<compile_context>
chip_gen: v5e
topology: v5e:2x2
jax: 0.10.0
libtpu: 0.0.40
codegen_flags: <defaults>
</compile_context>

<pallas_src>
import functools

import numpy as np
import jax
import jax.numpy as jnp
from jax import lax
from jax.experimental import pallas as pl
from jax.experimental.pallas import tpu as pltpu


# ----------------------------- configuration --------------------------------
L_IN = 2            # lmax_in + 1   (irreps_in up to l=1)
L_OUT = 2           # lmax_out + 1  (irreps_out up to l=1)
CORRELATION = 3
NUM_ELEMENTS = 4
NUM_CHANNELS = 4
N_NODES = 64

M1 = 2 * L_IN - 1
MO = 2 * L_OUT - 1
OFF = L_IN - L_OUT
D_IN = L_IN ** 2
D_OUT = L_OUT ** 2


def _pad8(n):
    return ((n + 7) // 8) * 8


DOP = _pad8(D_OUT)          # packed output rows padded to a full f32 sublane tile


def _tpu_flavor():
    """(num parallel lane tiles, matmul-operand dtype) chosen per TPU generation."""
    try:
        kind = jax.devices()[0].device_kind.lower()
    except Exception:
        kind = ""
    two_tc = ("v7" in kind) or ("7x" in kind)                  # v7x: 2 TensorCores/chip
    bf16 = two_tc or ("v6" in kind) or ("trillium" in kind)    # bf16-native MXU/VPU
    return (2 if two_tc else 1), (jnp.bfloat16 if bf16 else jnp.float32)


def _fourier_sizes():
    sizes = {1: M1}
    for nu in range(2, CORRELATION + 1):
        sizes[nu] = 2 * nu * (L_IN - 1) + 1
    return sizes


def _mask_indices(L):
    # positions j of row l (in an (L, 2L-1) grid) with |j - (L-1)| <= l,
    # flattened row-major -- identical to gen_mask() in the PyTorch module.
    idx = []
    for l in range(L):
        for j in range(2 * L - 1):
            if abs(j - (L - 1)) <= l:
                idx.append(l * (2 * L - 1) + j)
    return np.asarray(idx, dtype=np.int32)


def build_constants(rng):
    """Synthesize sh2f / f2sh coefficient tables and express them as dense
    matrices acting on flattened Fourier grids (output slicing folded in)."""
    # TODO(synk): the real module torch.load()s precomputed coefficient tables
    # (coefficient_sh2f.pt / coefficient_f2sh.pt); they are synthesized
    # deterministically here with the same shapes / contraction structure.
    sizes = _fourier_sizes()

    # sh2f bases: complex (L_in, 2L_in-1 [v], 2L_in-1 [u]);
    #   F[u, v] = sum_l feat[l, v] * sh2f[l, v, u]
    sh2f = rng.standard_normal((L_IN, M1, M1)) + 1j * rng.standard_normal((L_IN, M1, M1))
    S = np.zeros((M1 * M1, L_IN * M1), dtype=np.complex128)
    for u in range(M1):
        for v in range(M1):
            for l in range(L_IN):
                S[u * M1 + v, l * M1 + v] = sh2f[l, v, u]

    # f2sh bases per order nu: complex (L'=nu*(L_in-1)+1, U, V);
    #   sh[l, v] = sum_u F[u, v] * f2sh[l, u, v]
    # The output slice [:L_out, lmax-L_out+1 : lmax+L_out) is folded into G.
    f2sh_list, G_list = [], []
    for nu in range(2, CORRELATION + 1):
        lmax = nu * (L_IN - 1)
        Lp, Mn = lmax + 1, sizes[nu]
        f2sh = rng.standard_normal((Lp, Mn, Mn)) + 1j * rng.standard_normal((Lp, Mn, Mn))
        f2sh_list.append(f2sh)
        off_st = lmax - L_OUT + 1
        G = np.zeros((L_OUT * MO, Mn * Mn), dtype=np.complex128)
        for l in range(L_OUT):
            for m in range(MO):
                v = off_st + m
                for u in range(Mn):
                    G[l * MO + m, u * Mn + v] = f2sh[l, u, v]
        G_list.append(G)

    # selection of feat4D[:, :, :L_out, L_in-L_out : L_in+L_out-1] (nu = 1 term)
    SEL = np.zeros((L_OUT * MO, L_IN * M1), dtype=np.float64)
    for l in range(L_OUT):
        for m in range(MO):
            SEL[l * MO + m, l * M1 + OFF + m] = 1.0

    return dict(sizes=sizes, sh2f=sh2f, f2sh_list=f2sh_list,
                S=S, G_list=G_list, SEL=SEL)


# --------------------- build-time algebraic pre-folding -----------------------
def _pad_cols(mat, cols):
    out = np.zeros((mat.shape[0], cols), dtype=np.float64)
    out[:, :mat.shape[1]] = mat
    return out


def build_folded(consts, compute_dtype):
    sizes = consts['sizes']
    C = CORRELATION
    assert C >= 2
    K = {m: sizes[m] ** 2 for m in range(1, C + 1)}
    KP = {m: _pad8(K[m]) for m in range(1, C + 1)}
    ab = {nu: (nu // 2, nu - nu // 2) for nu in range(2, C + 1)}
    PKR = {nu: _pad8(K[ab[nu][0]] * K[ab[nu][1]]) for nu in range(2, C + 1)}

    # mask_i scatter / mask_o gather folded into the constants
    mi = _mask_indices(L_IN)
    mo = _mask_indices(L_OUT)
    scatter = np.zeros((L_IN * M1, D_IN))
    scatter[mi, np.arange(D_IN)] = 1.0
    gather = np.zeros((D_OUT, L_OUT * MO))
    gather[np.arange(D_OUT), mo] = 1.0

    S4 = consts['S'] @ scatter                               # (K[1], D_IN) complex
    SEL4 = gather @ consts['SEL'] @ scatter                  # (D_OUT, D_IN)
    G4 = {m: gather @ consts['G_list'][m - 2] for m in range(2, C + 1)}

    # 2-D conv placement matrices M_nu : (K[nu], K[a]*K[b]), 0/1
    Mconv = {}
    for nu in range(2, C + 1):
        a, b = ab[nu]
        Ma, Mb, Mc = sizes[a], sizes[b], sizes[nu]
        M = np.zeros((K[nu], K[a] * K[b]))
        for ua in range(Ma):
            for va in range(Ma):
                ka = ua * Ma + va
                for r in range(Mb):
                    for s in range(Mb):
                        M[(ua + r) * Mc + (va + s), ka * K[b] + r * Mb + s] = 1.0
        Mconv[nu] = M

    # Khatri-Rao row-expansion selectors, only for INTERMEDIATE orders' operands
    R = {}
    for nu in range(2, C):
        a, b = ab[nu]
        rows = np.arange(K[a] * K[b])
        Ra = np.zeros((K[a] * K[b], K[a]))
        Rb = np.zeros((K[a] * K[b], K[b]))
        Ra[rows, rows // K[b]] = 1.0
        Rb[rows, rows % K[b]] = 1.0
        R[(nu, 'a')] = Ra
        R[(nu, 'b')] = Rb

    aC, bC = ab[C]
    raw_needed = set(ab[C])     # orders whose RAW Fourier grid the final order consumes

    loc = {}        # (nu, side) -> (src stage id, re row offset, im row offset)
    raw_off = {}    # order m    -> (src stage id, re row offset, im row offset)

    # ---- stage 1: ONE block-diagonal matmul against [feat ; weights] ----------
    n_act = D_IN + C * L_OUT
    blocks1, row = [], 0

    def put1(mat, nrows):                       # block living in the feat columns
        nonlocal row
        blk = np.zeros((nrows, n_act))
        blk[:mat.shape[0], :D_IN] = mat
        blocks1.append(blk)
        off = row
        row += nrows
        return off

    for nu in range(2, C):                      # expansions for intermediate orders
        for side, src in zip(('a', 'b'), ab[nu]):
            if src != 1:
                continue
            re_off = put1(R[(nu, side)] @ S4.real, PKR[nu])
            im_off = put1(R[(nu, side)] @ S4.imag, PKR[nu])
            loc[(nu, side)] = (1, re_off, im_off)
    if 1 in raw_needed:                         # raw fs1 grid for the final order
        re_off = put1(S4.real, KP[1])
        im_off = put1(S4.imag, KP[1])
        raw_off[1] = (1, re_off, im_off)
    sel_off = put1(SEL4, DOP)                   # nu = 1 selected term

    # per-element weight expansion block lives in the weight columns
    l_of = [l for l in range(L_OUT) for _ in range(2 * l + 1)]
    wexp_blk = np.zeros((C * DOP, n_act))
    for k in range(C):
        for r, l in enumerate(l_of):
            wexp_blk[k * DOP + r, D_IN + k * L_OUT + l] = 1.0
    blocks1.append(wexp_blk)
    wexp_off = row
    row += C * DOP
    stage1 = np.vstack(blocks1)                 # (rows1, D_IN + C*L_OUT)

    # ---- stages 2..C-1: ONE matmul per order on [p_re ; p_im]:
    #      later-order expansions + raw grid (if the final order needs it) + sh rows
    stages, sh_off = {}, {}
    for m in range(2, C):
        Mp = _pad_cols(Mconv[m], PKR[m])        # (K[m], PKR[m])
        two = 2 * PKR[m]
        blks, r2 = [], 0

        def putm(mat_re, mat_im, nrows):
            nonlocal r2
            blk = np.zeros((nrows, two))
            if mat_re is not None:
                blk[:mat_re.shape[0], :PKR[m]] = mat_re
            if mat_im is not None:
                blk[:mat_im.shape[0], PKR[m]:] = mat_im
            blks.append(blk)
            off = r2
            r2 += nrows
            return off

        for nu in range(m + 1, C):
            for side, src in zip(('a', 'b'), ab[nu]):
                if src != m:
                    continue
                re_off = putm(R[(nu, side)] @ Mp, None, PKR[nu])
                im_off = putm(None, R[(nu, side)] @ Mp, PKR[nu])
                loc[(nu, side)] = (m, re_off, im_off)
        if m in raw_needed:
            re_off = putm(Mp, None, KP[m])
            im_off = putm(None, Mp, KP[m])
            raw_off[m] = (m, re_off, im_off)
        sh_off[m] = putm(G4[m].real @ Mp, -(G4[m].imag @ Mp), DOP)
        stages[m] = np.vstack(blks)

    # ---- final order: blocked conv placement with f2sh projection folded in,
    #      acting on per-row broadcast Khatri-Rao blocks built in-kernel.
    gC_re = G4[C].real @ Mconv[C]               # (D_OUT, K[aC]*K[bC])
    gC_im = G4[C].imag @ Mconv[C]
    gC_blk = np.zeros((DOP, 2 * K[aC] * KP[bC]))
    for ka in range(K[aC]):
        src = slice(ka * K[bC], (ka + 1) * K[bC])
        gC_blk[:D_OUT, ka * KP[bC]: ka * KP[bC] + K[bC]] = gC_re[:, src]
        gC_blk[:D_OUT, (K[aC] + ka) * KP[bC]: (K[aC] + ka) * KP[bC] + K[bC]] = -gC_im[:, src]

    cast = lambda x: jnp.asarray(x, compute_dtype)
    mats = dict(stage1=cast(stage1),
                stages={m: cast(stages[m]) for m in stages},
                gC=cast(gC_blk))
    meta = dict(C=C, K=K, KP=KP, PKR=PKR, ab=ab,
                loc=loc, raw_off=raw_off, sh_off=sh_off,
                sel_off=sel_off, wexp_off=wexp_off)
    return mats, meta


# ------------------------------- Pallas kernel -------------------------------
def emtp_kernel(*refs, meta, compute_dtype):
    C = meta['C']
    K, KP, PKR, ab = meta['K'], meta['KP'], meta['PKR'], meta['ab']
    loc, raw_off, sh_off = meta['loc'], meta['raw_off'], meta['sh_off']
    sel_off, wexp_off = meta['sel_off'], meta['wexp_off']

    it = iter(refs)
    act_ref = next(it)
    s1_ref = next(it)
    stage_ref = {m: next(it) for m in range(2, C)}
    gC_ref = next(it)
    out_ref = next(it)

    def mm(const_ref, rhs):
        lhs = const_ref[...]
        if compute_dtype == jnp.bfloat16:
            return jnp.dot(lhs, rhs.astype(jnp.bfloat16),
                           preferred_element_type=jnp.float32)
        return jnp.dot(lhs, rhs, preferred_element_type=jnp.float32,
                       precision=lax.Precision.HIGHEST)

    act = act_ref[...]                                    # (D_IN + C*L_OUT, TB) f32

    # stage 1: all order-1 derived row blocks + the weight expansion, one matmul
    s1 = mm(s1_ref, act)
    outs = {1: s1}

    def w_rows(nu):
        return s1[wexp_off + (nu - 1) * DOP: wexp_off + nu * DOP]

    res = s1[sel_off: sel_off + DOP] * w_rows(1)          # nu = 1 term

    # intermediate orders: KR product (VPU, f32) + one placement/projection matmul
    for nu in range(2, C):
        n = PKR[nu]
        sa, oar, oai = loc[(nu, 'a')]
        sb, obr, obi = loc[(nu, 'b')]
        a_re, a_im = outs[sa][oar:oar + n], outs[sa][oai:oai + n]
        b_re, b_im = outs[sb][obr:obr + n], outs[sb][obi:obi + n]
        p_re = a_re * b_re - a_im * b_im
        p_im = a_re * b_im + a_im * b_re
        o = mm(stage_ref[nu], jnp.concatenate([p_re, p_im], axis=0))
        outs[nu] = o
        res = res + o[sh_off[nu]: sh_off[nu] + DOP] * w_rows(nu)

    # final order: per-row broadcast KR blocks against the RAW previous grids,
    # conv placement + f2sh projection folded into a single matmul.
    a, b = ab[C]
    sa, oar, oai = raw_off[a]
    sb, obr, obi = raw_off[b]
    a_re, a_im = outs[sa][oar:oar + KP[a]], outs[sa][oai:oai + KP[a]]
    b_re, b_im = outs[sb][obr:obr + KP[b]], outs[sb][obi:obi + KP[b]]
    blocks = [a_re[ka:ka + 1] * b_re - a_im[ka:ka + 1] * b_im for ka in range(K[a])]
    blocks += [a_re[ka:ka + 1] * b_im + a_im[ka:ka + 1] * b_re for ka in range(K[a])]
    sh = mm(gC_ref, jnp.concatenate(blocks, axis=0))
    res = res + sh * w_rows(C)

    out_ref[...] = res                                    # (DOP, TB); rows >= L_OUT**2 are 0


# ------------------------------ wrapper (glue) --------------------------------
def build_forward(consts, params):
    n_tiles, compute_dtype = _tpu_flavor()
    mats, meta = build_folded(consts, compute_dtype)
    C = CORRELATION
    B = N_NODES * NUM_CHANNELS

    # lane tile per grid step: one step on single-TC chips, one tile per TC on v7x
    TB = B
    if n_tiles > 1 and B % (128 * n_tiles) == 0:
        TB = B // n_tiles
    assert B % TB == 0 and TB % 128 == 0
    grid = (B // TB,)

    const_list = ([mats['stage1']]
                  + [mats['stages'][m] for m in range(2, C)]
                  + [mats['gC']])
    n_act = D_IN + C * L_OUT

    def lane_spec(rows):
        return pl.BlockSpec((rows, TB), lambda i: (0, i))

    def const_spec(arr):
        return pl.BlockSpec(arr.shape, lambda i: (0, 0))

    in_specs = [lane_spec(n_act)] + [const_spec(a) for a in const_list]

    # advisory cost estimate so XLA schedules the surrounding glue well
    mm_macs = mats['stage1'].shape[0] * mats['stage1'].shape[1]
    for m in range(2, C):
        mm_macs += mats['stages'][m].shape[0] * mats['stages'][m].shape[1]
    mm_macs += mats['gC'].shape[0] * mats['gC'].shape[1]
    vpu_ops = 6 * sum(meta['PKR'][nu] for nu in range(2, C))
    vpu_ops += 6 * 2 * meta['K'][meta['ab'][C][0]] * meta['KP'][meta['ab'][C][1]]
    vpu_ops += 2 * (C + 1) * DOP
    const_bytes = sum(int(a.size) * a.dtype.itemsize for a in const_list)
    cost = pl.CostEstimate(flops=int((2 * mm_macs + vpu_ops) * B),
                           transcendentals=0,
                           bytes_accessed=int(4 * (n_act + DOP) * B + const_bytes))

    pk = pl.pallas_call(
        functools.partial(emtp_kernel, meta=meta, compute_dtype=compute_dtype),
        out_shape=jax.ShapeDtypeStruct((DOP, B), jnp.float32),
        grid=grid,
        in_specs=in_specs,
        out_specs=lane_spec(DOP),
        compiler_params=pltpu.CompilerParams(dimension_semantics=("parallel",)),
        cost_estimate=cost,
    )

    W_stack = jnp.concatenate([params[nu] for nu in range(1, C + 1)], axis=0)  # (C, E, Cch, L_out)

    @jax.jit
    def forward(atom_feat, atom_type):
        # atom_feat: (N, Cch, L_in**2) f32, atom_type: (N, E) f32 (one-hot)
        n = atom_feat.shape[0]
        b = n * NUM_CHANNELS
        # TODO(synk): accepting/producing the structure-major (rows, batch) layout at
        # the model level would remove the transpose / repack glue below entirely.
        feat_k = atom_feat.reshape(b, D_IN).T                                # (D_IN, B)
        w_k = jnp.einsum('ne,kecl->klnc', atom_type, W_stack).reshape(C * L_OUT, b)
        act = jnp.concatenate([feat_k, w_k], axis=0)                         # one kernel activation
        out = pk(act, *const_list)                                           # (DOP, B)
        res = out[:D_OUT].reshape(D_OUT, n, NUM_CHANNELS)
        # irreps re-packing (mask_o gather already folded into the constants)
        pieces, start = [], 0
        for l in range(L_OUT):
            sz = 2 * l + 1
            pieces.append(res[start:start + sz].transpose(1, 2, 0).reshape(n, -1))
            start += sz
        return jnp.concatenate(pieces, axis=-1)                              # (N, Cch*L_out**2)

    return forward, compute_dtype


# -------------------------- numpy reference (float64) -------------------------
def reference_forward(atom_feat, atom_type, W_list, consts):
    sh2f = consts['sh2f']
    f2sh_list = consts['f2sh_list']
    n = atom_feat.shape[0]
    mi = _mask_indices(L_IN)
    mo = _mask_indices(L_OUT)

    feat3d = np.zeros((n, NUM_CHANNELS, L_IN * M1))
    feat3d[:, :, mi] = atom_feat
    feat4d = feat3d.reshape(n, NUM_CHANNELS, L_IN, M1)

    def w_of(nu):
        return np.einsum('ne,ecl->ncl', atom_type, W_list[nu - 1][0])

    result = feat4d[:, :, :L_OUT, L_IN - L_OUT: L_IN + L_OUT - 1] * w_of(1)[..., None]

    def conv_full(A, Bm):
        Ma, Mb = A.shape[-1], Bm.shape[-1]
        Mc = Ma + Mb - 1
        out = np.zeros(A.shape[:-2] + (Mc, Mc), dtype=np.complex128)
        for u in range(Ma):
            for v in range(Ma):
                out[..., u:u + Mb, v:v + Mb] += A[..., u:u + 1, v:v + 1] * Bm
        return out

    fs = {1: np.einsum('nclv,lvu->ncuv', feat4d.astype(np.complex128), sh2f)}
    for nu in range(2, CORRELATION + 1):
        fs[nu] = conv_full(fs[nu // 2], fs[nu // 2 + (nu % 2)])
        lmax = nu * (L_IN - 1)
        sh = np.einsum('ncuv,luv->nclv', fs[nu], f2sh_list[nu - 2])
        result = result + w_of(nu)[..., None] * sh.real[:, :, :L_OUT,
                                                        lmax - L_OUT + 1: lmax + L_OUT]

    if L_OUT == 1:
        return result.reshape(n, NUM_CHANNELS)
    result3d = result.reshape(n, NUM_CHANNELS, -1)[:, :, mo]
    pieces, start = [], 0
    for l in range(L_OUT):
        sz = 2 * l + 1
        pieces.append(result3d[:, :, start:start + sz].reshape(n, -1))
        start += sz
    return np.concatenate(pieces, axis=-1)


# ------------------------------------ main ------------------------------------
if __name__ == "__main__":
    # TODO(synk): the original forward runs e3nn assert_equivariant on first call;
    # skipped here (no e3nn), semantics of the compute path are unaffected.
    consts = build_constants(np.random.default_rng(0))

    key = jax.random.PRNGKey(0)
    keys = jax.random.split(key, CORRELATION + 2)
    params = {nu: jax.random.normal(keys[nu - 1],
                                    (1, NUM_ELEMENTS, NUM_CHANNELS, L_OUT),
                                    dtype=jnp.float32)
              for nu in range(1, CORRELATION + 1)}

    atom_feat = jax.random.normal(keys[-2], (N_NODES, NUM_CHANNELS, L_IN ** 2),
                                  dtype=jnp.float32)
    types = jax.random.randint(keys[-1], (N_NODES,), 0, NUM_ELEMENTS)
    atom_type = jax.nn.one_hot(types, NUM_ELEMENTS, dtype=jnp.float32)

    forward, compute_dtype = build_forward(consts, params)
    out = jax.block_until_ready(forward(atom_feat, atom_type))

    ref = reference_forward(
        np.asarray(atom_feat, np.float64),
        np.asarray(atom_type, np.float64),
        [np.asarray(params[nu], np.float64) for nu in range(1, CORRELATION + 1)],
        consts)

    assert out.shape == (N_NODES, NUM_CHANNELS * L_OUT ** 2), out.shape
    err = np.max(np.abs(np.asarray(out, np.float64) - ref)) / (np.max(np.abs(ref)) + 1e-9)
    tol = 5e-2 if compute_dtype == jnp.bfloat16 else 1e-3
    assert err < tol, f"mismatch vs reference: normalized max error {err:.3e} (tol {tol:.0e})"
    print("KERNEL_OK")
</pallas_src>

<mosaic_0001>
module attributes {stable_mosaic.version = 11 : i64} {
  func.func @emtp_kernel(%arg0: i32, %arg1: memref<10x256xf32, #tpu.memory_space<vmem>>, %arg2: memref<416x10xf32, #tpu.memory_space<vmem>>, %arg3: memref<72x176xf32, #tpu.memory_space<vmem>>, %arg4: memref<8x576xf32, #tpu.memory_space<vmem>>, %arg5: memref<8x256xf32, #tpu.memory_space<vmem>>) attributes {dimension_semantics = [#tpu.dimension_semantics<parallel>], iteration_bounds = array<i64: 1>, scalar_prefetch = 0 : i64, scratch_operands = 0 : i64, tpu.core_type = #tpu.core_type<tc>, window_params = [{transform_indices = @transform_0, window_bounds = array<i64: 10, 256>}, {pipeline_mode = #tpu.pipeline_mode<synchronous>, transform_indices = @transform_1, window_bounds = array<i64: 416, 10>}, {pipeline_mode = #tpu.pipeline_mode<synchronous>, transform_indices = @transform_2, window_bounds = array<i64: 72, 176>}, {pipeline_mode = #tpu.pipeline_mode<synchronous>, transform_indices = @transform_3, window_bounds = array<i64: 8, 576>}, {transform_indices = @transform_4, window_bounds = array<i64: 8, 256>}]} {
    %c0 = arith.constant 0 : index
    %c0_0 = arith.constant 0 : index
    %0 = vector.load %arg1[%c0, %c0_0] : memref<10x256xf32, #tpu.memory_space<vmem>>, vector<10x256xf32>
    %c0_1 = arith.constant 0 : index
    %c0_2 = arith.constant 0 : index
    %1 = vector.load %arg2[%c0_1, %c0_2] : memref<416x10xf32, #tpu.memory_space<vmem>>, vector<416x10xf32>
    %cst = arith.constant dense<0.000000e+00> : vector<416x256xf32>
    %2 = tpu.matmul %1, %0, %cst {dimension_numbers = #tpu.dot_dimension_numbers<[1], [0], [0], [1], [0, 0, 1, 1], [], []>, precision = #tpu.contract_precision<fp32>} : vector<416x10xf32>, vector<10x256xf32>, vector<416x256xf32> -> vector<416x256xf32>
    %3 = vector.extract_strided_slice %2 {offsets = [384, 0], sizes = [8, 256], strides = [1, 1]} : vector<416x256xf32> to vector<8x256xf32>
    %4 = vector.extract_strided_slice %2 {offsets = [392, 0], sizes = [8, 256], strides = [1, 1]} : vector<416x256xf32> to vector<8x256xf32>
    %5 = arith.mulf %3, %4 : vector<8x256xf32>
    %6 = vector.extract_strided_slice %2 {offsets = [0, 0], sizes = [88, 256], strides = [1, 1]} : vector<416x256xf32> to vector<88x256xf32>
    %7 = vector.extract_strided_slice %2 {offsets = [88, 0], sizes = [88, 256], strides = [1, 1]} : vector<416x256xf32> to vector<88x256xf32>
    %8 = vector.extract_strided_slice %2 {offsets = [176, 0], sizes = [88, 256], strides = [1, 1]} : vector<416x256xf32> to vector<88x256xf32>
    %9 = vector.extract_strided_slice %2 {offsets = [264, 0], sizes = [88, 256], strides = [1, 1]} : vector<416x256xf32> to vector<88x256xf32>
    %10 = arith.mulf %6, %8 : vector<88x256xf32>
    %11 = arith.mulf %7, %9 : vector<88x256xf32>
    %12 = arith.subf %10, %11 : vector<88x256xf32>
    %13 = arith.mulf %6, %9 : vector<88x256xf32>
    %14 = arith.mulf %7, %8 : vector<88x256xf32>
    %15 = arith.addf %13, %14 : vector<88x256xf32>
    %16 = tpu.concatenate %12, %15 in 0 : vector<88x256xf32>, vector<88x256xf32> -> vector<176x256xf32>
    %c0_3 = arith.constant 0 : index
    %c0_4 = arith.constant 0 : index
    %17 = vector.load %arg3[%c0_3, %c0_4] : memref<72x176xf32, #tpu.memory_space<vmem>>, vector<72x176xf32>
    %cst_5 = arith.constant dense<0.000000e+00> : vector<72x256xf32>
    %18 = tpu.matmul %17, %16, %cst_5 {dimension_numbers = #tpu.dot_dimension_numbers<[1], [0], [0], [1], [0, 0, 1, 1], [], []>, precision = #tpu.contract_precision<fp32>} : vector<72x176xf32>, vector<176x256xf32>, vector<72x256xf32> -> vector<72x256xf32>
    %19 = vector.extract_strided_slice %18 {offsets = [64, 0], sizes = [8, 256], strides = [1, 1]} : vector<72x256xf32> to vector<8x256xf32>
    %20 = vector.extract_strided_slice %2 {offsets = [400, 0], sizes = [8, 256], strides = [1, 1]} : vector<416x256xf32> to vector<8x256xf32>
    %21 = arith.mulf %19, %20 : vector<8x256xf32>
    %22 = arith.addf %5, %21 : vector<8x256xf32>
    %23 = vector.extract_strided_slice %2 {offsets = [352, 0], sizes = [16, 256], strides = [1, 1]} : vector<416x256xf32> to vector<16x256xf32>
    %24 = vector.extract_strided_slice %2 {offsets = [368, 0], sizes = [16, 256], strides = [1, 1]} : vector<416x256xf32> to vector<16x256xf32>
    %25 = vector.extract_strided_slice %18 {offsets = [0, 0], sizes = [32, 256], strides = [1, 1]} : vector<72x256xf32> to vector<32x256xf32>
    %26 = vector.extract_strided_slice %18 {offsets = [32, 0], sizes = [32, 256], strides = [1, 1]} : vector<72x256xf32> to vector<32x256xf32>
    %27 = vector.extract_strided_slice %23 {offsets = [0, 0], sizes = [1, 256], strides = [1, 1]} : vector<16x256xf32> to vector<1x256xf32>
    %28 = vector.broadcast %27 : vector<1x256xf32> to vector<32x256xf32>
    %29 = arith.mulf %28, %25 : vector<32x256xf32>
    %30 = vector.extract_strided_slice %24 {offsets = [0, 0], sizes = [1, 256], strides = [1, 1]} : vector<16x256xf32> to vector<1x256xf32>
    %31 = vector.broadcast %30 : vector<1x256xf32> to vector<32x256xf32>
    %32 = arith.mulf %31, %26 : vector<32x256xf32>
    %33 = arith.subf %29, %32 : vector<32x256xf32>
    %34 = vector.extract_strided_slice %23 {offsets = [1, 0], sizes = [1, 256], strides = [1, 1]} : vector<16x256xf32> to vector<1x256xf32>
    %35 = vector.broadcast %34 : vector<1x256xf32> to vector<32x256xf32>
    %36 = arith.mulf %35, %25 : vector<32x256xf32>
    %37 = vector.extract_strided_slice %24 {offsets = [1, 0], sizes = [1, 256], strides = [1, 1]} : vector<16x256xf32> to vector<1x256xf32>
    %38 = vector.broadcast %37 : vector<1x256xf32> to vector<32x256xf32>
    %39 = arith.mulf %38, %26 : vector<32x256xf32>
    %40 = arith.subf %36, %39 : vector<32x256xf32>
    %41 = vector.extract_strided_slice %23 {offsets = [2, 0], sizes = [1, 256], strides = [1, 1]} : vector<16x256xf32> to vector<1x256xf32>
    %42 = vector.broadcast %41 : vector<1x256xf32> to vector<32x256xf32>
    %43 = arith.mulf %42, %25 : vector<32x256xf32>
    %44 = vector.extract_strided_slice %24 {offsets = [2, 0], sizes = [1, 256], strides = [1, 1]} : vector<16x256xf32> to vector<1x256xf32>
    %45 = vector.broadcast %44 : vector<1x256xf32> to vector<32x256xf32>
    %46 = arith.mulf %45, %26 : vector<32x256xf32>
    %47 = arith.subf %43, %46 : vector<32x256xf32>
    %48 = vector.extract_strided_slice %23 {offsets = [3, 0], sizes = [1, 256], strides = [1, 1]} : vector<16x256xf32> to vector<1x256xf32>
    %49 = vector.broadcast %48 : vector<1x256xf32> to vector<32x256xf32>
    %50 = arith.mulf %49, %25 : vector<32x256xf32>
    %51 = vector.extract_strided_slice %24 {offsets = [3, 0], sizes = [1, 256], strides = [1, 1]} : vector<16x256xf32> to vector<1x256xf32>
    %52 = vector.broadcast %51 : vector<1x256xf32> to vector<32x256xf32>
    %53 = arith.mulf %52, %26 : vector<32x256xf32>
    %54 = arith.subf %50, %53 : vector<32x256xf32>
    %55 = vector.extract_strided_slice %23 {offsets = [4, 0], sizes = [1, 256], strides = [1, 1]} : vector<16x256xf32> to vector<1x256xf32>
    %56 = vector.broadcast %55 : vector<1x256xf32> to vector<32x256xf32>
    %57 = arith.mulf %56, %25 : vector<32x256xf32>
    %58 = vector.extract_strided_slice %24 {offsets = [4, 0], sizes = [1, 256], strides = [1, 1]} : vector<16x256xf32> to vector<1x256xf32>
    %59 = vector.broadcast %58 : vector<1x256xf32> to vector<32x256xf32>
    %60 = arith.mulf %59, %26 : vector<32x256xf32>
    %61 = arith.subf %57, %60 : vector<32x256xf32>
    %62 = vector.extract_strided_slice %23 {offsets = [5, 0], sizes = [1, 256], strides = [1, 1]} : vector<16x256xf32> to vector<1x256xf32>
    %63 = vector.broadcast %62 : vector<1x256xf32> to vector<32x256xf32>
    %64 = arith.mulf %63, %25 : vector<32x256xf32>
    %65 = vector.extract_strided_slice %24 {offsets = [5, 0], sizes = [1, 256], strides = [1, 1]} : vector<16x256xf32> to vector<1x256xf32>
    %66 = vector.broadcast %65 : vector<1x256xf32> to vector<32x256xf32>
    %67 = arith.mulf %66, %26 : vector<32x256xf32>
    %68 = arith.subf %64, %67 : vector<32x256xf32>
    %69 = vector.extract_strided_slice %23 {offsets = [6, 0], sizes = [1, 256], strides = [1, 1]} : vector<16x256xf32> to vector<1x256xf32>
    %70 = vector.broadcast %69 : vector<1x256xf32> to vector<32x256xf32>
    %71 = arith.mulf %70, %25 : vector<32x256xf32>
    %72 = vector.extract_strided_slice %24 {offsets = [6, 0], sizes = [1, 256], strides = [1, 1]} : vector<16x256xf32> to vector<1x256xf32>
    %73 = vector.broadcast %72 : vector<1x256xf32> to vector<32x256xf32>
    %74 = arith.mulf %73, %26 : vector<32x256xf32>
    %75 = arith.subf %71, %74 : vector<32x256xf32>
    %76 = vector.extract_strided_slice %23 {offsets = [7, 0], sizes = [1, 256], strides = [1, 1]} : vector<16x256xf32> to vector<1x256xf32>
    %77 = vector.broadcast %76 : vector<1x256xf32> to vector<32x256xf32>
    %78 = arith.mulf %77, %25 : vector<32x256xf32>
    %79 = vector.extract_strided_slice %24 {offsets = [7, 0], sizes = [1, 256], strides = [1, 1]} : vector<16x256xf32> to vector<1x256xf32>
    %80 = vector.broadcast %79 : vector<1x256xf32> to vector<32x256xf32>
    %81 = arith.mulf %80, %26 : vector<32x256xf32>
    %82 = arith.subf %78, %81 : vector<32x256xf32>
    %83 = vector.extract_strided_slice %23 {offsets = [8, 0], sizes = [1, 256], strides = [1, 1]} : vector<16x256xf32> to vector<1x256xf32>
    %84 = vector.broadcast %83 : vector<1x256xf32> to vector<32x256xf32>
    %85 = arith.mulf %84, %25 : vector<32x256xf32>
    %86 = vector.extract_strided_slice %24 {offsets = [8, 0], sizes = [1, 256], strides = [1, 1]} : vector<16x256xf32> to vector<1x256xf32>
    %87 = vector.broadcast %86 : vector<1x256xf32> to vector<32x256xf32>
    %88 = arith.mulf %87, %26 : vector<32x256xf32>
    %89 = arith.subf %85, %88 : vector<32x256xf32>
    %90 = vector.extract_strided_slice %23 {offsets = [0, 0], sizes = [1, 256], strides = [1, 1]} : vector<16x256xf32> to vector<1x256xf32>
    %91 = vector.broadcast %90 : vector<1x256xf32> to vector<32x256xf32>
    %92 = arith.mulf %91, %26 : vector<32x256xf32>
    %93 = vector.extract_strided_slice %24 {offsets = [0, 0], sizes = [1, 256], strides = [1, 1]} : vector<16x256xf32> to vector<1x256xf32>
    %94 = vector.broadcast %93 : vector<1x256xf32> to vector<32x256xf32>
    %95 = arith.mulf %94, %25 : vector<32x256xf32>
    %96 = arith.addf %92, %95 : vector<32x256xf32>
    %97 = vector.extract_strided_slice %23 {offsets = [1, 0], sizes = [1, 256], strides = [1, 1]} : vector<16x256xf32> to vector<1x256xf32>
    %98 = vector.broadcast %97 : vector<1x256xf32> to vector<32x256xf32>
    %99 = arith.mulf %98, %26 : vector<32x256xf32>
    %100 = vector.extract_strided_slice %24 {offsets = [1, 0], sizes = [1, 256], strides = [1, 1]} : vector<16x256xf32> to vector<1x256xf32>
    %101 = vector.broadcast %100 : vector<1x256xf32> to vector<32x256xf32>
    %102 = arith.mulf %101, %25 : vector<32x256xf32>
    %103 = arith.addf %99, %102 : vector<32x256xf32>
    %104 = vector.extract_strided_slice %23 {offsets = [2, 0], sizes = [1, 256], strides = [1, 1]} : vector<16x256xf32> to vector<1x256xf32>
    %105 = vector.broadcast %104 : vector<1x256xf32> to vector<32x256xf32>
    %106 = arith.mulf %105, %26 : vector<32x256xf32>
    %107 = vector.extract_strided_slice %24 {offsets = [2, 0], sizes = [1, 256], strides = [1, 1]} : vector<16x256xf32> to vector<1x256xf32>
    %108 = vector.broadcast %107 : vector<1x256xf32> to vector<32x256xf32>
    %109 = arith.mulf %108, %25 : vector<32x256xf32>
    %110 = arith.addf %106, %109 : vector<32x256xf32>
    %111 = vector.extract_strided_slice %23 {offsets = [3, 0], sizes = [1, 256], strides = [1, 1]} : vector<16x256xf32> to vector<1x256xf32>
    %112 = vector.broadcast %111 : vector<1x256xf32> to vector<32x256xf32>
    %113 = arith.mulf %112, %26 : vector<32x256xf32>
    %114 = vector.extract_strided_slice %24 {offsets = [3, 0], sizes = [1, 256], strides = [1, 1]} : vector<16x256xf32> to vector<1x256xf32>
    %115 = vector.broadcast %114 : vector<1x256xf32> to vector<32x256xf32>
    %116 = arith.mulf %115, %25 : vector<32x256xf32>
    %117 = arith.addf %113, %116 : vector<32x256xf32>
    %118 = vector.extract_strided_slice %23 {offsets = [4, 0], sizes = [1, 256], strides = [1, 1]} : vector<16x256xf32> to vector<1x256xf32>
    %119 = vector.broadcast %118 : vector<1x256xf32> to vector<32x256xf32>
    %120 = arith.mulf %119, %26 : vector<32x256xf32>
    %121 = vector.extract_strided_slice %24 {offsets = [4, 0], sizes = [1, 256], strides = [1, 1]} : vector<16x256xf32> to vector<1x256xf32>
    %122 = vector.broadcast %121 : vector<1x256xf32> to vector<32x256xf32>
    %123 = arith.mulf %122, %25 : vector<32x256xf32>
    %124 = arith.addf %120, %123 : vector<32x256xf32>
    %125 = vector.extract_strided_slice %23 {offsets = [5, 0], sizes = [1, 256], strides = [1, 1]} : vector<16x256xf32> to vector<1x256xf32>
    %126 = vector.broadcast %125 : vector<1x256xf32> to vector<32x256xf32>
    %127 = arith.mulf %126, %26 : vector<32x256xf32>
    %128 = vector.extract_strided_slice %24 {offsets = [5, 0], sizes = [1, 256], strides = [1, 1]} : vector<16x256xf32> to vector<1x256xf32>
    %129 = vector.broadcast %128 : vector<1x256xf32> to vector<32x256xf32>
    %130 = arith.mulf %129, %25 : vector<32x256xf32>
    %131 = arith.addf %127, %130 : vector<32x256xf32>
    %132 = vector.extract_strided_slice %23 {offsets = [6, 0], sizes = [1, 256], strides = [1, 1]} : vector<16x256xf32> to vector<1x256xf32>
    %133 = vector.broadcast %132 : vector<1x256xf32> to vector<32x256xf32>
    %134 = arith.mulf %133, %26 : vector<32x256xf32>
    %135 = vector.extract_strided_slice %24 {offsets = [6, 0], sizes = [1, 256], strides = [1, 1]} : vector<16x256xf32> to vector<1x256xf32>
    %136 = vector.broadcast %135 : vector<1x256xf32> to vector<32x256xf32>
    %137 = arith.mulf %136, %25 : vector<32x256xf32>
    %138 = arith.addf %134, %137 : vector<32x256xf32>
    %139 = vector.extract_strided_slice %23 {offsets = [7, 0], sizes = [1, 256], strides = [1, 1]} : vector<16x256xf32> to vector<1x256xf32>
    %140 = vector.broadcast %139 : vector<1x256xf32> to vector<32x256xf32>
    %141 = arith.mulf %140, %26 : vector<32x256xf32>
    %142 = vector.extract_strided_slice %24 {offsets = [7, 0], sizes = [1, 256], strides = [1, 1]} : vector<16x256xf32> to vector<1x256xf32>
    %143 = vector.broadcast %142 : vector<1x256xf32> to vector<32x256xf32>
    %144 = arith.mulf %143, %25 : vector<32x256xf32>
    %145 = arith.addf %141, %144 : vector<32x256xf32>
    %146 = vector.extract_strided_slice %23 {offsets = [8, 0], sizes = [1, 256], strides = [1, 1]} : vector<16x256xf32> to vector<1x256xf32>
    %147 = vector.broadcast %146 : vector<1x256xf32> to vector<32x256xf32>
    %148 = arith.mulf %147, %26 : vector<32x256xf32>
    %149 = vector.extract_strided_slice %24 {offsets = [8, 0], sizes = [1, 256], strides = [1, 1]} : vector<16x256xf32> to vector<1x256xf32>
    %150 = vector.broadcast %149 : vector<1x256xf32> to vector<32x256xf32>
    %151 = arith.mulf %150, %25 : vector<32x256xf32>
    %152 = arith.addf %148, %151 : vector<32x256xf32>
    %153 = tpu.concatenate %33, %40, %47, %54, %61, %68, %75, %82, %89, %96, %103, %110, %117, %124, %131, %138 in 0 : vector<32x256xf32>, vector<32x256xf32>, vector<32x256xf32>, vector<32x256xf32>, vector<32x256xf32>, vector<32x256xf32>, vector<32x256xf32>, vector<32x256xf32>, vector<32x256xf32>, vector<32x256xf32>, vector<32x256xf32>, vector<32x256xf32>, vector<32x256xf32>, vector<32x256xf32>, vector<32x256xf32>, vector<32x256xf32> -> vector<512x256xf32>
    %154 = tpu.concatenate %145, %152 in 0 : vector<32x256xf32>, vector<32x256xf32> -> vector<64x256xf32>
    %155 = tpu.concatenate %153, %154 in 0 : vector<512x256xf32>, vector<64x256xf32> -> vector<576x256xf32>
    %c0_6 = arith.constant 0 : index
    %c0_7 = arith.constant 0 : index
    %156 = vector.load %arg4[%c0_6, %c0_7] : memref<8x576xf32, #tpu.memory_space<vmem>>, vector<8x576xf32>
    %cst_8 = arith.constant dense<0.000000e+00> : vector<8x256xf32>
    %157 = tpu.matmul %156, %155, %cst_8 {dimension_numbers = #tpu.dot_dimension_numbers<[1], [0], [0], [1], [0, 0, 1, 1], [], []>, precision = #tpu.contract_precision<fp32>} : vector<8x576xf32>, vector<576x256xf32>, vector<8x256xf32> -> vector<8x256xf32>
    %158 = vector.extract_strided_slice %2 {offsets = [408, 0], sizes = [8, 256], strides = [1, 1]} : vector<416x256xf32> to vector<8x256xf32>
    %159 = arith.mulf %157, %158 : vector<8x256xf32>
    %160 = arith.addf %22, %159 : vector<8x256xf32>
    %c0_9 = arith.constant 0 : index
    %c0_10 = arith.constant 0 : index
    %161 = vector.load %arg5[%c0_9, %c0_10] : memref<8x256xf32, #tpu.memory_space<vmem>>, vector<8x256xf32>
    tpu.vector_store %arg5[%c0_9, %c0_10], %160 {strides = array<i32>} : memref<8x256xf32, #tpu.memory_space<vmem>>, vector<8x256xf32>,
    return
  }
  func.func @transform_0(%arg0: i32) -> (i32, i32) {
    %c0_i32 = arith.constant 0 : i32
    %c0_i32_0 = arith.constant 0 : i32
    return %c0_i32, %arg0 : i32, i32
  }
  func.func @transform_1(%arg0: i32) -> (i32, i32) {
    %c0_i32 = arith.constant 0 : i32
    %c0_i32_0 = arith.constant 0 : i32
    %c0_i32_1 = arith.constant 0 : i32
    return %c0_i32, %c0_i32_0 : i32, i32
  }
  func.func @transform_2(%arg0: i32) -> (i32, i32) {
    %c0_i32 = arith.constant 0 : i32
    %c0_i32_0 = arith.constant 0 : i32
    %c0_i32_1 = arith.constant 0 : i32
    return %c0_i32, %c0_i32_0 : i32, i32
  }
  func.func @transform_3(%arg0: i32) -> (i32, i32) {
    %c0_i32 = arith.constant 0 : i32
    %c0_i32_0 = arith.constant 0 : i32
    %c0_i32_1 = arith.constant 0 : i32
    return %c0_i32, %c0_i32_0 : i32, i32
  }
  func.func @transform_4(%arg0: i32) -> (i32, i32) {
    %c0_i32 = arith.constant 0 : i32
    %c0_i32_0 = arith.constant 0 : i32
    return %c0_i32, %arg0 : i32, i32
  }
}

</mosaic_0001>

<bundles_post_ra>
// kernel: forward.1
= control target key start
LH: loop header
LB: loop body
LE: loop exit
PB: predicated region body
PF: predicated region fallthrough
CT: control target
= control target key end

     0   :  { %vm230_vm0 = vcmask 1041408   ;;  %vm73_vm1 = vcmask 80896   ;;  %vm3869_vm2 = vcmask 392192   ;;  %vm6470_vm3 = vcmask 523264   ;;  %s16999_s0 = inlined_call_operand.vmem [shape: f32[10,256], index: 0, kind: input, shape index: {}]   ;;  %s17000_s1 = inlined_call_operand.vmem [shape: f32[416,10], index: 1, kind: input, shape index: {}]   ;;  %s17001_s2 = inlined_call_operand.vmem [shape: f32[72,176], index: 2, kind: input, shape index: {}]   ;;  %s17002_s3 = inlined_call_operand.vmem [shape: f32[8,576], index: 3, kind: input, shape index: {}]   ;;  %s17003_s4 = inlined_call_operand.vmem [shape: f32[8,256], index: 4, kind: output, shape index: {}]  }
   0x1   :  { %v19_v0 = vld [vmem:[%s16999_s0 + $0x10] sm:$0x3]  ;;  %v17_v1 = vld [vmem:[%s16999_s0] sm:$0xff]  ;;  %v22_v6 = vld [vmem:[%s17000_s1 + $0x8] sm:$0xff] }
   0x2   :  { %v21_v2 = vld [vmem:[%s17000_s1] sm:$0xff]  ;;  %v232_v3 = vsel %vm230_vm0, %v19_v0, 0  ;;  %v253_v4 = vand.u32 4294901760, %v17_v1  ;;  %v78_v9 = vsel %vm73_vm1, %v22_v6, 0  ;;  %v23_v10 = vld [vmem:[%s17000_s1 + $0x10] sm:$0xff]  ;;  %v24_v28 = vld [vmem:[%s17000_s1 + $0x18] sm:$0xff] }
   0x3   :  { %v75_v5 = vsel %vm73_vm1, %v21_v2, 0  ;;  %v251_v7 = vand.u32 4294901760, %v232_v3  ;;  %v9731_v12 = vand.u32 4294901760, %v78_v9  ;;  %v81_v17 = vsel %vm73_vm1, %v23_v10, 0  ;;  %v25_v35 = vld [vmem:[%s17000_s1 + $0x20] sm:$0xff]  ;;  %v26_v42 = vld [vmem:[%s17000_s1 + $0x28] sm:$0xff] }
   0x4   :  { %v9725_v8 = vand.u32 4294901760, %v75_v5  ;;  %v693_v11 = vsub.f32 %v17_v1, %v253_v4  ;;  %v9749_v24 = vand.u32 4294901760, %v81_v17  ;;  %v84_v31 = vsel %vm73_vm1, %v24_v28, 0  ;;  %v27_v49 = vld [vmem:[%s17000_s1 + $0x30] sm:$0xff]  ;;  %v28_v56 = vld [vmem:[%s17000_s1 + $0x38] sm:$0xff]  ;;  %v29_v63 = vld [vmem:[%s17000_s1 + $0x40] sm:$0xff] }
   0x5   :  { %17602 = vst [vmem:[#allocation3_spill] sm:$0xff] %v9731_v12  ;;  %1203 = vmatpush.msra.mxu3 %v251_v7  ;;  %v687_v13 = vsub.f32 %v232_v3, %v251_v7  ;;  %252 = vmatpush.msra.mxu0 %v251_v7  ;;  %v9737_v16 = vsub.f32 %v78_v9, %v9731_v12  ;;  %v9771_v34 = vand.u32 4294901760, %v84_v31  ;;  %v87_v38 = vsel %vm73_vm1, %v25_v35, 0  ;;  %v30_v6 = vld [vmem:[%s17000_s1 + $0x48] sm:$0xff]  ;;  %v32_v28 = vld [vmem:[%s17000_s1 + $0x58] sm:$0xff] }
   0x6   :  { %17601 = vst [vmem:[#allocation2_spill] sm:$0xff] %v9725_v8  ;;  %v9734_v14 = vsub.f32 %v75_v5, %v9725_v8  ;;  %v694_v15 = vand.u32 4294901760, %v693_v11  ;;  %v9761_v30 = vsub.f32 %v81_v17, %v9749_v24  ;;  %v9791_v41 = vand.u32 4294901760, %v87_v38  ;;  %v31_v17 = vld [vmem:[%s17000_s1 + $0x50] sm:$0xff] }
   0x7   :  { %17604 = vst [vmem:[#allocation5_spill] sm:$0xff] %v9737_v16  ;;  %923 = vmatpush.msra.mxu2 %v687_v13  ;;  %1205 = vmatpush.msra.mxu3 %v253_v4  ;;  %v688_v19 = vand.u32 4294901760, %v687_v13  ;;  %v9747_v23 = vand.u32 4294901760, %v9737_v16  ;;  %v9781_v37 = vsub.f32 %v84_v31, %v9771_v34  ;;  %v90_v45 = vsel %vm73_vm1, %v26_v42, 0 }
   0x8   :  { %17603 = vst [vmem:[#allocation4_spill] sm:$0xff] %v9734_v14  ;;  %v9741_v18 = vand.u32 4294901760, %v9734_v14  ;;  %254 = vmatpush.msra.mxu0 %v253_v4  ;;  %v695_v20 = vsub.f32 %v693_v11, %v694_v15  ;;  %v9769_v33 = vand.u32 4294901760, %v9761_v30  ;;  %v9801_v44 = vsub.f32 %v87_v38, %v9791_v41 }
   0x9   :  { %926 = vmatpush.msra.mxu2 %v693_v11  ;;  %v689_v22 = vsub.f32 %v687_v13, %v688_v19  ;;  %17606 = vst [vmem:[#allocation7_spill] sm:$0xff] %v9747_v23  ;;  %v266_v29 = vsub.f32 %v9737_v16, %v9747_v23  ;;  %v9789_v40 = vand.u32 4294901760, %v9781_v37  ;;  %v9811_v48 = vand.u32 4294901760, %v90_v45 }
   0xa   :  { %17605 = vst [vmem:[#allocation6_spill] sm:$0xff] %v9741_v18  ;;  %1209 = vmatmul.f32.vlgmr.msra.gmra.mxu3 %v9741_v18  ;;  %v258_v21 = vsub.f32 %v9734_v14, %v9741_v18  ;;  %929 = vmatmul.f32.vlgmr.msra.gmra.mxu2 %v9734_v14  ;;  %v696_v27 = vand.u32 4294901760, %v695_v20  ;;  %v274_v36 = vsub.f32 %v9761_v30, %v9769_v33  ;;  %v9809_v47 = vand.u32 4294901760, %v9801_v44 }
   0xb   :  { %17607 = vst [vmem:[#allocation8_spill] sm:$0xff] %v9749_v24  ;;  %1536 = vmatpush.msrb.mxu0 %v688_v19  ;;  %v690_v26 = vand.u32 4294901760, %v689_v22  ;;  %v9766_v32 = vand.u32 4294901760, %v266_v29  ;;  %v282_v43 = vsub.f32 %v9781_v37, %v9789_v40  ;;  %v9821_v51 = vsub.f32 %v90_v45, %v9811_v48  ;;  %v33_v45 = vld [vmem:[%s17000_s1 + $0x60] sm:$0xff] }
   0xc   :  { %v9752_v25 = vand.u32 4294901760, %v258_v21  ;;  %17608 = vst [vmem:[#allocation9_spill] sm:$0xff] %v9761_v30  ;;  %v9786_v39 = vand.u32 4294901760, %v274_v36  ;;  %v290_v50 = vsub.f32 %v9801_v44, %v9809_v47  ;;  %v93_v52 = vsel %vm73_vm1, %v27_v49, 0 }
   0xd   :  { %1540 = vmatpush.msrb.mxu0 %v694_v15  ;;  %691 = vmatpush.msra.mxu1 %v690_v26  ;;  %17609 = vst [vmem:[#allocation10_spill] sm:$0xff] %v9769_v33  ;;  %v9806_v46 = vand.u32 4294901760, %v282_v43  ;;  %v9829_v54 = vand.u32 4294901760, %v9821_v51  ;;  %v9831_v55 = vand.u32 4294901760, %v93_v52  ;;  %v96_v59 = vsel %vm73_vm1, %v28_v56, 0 }
   0xe   :  { %260 = vmatmul.f32.vlgmr.msra.gmra.mxu0 %v9752_v25  ;;  %17610 = vst [vmem:[#allocation11_spill] sm:$0xff] %v9771_v34  ;;  %v9826_v53 = vand.u32 4294901760, %v290_v50  ;;  %v9851_v62 = vand.u32 4294901760, %v96_v59  ;;  %v99_v2 = vsel %vm73_vm1, %v29_v63, 0  ;;  %v102_v10 = vsel %vm73_vm1, %v30_v6, 0 }
   0xf   :  { %697 = vmatpush.msra.mxu1 %v696_v27  ;;  %17611 = vst [vmem:[#allocation12_spill] sm:$0xff] %v9781_v37  ;;  %v298_v57 = vsub.f32 %v9821_v51, %v9829_v54  ;;  %v9841_v58 = vsub.f32 %v93_v52, %v9831_v55  ;;  %v9871_v5 = vand.u32 4294901760, %v99_v2  ;;  %v9891_v15 = vand.u32 4294901760, %v102_v10  ;;  %v20_v43 = vld [vmem:[%s16999_s0 + $0x18] sm:$0x3] }
  0x10   :  { %699 = vmatmul.f32.vlgmr.msra.gmra.mxu1 %v9725_v8  ;;  %17612 = vst [vmem:[#allocation13_spill] sm:$0xff] %v9789_v40  ;;  %v9861_v1 = vsub.f32 %v96_v59, %v9851_v62  ;;  %v105_v21 = vsel %vm73_vm1, %v31_v17, 0  ;;  %v108_v35 = vsel %vm73_vm1, %v32_v28, 0  ;;  %v235_v49 = vsel %vm230_vm0, %v20_v43, 0 }
  0x11   :  { %1765 = vmatpush.msrb.mxu1 %v251_v7  ;;  %17613 = vst [vmem:[#allocation14_spill] sm:$0xff] %v9791_v41  ;;  %v9846_v60 = vand.u32 4294901760, %v298_v57  ;;  %v9849_v61 = vand.u32 4294901760, %v9841_v58  ;;  %v9881_v9 = vsub.f32 %v99_v2, %v9871_v5  ;;  %v9901_v20 = vsub.f32 %v102_v10, %v9891_v15  ;;  %v34_v10 = vld [vmem:[%s17000_s1 + $0x68] sm:$0xff] }
  0x12   :  { %1215 = vmatmul.f32.gmra.mxu3 %v9747_v23  ;;  %934 = vmatmul.f32.gmra.mxu2 %v9737_v16  ;;  %17614 = vst [vmem:[#allocation15_spill] sm:$0xff] %v9801_v44  ;;  %v9911_v27 = vand.u32 4294901760, %v105_v21  ;;  %v9931_v42 = vand.u32 4294901760, %v108_v35  ;;  %v9941_v50 = vand.u32 4294901760, %v235_v49  ;;  %v111_v57 = vsel %vm73_vm1, %v33_v45, 0  ;;  %v35_v45 = vld [vmem:[%s17000_s1 + $0x70] sm:$0xff] }
  0x13   :  { %1767 = vmatpush.msrb.mxu1 %v253_v4  ;;  %17615 = vst [vmem:[#allocation16_spill] sm:$0xff] %v9809_v47  ;;  %v306_v0 = vsub.f32 %v9841_v58, %v9849_v61  ;;  %v9869_v4 = vand.u32 4294901760, %v9861_v1  ;;  %v9889_v13 = vand.u32 4294901760, %v9881_v9  ;;  %v9909_v26 = vand.u32 4294901760, %v9901_v20 }
  0x14   :  { %17616 = vst [vmem:[#allocation17_spill] sm:$0xff] %v9811_v48  ;;  %v9921_v31 = vsub.f32 %v105_v21, %v9911_v27  ;;  %v9947_v56 = vsub.f32 %v108_v35, %v9931_v42  ;;  %1992 = vmatpush.msrb.mxu2 %v9941_v50  ;;  %v9952_v59 = vsub.f32 %v235_v49, %v9941_v50  ;;  %v9964_v6 = vand.u32 4294901760, %v111_v57 }
  0x15   :  { %17617 = vst [vmem:[#allocation18_spill] sm:$0xff] %v9821_v51  ;;  %v9866_v3 = vand.u32 4294901760, %v306_v0  ;;  %v314_v7 = vsub.f32 %v9861_v1, %v9869_v4  ;;  %v322_v19 = vsub.f32 %v9881_v9, %v9889_v13  ;;  %v330_v29 = vsub.f32 %v9901_v20, %v9909_v26  ;;  %2943 = vmatpush.msra.mxu1 %v9941_v50 }
  0x16   :  { %268 = vmatmul.f32.gmra.mxu0 %v9766_v32  ;;  %17618 = vst [vmem:[#allocation19_spill] sm:$0xff] %v9829_v54  ;;  %v9929_v38 = vand.u32 4294901760, %v9921_v31  ;;  %v17004_v63 = vand.u32 4294901760, %v9952_v59  ;;  %v9962_v2 = vand.u32 4294901760, %v9947_v56  ;;  %v9977_v21 = vsub.f32 %v111_v57, %v9964_v6 }
  0x17   :  { %17619 = vst [vmem:[#allocation20_spill] sm:$0xff] %v9831_v55  ;;  %v9886_v11 = vand.u32 4294901760, %v314_v7  ;;  %v9906_v22 = vand.u32 4294901760, %v322_v19  ;;  %v9926_v36 = vand.u32 4294901760, %v330_v29  ;;  %2663 = vmatpush.msra.mxu0 %v9952_v59  ;;  %v114_v28 = vsel %vm73_vm1, %v34_v10, 0 }
  0x18   :  { %703 = vmatmul.f32.gmra.mxu1 %v9731_v12  ;;  %17620 = vst [vmem:[#allocation21_spill] sm:$0xff] %v9841_v58  ;;  %v338_v52 = vsub.f32 %v9921_v31, %v9929_v38  ;;  %v2429_v7 = vsub.f32 %v9952_v59, %v17004_v63  ;;  %v346_v19 = vsub.f32 %v9947_v56, %v9962_v2  ;;  %v9985_v35 = vand.u32 4294901760, %v9977_v21 }
  0x19   :  { %17621 = vst [vmem:[#allocation22_spill] sm:$0xff] %v9849_v61  ;;  %v9987_v43 = vand.u32 4294901760, %v114_v28  ;;  %v117_v57 = vsel %vm73_vm1, %v35_v45, 0 }
  0x1a   :  { %1221 = vmatmul.f32.gmra.mxu3 %v9769_v33  ;;  %939 = vmatmul.f32.gmra.mxu2 %v9761_v30  ;;  %17622 = vst [vmem:[#allocation23_spill] sm:$0xff] %v9851_v62  ;;  %v9959_v0 = vand.u32 4294901760, %v338_v52  ;;  %v2430_v17 = vand.u32 4294901760, %v2429_v7  ;;  %v9982_v29 = vand.u32 4294901760, %v346_v19  ;;  %v354_v49 = vsub.f32 %v9977_v21, %v9985_v35  ;;  %v36_v19 = vld [vmem:[%s17000_s1 + $0x78] sm:$0xff] }
  0x1b   :  { %17623 = vst [vmem:[#allocation24_spill] sm:$0xff] %v9861_v1  ;;  %v9997_v52 = vsub.f32 %v114_v28, %v9987_v43 }
  0x1c   :  { %17624 = vst [vmem:[#allocation25_spill] sm:$0xff] %v9869_v4  ;;  %2431 = vmatpush.msrb.mxu3 %v2430_v17  ;;  %v10002_v7 = vand.u32 4294901760, %v354_v49  ;;  %v10007_v17 = vand.u32 4294901760, %v117_v57  ;;  %v120_v49 = vsel %vm73_vm1, %v36_v19, 0 }
  0x1d   :  { %17625 = vst [vmem:[#allocation26_spill] sm:$0xff] %v9871_v5  ;;  %v10005_v10 = vand.u32 4294901760, %v9997_v52 }
  0x1e   :  { %276 = vmatmul.f32.gmra.mxu0 %v9786_v39  ;;  %17626 = vst [vmem:[#allocation27_spill] sm:$0xff] %v9881_v9  ;;  %v10017_v45 = vsub.f32 %v117_v57, %v10007_v17  ;;  %v37_v57 = vld [vmem:[%s17000_s1 + $0x80] sm:$0xff] }
  0x1f   :  { %17627 = vst [vmem:[#allocation28_spill] sm:$0xff] %v9889_v13  ;;  %v362_v28 = vsub.f32 %v9997_v52, %v10005_v10 }
  0x20   :  { %707 = vmatmul.f32.gmra.mxu1 %v9749_v24  ;;  %17628 = vst [vmem:[#allocation29_spill] sm:$0xff] %v9891_v15 }
  0x21   :  { %17629 = vst [vmem:[#allocation30_spill] sm:$0xff] %v9901_v20  ;;  %v10022_v63 = vand.u32 4294901760, %v362_v28  ;;  %v123_v28 = vsel %vm73_vm1, %v37_v57, 0 }
  0x22   :  { %1227 = vmatmul.f32.gmra.mxu3 %v9789_v40  ;;  %944 = vmatmul.f32.gmra.mxu2 %v9781_v37  ;;  %17630 = vst [vmem:[#allocation31_spill] sm:$0xff] %v9909_v26 }
  0x23   :  { %17631 = vst [vmem:[#allocation32_spill] sm:$0xff] %v9911_v27 }
  0x24   :  { %17632 = vst [vmem:[#allocation33_spill] sm:$0xff] %v9921_v31 }
  0x25   :  { %17633 = vst [vmem:[#allocation34_spill] sm:$0xff] %v9929_v38 }
  0x26   :  { %284 = vmatmul.f32.gmra.mxu0 %v9806_v46  ;;  %17634 = vst [vmem:[#allocation35_spill] sm:$0xff] %v9931_v42 }
  0x27   :  { %17635 = vst [vmem:[#allocation36_spill] sm:$0xff] %v9947_v56 }
  0x28   :  { %711 = vmatmul.f32.gmra.mxu1 %v9771_v34  ;;  %17636 = vst [vmem:[#allocation37_spill] sm:$0xff] %v9962_v2 }
  0x29   :  { %17637 = vst [vmem:[#allocation38_spill] sm:$0xff] %v9964_v6 }
  0x2a   :  { %1233 = vmatmul.f32.gmra.mxu3 %v9809_v47  ;;  %949 = vmatmul.f32.gmra.mxu2 %v9801_v44  ;;  %17638 = vst [vmem:[#allocation39_spill] sm:$0xff] %v9977_v21 }
  0x2b   :  { %17639 = vst [vmem:[#allocation40_spill] sm:$0xff] %v9985_v35 }
  0x2c   :  { %17640 = vst [vmem:[#allocation41_spill] sm:$0xff] %v9987_v43 }
  0x2d   :  { %17641 = vst [vmem:[#allocation42_spill] sm:$0xff] %v9997_v52 }
  0x2e   :  { %292 = vmatmul.f32.gmra.mxu0 %v9826_v53  ;;  %17642 = vst [vmem:[#allocation43_spill] sm:$0xff] %v10005_v10 }
  0x2f   :  { %17643 = vst [vmem:[#allocation44_spill] sm:$0xff] %v10007_v17 }
  0x30   :  { %715 = vmatmul.f32.gmra.mxu1 %v9791_v41  ;;  %17644 = vst [vmem:[#allocation45_spill] sm:$0xff] %v10017_v45 }
  0x32   :  { %1239 = vmatmul.f32.gmra.mxu3 %v9829_v54  ;;  %954 = vmatmul.f32.gmra.mxu2 %v9821_v51 }
  0x36   :  { %300 = vmatmul.f32.gmra.mxu0 %v9846_v60 }
  0x38   :  { %719 = vmatmul.f32.gmra.mxu1 %v9811_v48 }
  0x3a   :  { %1245 = vmatmul.f32.gmra.mxu3 %v9849_v61  ;;  %959 = vmatmul.f32.gmra.mxu2 %v9841_v58 }
  0x3e   :  { %308 = vmatmul.f32.gmra.mxu0 %v9866_v3 }
  0x40   :  { %723 = vmatmul.f32.gmra.mxu1 %v9831_v55 }
  0x42   :  { %1251 = vmatmul.f32.gmra.mxu3 %v9869_v4  ;;  %964 = vmatmul.f32.gmra.mxu2 %v9861_v1 }
  0x46   :  { %316 = vmatmul.f32.gmra.mxu0 %v9886_v11 }
  0x48   :  { %727 = vmatmul.f32.gmra.mxu1 %v9851_v62 }
  0x4a   :  { %1257 = vmatmul.f32.gmra.mxu3 %v9889_v13  ;;  %969 = vmatmul.f32.gmra.mxu2 %v9881_v9 }
  0x4e   :  { %324 = vmatmul.f32.gmra.mxu0 %v9906_v22 }
  0x50   :  { %731 = vmatmul.f32.gmra.mxu1 %v9871_v5 }
  0x52   :  { %1263 = vmatmul.f32.gmra.mxu3 %v9909_v26  ;;  %974 = vmatmul.f32.gmra.mxu2 %v9901_v20 }
  0x56   :  { %332 = vmatmul.f32.gmra.mxu0 %v9926_v36 }
  0x58   :  { %735 = vmatmul.f32.gmra.mxu1 %v9891_v15 }
  0x5a   :  { %1269 = vmatmul.f32.gmra.mxu3 %v9929_v38  ;;  %979 = vmatmul.f32.gmra.mxu2 %v9921_v31 }
  0x5e   :  { %340 = vmatmul.f32.gmra.mxu0 %v9959_v0 }
  0x60   :  { %739 = vmatmul.f32.gmra.mxu1 %v9911_v27 }
  0x62   :  { %1275 = vmatmul.f32.gmra.mxu3 %v9962_v2  ;;  %984 = vmatmul.f32.gmra.mxu2 %v9947_v56  ;;  %v10047_v56 = vand.u32 4294901760, %v123_v28 }
  0x64   :  { %17649 = vst [vmem:[#allocation50_spill] sm:$0xff] %v10047_v56 }
  0x66   :  { %348 = vmatmul.f32.gmra.mxu0 %v9982_v29 }
  0x68   :  { %743 = vmatmul.f32.gmra.mxu1 %v9931_v42 }
  0x6a   :  { %1281 = vmatmul.f32.gmra.mxu3 %v9985_v35  ;;  %989 = vmatmul.f32.gmra.mxu2 %v9977_v21  ;;  %v10025_v35 = vand.u32 4294901760, %v10017_v45  ;;  %v10027_v21 = vand.u32 4294901760, %v120_v49 }
  0x6c   :  { %17645 = vst [vmem:[#allocation46_spill] sm:$0xff] %v10025_v35  ;;  %v370_v19 = vsub.f32 %v10017_v45, %v10025_v35 }
  0x6d   :  { %17646 = vst [vmem:[#allocation47_spill] sm:$0xff] %v10027_v21 }
  0x6e   :  { %356 = vmatmul.f32.gmra.mxu0 %v10002_v7  ;;  %v10042_v2 = vand.u32 4294901760, %v370_v19 }
  0x70   :  { %747 = vmatmul.f32.gmra.mxu1 %v9964_v6 }
  0x72   :  { %1287 = vmatmul.f32.gmra.mxu3 %v10005_v10  ;;  %994 = vmatmul.f32.gmra.mxu2 %v9997_v52  ;;  %v10037_v10 = vsub.f32 %v120_v49, %v10027_v21  ;;  %v38_v49 = vld [vmem:[%s17000_s1 + $0x88] sm:$0xff] }
  0x73   :  { %v126_v19 = vsel %vm73_vm1, %v38_v49, 0 }
  0x74   :  { %17647 = vst [vmem:[#allocation48_spill] sm:$0xff] %v10037_v10  ;;  %v10045_v52 = vand.u32 4294901760, %v10037_v10  ;;  %v10067_v31 = vand.u32 4294901760, %v126_v19 }
  0x76   :  { %364 = vmatmul.f32.gmra.mxu0 %v10022_v63  ;;  %17648 = vst [vmem:[#allocation49_spill] sm:$0xff] %v10045_v52  ;;  %v378_v57 = vsub.f32 %v10037_v10, %v10045_v52 }
  0x77   :  { %17652 = vst [vmem:[#allocation53_spill] sm:$0xff] %v10067_v31 }
  0x78   :  { %751 = vmatmul.f32.gmra.mxu1 %v9987_v43  ;;  %v10062_v38 = vand.u32 4294901760, %v378_v57 }
  0x7a   :  { %1293 = vmatmul.f32.gmra.mxu3 %v10025_v35  ;;  %999 = vmatmul.f32.gmra.mxu2 %v10017_v45  ;;  %v10057_v35 = vsub.f32 %v123_v28, %v10047_v56  ;;  %v39_v28 = vld [vmem:[%s17000_s1 + $0x90] sm:$0xff] }
  0x7b   :  { %v129_v57 = vsel %vm73_vm1, %v39_v28, 0 }
  0x7c   :  { %17650 = vst [vmem:[#allocation51_spill] sm:$0xff] %v10057_v35  ;;  %v10065_v45 = vand.u32 4294901760, %v10057_v35  ;;  %v10087_v20 = vand.u32 4294901760, %v129_v57 }
  0x7e   :  { %372 = vmatmul.f32.gmra.mxu0 %v10042_v2  ;;  %17651 = vst [vmem:[#allocation52_spill] sm:$0xff] %v10065_v45  ;;  %v386_v49 = vsub.f32 %v10057_v35, %v10065_v45 }
  0x7f   :  { %17655 = vst [vmem:[#allocation56_spill] sm:$0xff] %v10087_v20 }
  0x80   :  { %755 = vmatmul.f32.gmra.mxu1 %v10007_v17  ;;  %v10082_v26 = vand.u32 4294901760, %v386_v49 }
  0x82   :  { %1299 = vmatmul.f32.gmra.mxu3 %v10045_v52  ;;  %1004 = vmatmul.f32.gmra.mxu2 %v10037_v10  ;;  %v10077_v52 = vsub.f32 %v126_v19, %v10067_v31  ;;  %v40_v19 = vld [vmem:[%s17000_s1 + $0x98] sm:$0xff] }
  0x83   :  { %v132_v61 = vsel %vm73_vm1, %v40_v19, 0 }
  0x84   :  { %17653 = vst [vmem:[#allocation54_spill] sm:$0xff] %v10077_v52  ;;  %v10085_v10 = vand.u32 4294901760, %v10077_v52  ;;  %v10107_v51 = vand.u32 4294901760, %v132_v61 }
  0x86   :  { %380 = vmatmul.f32.gmra.mxu0 %v10062_v38  ;;  %17654 = vst [vmem:[#allocation55_spill] sm:$0xff] %v10085_v10  ;;  %v394_v49 = vsub.f32 %v10077_v52, %v10085_v10 }
  0x87   :  { %17658 = vst [vmem:[#allocation59_spill] sm:$0xff] %v10107_v51 }
  0x88   :  { %759 = vmatmul.f32.gmra.mxu1 %v10027_v21 }
  0x8a   :  { %1305 = vmatmul.f32.gmra.mxu3 %v10065_v45  ;;  %1009 = vmatmul.f32.gmra.mxu2 %v10057_v35  ;;  %v10097_v45 = vsub.f32 %v129_v57, %v10087_v20  ;;  %v10102_v35 = vand.u32 4294901760, %v394_v49 }
  0x8b   :  { %v261_v13 = vpop.f32.mrf.mxu0 }
  0x8c   :  { %17656 = vst [vmem:[#allocation57_spill] sm:$0xff] %v10097_v45  ;;  %v10105_v54 = vand.u32 4294901760, %v10097_v45 }
  0x8d   :  { %v1210_v9 = vpop.f32.mrf.mxu3  ;;  %v700_v28 = vpop.f32.mrf.mxu1 }
  0x8e   :  { %388 = vmatmul.f32.gmra.mxu0 %v10082_v26  ;;  %v930_v4 = vpop.f32.mrf.mxu2  ;;  %v701_v1 = vadd.f32 %v700_v28, %v261_v13  ;;  %17657 = vst [vmem:[#allocation58_spill] sm:$0xff] %v10105_v54  ;;  %v402_v19 = vsub.f32 %v10097_v45, %v10105_v54  ;;  %v10119_v28 = vsub.f32 %v132_v61, %v10107_v51 }
  0x90   :  { %v931_v58 = vadd.f32 %v930_v4, %v701_v1  ;;  %763 = vmatmul.f32.gmra.mxu1 %v10047_v56  ;;  %v41_v1 = vld [vmem:[%s17000_s1 + $0xa0] sm:$0xff]  ;;  %17660 = vst [vmem:[#allocation61_spill] sm:$0xff] %v10119_v28 }
  0x92   :  { %1311 = vmatmul.f32.gmra.mxu3 %v10085_v10  ;;  %v10109_v47 = vadd.f32 %v1210_v9, %v931_v58  ;;  %1014 = vmatmul.f32.gmra.mxu2 %v10077_v52  ;;  %v135_v9 = vsel %vm73_vm1, %v41_v1, 0  ;;  %v10124_v10 = vand.u32 4294901760, %v402_v19  ;;  %v10127_v52 = vand.u32 4294901760, %v10119_v28 }
  0x93   :  { %v269_v44 = vpop.f32.mrf.mxu0  ;;  %v10129_v40 = vand.u32 4294901760, %v135_v9 }
  0x94   :  { %17659 = vst [vmem:[#allocation60_spill] sm:$0xff] %v10109_v47 }
  0x95   :  { %v1216_v4 = vpop.f32.mrf.mxu3  ;;  %v704_v13 = vpop.f32.mrf.mxu1  ;;  %17661 = vst [vmem:[#allocation62_spill] sm:$0xff] %v10127_v52  ;;  %v10141_v19 = vsub.f32 %v135_v9, %v10129_v40 }
  0x96   :  { %396 = vmatmul.f32.gmra.mxu0 %v10102_v35  ;;  %v935_v57 = vpop.f32.mrf.mxu2  ;;  %v705_v58 = vadd.f32 %v704_v13, %v269_v44  ;;  %17662 = vst [vmem:[#allocation63_spill] sm:$0xff] %v10129_v40  ;;  %v42_v44 = vld [vmem:[%s17000_s1 + $0xa8] sm:$0xff] }
  0x97   :  { %17664 = vst [vmem:[#allocation65_spill] sm:$0xff] %v10141_v19 }
  0x98   :  { %v936_v49 = vadd.f32 %v935_v57, %v705_v58  ;;  %767 = vmatmul.f32.gmra.mxu1 %v10067_v31  ;;  %v410_v57 = vsub.f32 %v10119_v28, %v10127_v52  ;;  %v138_v58 = vsel %vm73_vm1, %v42_v44, 0 }
  0x99   :  { %v10151_v30 = vand.u32 4294901760, %v138_v58 }
  0x9a   :  { %1317 = vmatmul.f32.gmra.mxu3 %v10105_v54  ;;  %v10131_v37 = vadd.f32 %v1216_v4, %v936_v49  ;;  %1019 = vmatmul.f32.gmra.mxu2 %v10097_v45  ;;  %v10146_v54 = vand.u32 4294901760, %v410_v57  ;;  %v10149_v45 = vand.u32 4294901760, %v10141_v19 }
  0x9b   :  { %v277_v33 = vpop.f32.mrf.mxu0  ;;  %17666 = vst [vmem:[#allocation67_spill] sm:$0xff] %v10151_v30  ;;  %v10163_v57 = vsub.f32 %v138_v58, %v10151_v30 }
  0x9c   :  { %17663 = vst [vmem:[#allocation64_spill] sm:$0xff] %v10131_v37 }
  0x9d   :  { %v1222_v61 = vpop.f32.mrf.mxu3  ;;  %v708_v1 = vpop.f32.mrf.mxu1  ;;  %17665 = vst [vmem:[#allocation66_spill] sm:$0xff] %v10149_v45 }
  0x9e   :  { %404 = vmatmul.f32.gmra.mxu0 %v10124_v10  ;;  %v940_v13 = vpop.f32.mrf.mxu2  ;;  %v709_v4 = vadd.f32 %v708_v1, %v277_v33  ;;  %v43_v33 = vld [vmem:[%s17000_s1 + $0xb0] sm:$0xff]  ;;  %17668 = vst [vmem:[#allocation69_spill] sm:$0xff] %v10163_v57 }
  0xa0   :  { %v941_v49 = vadd.f32 %v940_v13, %v709_v4  ;;  %771 = vmatmul.f32.gmra.mxu1 %v10087_v20  ;;  %v418_v13 = vsub.f32 %v10141_v19, %v10149_v45  ;;  %v141_v4 = vsel %vm73_vm1, %v43_v33, 0 }
  0xa1   :  { %v10173_v18 = vand.u32 4294901760, %v141_v4 }
  0xa2   :  { %1323 = vmatmul.f32.gmra.mxu3 %v10127_v52  ;;  %v10153_v23 = vadd.f32 %v1222_v61, %v941_v49  ;;  %1024 = vmatmul.f32.gmra.mxu2 %v10119_v28  ;;  %v10168_v52 = vand.u32 4294901760, %v418_v13  ;;  %v10171_v28 = vand.u32 4294901760, %v10163_v57 }
  0xa3   :  { %v285_v16 = vpop.f32.mrf.mxu0  ;;  %17671 = vst [vmem:[#allocation72_spill] sm:$0xff] %v10173_v18  ;;  %v10185_v13 = vsub.f32 %v141_v4, %v10173_v18 }
  0xa4   :  { %17667 = vst [vmem:[#allocation68_spill] sm:$0xff] %v10153_v23 }
  0xa5   :  { %v1228_v9 = vpop.f32.mrf.mxu3  ;;  %v712_v44 = vpop.f32.mrf.mxu1  ;;  %17669 = vst [vmem:[#allocation70_spill] sm:$0xff] %v10168_v52 }
  0xa6   :  { %412 = vmatmul.f32.gmra.mxu0 %v10146_v54  ;;  %v945_v1 = vpop.f32.mrf.mxu2  ;;  %v713_v61 = vadd.f32 %v712_v44, %v285_v16  ;;  %17670 = vst [vmem:[#allocation71_spill] sm:$0xff] %v10171_v28  ;;  %v44_v16 = vld [vmem:[%s17000_s1 + $0xb8] sm:$0xff] }
  0xa7   :  { %17673 = vst [vmem:[#allocation74_spill] sm:$0xff] %v10185_v13 }
  0xa8   :  { %v946_v49 = vadd.f32 %v945_v1, %v713_v61  ;;  %775 = vmatmul.f32.gmra.mxu1 %v10107_v51  ;;  %v426_v1 = vsub.f32 %v10163_v57, %v10171_v28  ;;  %v144_v61 = vsel %vm73_vm1, %v44_v16, 0 }
  0xaa   :  { %1329 = vmatmul.f32.gmra.mxu3 %v10149_v45  ;;  %v10175_v14 = vadd.f32 %v1228_v9, %v946_v49  ;;  %1029 = vmatmul.f32.gmra.mxu2 %v10141_v19  ;;  %v10190_v45 = vand.u32 4294901760, %v426_v1  ;;  %v10193_v19 = vand.u32 4294901760, %v10185_v13 }
  0xab   :  { %v293_v23 = vpop.f32.mrf.mxu0 }
  0xac   :  { %17672 = vst [vmem:[#allocation73_spill] sm:$0xff] %v10175_v14  ;;  %v10195_v14 = vand.u32 4294901760, %v144_v61 }
  0xad   :  { %v1234_v58 = vpop.f32.mrf.mxu3  ;;  %v716_v33 = vpop.f32.mrf.mxu1  ;;  %17674 = vst [vmem:[#allocation75_spill] sm:$0xff] %v10190_v45 }
  0xae   :  { %420 = vmatmul.f32.gmra.mxu0 %v10168_v52  ;;  %v950_v44 = vpop.f32.mrf.mxu2  ;;  %v717_v9 = vadd.f32 %v716_v33, %v293_v23  ;;  %17675 = vst [vmem:[#allocation76_spill] sm:$0xff] %v10193_v19  ;;  %v45_v23 = vld [vmem:[%s17000_s1 + $0xc0] sm:$0xff]  ;;  %v10207_v1 = vsub.f32 %v144_v61, %v10195_v14 }
  0xaf   :  { %17676 = vst [vmem:[#allocation77_spill] sm:$0xff] %v10195_v14 }
  0xb0   :  { %v951_v49 = vadd.f32 %v950_v44, %v717_v9  ;;  %779 = vmatmul.f32.gmra.mxu1 %v10129_v40  ;;  %v434_v44 = vsub.f32 %v10185_v13, %v10193_v19  ;;  %17678 = vst [vmem:[#allocation79_spill] sm:$0xff] %v10207_v1  ;;  %v147_v9 = vsel %vm73_vm1, %v45_v23, 0 }
  0xb2   :  { %1335 = vmatmul.f32.gmra.mxu3 %v10171_v28  ;;  %v10197_v37 = vadd.f32 %v1234_v58, %v951_v49  ;;  %1034 = vmatmul.f32.gmra.mxu2 %v10163_v57  ;;  %v10212_v28 = vand.u32 4294901760, %v434_v44  ;;  %v10215_v57 = vand.u32 4294901760, %v10207_v1 }
  0xb3   :  { %v301_v47 = vpop.f32.mrf.mxu0 }
  0xb4   :  { %17677 = vst [vmem:[#allocation78_spill] sm:$0xff] %v10197_v37  ;;  %v10217_v37 = vand.u32 4294901760, %v147_v9 }
  0xb5   :  { %v1240_v4 = vpop.f32.mrf.mxu3  ;;  %v720_v16 = vpop.f32.mrf.mxu1  ;;  %17679 = vst [vmem:[#allocation80_spill] sm:$0xff] %v10212_v28 }
  0xb6   :  { %428 = vmatmul.f32.gmra.mxu0 %v10190_v45  ;;  %v955_v33 = vpop.f32.mrf.mxu2  ;;  %v721_v58 = vadd.f32 %v720_v16, %v301_v47  ;;  %17680 = vst [vmem:[#allocation81_spill] sm:$0xff] %v10215_v57  ;;  %v46_v47 = vld [vmem:[%s17000_s1 + $0xc8] sm:$0xff]  ;;  %v10229_v44 = vsub.f32 %v147_v9, %v10217_v37 }
  0xb7   :  { %17681 = vst [vmem:[#allocation82_spill] sm:$0xff] %v10217_v37 }
  0xb8   :  { %v956_v49 = vadd.f32 %v955_v33, %v721_v58  ;;  %783 = vmatmul.f32.gmra.mxu1 %v10151_v30  ;;  %v442_v33 = vsub.f32 %v10207_v1, %v10215_v57  ;;  %17683 = vst [vmem:[#allocation84_spill] sm:$0xff] %v10229_v44  ;;  %v150_v58 = vsel %vm73_vm1, %v46_v47, 0 }
  0xba   :  { %1341 = vmatmul.f32.gmra.mxu3 %v10193_v19  ;;  %v10219_v45 = vadd.f32 %v1240_v4, %v956_v49  ;;  %1039 = vmatmul.f32.gmra.mxu2 %v10185_v13  ;;  %v10234_v19 = vand.u32 4294901760, %v442_v33  ;;  %v10237_v13 = vand.u32 4294901760, %v10229_v44 }
  0xbb   :  { %v309_v52 = vpop.f32.mrf.mxu0 }
  0xbc   :  { %17682 = vst [vmem:[#allocation83_spill] sm:$0xff] %v10219_v45  ;;  %v10239_v45 = vand.u32 4294901760, %v150_v58 }
  0xbd   :  { %v1246_v61 = vpop.f32.mrf.mxu3  ;;  %v724_v23 = vpop.f32.mrf.mxu1  ;;  %17684 = vst [vmem:[#allocation85_spill] sm:$0xff] %v10234_v19 }
  0xbe   :  { %436 = vmatmul.f32.gmra.mxu0 %v10212_v28  ;;  %v960_v16 = vpop.f32.mrf.mxu2  ;;  %v725_v4 = vadd.f32 %v724_v23, %v309_v52  ;;  %17685 = vst [vmem:[#allocation86_spill] sm:$0xff] %v10237_v13  ;;  %v47_v52 = vld [vmem:[%s17000_s1 + $0xd0] sm:$0xff]  ;;  %v10251_v33 = vsub.f32 %v150_v58, %v10239_v45 }
  0xbf   :  { %17686 = vst [vmem:[#allocation87_spill] sm:$0xff] %v10239_v45 }
  0xc0   :  { %v961_v49 = vadd.f32 %v960_v16, %v725_v4  ;;  %787 = vmatmul.f32.gmra.mxu1 %v10173_v18  ;;  %v450_v16 = vsub.f32 %v10229_v44, %v10237_v13  ;;  %17688 = vst [vmem:[#allocation89_spill] sm:$0xff] %v10251_v33  ;;  %v153_v4 = vsel %vm73_vm1, %v47_v52, 0 }
  0xc2   :  { %1347 = vmatmul.f32.gmra.mxu3 %v10215_v57  ;;  %v10241_v28 = vadd.f32 %v1246_v61, %v961_v49  ;;  %1044 = vmatmul.f32.gmra.mxu2 %v10207_v1  ;;  %v10256_v57 = vand.u32 4294901760, %v450_v16  ;;  %v10259_v1 = vand.u32 4294901760, %v10251_v33 }
  0xc3   :  { %v317_v30 = vpop.f32.mrf.mxu0 }
  0xc4   :  { %17687 = vst [vmem:[#allocation88_spill] sm:$0xff] %v10241_v28  ;;  %v10261_v28 = vand.u32 4294901760, %v153_v4 }
  0xc5   :  { %v1252_v9 = vpop.f32.mrf.mxu3  ;;  %v728_v47 = vpop.f32.mrf.mxu1  ;;  %17689 = vst [vmem:[#allocation90_spill] sm:$0xff] %v10256_v57 }
  0xc6   :  { %444 = vmatmul.f32.gmra.mxu0 %v10234_v19  ;;  %v965_v23 = vpop.f32.mrf.mxu2  ;;  %v729_v61 = vadd.f32 %v728_v47, %v317_v30  ;;  %17690 = vst [vmem:[#allocation91_spill] sm:$0xff] %v10259_v1  ;;  %v48_v30 = vld [vmem:[%s17000_s1 + $0xd8] sm:$0xff]  ;;  %v10273_v16 = vsub.f32 %v153_v4, %v10261_v28 }
  0xc7   :  { %17691 = vst [vmem:[#allocation92_spill] sm:$0xff] %v10261_v28 }
  0xc8   :  { %v966_v49 = vadd.f32 %v965_v23, %v729_v61  ;;  %791 = vmatmul.f32.gmra.mxu1 %v10195_v14  ;;  %v458_v23 = vsub.f32 %v10251_v33, %v10259_v1  ;;  %17693 = vst [vmem:[#allocation94_spill] sm:$0xff] %v10273_v16  ;;  %v156_v61 = vsel %vm73_vm1, %v48_v30, 0 }
  0xca   :  { %1353 = vmatmul.f32.gmra.mxu3 %v10237_v13  ;;  %v10263_v19 = vadd.f32 %v1252_v9, %v966_v49  ;;  %1049 = vmatmul.f32.gmra.mxu2 %v10229_v44  ;;  %v10278_v13 = vand.u32 4294901760, %v458_v23  ;;  %v10281_v44 = vand.u32 4294901760, %v10273_v16 }
  0xcb   :  { %v325_v18 = vpop.f32.mrf.mxu0 }
  0xcc   :  { %17692 = vst [vmem:[#allocation93_spill] sm:$0xff] %v10263_v19  ;;  %v10283_v19 = vand.u32 4294901760, %v156_v61 }
  0xcd   :  { %v1258_v58 = vpop.f32.mrf.mxu3  ;;  %v732_v52 = vpop.f32.mrf.mxu1  ;;  %17694 = vst [vmem:[#allocation95_spill] sm:$0xff] %v10278_v13 }
  0xce   :  { %452 = vmatmul.f32.gmra.mxu0 %v10256_v57  ;;  %v970_v47 = vpop.f32.mrf.mxu2  ;;  %v733_v9 = vadd.f32 %v732_v52, %v325_v18  ;;  %17695 = vst [vmem:[#allocation96_spill] sm:$0xff] %v10281_v44  ;;  %v49_v18 = vld [vmem:[%s17000_s1 + $0xe0] sm:$0xff]  ;;  %v10295_v23 = vsub.f32 %v156_v61, %v10283_v19 }
  0xcf   :  { %17696 = vst [vmem:[#allocation97_spill] sm:$0xff] %v10283_v19 }
  0xd0   :  { %v971_v49 = vadd.f32 %v970_v47, %v733_v9  ;;  %795 = vmatmul.f32.gmra.mxu1 %v10217_v37  ;;  %v466_v47 = vsub.f32 %v10273_v16, %v10281_v44  ;;  %17698 = vst [vmem:[#allocation99_spill] sm:$0xff] %v10295_v23  ;;  %v159_v9 = vsel %vm73_vm1, %v49_v18, 0 }
  0xd2   :  { %1359 = vmatmul.f32.gmra.mxu3 %v10259_v1  ;;  %v10285_v57 = vadd.f32 %v1258_v58, %v971_v49  ;;  %1054 = vmatmul.f32.gmra.mxu2 %v10251_v33  ;;  %v10300_v1 = vand.u32 4294901760, %v466_v47  ;;  %v10303_v33 = vand.u32 4294901760, %v10295_v23 }
  0xd3   :  { %v333_v14 = vpop.f32.mrf.mxu0 }
  0xd4   :  { %17697 = vst [vmem:[#allocation98_spill] sm:$0xff] %v10285_v57  ;;  %v10305_v57 = vand.u32 4294901760, %v159_v9 }
  0xd5   :  { %v1264_v4 = vpop.f32.mrf.mxu3  ;;  %v736_v30 = vpop.f32.mrf.mxu1  ;;  %17699 = vst [vmem:[#allocation100_spill] sm:$0xff] %v10300_v1 }
  0xd6   :  { %460 = vmatmul.f32.gmra.mxu0 %v10278_v13  ;;  %v975_v52 = vpop.f32.mrf.mxu2  ;;  %v737_v58 = vadd.f32 %v736_v30, %v333_v14  ;;  %17700 = vst [vmem:[#allocation101_spill] sm:$0xff] %v10303_v33  ;;  %v50_v14 = vld [vmem:[%s17000_s1 + $0xe8] sm:$0xff]  ;;  %v10317_v47 = vsub.f32 %v159_v9, %v10305_v57 }
  0xd7   :  { %17701 = vst [vmem:[#allocation102_spill] sm:$0xff] %v10305_v57 }
  0xd8   :  { %v976_v49 = vadd.f32 %v975_v52, %v737_v58  ;;  %799 = vmatmul.f32.gmra.mxu1 %v10239_v45  ;;  %v474_v52 = vsub.f32 %v10295_v23, %v10303_v33  ;;  %17703 = vst [vmem:[#allocation104_spill] sm:$0xff] %v10317_v47  ;;  %v162_v58 = vsel %vm73_vm1, %v50_v14, 0 }
  0xda   :  { %1365 = vmatmul.f32.gmra.mxu3 %v10281_v44  ;;  %v10307_v13 = vadd.f32 %v1264_v4, %v976_v49  ;;  %1059 = vmatmul.f32.gmra.mxu2 %v10273_v16  ;;  %v10322_v44 = vand.u32 4294901760, %v474_v52  ;;  %v10325_v16 = vand.u32 4294901760, %v10317_v47 }
  0xdb   :  { %v341_v37 = vpop.f32.mrf.mxu0 }
  0xdc   :  { %17702 = vst [vmem:[#allocation103_spill] sm:$0xff] %v10307_v13  ;;  %v10327_v13 = vand.u32 4294901760, %v162_v58 }
  0xdd   :  { %v1270_v61 = vpop.f32.mrf.mxu3  ;;  %v740_v18 = vpop.f32.mrf.mxu1  ;;  %17704 = vst [vmem:[#allocation105_spill] sm:$0xff] %v10322_v44 }
  0xde   :  { %468 = vmatmul.f32.gmra.mxu0 %v10300_v1  ;;  %v980_v30 = vpop.f32.mrf.mxu2  ;;  %v741_v4 = vadd.f32 %v740_v18, %v341_v37  ;;  %17705 = vst [vmem:[#allocation106_spill] sm:$0xff] %v10325_v16  ;;  %v51_v37 = vld [vmem:[%s17000_s1 + $0xf0] sm:$0xff]  ;;  %v10339_v52 = vsub.f32 %v162_v58, %v10327_v13 }
  0xdf   :  { %17706 = vst [vmem:[#allocation107_spill] sm:$0xff] %v10327_v13 }
  0xe0   :  { %v981_v49 = vadd.f32 %v980_v30, %v741_v4  ;;  %803 = vmatmul.f32.gmra.mxu1 %v10261_v28  ;;  %v482_v30 = vsub.f32 %v10317_v47, %v10325_v16  ;;  %17708 = vst [vmem:[#allocation109_spill] sm:$0xff] %v10339_v52  ;;  %v165_v4 = vsel %vm73_vm1, %v51_v37, 0 }
  0xe2   :  { %1371 = vmatmul.f32.gmra.mxu3 %v10303_v33  ;;  %v10329_v1 = vadd.f32 %v1270_v61, %v981_v49  ;;  %1064 = vmatmul.f32.gmra.mxu2 %v10295_v23  ;;  %v10344_v33 = vand.u32 4294901760, %v482_v30  ;;  %v10347_v23 = vand.u32 4294901760, %v10339_v52 }
  0xe3   :  { %v349_v45 = vpop.f32.mrf.mxu0 }
  0xe4   :  { %17707 = vst [vmem:[#allocation108_spill] sm:$0xff] %v10329_v1  ;;  %v10349_v1 = vand.u32 4294901760, %v165_v4 }
  0xe5   :  { %v1276_v9 = vpop.f32.mrf.mxu3  ;;  %v744_v14 = vpop.f32.mrf.mxu1  ;;  %17709 = vst [vmem:[#allocation110_spill] sm:$0xff] %v10344_v33 }
  0xe6   :  { %476 = vmatmul.f32.gmra.mxu0 %v10322_v44  ;;  %v985_v18 = vpop.f32.mrf.mxu2  ;;  %v745_v61 = vadd.f32 %v744_v14, %v349_v45  ;;  %17710 = vst [vmem:[#allocation111_spill] sm:$0xff] %v10347_v23  ;;  %v52_v45 = vld [vmem:[%s17000_s1 + $0xf8] sm:$0xff]  ;;  %v10361_v30 = vsub.f32 %v165_v4, %v10349_v1 }
  0xe7   :  { %17711 = vst [vmem:[#allocation112_spill] sm:$0xff] %v10349_v1 }
  0xe8   :  { %v986_v49 = vadd.f32 %v985_v18, %v745_v61  ;;  %807 = vmatmul.f32.gmra.mxu1 %v10283_v19  ;;  %v490_v18 = vsub.f32 %v10339_v52, %v10347_v23  ;;  %17713 = vst [vmem:[#allocation114_spill] sm:$0xff] %v10361_v30  ;;  %v168_v61 = vsel %vm73_vm1, %v52_v45, 0 }
  0xea   :  { %1377 = vmatmul.f32.gmra.mxu3 %v10325_v16  ;;  %v10351_v44 = vadd.f32 %v1276_v9, %v986_v49  ;;  %1069 = vmatmul.f32.gmra.mxu2 %v10317_v47  ;;  %v10366_v16 = vand.u32 4294901760, %v490_v18  ;;  %v10369_v47 = vand.u32 4294901760, %v10361_v30 }
  0xeb   :  { %v357_v28 = vpop.f32.mrf.mxu0 }
  0xec   :  { %17712 = vst [vmem:[#allocation113_spill] sm:$0xff] %v10351_v44  ;;  %v10371_v44 = vand.u32 4294901760, %v168_v61 }
  0xed   :  { %v1282_v58 = vpop.f32.mrf.mxu3  ;;  %v748_v37 = vpop.f32.mrf.mxu1  ;;  %17714 = vst [vmem:[#allocation115_spill] sm:$0xff] %v10366_v16 }
  0xee   :  { %484 = vmatmul.f32.gmra.mxu0 %v10344_v33  ;;  %v990_v14 = vpop.f32.mrf.mxu2  ;;  %v749_v9 = vadd.f32 %v748_v37, %v357_v28  ;;  %17715 = vst [vmem:[#allocation116_spill] sm:$0xff] %v10369_v47  ;;  %v53_v28 = vld [vmem:[%s17000_s1 + $0x100] sm:$0xff]  ;;  %v10383_v18 = vsub.f32 %v168_v61, %v10371_v44 }
  0xef   :  { %17716 = vst [vmem:[#allocation117_spill] sm:$0xff] %v10371_v44 }
  0xf0   :  { %v991_v49 = vadd.f32 %v990_v14, %v749_v9  ;;  %811 = vmatmul.f32.gmra.mxu1 %v10305_v57  ;;  %v498_v14 = vsub.f32 %v10361_v30, %v10369_v47  ;;  %17718 = vst [vmem:[#allocation119_spill] sm:$0xff] %v10383_v18  ;;  %v171_v9 = vsel %vm73_vm1, %v53_v28, 0 }
  0xf2   :  { %1383 = vmatmul.f32.gmra.mxu3 %v10347_v23  ;;  %v10373_v33 = vadd.f32 %v1282_v58, %v991_v49  ;;  %1074 = vmatmul.f32.gmra.mxu2 %v10339_v52  ;;  %v10388_v23 = vand.u32 4294901760, %v498_v14  ;;  %v10391_v52 = vand.u32 4294901760, %v10383_v18 }
  0xf3   :  { %v365_v19 = vpop.f32.mrf.mxu0 }
  0xf4   :  { %17717 = vst [vmem:[#allocation118_spill] sm:$0xff] %v10373_v33  ;;  %v10393_v33 = vand.u32 4294901760, %v171_v9 }
  0xf5   :  { %v1288_v4 = vpop.f32.mrf.mxu3  ;;  %v752_v45 = vpop.f32.mrf.mxu1  ;;  %17719 = vst [vmem:[#allocation120_spill] sm:$0xff] %v10388_v23 }
  0xf6   :  { %492 = vmatmul.f32.gmra.mxu0 %v10366_v16  ;;  %v995_v37 = vpop.f32.mrf.mxu2  ;;  %v753_v58 = vadd.f32 %v752_v45, %v365_v19  ;;  %17720 = vst [vmem:[#allocation121_spill] sm:$0xff] %v10391_v52  ;;  %v54_v19 = vld [vmem:[%s17000_s1 + $0x108] sm:$0xff]  ;;  %v10405_v14 = vsub.f32 %v171_v9, %v10393_v33 }
  0xf7   :  { %17721 = vst [vmem:[#allocation122_spill] sm:$0xff] %v10393_v33 }
  0xf8   :  { %v996_v49 = vadd.f32 %v995_v37, %v753_v58  ;;  %815 = vmatmul.f32.gmra.mxu1 %v10327_v13  ;;  %v506_v37 = vsub.f32 %v10383_v18, %v10391_v52  ;;  %17723 = vst [vmem:[#allocation124_spill] sm:$0xff] %v10405_v14  ;;  %v174_v58 = vsel %vm73_vm1, %v54_v19, 0 }
  0xfa   :  { %1389 = vmatmul.f32.gmra.mxu3 %v10369_v47  ;;  %v10395_v16 = vadd.f32 %v1288_v4, %v996_v49  ;;  %1079 = vmatmul.f32.gmra.mxu2 %v10361_v30  ;;  %v10410_v47 = vand.u32 4294901760, %v506_v37  ;;  %v10413_v30 = vand.u32 4294901760, %v10405_v14 }
  0xfb   :  { %v373_v57 = vpop.f32.mrf.mxu0 }
  0xfc   :  { %17722 = vst [vmem:[#allocation123_spill] sm:$0xff] %v10395_v16  ;;  %v10415_v16 = vand.u32 4294901760, %v174_v58 }
  0xfd   :  { %v1294_v61 = vpop.f32.mrf.mxu3  ;;  %v756_v28 = vpop.f32.mrf.mxu1  ;;  %17724 = vst [vmem:[#allocation125_spill] sm:$0xff] %v10410_v47 }
  0xfe   :  { %500 = vmatmul.f32.gmra.mxu0 %v10388_v23  ;;  %v1000_v45 = vpop.f32.mrf.mxu2  ;;  %v757_v4 = vadd.f32 %v756_v28, %v373_v57  ;;  %17725 = vst [vmem:[#allocation126_spill] sm:$0xff] %v10413_v30  ;;  %v55_v57 = vld [vmem:[%s17000_s1 + $0x110] sm:$0xff]  ;;  %v10427_v37 = vsub.f32 %v174_v58, %v10415_v16 }
  0xff   :  { %17726 = vst [vmem:[#allocation127_spill] sm:$0xff] %v10415_v16 }
 0x100   :  { %v1001_v49 = vadd.f32 %v1000_v45, %v757_v4  ;;  %819 = vmatmul.f32.gmra.mxu1 %v10349_v1  ;;  %v514_v45 = vsub.f32 %v10405_v14, %v10413_v30  ;;  %17728 = vst [vmem:[#allocation129_spill] sm:$0xff] %v10427_v37  ;;  %v177_v4 = vsel %vm73_vm1, %v55_v57, 0 }
 0x102   :  { %1395 = vmatmul.f32.gmra.mxu3 %v10391_v52  ;;  %v10417_v23 = vadd.f32 %v1294_v61, %v1001_v49  ;;  %1084 = vmatmul.f32.gmra.mxu2 %v10383_v18  ;;  %v10432_v52 = vand.u32 4294901760, %v514_v45  ;;  %v10435_v18 = vand.u32 4294901760, %v10427_v37 }
 0x103   :  { %v381_v13 = vpop.f32.mrf.mxu0 }
 0x104   :  { %17727 = vst [vmem:[#allocation128_spill] sm:$0xff] %v10417_v23  ;;  %v10437_v23 = vand.u32 4294901760, %v177_v4 }
 0x105   :  { %v1300_v9 = vpop.f32.mrf.mxu3  ;;  %v760_v19 = vpop.f32.mrf.mxu1  ;;  %17729 = vst [vmem:[#allocation130_spill] sm:$0xff] %v10432_v52 }
 0x106   :  { %508 = vmatmul.f32.gmra.mxu0 %v10410_v47  ;;  %v1005_v28 = vpop.f32.mrf.mxu2  ;;  %v761_v61 = vadd.f32 %v760_v19, %v381_v13  ;;  %17730 = vst [vmem:[#allocation131_spill] sm:$0xff] %v10435_v18  ;;  %v56_v13 = vld [vmem:[%s17000_s1 + $0x118] sm:$0xff]  ;;  %v10449_v45 = vsub.f32 %v177_v4, %v10437_v23 }
 0x107   :  { %17731 = vst [vmem:[#allocation132_spill] sm:$0xff] %v10437_v23 }
 0x108   :  { %v1006_v49 = vadd.f32 %v1005_v28, %v761_v61  ;;  %823 = vmatmul.f32.gmra.mxu1 %v10371_v44  ;;  %v522_v28 = vsub.f32 %v10427_v37, %v10435_v18  ;;  %17733 = vst [vmem:[#allocation134_spill] sm:$0xff] %v10449_v45  ;;  %v180_v61 = vsel %vm73_vm1, %v56_v13, 0 }
 0x10a   :  { %1401 = vmatmul.f32.gmra.mxu3 %v10413_v30  ;;  %v10439_v47 = vadd.f32 %v1300_v9, %v1006_v49  ;;  %1089 = vmatmul.f32.gmra.mxu2 %v10405_v14  ;;  %v10454_v30 = vand.u32 4294901760, %v522_v28  ;;  %v10457_v14 = vand.u32 4294901760, %v10449_v45 }
 0x10b   :  { %v389_v1 = vpop.f32.mrf.mxu0 }
 0x10c   :  { %17732 = vst [vmem:[#allocation133_spill] sm:$0xff] %v10439_v47  ;;  %v10459_v47 = vand.u32 4294901760, %v180_v61 }
 0x10d   :  { %v1306_v58 = vpop.f32.mrf.mxu3  ;;  %v764_v57 = vpop.f32.mrf.mxu1  ;;  %17734 = vst [vmem:[#allocation135_spill] sm:$0xff] %v10454_v30 }
 0x10e   :  { %516 = vmatmul.f32.gmra.mxu0 %v10432_v52  ;;  %v1010_v19 = vpop.f32.mrf.mxu2  ;;  %v765_v9 = vadd.f32 %v764_v57, %v389_v1  ;;  %17735 = vst [vmem:[#allocation136_spill] sm:$0xff] %v10457_v14  ;;  %v57_v1 = vld [vmem:[%s17000_s1 + $0x120] sm:$0xff]  ;;  %v10471_v28 = vsub.f32 %v180_v61, %v10459_v47 }
 0x10f   :  { %17736 = vst [vmem:[#allocation137_spill] sm:$0xff] %v10459_v47 }
 0x110   :  { %v1011_v49 = vadd.f32 %v1010_v19, %v765_v9  ;;  %827 = vmatmul.f32.gmra.mxu1 %v10393_v33  ;;  %v530_v19 = vsub.f32 %v10449_v45, %v10457_v14  ;;  %17738 = vst [vmem:[#allocation139_spill] sm:$0xff] %v10471_v28  ;;  %v183_v9 = vsel %vm73_vm1, %v57_v1, 0 }
 0x112   :  { %1407 = vmatmul.f32.gmra.mxu3 %v10435_v18  ;;  %v10461_v52 = vadd.f32 %v1306_v58, %v1011_v49  ;;  %1094 = vmatmul.f32.gmra.mxu2 %v10427_v37  ;;  %v10476_v18 = vand.u32 4294901760, %v530_v19  ;;  %v10479_v37 = vand.u32 4294901760, %v10471_v28 }
 0x113   :  { %v397_v44 = vpop.f32.mrf.mxu0 }
 0x114   :  { %17737 = vst [vmem:[#allocation138_spill] sm:$0xff] %v10461_v52  ;;  %v10481_v52 = vand.u32 4294901760, %v183_v9 }
 0x115   :  { %v1312_v4 = vpop.f32.mrf.mxu3  ;;  %v768_v13 = vpop.f32.mrf.mxu1  ;;  %17739 = vst [vmem:[#allocation140_spill] sm:$0xff] %v10476_v18 }
 0x116   :  { %524 = vmatmul.f32.gmra.mxu0 %v10454_v30  ;;  %v1015_v57 = vpop.f32.mrf.mxu2  ;;  %v769_v58 = vadd.f32 %v768_v13, %v397_v44  ;;  %17740 = vst [vmem:[#allocation141_spill] sm:$0xff] %v10479_v37  ;;  %v58_v44 = vld [vmem:[%s17000_s1 + $0x128] sm:$0xff]  ;;  %v10493_v19 = vsub.f32 %v183_v9, %v10481_v52  ;;  %v59_v9 = vld [vmem:[%s17000_s1 + $0x130] sm:$0xff] }
 0x117   :  { %17741 = vst [vmem:[#allocation142_spill] sm:$0xff] %v10481_v52 }
 0x118   :  { %v1016_v49 = vadd.f32 %v1015_v57, %v769_v58  ;;  %831 = vmatmul.f32.gmra.mxu1 %v10415_v16  ;;  %v538_v57 = vsub.f32 %v10471_v28, %v10479_v37  ;;  %17743 = vst [vmem:[#allocation144_spill] sm:$0xff] %v10493_v19  ;;  %v186_v58 = vsel %vm73_vm1, %v58_v44, 0 }
 0x11a   :  { %1413 = vmatmul.f32.gmra.mxu3 %v10457_v14  ;;  %v10483_v30 = vadd.f32 %v1312_v4, %v1016_v49  ;;  %1099 = vmatmul.f32.gmra.mxu2 %v10449_v45  ;;  %v10498_v14 = vand.u32 4294901760, %v538_v57  ;;  %v10501_v45 = vand.u32 4294901760, %v10493_v19 }
 0x11b   :  { %v405_v33 = vpop.f32.mrf.mxu0 }
 0x11c   :  { %17742 = vst [vmem:[#allocation143_spill] sm:$0xff] %v10483_v30  ;;  %v10503_v30 = vand.u32 4294901760, %v186_v58 }
 0x11d   :  { %v1318_v61 = vpop.f32.mrf.mxu3  ;;  %v772_v1 = vpop.f32.mrf.mxu1  ;;  %17744 = vst [vmem:[#allocation145_spill] sm:$0xff] %v10498_v14 }
 0x11e   :  { %532 = vmatmul.f32.gmra.mxu0 %v10476_v18  ;;  %v1020_v13 = vpop.f32.mrf.mxu2  ;;  %v773_v4 = vadd.f32 %v772_v1, %v405_v33  ;;  %17745 = vst [vmem:[#allocation146_spill] sm:$0xff] %v10501_v45  ;;  %v18_v33 = vld [vmem:[%s16999_s0 + $0x8] sm:$0xff] }
 0x11f   :  { %17746 = vst [vmem:[#allocation147_spill] sm:$0xff] %v10503_v30  ;;  %v1993_v44 = vand.u32 4294901760, %v18_v33 }
 0x120   :  { %v1021_v49 = vadd.f32 %v1020_v13, %v773_v4  ;;  %835 = vmatmul.f32.gmra.mxu1 %v10437_v23  ;;  %v10518_v4 = vsub.f32 %v186_v58, %v10503_v30 }
 0x121   :  { %1994 = vmatpush.msrb.mxu2 %v1993_v44  ;;  %2945 = vmatpush.msra.mxu1 %v1993_v44 }
 0x122   :  { %1419 = vmatmul.f32.gmra.mxu3 %v10479_v37  ;;  %v10505_v18 = vadd.f32 %v1318_v61, %v1021_v49  ;;  %1104 = vmatmul.f32.gmra.mxu2 %v10471_v28  ;;  %v546_v61 = vsub.f32 %v10493_v19, %v10501_v45  ;;  %17748 = vst [vmem:[#allocation149_spill] sm:$0xff] %v10518_v4  ;;  %v189_v37 = vsel %vm73_vm1, %v59_v9, 0  ;;  %v10528_v58 = vand.u32 4294901760, %v10518_v4 }
 0x123   :  { %v413_v16 = vpop.f32.mrf.mxu0  ;;  %v2433_v28 = vsub.f32 %v18_v33, %v1993_v44 }
 0x124   :  { %17747 = vst [vmem:[#allocation148_spill] sm:$0xff] %v10505_v18  ;;  %v17749_v18 = vand.u32 4294901760, %v9952_v59  ;;  %v10525_v40 = vand.u32 4294901760, %v546_v61 }
 0x125   :  { %v1324_v1 = vpop.f32.mrf.mxu3  ;;  %v776_v13 = vpop.f32.mrf.mxu1  ;;  %2666 = vmatpush.msra.mxu0 %v2433_v28  ;;  %17750 = vst [vmem:[#allocation150_spill] sm:$0xff] %v10528_v58 }
 0x126   :  { %540 = vmatmul.f32.gmra.mxu0 %v10498_v14  ;;  %v1025_v57 = vpop.f32.mrf.mxu2  ;;  %v777_v49 = vadd.f32 %v776_v13, %v413_v16  ;;  %3276 = vmatpush.msra.mxu2 %v17749_v18  ;;  %v2434_v14 = vand.u32 4294901760, %v2433_v28  ;;  %v10530_v16 = vand.u32 4294901760, %v189_v37  ;;  %v60_v18 = vld [vmem:[%s17000_s1 + $0x138] sm:$0xff] }
 0x128   :  { %v1026_v23 = vadd.f32 %v1025_v57, %v777_v49  ;;  %839 = vmatmul.f32.gmra.mxu1 %v10459_v47  ;;  %17751 = vst [vmem:[#allocation151_spill] sm:$0xff] %v10530_v16  ;;  %v2435_v59 = vsub.f32 %v2433_v28, %v2434_v14  ;;  %3280 = vmatpush.msra.mxu2 %v2434_v14  ;;  %v192_v28 = vsel %vm73_vm1, %v60_v18, 0 }
 0x12a   :  { %1425 = vmatmul.f32.gmra.mxu3 %v10501_v45  ;;  %v10532_v9 = vadd.f32 %v1324_v1, %v1026_v23  ;;  %1109 = vmatmul.f32.gmra.mxu2 %v10493_v19  ;;  %v2436_v57 = vand.u32 4294901760, %v2435_v59  ;;  %v554_v45 = vsub.f32 %v10518_v4, %v10528_v58  ;;  %v10542_v23 = vsub.f32 %v189_v37, %v10530_v16 }
 0x12b   :  { %v421_v33 = vpop.f32.mrf.mxu0 }
 0x12c   :  { %17752 = vst [vmem:[#allocation152_spill] sm:$0xff] %v10532_v9  ;;  %2437 = vmatpush.msrb.mxu3 %v2436_v57  ;;  %v10548_v14 = vand.u32 4294901760, %v554_v45  ;;  %v10551_v59 = vand.u32 4294901760, %v10542_v23  ;;  %v10553_v9 = vand.u32 4294901760, %v192_v28 }
 0x12d   :  { %v1330_v13 = vpop.f32.mrf.mxu3  ;;  %v780_v61 = vpop.f32.mrf.mxu1  ;;  %17753 = vst [vmem:[#allocation153_spill] sm:$0xff] %v10542_v23 }
 0x12e   :  { %548 = vmatmul.f32.gmra.mxu0 %v10525_v40  ;;  %v1030_v49 = vpop.f32.mrf.mxu2  ;;  %v781_v1 = vadd.f32 %v780_v61, %v421_v33  ;;  %3505 = vmatpush.msra.mxu3 %v9941_v50  ;;  %17754 = vst [vmem:[#allocation154_spill] sm:$0xff] %v10548_v14  ;;  %v61_v50 = vld [vmem:[%s17000_s1 + $0x140] sm:$0xff]  ;;  %v562_v61 = vsub.f32 %v10542_v23, %v10551_v59 }
 0x12f   :  { %17755 = vst [vmem:[#allocation155_spill] sm:$0xff] %v10551_v59 }
 0x130   :  { %v1031_v19 = vadd.f32 %v1030_v49, %v781_v1  ;;  %843 = vmatmul.f32.gmra.mxu1 %v10481_v52  ;;  %17756 = vst [vmem:[#allocation156_spill] sm:$0xff] %v10553_v9  ;;  %3507 = vmatpush.msra.mxu3 %v1993_v44  ;;  %v10565_v49 = vsub.f32 %v192_v28, %v10553_v9  ;;  %v10570_v44 = vand.u32 4294901760, %v562_v61  ;;  %v62_v28 = vld [vmem:[%s17000_s1 + $0x148] sm:$0xff] }
 0x132   :  { %1431 = vmatmul.f32.gmra.mxu3 %v10528_v58  ;;  %v10555_v37 = vadd.f32 %v1330_v13, %v1031_v19  ;;  %1114 = vmatmul.f32.gmra.mxu2 %v10518_v4  ;;  %17758 = vst [vmem:[#allocation158_spill] sm:$0xff] %v10565_v49  ;;  %v195_v13 = vsel %vm73_vm1, %v61_v50, 0  ;;  %v10573_v58 = vand.u32 4294901760, %v10565_v49 }
 0x133   :  { %v429_v33 = vpop.f32.mrf.mxu0  ;;  %17759 = vst [vmem:[#allocation159_spill] sm:$0xff] %v10570_v44  ;;  %v10575_v4 = vand.u32 4294901760, %v195_v13 }
 0x134   :  { %17757 = vst [vmem:[#allocation157_spill] sm:$0xff] %v10555_v37 }
 0x135   :  { %v1336_v18 = vpop.f32.mrf.mxu3  ;;  %v784_v45 = vpop.f32.mrf.mxu1  ;;  %17760 = vst [vmem:[#allocation160_spill] sm:$0xff] %v10573_v58  ;;  %v10587_v61 = vsub.f32 %v195_v13, %v10575_v4 }
 0x136   :  { %556 = vmatmul.f32.gmra.mxu0 %v10548_v14  ;;  %v1035_v57 = vpop.f32.mrf.mxu2  ;;  %v785_v19 = vadd.f32 %v784_v45, %v429_v33  ;;  %17761 = vst [vmem:[#allocation161_spill] sm:$0xff] %v10575_v4 }
 0x137   :  { %17763 = vst [vmem:[#allocation163_spill] sm:$0xff] %v10587_v61 }
 0x138   :  { %v1036_v1 = vadd.f32 %v1035_v57, %v785_v19  ;;  %847 = vmatmul.f32.gmra.mxu1 %v10503_v30  ;;  %v570_v57 = vsub.f32 %v10565_v49, %v10573_v58  ;;  %v198_v19 = vsel %vm73_vm1, %v62_v28, 0 }
 0x13a   :  { %1437 = vmatmul.f32.gmra.mxu3 %v10551_v59  ;;  %v10577_v37 = vadd.f32 %v1336_v18, %v1036_v1  ;;  %1119 = vmatmul.f32.gmra.mxu2 %v10542_v23  ;;  %v10592_v59 = vand.u32 4294901760, %v570_v57  ;;  %v10595_v23 = vand.u32 4294901760, %v10587_v61 }
 0x13b   :  { %v437_v14 = vpop.f32.mrf.mxu0 }
 0x13c   :  { %17762 = vst [vmem:[#allocation162_spill] sm:$0xff] %v10577_v37  ;;  %v10597_v37 = vand.u32 4294901760, %v198_v19 }
 0x13d   :  { %v1342_v33 = vpop.f32.mrf.mxu3  ;;  %v788_v50 = vpop.f32.mrf.mxu1  ;;  %17764 = vst [vmem:[#allocation164_spill] sm:$0xff] %v10592_v59 }
 0x13e   :  { %564 = vmatmul.f32.gmra.mxu0 %v10570_v44  ;;  %v1040_v45 = vpop.f32.mrf.mxu2  ;;  %v789_v18 = vadd.f32 %v788_v50, %v437_v14  ;;  %17765 = vst [vmem:[#allocation165_spill] sm:$0xff] %v10595_v23  ;;  %v63_v14 = vld [vmem:[%s17000_s1 + $0x150] sm:$0xff]  ;;  %v10609_v57 = vsub.f32 %v198_v19, %v10597_v37 }
 0x13f   :  { %17766 = vst [vmem:[#allocation166_spill] sm:$0xff] %v10597_v37 }
 0x140   :  { %v1041_v1 = vadd.f32 %v1040_v45, %v789_v18  ;;  %851 = vmatmul.f32.gmra.mxu1 %v10530_v16  ;;  %v578_v45 = vsub.f32 %v10587_v61, %v10595_v23  ;;  %17768 = vst [vmem:[#allocation168_spill] sm:$0xff] %v10609_v57  ;;  %v201_v18 = vsel %vm73_vm1, %v63_v14, 0 }
 0x142   :  { %1443 = vmatmul.f32.gmra.mxu3 %v10573_v58  ;;  %v10599_v44 = vadd.f32 %v1342_v33, %v1041_v1  ;;  %1124 = vmatmul.f32.gmra.mxu2 %v10565_v49  ;;  %v10614_v58 = vand.u32 4294901760, %v578_v45  ;;  %v10617_v49 = vand.u32 4294901760, %v10609_v57 }
 0x143   :  { %v445_v30 = vpop.f32.mrf.mxu0 }
 0x144   :  { %17767 = vst [vmem:[#allocation167_spill] sm:$0xff] %v10599_v44 }
 0x145   :  { %v1348_v13 = vpop.f32.mrf.mxu3  ;;  %v792_v28 = vpop.f32.mrf.mxu1  ;;  %17769 = vst [vmem:[#allocation169_spill] sm:$0xff] %v10614_v58 }
 0x146   :  { %572 = vmatmul.f32.gmra.mxu0 %v10592_v59  ;;  %v1045_v50 = vpop.f32.mrf.mxu2  ;;  %v793_v33 = vadd.f32 %v792_v28, %v445_v30  ;;  %17770 = vst [vmem:[#allocation170_spill] sm:$0xff] %v10617_v49  ;;  %v10619_v59 = vand.u32 4294901760, %v201_v18  ;;  %v64_v30 = vld [vmem:[%s17000_s1 + $0x158] sm:$0xff] }
 0x148   :  { %v1046_v1 = vadd.f32 %v1045_v50, %v793_v33  ;;  %855 = vmatmul.f32.gmra.mxu1 %v10553_v9  ;;  %17771 = vst [vmem:[#allocation171_spill] sm:$0xff] %v10619_v59  ;;  %v586_v50 = vsub.f32 %v10609_v57, %v10617_v49  ;;  %v10631_v45 = vsub.f32 %v201_v18, %v10619_v59  ;;  %v204_v33 = vsel %vm73_vm1, %v64_v30, 0 }
 0x14a   :  { %1449 = vmatmul.f32.gmra.mxu3 %v10595_v23  ;;  %v10621_v44 = vadd.f32 %v1348_v13, %v1046_v1  ;;  %1129 = vmatmul.f32.gmra.mxu2 %v10587_v61  ;;  %17773 = vst [vmem:[#allocation173_spill] sm:$0xff] %v10631_v45  ;;  %v10636_v23 = vand.u32 4294901760, %v586_v50  ;;  %v10639_v61 = vand.u32 4294901760, %v10631_v45 }
 0x14b   :  { %v453_v16 = vpop.f32.mrf.mxu0 }
 0x14c   :  { %17772 = vst [vmem:[#allocation172_spill] sm:$0xff] %v10621_v44 }
 0x14d   :  { %v1354_v19 = vpop.f32.mrf.mxu3  ;;  %v796_v14 = vpop.f32.mrf.mxu1  ;;  %17774 = vst [vmem:[#allocation174_spill] sm:$0xff] %v10636_v23 }
 0x14e   :  { %580 = vmatmul.f32.gmra.mxu0 %v10614_v58  ;;  %v1050_v28 = vpop.f32.mrf.mxu2  ;;  %v797_v13 = vadd.f32 %v796_v14, %v453_v16  ;;  %17775 = vst [vmem:[#allocation175_spill] sm:$0xff] %v10639_v61  ;;  %v10641_v58 = vand.u32 4294901760, %v204_v33  ;;  %v65_v16 = vld [vmem:[%s17000_s1 + $0x160] sm:$0xff] }
 0x150   :  { %v1051_v1 = vadd.f32 %v1050_v28, %v797_v13  ;;  %859 = vmatmul.f32.gmra.mxu1 %v10575_v4  ;;  %17776 = vst [vmem:[#allocation176_spill] sm:$0xff] %v10641_v58  ;;  %v594_v28 = vsub.f32 %v10631_v45, %v10639_v61  ;;  %v10653_v50 = vsub.f32 %v204_v33, %v10641_v58  ;;  %v207_v13 = vsel %vm73_vm1, %v65_v16, 0 }
 0x152   :  { %1455 = vmatmul.f32.gmra.mxu3 %v10617_v49  ;;  %v10643_v44 = vadd.f32 %v1354_v19, %v1051_v1  ;;  %1134 = vmatmul.f32.gmra.mxu2 %v10609_v57  ;;  %17778 = vst [vmem:[#allocation178_spill] sm:$0xff] %v10653_v50  ;;  %v10658_v49 = vand.u32 4294901760, %v594_v28  ;;  %v10661_v57 = vand.u32 4294901760, %v10653_v50 }
 0x153   :  { %v461_v9 = vpop.f32.mrf.mxu0 }
 0x154   :  { %17777 = vst [vmem:[#allocation177_spill] sm:$0xff] %v10643_v44 }
 0x155   :  { %v1360_v18 = vpop.f32.mrf.mxu3  ;;  %v800_v30 = vpop.f32.mrf.mxu1  ;;  %17779 = vst [vmem:[#allocation179_spill] sm:$0xff] %v10658_v49 }
 0x156   :  { %588 = vmatmul.f32.gmra.mxu0 %v10636_v23  ;;  %v1055_v14 = vpop.f32.mrf.mxu2  ;;  %v801_v19 = vadd.f32 %v800_v30, %v461_v9  ;;  %17780 = vst [vmem:[#allocation180_spill] sm:$0xff] %v10661_v57  ;;  %v10663_v23 = vand.u32 4294901760, %v207_v13  ;;  %v66_v9 = vld [vmem:[%s17000_s1 + $0x168] sm:$0xff] }
 0x158   :  { %v1056_v1 = vadd.f32 %v1055_v14, %v801_v19  ;;  %863 = vmatmul.f32.gmra.mxu1 %v10597_v37  ;;  %17781 = vst [vmem:[#allocation181_spill] sm:$0xff] %v10663_v23  ;;  %v602_v14 = vsub.f32 %v10653_v50, %v10661_v57  ;;  %v10675_v28 = vsub.f32 %v207_v13, %v10663_v23  ;;  %v210_v19 = vsel %vm73_vm1, %v66_v9, 0 }
 0x15a   :  { %1461 = vmatmul.f32.gmra.mxu3 %v10639_v61  ;;  %v10665_v44 = vadd.f32 %v1360_v18, %v1056_v1  ;;  %1139 = vmatmul.f32.gmra.mxu2 %v10631_v45  ;;  %17783 = vst [vmem:[#allocation183_spill] sm:$0xff] %v10675_v28  ;;  %v10680_v61 = vand.u32 4294901760, %v602_v14  ;;  %v10683_v45 = vand.u32 4294901760, %v10675_v28 }
 0x15b   :  { %v469_v4 = vpop.f32.mrf.mxu0 }
 0x15c   :  { %17782 = vst [vmem:[#allocation182_spill] sm:$0xff] %v10665_v44 }
 0x15d   :  { %v1366_v33 = vpop.f32.mrf.mxu3  ;;  %v804_v16 = vpop.f32.mrf.mxu1  ;;  %17784 = vst [vmem:[#allocation184_spill] sm:$0xff] %v10680_v61 }
 0x15e   :  { %596 = vmatmul.f32.gmra.mxu0 %v10658_v49  ;;  %v1060_v30 = vpop.f32.mrf.mxu2  ;;  %v805_v18 = vadd.f32 %v804_v16, %v469_v4  ;;  %17785 = vst [vmem:[#allocation185_spill] sm:$0xff] %v10683_v45  ;;  %v10685_v49 = vand.u32 4294901760, %v210_v19  ;;  %v67_v4 = vld [vmem:[%s17000_s1 + $0x170] sm:$0xff] }
 0x160   :  { %v1061_v1 = vadd.f32 %v1060_v30, %v805_v18  ;;  %867 = vmatmul.f32.gmra.mxu1 %v10619_v59  ;;  %17786 = vst [vmem:[#allocation186_spill] sm:$0xff] %v10685_v49  ;;  %v610_v30 = vsub.f32 %v10675_v28, %v10683_v45  ;;  %v10697_v14 = vsub.f32 %v210_v19, %v10685_v49  ;;  %v213_v18 = vsel %vm73_vm1, %v67_v4, 0 }
 0x162   :  { %1467 = vmatmul.f32.gmra.mxu3 %v10661_v57  ;;  %v10687_v44 = vadd.f32 %v1366_v33, %v1061_v1  ;;  %1144 = vmatmul.f32.gmra.mxu2 %v10653_v50  ;;  %17788 = vst [vmem:[#allocation188_spill] sm:$0xff] %v10697_v14  ;;  %v10702_v57 = vand.u32 4294901760, %v610_v30  ;;  %v10705_v50 = vand.u32 4294901760, %v10697_v14 }
 0x163   :  { %v477_v37 = vpop.f32.mrf.mxu0 }
 0x164   :  { %17787 = vst [vmem:[#allocation187_spill] sm:$0xff] %v10687_v44 }
 0x165   :  { %v1372_v13 = vpop.f32.mrf.mxu3  ;;  %v808_v9 = vpop.f32.mrf.mxu1  ;;  %17789 = vst [vmem:[#allocation189_spill] sm:$0xff] %v10702_v57 }
 0x166   :  { %604 = vmatmul.f32.gmra.mxu0 %v10680_v61  ;;  %v1065_v16 = vpop.f32.mrf.mxu2  ;;  %v809_v33 = vadd.f32 %v808_v9, %v477_v37  ;;  %17790 = vst [vmem:[#allocation190_spill] sm:$0xff] %v10705_v50  ;;  %v10707_v61 = vand.u32 4294901760, %v213_v18  ;;  %v68_v37 = vld [vmem:[%s17000_s1 + $0x178] sm:$0xff] }
 0x168   :  { %v1066_v1 = vadd.f32 %v1065_v16, %v809_v33  ;;  %871 = vmatmul.f32.gmra.mxu1 %v10641_v58  ;;  %17791 = vst [vmem:[#allocation191_spill] sm:$0xff] %v10707_v61  ;;  %v618_v16 = vsub.f32 %v10697_v14, %v10705_v50  ;;  %v10719_v30 = vsub.f32 %v213_v18, %v10707_v61  ;;  %v216_v33 = vsel %vm73_vm1, %v68_v37, 0 }
 0x16a   :  { %1473 = vmatmul.f32.gmra.mxu3 %v10683_v45  ;;  %v10709_v44 = vadd.f32 %v1372_v13, %v1066_v1  ;;  %1149 = vmatmul.f32.gmra.mxu2 %v10675_v28  ;;  %17793 = vst [vmem:[#allocation193_spill] sm:$0xff] %v10719_v30  ;;  %v10724_v45 = vand.u32 4294901760, %v618_v16  ;;  %v10727_v28 = vand.u32 4294901760, %v10719_v30 }
 0x16b   :  { %v485_v59 = vpop.f32.mrf.mxu0 }
 0x16c   :  { %17792 = vst [vmem:[#allocation192_spill] sm:$0xff] %v10709_v44 }
 0x16d   :  { %v1378_v19 = vpop.f32.mrf.mxu3  ;;  %v812_v4 = vpop.f32.mrf.mxu1  ;;  %17794 = vst [vmem:[#allocation194_spill] sm:$0xff] %v10724_v45 }
 0x16e   :  { %612 = vmatmul.f32.gmra.mxu0 %v10702_v57  ;;  %v1070_v9 = vpop.f32.mrf.mxu2  ;;  %v813_v13 = vadd.f32 %v812_v4, %v485_v59  ;;  %17795 = vst [vmem:[#allocation195_spill] sm:$0xff] %v10727_v28  ;;  %v10729_v57 = vand.u32 4294901760, %v216_v33  ;;  %v69_v59 = vld [vmem:[%s17000_s1 + $0x180] sm:$0xff] }
 0x170   :  { %v1071_v1 = vadd.f32 %v1070_v9, %v813_v13  ;;  %875 = vmatmul.f32.gmra.mxu1 %v10663_v23  ;;  %17796 = vst [vmem:[#allocation196_spill] sm:$0xff] %v10729_v57  ;;  %v626_v9 = vsub.f32 %v10719_v30, %v10727_v28  ;;  %v10741_v16 = vsub.f32 %v216_v33, %v10729_v57  ;;  %v219_v13 = vsel %vm73_vm1, %v69_v59, 0 }
 0x172   :  { %1479 = vmatmul.f32.gmra.mxu3 %v10705_v50  ;;  %v10731_v44 = vadd.f32 %v1378_v19, %v1071_v1  ;;  %1154 = vmatmul.f32.gmra.mxu2 %v10697_v14  ;;  %17798 = vst [vmem:[#allocation198_spill] sm:$0xff] %v10741_v16  ;;  %v10746_v50 = vand.u32 4294901760, %v626_v9  ;;  %v10749_v14 = vand.u32 4294901760, %v10741_v16 }
 0x173   :  { %v493_v58 = vpop.f32.mrf.mxu0 }
 0x174   :  { %17797 = vst [vmem:[#allocation197_spill] sm:$0xff] %v10731_v44 }
 0x175   :  { %v1384_v18 = vpop.f32.mrf.mxu3  ;;  %v816_v37 = vpop.f32.mrf.mxu1  ;;  %17799 = vst [vmem:[#allocation199_spill] sm:$0xff] %v10746_v50 }
 0x176   :  { %620 = vmatmul.f32.gmra.mxu0 %v10724_v45  ;;  %v1075_v4 = vpop.f32.mrf.mxu2  ;;  %v817_v19 = vadd.f32 %v816_v37, %v493_v58  ;;  %17800 = vst [vmem:[#allocation200_spill] sm:$0xff] %v10749_v14  ;;  %v10751_v45 = vand.u32 4294901760, %v219_v13  ;;  %v70_v58 = vld [vmem:[%s17000_s1 + $0x188] sm:$0xff] }
 0x178   :  { %v1076_v1 = vadd.f32 %v1075_v4, %v817_v19  ;;  %879 = vmatmul.f32.gmra.mxu1 %v10685_v49  ;;  %v634_v4 = vsub.f32 %v10741_v16, %v10749_v14  ;;  %v10763_v9 = vsub.f32 %v219_v13, %v10751_v45  ;;  %v222_v19 = vsel %vm73_vm1, %v70_v58, 0 }
 0x17a   :  { %1485 = vmatmul.f32.gmra.mxu3 %v10727_v28  ;;  %v10753_v44 = vadd.f32 %v1384_v18, %v1076_v1  ;;  %1159 = vmatmul.f32.gmra.mxu2 %v10719_v30  ;;  %17802 = vst [vmem:[#allocation202_spill] sm:$0xff] %v10763_v9  ;;  %v10768_v28 = vand.u32 4294901760, %v634_v4  ;;  %v10771_v30 = vand.u32 4294901760, %v10763_v9 }
 0x17b   :  { %v501_v23 = vpop.f32.mrf.mxu0 }
 0x17c   :  { %17801 = vst [vmem:[#allocation201_spill] sm:$0xff] %v10753_v44 }
 0x17d   :  { %v1390_v33 = vpop.f32.mrf.mxu3  ;;  %v820_v59 = vpop.f32.mrf.mxu1  ;;  %17803 = vst [vmem:[#allocation203_spill] sm:$0xff] %v10768_v28 }
 0x17e   :  { %628 = vmatmul.f32.gmra.mxu0 %v10746_v50  ;;  %v1080_v37 = vpop.f32.mrf.mxu2  ;;  %v821_v18 = vadd.f32 %v820_v59, %v501_v23  ;;  %17804 = vst [vmem:[#allocation204_spill] sm:$0xff] %v10771_v30  ;;  %v10773_v50 = vand.u32 4294901760, %v222_v19  ;;  %v71_v23 = vld [vmem:[%s17000_s1 + $0x190] sm:$0xff] }
 0x180   :  { %v1081_v1 = vadd.f32 %v1080_v37, %v821_v18  ;;  %883 = vmatmul.f32.gmra.mxu1 %v10707_v61  ;;  %17805 = vst [vmem:[#allocation205_spill] sm:$0xff] %v10773_v50  ;;  %v642_v37 = vsub.f32 %v10763_v9, %v10771_v30  ;;  %v10785_v4 = vsub.f32 %v222_v19, %v10773_v50  ;;  %v225_v18 = vsel %vm73_vm1, %v71_v23, 0 }
 0x182   :  { %1491 = vmatmul.f32.gmra.mxu3 %v10749_v14  ;;  %v10775_v44 = vadd.f32 %v1390_v33, %v1081_v1  ;;  %1164 = vmatmul.f32.gmra.mxu2 %v10741_v16  ;;  %17807 = vst [vmem:[#allocation207_spill] sm:$0xff] %v10785_v4  ;;  %v10790_v14 = vand.u32 4294901760, %v642_v37  ;;  %v10793_v16 = vand.u32 4294901760, %v10785_v4 }
 0x183   :  { %v509_v49 = vpop.f32.mrf.mxu0 }
 0x184   :  { %17806 = vst [vmem:[#allocation206_spill] sm:$0xff] %v10775_v44 }
 0x185   :  { %v1396_v13 = vpop.f32.mrf.mxu3  ;;  %v824_v58 = vpop.f32.mrf.mxu1  ;;  %17808 = vst [vmem:[#allocation208_spill] sm:$0xff] %v10790_v14 }
 0x186   :  { %636 = vmatmul.f32.gmra.mxu0 %v10768_v28  ;;  %v1085_v59 = vpop.f32.mrf.mxu2  ;;  %v825_v33 = vadd.f32 %v824_v58, %v509_v49  ;;  %17809 = vst [vmem:[#allocation209_spill] sm:$0xff] %v10793_v16  ;;  %v10795_v28 = vand.u32 4294901760, %v225_v18  ;;  %v72_v49 = vld [vmem:[%s17000_s1 + $0x198] sm:$0xff] }
 0x188   :  { %v1086_v1 = vadd.f32 %v1085_v59, %v825_v33  ;;  %887 = vmatmul.f32.gmra.mxu1 %v10729_v57  ;;  %v650_v59 = vsub.f32 %v10785_v4, %v10793_v16  ;;  %v10807_v37 = vsub.f32 %v225_v18, %v10795_v28  ;;  %v228_v33 = vsel %vm73_vm1, %v72_v49, 0 }
 0x18a   :  { %1497 = vmatmul.f32.gmra.mxu3 %v10771_v30  ;;  %v10797_v44 = vadd.f32 %v1396_v13, %v1086_v1  ;;  %1169 = vmatmul.f32.gmra.mxu2 %v10763_v9  ;;  %17811 = vst [vmem:[#allocation211_spill] sm:$0xff] %v10807_v37  ;;  %v10812_v30 = vand.u32 4294901760, %v650_v59  ;;  %v10815_v9 = vand.u32 4294901760, %v10807_v37 }
 0x18b   :  { %v517_v61 = vpop.f32.mrf.mxu0 }
 0x18c   :  { %17810 = vst [vmem:[#allocation210_spill] sm:$0xff] %v10797_v44 }
 0x18d   :  { %v1402_v19 = vpop.f32.mrf.mxu3  ;;  %v828_v23 = vpop.f32.mrf.mxu1  ;;  %17812 = vst [vmem:[#allocation212_spill] sm:$0xff] %v10812_v30 }
 0x18e   :  { %644 = vmatmul.f32.gmra.mxu0 %v10790_v14  ;;  %v1090_v58 = vpop.f32.mrf.mxu2  ;;  %v829_v13 = vadd.f32 %v828_v23, %v517_v61  ;;  %17813 = vst [vmem:[#allocation213_spill] sm:$0xff] %v10815_v9  ;;  %v10817_v14 = vand.u32 4294901760, %v228_v33  ;;  %v658_v23 = vsub.f32 %v10807_v37, %v10815_v9 }
 0x190   :  { %v1091_v1 = vadd.f32 %v1090_v58, %v829_v13  ;;  %891 = vmatmul.f32.gmra.mxu1 %v10751_v45  ;;  %v10826_v58 = vsub.f32 %v228_v33, %v10817_v14 }
 0x192   :  { %1503 = vmatmul.f32.gmra.mxu3 %v10793_v16  ;;  %v10819_v44 = vadd.f32 %v1402_v19, %v1091_v1  ;;  %1174 = vmatmul.f32.gmra.mxu2 %v10785_v4  ;;  %17814 = vst [vmem:[#allocation214_spill] sm:$0xff] %v10826_v58  ;;  %v10830_v19 = vand.u32 4294901760, %v658_v23  ;;  %v10833_v1 = vand.u32 4294901760, %v10826_v58 }
 0x193   :  { %v525_v57 = vpop.f32.mrf.mxu0 }
 0x194   :  { %17815 = vst [vmem:[#allocation215_spill] sm:$0xff] %v10830_v19 }
 0x195   :  { %v1408_v61 = vpop.f32.mrf.mxu3  ;;  %v832_v18 = vpop.f32.mrf.mxu1  ;;  %17816 = vst [vmem:[#allocation216_spill] sm:$0xff] %v10833_v1 }
 0x196   :  { %652 = vmatmul.f32.gmra.mxu0 %v10812_v30  ;;  %v1095_v49 = vpop.f32.mrf.mxu2  ;;  %v833_v59 = vadd.f32 %v832_v18, %v525_v57  ;;  %v666_v18 = vsub.f32 %v10826_v58, %v10833_v1 }
 0x198   :  { %v1096_v13 = vadd.f32 %v1095_v49, %v833_v59  ;;  %895 = vmatmul.f32.gmra.mxu1 %v10773_v50  ;;  %v10843_v23 = vand.u32 4294901760, %v666_v18 }
 0x19a   :  { %1509 = vmatmul.f32.gmra.mxu3 %v10815_v9  ;;  %v10835_v16 = vadd.f32 %v1408_v61, %v1096_v13  ;;  %1179 = vmatmul.f32.gmra.mxu2 %v10807_v37 }
 0x19b   :  { %v533_v4 = vpop.f32.mrf.mxu0 }
 0x19c   :  { %17817 = vst [vmem:[#allocation217_spill] sm:$0xff] %v10835_v16 }
 0x19d   :  { %v1414_v30 = vpop.f32.mrf.mxu3  ;;  %v836_v33 = vpop.f32.mrf.mxu1 }
 0x19e   :  { %660 = vmatmul.f32.gmra.mxu0 %v10830_v19  ;;  %v1100_v57 = vpop.f32.mrf.mxu2  ;;  %v837_v49 = vadd.f32 %v836_v33, %v533_v4 }
 0x1a0   :  { %v1101_v59 = vadd.f32 %v1100_v57, %v837_v49  ;;  %899 = vmatmul.f32.gmra.mxu1 %v10795_v28 }
 0x1a2   :  { %1515 = vmatmul.f32.gmra.mxu3 %v10833_v1  ;;  %v10845_v61 = vadd.f32 %v1414_v30, %v1101_v59  ;;  %1184 = vmatmul.f32.gmra.mxu2 %v10826_v58 }
 0x1a3   :  { %v541_v13 = vpop.f32.mrf.mxu0 }
 0x1a5   :  { %v1420_v9 = vpop.f32.mrf.mxu3  ;;  %v840_v37 = vpop.f32.mrf.mxu1 }
 0x1a6   :  { %668 = vmatmul.f32.gmra.mxu0 %v10843_v23  ;;  %v1105_v19 = vpop.f32.mrf.mxu2  ;;  %v841_v16 = vadd.f32 %v840_v37, %v541_v13 }
 0x1a8   :  { %v1106_v50 = vadd.f32 %v1105_v19, %v841_v16  ;;  %903 = vmatmul.f32.gmra.mxu1 %v10817_v14 }
 0x1aa   :  { %2439 = vmatmul.f32.vlgmr.msrb.gmra.mxu3 %v9725_v8  ;;  %v10851_v4 = vadd.f32 %v1420_v9, %v1106_v50  ;;  %2000 = vmatmul.f32.vlgmr.msrb.gmra.mxu2 %v9752_v25 }
 0x1ab   :  { %v549_v33 = vpop.f32.mrf.mxu0 }
 0x1ac   :  { %17818 = vst [vmem:[#allocation218_spill] sm:$0xff] %v10851_v4 }
 0x1ad   :  { %v1426_v30 = vpop.f32.mrf.mxu3  ;;  %v844_v57 = vpop.f32.mrf.mxu1 }
 0x1ae   :  { %1542 = vmatmul.f32.vlgmr.msrb.gmra.mxu0 %v9725_v8  ;;  %v1110_v18 = vpop.f32.mrf.mxu2  ;;  %v845_v49 = vadd.f32 %v844_v57, %v549_v33 }
 0x1b0   :  { %v1111_v59 = vadd.f32 %v1110_v18, %v845_v49  ;;  %1769 = vmatmul.f32.vlgmr.msrb.gmra.mxu1 %v9725_v8 }
 0x1b2   :  { %2443 = vmatmul.f32.gmra.mxu3 %v9731_v12  ;;  %v10857_v16 = vadd.f32 %v1426_v30, %v1111_v59  ;;  %2008 = vmatmul.f32.gmra.mxu2 %v9766_v32 }
 0x1b3   :  { %v557_v37 = vpop.f32.mrf.mxu0 }
 0x1b4   :  { %17819 = vst [vmem:[#allocation219_spill] sm:$0xff] %v10857_v16  ;;  %v17894_v16 = vld [vmem:[#allocation167_spill] sm:$0xff] }
 0x1b5   :  { %v1432_v50 = vpop.f32.mrf.mxu3  ;;  %v848_v9 = vpop.f32.mrf.mxu1 }
 0x1b6   :  { %1546 = vmatmul.f32.gmra.mxu0 %v9731_v12  ;;  %v1115_v25 = vpop.f32.mrf.mxu2  ;;  %v849_v19 = vadd.f32 %v848_v9, %v557_v37 }
 0x1b8   :  { %v1116_v13 = vadd.f32 %v1115_v25, %v849_v19  ;;  %1773 = vmatmul.f32.gmra.mxu1 %v9731_v12 }
 0x1ba   :  { %2447 = vmatmul.f32.gmra.mxu3 %v9749_v24  ;;  %v10863_v33 = vadd.f32 %v1432_v50, %v1116_v13  ;;  %2016 = vmatmul.f32.gmra.mxu2 %v9786_v39 }
 0x1bb   :  { %v565_v57 = vpop.f32.mrf.mxu0 }
 0x1bc   :  { %17820 = vst [vmem:[#allocation220_spill] sm:$0xff] %v10863_v33 }
 0x1bd   :  { %v1438_v30 = vpop.f32.mrf.mxu3  ;;  %v852_v18 = vpop.f32.mrf.mxu1 }
 0x1be   :  { %1550 = vmatmul.f32.gmra.mxu0 %v9749_v24  ;;  %v1120_v32 = vpop.f32.mrf.mxu2  ;;  %v853_v49 = vadd.f32 %v852_v18, %v565_v57 }
 0x1c0   :  { %v1121_v59 = vadd.f32 %v1120_v32, %v853_v49  ;;  %1777 = vmatmul.f32.gmra.mxu1 %v9749_v24 }
 0x1c2   :  { %2451 = vmatmul.f32.gmra.mxu3 %v9771_v34  ;;  %v10869_v37 = vadd.f32 %v1438_v30, %v1121_v59  ;;  %2024 = vmatmul.f32.gmra.mxu2 %v9806_v46 }
 0x1c3   :  { %v573_v9 = vpop.f32.mrf.mxu0 }
 0x1c4   :  { %17821 = vst [vmem:[#allocation221_spill] sm:$0xff] %v10869_v37 }
 0x1c5   :  { %v1444_v50 = vpop.f32.mrf.mxu3  ;;  %v856_v25 = vpop.f32.mrf.mxu1 }
 0x1c6   :  { %1554 = vmatmul.f32.gmra.mxu0 %v9771_v34  ;;  %v1125_v39 = vpop.f32.mrf.mxu2  ;;  %v857_v19 = vadd.f32 %v856_v25, %v573_v9 }
 0x1c8   :  { %v1126_v13 = vadd.f32 %v1125_v39, %v857_v19  ;;  %1781 = vmatmul.f32.gmra.mxu1 %v9771_v34 }
 0x1ca   :  { %2455 = vmatmul.f32.gmra.mxu3 %v9791_v41  ;;  %v10875_v57 = vadd.f32 %v1444_v50, %v1126_v13  ;;  %2032 = vmatmul.f32.gmra.mxu2 %v9826_v53 }
 0x1cb   :  { %v581_v18 = vpop.f32.mrf.mxu0 }
 0x1cc   :  { %17822 = vst [vmem:[#allocation222_spill] sm:$0xff] %v10875_v57 }
 0x1cd   :  { %v1450_v30 = vpop.f32.mrf.mxu3  ;;  %v860_v32 = vpop.f32.mrf.mxu1 }
 0x1ce   :  { %1558 = vmatmul.f32.gmra.mxu0 %v9791_v41  ;;  %v1130_v46 = vpop.f32.mrf.mxu2  ;;  %v861_v49 = vadd.f32 %v860_v32, %v581_v18 }
 0x1d0   :  { %v1131_v59 = vadd.f32 %v1130_v46, %v861_v49  ;;  %1785 = vmatmul.f32.gmra.mxu1 %v9791_v41 }
 0x1d2   :  { %2459 = vmatmul.f32.gmra.mxu3 %v9811_v48  ;;  %v10881_v9 = vadd.f32 %v1450_v30, %v1131_v59  ;;  %2040 = vmatmul.f32.gmra.mxu2 %v9846_v60 }
 0x1d3   :  { %v589_v25 = vpop.f32.mrf.mxu0 }
 0x1d4   :  { %17823 = vst [vmem:[#allocation223_spill] sm:$0xff] %v10881_v9 }
 0x1d5   :  { %v1456_v50 = vpop.f32.mrf.mxu3  ;;  %v864_v39 = vpop.f32.mrf.mxu1 }
 0x1d6   :  { %1562 = vmatmul.f32.gmra.mxu0 %v9811_v48  ;;  %v1135_v53 = vpop.f32.mrf.mxu2  ;;  %v865_v19 = vadd.f32 %v864_v39, %v589_v25 }
 0x1d8   :  { %v1136_v13 = vadd.f32 %v1135_v53, %v865_v19  ;;  %1789 = vmatmul.f32.gmra.mxu1 %v9811_v48 }
 0x1da   :  { %2463 = vmatmul.f32.gmra.mxu3 %v9831_v55  ;;  %v10887_v18 = vadd.f32 %v1456_v50, %v1136_v13  ;;  %2048 = vmatmul.f32.gmra.mxu2 %v9866_v3 }
 0x1db   :  { %v597_v32 = vpop.f32.mrf.mxu0 }
 0x1dc   :  { %17824 = vst [vmem:[#allocation224_spill] sm:$0xff] %v10887_v18 }
 0x1dd   :  { %v1462_v30 = vpop.f32.mrf.mxu3  ;;  %v868_v46 = vpop.f32.mrf.mxu1 }
 0x1de   :  { %1566 = vmatmul.f32.gmra.mxu0 %v9831_v55  ;;  %v1140_v60 = vpop.f32.mrf.mxu2  ;;  %v869_v49 = vadd.f32 %v868_v46, %v597_v32 }
 0x1e0   :  { %v1141_v59 = vadd.f32 %v1140_v60, %v869_v49  ;;  %1793 = vmatmul.f32.gmra.mxu1 %v9831_v55 }
 0x1e2   :  { %2467 = vmatmul.f32.gmra.mxu3 %v9851_v62  ;;  %v10893_v25 = vadd.f32 %v1462_v30, %v1141_v59  ;;  %2056 = vmatmul.f32.gmra.mxu2 %v9886_v11 }
 0x1e3   :  { %v605_v39 = vpop.f32.mrf.mxu0 }
 0x1e4   :  { %17825 = vst [vmem:[#allocation225_spill] sm:$0xff] %v10893_v25 }
 0x1e5   :  { %v1468_v50 = vpop.f32.mrf.mxu3  ;;  %v872_v53 = vpop.f32.mrf.mxu1 }
 0x1e6   :  { %1570 = vmatmul.f32.gmra.mxu0 %v9851_v62  ;;  %v1145_v3 = vpop.f32.mrf.mxu2  ;;  %v873_v19 = vadd.f32 %v872_v53, %v605_v39 }
 0x1e8   :  { %v1146_v13 = vadd.f32 %v1145_v3, %v873_v19  ;;  %1797 = vmatmul.f32.gmra.mxu1 %v9851_v62 }
 0x1ea   :  { %2471 = vmatmul.f32.gmra.mxu3 %v9871_v5  ;;  %v10899_v32 = vadd.f32 %v1468_v50, %v1146_v13  ;;  %2064 = vmatmul.f32.gmra.mxu2 %v9906_v22 }
 0x1eb   :  { %v613_v46 = vpop.f32.mrf.mxu0 }
 0x1ec   :  { %17826 = vst [vmem:[#allocation226_spill] sm:$0xff] %v10899_v32 }
 0x1ed   :  { %v1474_v30 = vpop.f32.mrf.mxu3  ;;  %v876_v60 = vpop.f32.mrf.mxu1 }
 0x1ee   :  { %1574 = vmatmul.f32.gmra.mxu0 %v9871_v5  ;;  %v1150_v11 = vpop.f32.mrf.mxu2  ;;  %v877_v49 = vadd.f32 %v876_v60, %v613_v46 }
 0x1f0   :  { %v1151_v59 = vadd.f32 %v1150_v11, %v877_v49  ;;  %1801 = vmatmul.f32.gmra.mxu1 %v9871_v5 }
 0x1f2   :  { %2475 = vmatmul.f32.gmra.mxu3 %v9891_v15  ;;  %v10905_v39 = vadd.f32 %v1474_v30, %v1151_v59  ;;  %2072 = vmatmul.f32.gmra.mxu2 %v9926_v36 }
 0x1f3   :  { %v621_v53 = vpop.f32.mrf.mxu0 }
 0x1f4   :  { %17827 = vst [vmem:[#allocation227_spill] sm:$0xff] %v10905_v39 }
 0x1f5   :  { %v1480_v50 = vpop.f32.mrf.mxu3  ;;  %v880_v3 = vpop.f32.mrf.mxu1 }
 0x1f6   :  { %1578 = vmatmul.f32.gmra.mxu0 %v9891_v15  ;;  %v1155_v22 = vpop.f32.mrf.mxu2  ;;  %v881_v19 = vadd.f32 %v880_v3, %v621_v53 }
 0x1f8   :  { %v1156_v13 = vadd.f32 %v1155_v22, %v881_v19  ;;  %1805 = vmatmul.f32.gmra.mxu1 %v9891_v15 }
 0x1fa   :  { %2479 = vmatmul.f32.gmra.mxu3 %v9911_v27  ;;  %v10911_v46 = vadd.f32 %v1480_v50, %v1156_v13  ;;  %2080 = vmatmul.f32.gmra.mxu2 %v9959_v0 }
 0x1fb   :  { %v629_v60 = vpop.f32.mrf.mxu0 }
 0x1fc   :  { %17828 = vst [vmem:[#allocation228_spill] sm:$0xff] %v10911_v46 }
 0x1fd   :  { %v1486_v30 = vpop.f32.mrf.mxu3  ;;  %v884_v11 = vpop.f32.mrf.mxu1 }
 0x1fe   :  { %1582 = vmatmul.f32.gmra.mxu0 %v9911_v27  ;;  %v1160_v36 = vpop.f32.mrf.mxu2  ;;  %v885_v49 = vadd.f32 %v884_v11, %v629_v60 }
 0x200   :  { %v1161_v59 = vadd.f32 %v1160_v36, %v885_v49  ;;  %1809 = vmatmul.f32.gmra.mxu1 %v9911_v27 }
 0x202   :  { %2483 = vmatmul.f32.gmra.mxu3 %v9931_v42  ;;  %v10917_v53 = vadd.f32 %v1486_v30, %v1161_v59  ;;  %2088 = vmatmul.f32.gmra.mxu2 %v9982_v29 }
 0x203   :  { %v637_v3 = vpop.f32.mrf.mxu0 }
 0x204   :  { %17829 = vst [vmem:[#allocation229_spill] sm:$0xff] %v10917_v53  ;;  %v17843_v53 = vld [vmem:[#allocation75_spill] sm:$0xff] }
 0x205   :  { %v1492_v50 = vpop.f32.mrf.mxu3  ;;  %v888_v22 = vpop.f32.mrf.mxu1 }
 0x206   :  { %1586 = vmatmul.f32.gmra.mxu0 %v9931_v42  ;;  %v1165_v0 = vpop.f32.mrf.mxu2  ;;  %v889_v19 = vadd.f32 %v888_v22, %v637_v3 }
 0x208   :  { %v1166_v13 = vadd.f32 %v1165_v0, %v889_v19  ;;  %1813 = vmatmul.f32.gmra.mxu1 %v9931_v42 }
 0x20a   :  { %2487 = vmatmul.f32.gmra.mxu3 %v9964_v6  ;;  %v10923_v60 = vadd.f32 %v1492_v50, %v1166_v13  ;;  %2096 = vmatmul.f32.gmra.mxu2 %v10002_v7 }
 0x20b   :  { %v645_v11 = vpop.f32.mrf.mxu0 }
 0x20c   :  { %17830 = vst [vmem:[#allocation230_spill] sm:$0xff] %v10923_v60  ;;  %v17840_v60 = vld [vmem:[#allocation70_spill] sm:$0xff] }
 0x20d   :  { %v1498_v30 = vpop.f32.mrf.mxu3  ;;  %v892_v36 = vpop.f32.mrf.mxu1 }
 0x20e   :  { %1590 = vmatmul.f32.gmra.mxu0 %v9964_v6  ;;  %v1170_v29 = vpop.f32.mrf.mxu2  ;;  %v893_v49 = vadd.f32 %v892_v36, %v645_v11 }
 0x210   :  { %v1171_v59 = vadd.f32 %v1170_v29, %v893_v49  ;;  %1817 = vmatmul.f32.gmra.mxu1 %v9964_v6 }
 0x212   :  { %2491 = vmatmul.f32.gmra.mxu3 %v9987_v43  ;;  %v10929_v3 = vadd.f32 %v1498_v30, %v1171_v59  ;;  %2104 = vmatmul.f32.gmra.mxu2 %v10022_v63 }
 0x213   :  { %v653_v22 = vpop.f32.mrf.mxu0 }
 0x214   :  { %17831 = vst [vmem:[#allocation231_spill] sm:$0xff] %v10929_v3 }
 0x215   :  { %v1504_v50 = vpop.f32.mrf.mxu3  ;;  %v896_v0 = vpop.f32.mrf.mxu1 }
 0x216   :  { %1594 = vmatmul.f32.gmra.mxu0 %v9987_v43  ;;  %v1175_v7 = vpop.f32.mrf.mxu2  ;;  %v897_v19 = vadd.f32 %v896_v0, %v653_v22 }
 0x218   :  { %v1176_v13 = vadd.f32 %v1175_v7, %v897_v19  ;;  %1821 = vmatmul.f32.gmra.mxu1 %v9987_v43 }
 0x21a   :  { %2495 = vmatmul.f32.gmra.mxu3 %v10007_v17  ;;  %v10935_v11 = vadd.f32 %v1504_v50, %v1176_v13  ;;  %2112 = vmatmul.f32.gmra.mxu2 %v10042_v2 }
 0x21b   :  { %v661_v36 = vpop.f32.mrf.mxu0 }
 0x21c   :  { %17832 = vst [vmem:[#allocation232_spill] sm:$0xff] %v10935_v11 }
 0x21d   :  { %v1510_v30 = vpop.f32.mrf.mxu3  ;;  %v900_v29 = vpop.f32.mrf.mxu1 }
 0x21e   :  { %1598 = vmatmul.f32.gmra.mxu0 %v10007_v17  ;;  %v1180_v63 = vpop.f32.mrf.mxu2  ;;  %v901_v49 = vadd.f32 %v900_v29, %v661_v36 }
 0x220   :  { %v1181_v59 = vadd.f32 %v1180_v63, %v901_v49  ;;  %1825 = vmatmul.f32.gmra.mxu1 %v10007_v17 }
 0x222   :  { %2499 = vmatmul.f32.gmra.mxu3 %v10027_v21  ;;  %v10941_v22 = vadd.f32 %v1510_v30, %v1181_v59  ;;  %2120 = vmatmul.f32.gmra.mxu2 %v10062_v38 }
 0x223   :  { %v669_v0 = vpop.f32.mrf.mxu0 }
 0x224   :  { %17833 = vst [vmem:[#allocation233_spill] sm:$0xff] %v10941_v22 }
 0x225   :  { %v1516_v50 = vpop.f32.mrf.mxu3  ;;  %v904_v7 = vpop.f32.mrf.mxu1 }
 0x226   :  { %1602 = vmatmul.f32.gmra.mxu0 %v10027_v21  ;;  %v1185_v2 = vpop.f32.mrf.mxu2  ;;  %v905_v19 = vadd.f32 %v904_v7, %v669_v0 }
 0x228   :  { %v1186_v13 = vadd.f32 %v1185_v2, %v905_v19  ;;  %1829 = vmatmul.f32.gmra.mxu1 %v10027_v21 }
 0x22a   :  { %2503 = vmatmul.f32.gmra.mxu3 %v10047_v56  ;;  %v10947_v36 = vadd.f32 %v1516_v50, %v1186_v13  ;;  %2128 = vmatmul.f32.gmra.mxu2 %v10082_v26 }
 0x22b   :  { %v10949_v29 = vpop.f32.mrf.mxu0 }
 0x22c   :  { %17834 = vst [vmem:[#allocation234_spill] sm:$0xff] %v10947_v36 }
 0x22d   :  { %v2440_v30 = vpop.f32.mrf.mxu3  ;;  %v10953_v38 = vpop.f32.mrf.mxu1 }
 0x22e   :  { %1606 = vmatmul.f32.gmra.mxu0 %v10047_v56  ;;  %v2001_v63 = vpop.f32.mrf.mxu2 }
 0x22f   :  { %v10955_v49 = vadd.f32 %v2440_v30, %v2001_v63 }
 0x230   :  { %1833 = vmatmul.f32.gmra.mxu1 %v10047_v56 }
 0x231   :  { %17835 = vst [vmem:[#allocation235_spill] sm:$0xff] %v10955_v49 }
 0x232   :  { %2507 = vmatmul.f32.gmra.mxu3 %v10067_v31  ;;  %2136 = vmatmul.f32.gmra.mxu2 %v10102_v35 }
 0x233   :  { %v10959_v59 = vpop.f32.mrf.mxu0 }
 0x235   :  { %v2444_v0 = vpop.f32.mrf.mxu3  ;;  %v10963_v26 = vpop.f32.mrf.mxu1 }
 0x236   :  { %1610 = vmatmul.f32.gmra.mxu0 %v10067_v31  ;;  %v2009_v50 = vpop.f32.mrf.mxu2 }
 0x237   :  { %v10965_v7 = vadd.f32 %v2444_v0, %v2009_v50 }
 0x238   :  { %1837 = vmatmul.f32.gmra.mxu1 %v10067_v31 }
 0x239   :  { %17836 = vst [vmem:[#allocation236_spill] sm:$0xff] %v10965_v7 }
 0x23a   :  { %2511 = vmatmul.f32.gmra.mxu3 %v10087_v20  ;;  %2144 = vmatmul.f32.gmra.mxu2 %v10124_v10 }
 0x23b   :  { %v10969_v2 = vpop.f32.mrf.mxu0 }
 0x23d   :  { %v2448_v19 = vpop.f32.mrf.mxu3  ;;  %v10973_v35 = vpop.f32.mrf.mxu1 }
 0x23e   :  { %1614 = vmatmul.f32.gmra.mxu0 %v10087_v20  ;;  %v2017_v13 = vpop.f32.mrf.mxu2 }
 0x23f   :  { %v10975_v30 = vadd.f32 %v2448_v19, %v2017_v13  ;;  %v17839_v19 = vld [vmem:[#allocation63_spill] sm:$0xff] }
 0x240   :  { %1841 = vmatmul.f32.gmra.mxu1 %v10087_v20 }
 0x241   :  { %17837 = vst [vmem:[#allocation237_spill] sm:$0xff] %v10975_v30 }
 0x242   :  { %2515 = vmatmul.f32.gmra.mxu3 %v10107_v51  ;;  %2152 = vmatmul.f32.gmra.mxu2 %v10146_v54 }
 0x243   :  { %v10979_v63 = vpop.f32.mrf.mxu0 }
 0x245   :  { %v2452_v0 = vpop.f32.mrf.mxu3  ;;  %v10983_v10 = vpop.f32.mrf.mxu1 }
 0x246   :  { %1618 = vmatmul.f32.gmra.mxu0 %v10107_v51  ;;  %v2025_v50 = vpop.f32.mrf.mxu2 }
 0x247   :  { %v10985_v36 = vadd.f32 %v2452_v0, %v2025_v50  ;;  %v17842_v0 = vld [vmem:[#allocation67_spill] sm:$0xff] }
 0x248   :  { %1845 = vmatmul.f32.gmra.mxu1 %v10107_v51 }
 0x249   :  { %17838 = vst [vmem:[#allocation238_spill] sm:$0xff] %v10985_v36 }
 0x24a   :  { %2519 = vmatmul.f32.gmra.mxu3 %v17839_v19  ;;  %2160 = vmatmul.f32.gmra.mxu2 %v17840_v60 }
 0x24b   :  { %v10989_v13 = vpop.f32.mrf.mxu0 }
 0x24d   :  { %v2456_v46 = vpop.f32.mrf.mxu3  ;;  %v10993_v54 = vpop.f32.mrf.mxu1 }
 0x24e   :  { %1622 = vmatmul.f32.gmra.mxu0 %v17839_v19  ;;  %v2033_v22 = vpop.f32.mrf.mxu2 }
 0x24f   :  { %v10995_v39 = vadd.f32 %v2456_v46, %v2033_v22  ;;  %v17845_v46 = vld [vmem:[#allocation72_spill] sm:$0xff] }
 0x250   :  { %1849 = vmatmul.f32.gmra.mxu1 %v17839_v19  ;;  %v17846_v19 = vld [vmem:[#allocation80_spill] sm:$0xff] }
 0x251   :  { %17841 = vst [vmem:[#allocation70_spill] sm:$0xff] %v10995_v39 }
 0x252   :  { %2523 = vmatmul.f32.gmra.mxu3 %v17842_v0  ;;  %2168 = vmatmul.f32.gmra.mxu2 %v17843_v53 }
 0x253   :  { %v10999_v50 = vpop.f32.mrf.mxu0 }
 0x255   :  { %v2460_v1 = vpop.f32.mrf.mxu3  ;;  %v11003_v60 = vpop.f32.mrf.mxu1 }
 0x256   :  { %1626 = vmatmul.f32.gmra.mxu0 %v17842_v0  ;;  %v2041_v58 = vpop.f32.mrf.mxu2 }
 0x257   :  { %v11005_v51 = vadd.f32 %v2460_v1, %v2041_v58  ;;  %v17848_v58 = vld [vmem:[#allocation77_spill] sm:$0xff] }
 0x258   :  { %1853 = vmatmul.f32.gmra.mxu1 %v17842_v0  ;;  %v17849_v0 = vld [vmem:[#allocation85_spill] sm:$0xff] }
 0x259   :  { %17844 = vst [vmem:[#allocation75_spill] sm:$0xff] %v11005_v51 }
 0x25a   :  { %2527 = vmatmul.f32.gmra.mxu3 %v17845_v46  ;;  %2176 = vmatmul.f32.gmra.mxu2 %v17846_v19 }
 0x25b   :  { %v11009_v22 = vpop.f32.mrf.mxu0 }
 0x25d   :  { %v2464_v39 = vpop.f32.mrf.mxu3  ;;  %v11013_v53 = vpop.f32.mrf.mxu1 }
 0x25e   :  { %1630 = vmatmul.f32.gmra.mxu0 %v17845_v46  ;;  %v2049_v36 = vpop.f32.mrf.mxu2 }
 0x25f   :  { %v11015_v20 = vadd.f32 %v2464_v39, %v2049_v36  ;;  %v17851_v39 = vld [vmem:[#allocation82_spill] sm:$0xff] }
 0x260   :  { %1857 = vmatmul.f32.gmra.mxu1 %v17845_v46  ;;  %v17852_v46 = vld [vmem:[#allocation90_spill] sm:$0xff] }
 0x261   :  { %17847 = vst [vmem:[#allocation80_spill] sm:$0xff] %v11015_v20 }
 0x262   :  { %2531 = vmatmul.f32.gmra.mxu3 %v17848_v58  ;;  %2184 = vmatmul.f32.gmra.mxu2 %v17849_v0 }
 0x263   :  { %v11019_v1 = vpop.f32.mrf.mxu0 }
 0x265   :  { %v2468_v51 = vpop.f32.mrf.mxu3  ;;  %v11023_v19 = vpop.f32.mrf.mxu1 }
 0x266   :  { %1634 = vmatmul.f32.gmra.mxu0 %v17848_v58  ;;  %v2057_v30 = vpop.f32.mrf.mxu2 }
 0x267   :  { %v11025_v31 = vadd.f32 %v2468_v51, %v2057_v30  ;;  %v17854_v51 = vld [vmem:[#allocation87_spill] sm:$0xff] }
 0x268   :  { %1861 = vmatmul.f32.gmra.mxu1 %v17848_v58  ;;  %v17855_v58 = vld [vmem:[#allocation95_spill] sm:$0xff] }
 0x269   :  { %17850 = vst [vmem:[#allocation85_spill] sm:$0xff] %v11025_v31 }
 0x26a   :  { %2535 = vmatmul.f32.gmra.mxu3 %v17851_v39  ;;  %2192 = vmatmul.f32.gmra.mxu2 %v17852_v46 }
 0x26b   :  { %v11029_v36 = vpop.f32.mrf.mxu0 }
 0x26d   :  { %v2472_v20 = vpop.f32.mrf.mxu3  ;;  %v11033_v0 = vpop.f32.mrf.mxu1 }
 0x26e   :  { %1638 = vmatmul.f32.gmra.mxu0 %v17851_v39  ;;  %v2065_v7 = vpop.f32.mrf.mxu2 }
 0x26f   :  { %v11035_v56 = vadd.f32 %v2472_v20, %v2065_v7  ;;  %v17857_v20 = vld [vmem:[#allocation92_spill] sm:$0xff] }
 0x270   :  { %1865 = vmatmul.f32.gmra.mxu1 %v17851_v39  ;;  %v17858_v39 = vld [vmem:[#allocation100_spill] sm:$0xff] }
 0x271   :  { %17853 = vst [vmem:[#allocation90_spill] sm:$0xff] %v11035_v56 }
 0x272   :  { %2539 = vmatmul.f32.gmra.mxu3 %v17854_v51  ;;  %2200 = vmatmul.f32.gmra.mxu2 %v17855_v58 }
 0x273   :  { %v11039_v30 = vpop.f32.mrf.mxu0 }
 0x275   :  { %v2476_v31 = vpop.f32.mrf.mxu3  ;;  %v11043_v46 = vpop.f32.mrf.mxu1 }
 0x276   :  { %1642 = vmatmul.f32.gmra.mxu0 %v17854_v51  ;;  %v2073_v49 = vpop.f32.mrf.mxu2 }
 0x277   :  { %v11045_v21 = vadd.f32 %v2476_v31, %v2073_v49  ;;  %v17860_v31 = vld [vmem:[#allocation97_spill] sm:$0xff] }
 0x278   :  { %1869 = vmatmul.f32.gmra.mxu1 %v17854_v51  ;;  %v17861_v51 = vld [vmem:[#allocation105_spill] sm:$0xff] }
 0x279   :  { %17856 = vst [vmem:[#allocation95_spill] sm:$0xff] %v11045_v21 }
 0x27a   :  { %2543 = vmatmul.f32.gmra.mxu3 %v17857_v20  ;;  %2208 = vmatmul.f32.gmra.mxu2 %v17858_v39 }
 0x27b   :  { %v11049_v7 = vpop.f32.mrf.mxu0 }
 0x27d   :  { %v2480_v56 = vpop.f32.mrf.mxu3  ;;  %v11053_v58 = vpop.f32.mrf.mxu1 }
 0x27e   :  { %1646 = vmatmul.f32.gmra.mxu0 %v17857_v20  ;;  %v2081_v17 = vpop.f32.mrf.mxu2 }
 0x27f   :  { %v11055_v43 = vadd.f32 %v2480_v56, %v2081_v17  ;;  %v17863_v56 = vld [vmem:[#allocation102_spill] sm:$0xff] }
 0x280   :  { %1873 = vmatmul.f32.gmra.mxu1 %v17857_v20  ;;  %v17864_v20 = vld [vmem:[#allocation110_spill] sm:$0xff] }
 0x281   :  { %17859 = vst [vmem:[#allocation100_spill] sm:$0xff] %v11055_v43 }
 0x282   :  { %2547 = vmatmul.f32.gmra.mxu3 %v17860_v31  ;;  %2216 = vmatmul.f32.gmra.mxu2 %v17861_v51 }
 0x283   :  { %v11059_v49 = vpop.f32.mrf.mxu0 }
 0x285   :  { %v2484_v21 = vpop.f32.mrf.mxu3  ;;  %v11063_v39 = vpop.f32.mrf.mxu1 }
 0x286   :  { %1650 = vmatmul.f32.gmra.mxu0 %v17860_v31  ;;  %v2089_v11 = vpop.f32.mrf.mxu2 }
 0x287   :  { %v11065_v3 = vadd.f32 %v2484_v21, %v2089_v11  ;;  %v17866_v21 = vld [vmem:[#allocation107_spill] sm:$0xff] }
 0x288   :  { %1877 = vmatmul.f32.gmra.mxu1 %v17860_v31 }
 0x289   :  { %17862 = vst [vmem:[#allocation105_spill] sm:$0xff] %v11065_v3  ;;  %v17867_v3 = vld [vmem:[#allocation115_spill] sm:$0xff] }
 0x28a   :  { %2551 = vmatmul.f32.gmra.mxu3 %v17863_v56  ;;  %2224 = vmatmul.f32.gmra.mxu2 %v17864_v20 }
 0x28b   :  { %v11069_v17 = vpop.f32.mrf.mxu0 }
 0x28d   :  { %v2488_v43 = vpop.f32.mrf.mxu3  ;;  %v11073_v51 = vpop.f32.mrf.mxu1 }
 0x28e   :  { %1654 = vmatmul.f32.gmra.mxu0 %v17863_v56  ;;  %v2097_v6 = vpop.f32.mrf.mxu2 }
 0x28f   :  { %v11075_v42 = vadd.f32 %v2488_v43, %v2097_v6  ;;  %v17869_v6 = vld [vmem:[#allocation112_spill] sm:$0xff] }
 0x290   :  { %1881 = vmatmul.f32.gmra.mxu1 %v17863_v56 }
 0x291   :  { %17865 = vst [vmem:[#allocation110_spill] sm:$0xff] %v11075_v42  ;;  %v17870_v42 = vld [vmem:[#allocation120_spill] sm:$0xff] }
 0x292   :  { %2555 = vmatmul.f32.gmra.mxu3 %v17866_v21  ;;  %2232 = vmatmul.f32.gmra.mxu2 %v17867_v3 }
 0x293   :  { %v11079_v11 = vpop.f32.mrf.mxu0 }
 0x295   :  { %v2492_v31 = vpop.f32.mrf.mxu3  ;;  %v11083_v20 = vpop.f32.mrf.mxu1 }
 0x296   :  { %1658 = vmatmul.f32.gmra.mxu0 %v17866_v21  ;;  %v2105_v27 = vpop.f32.mrf.mxu2 }
 0x297   :  { %v11085_v15 = vadd.f32 %v2492_v31, %v2105_v27  ;;  %v17872_v27 = vld [vmem:[#allocation117_spill] sm:$0xff] }
 0x298   :  { %1885 = vmatmul.f32.gmra.mxu1 %v17866_v21 }
 0x299   :  { %17868 = vst [vmem:[#allocation115_spill] sm:$0xff] %v11085_v15  ;;  %v17873_v15 = vld [vmem:[#allocation125_spill] sm:$0xff] }
 0x29a   :  { %2559 = vmatmul.f32.gmra.mxu3 %v17869_v6  ;;  %2240 = vmatmul.f32.gmra.mxu2 %v17870_v42 }
 0x29b   :  { %v11089_v43 = vpop.f32.mrf.mxu0 }
 0x29d   :  { %v2496_v56 = vpop.f32.mrf.mxu3  ;;  %v11093_v3 = vpop.f32.mrf.mxu1 }
 0x29e   :  { %1662 = vmatmul.f32.gmra.mxu0 %v17869_v6  ;;  %v2113_v5 = vpop.f32.mrf.mxu2 }
 0x29f   :  { %v11095_v32 = vadd.f32 %v2496_v56, %v2113_v5  ;;  %v17875_v5 = vld [vmem:[#allocation122_spill] sm:$0xff] }
 0x2a0   :  { %1889 = vmatmul.f32.gmra.mxu1 %v17869_v6 }
 0x2a1   :  { %17871 = vst [vmem:[#allocation120_spill] sm:$0xff] %v11095_v32  ;;  %v17876_v32 = vld [vmem:[#allocation130_spill] sm:$0xff] }
 0x2a2   :  { %2563 = vmatmul.f32.gmra.mxu3 %v17872_v27  ;;  %2248 = vmatmul.f32.gmra.mxu2 %v17873_v15 }
 0x2a3   :  { %v11099_v31 = vpop.f32.mrf.mxu0 }
 0x2a5   :  { %v2500_v21 = vpop.f32.mrf.mxu3  ;;  %v11103_v42 = vpop.f32.mrf.mxu1 }
 0x2a6   :  { %1666 = vmatmul.f32.gmra.mxu0 %v17872_v27  ;;  %v2121_v62 = vpop.f32.mrf.mxu2 }
 0x2a7   :  { %v11105_v25 = vadd.f32 %v2500_v21, %v2121_v62  ;;  %v17878_v62 = vld [vmem:[#allocation127_spill] sm:$0xff] }
 0x2a8   :  { %1893 = vmatmul.f32.gmra.mxu1 %v17872_v27 }
 0x2a9   :  { %17874 = vst [vmem:[#allocation125_spill] sm:$0xff] %v11105_v25  ;;  %v17879_v25 = vld [vmem:[#allocation135_spill] sm:$0xff] }
 0x2aa   :  { %2567 = vmatmul.f32.gmra.mxu3 %v17875_v5  ;;  %2256 = vmatmul.f32.gmra.mxu2 %v17876_v32 }
 0x2ab   :  { %v11109_v56 = vpop.f32.mrf.mxu0 }
 0x2ad   :  { %v2504_v6 = vpop.f32.mrf.mxu3  ;;  %v11113_v15 = vpop.f32.mrf.mxu1 }
 0x2ae   :  { %1670 = vmatmul.f32.gmra.mxu0 %v17875_v5  ;;  %v2129_v55 = vpop.f32.mrf.mxu2 }
 0x2af   :  { %v11115_v18 = vadd.f32 %v2504_v6, %v2129_v55  ;;  %v17881_v55 = vld [vmem:[#allocation132_spill] sm:$0xff] }
 0x2b0   :  { %1897 = vmatmul.f32.gmra.mxu1 %v17875_v5 }
 0x2b1   :  { %17877 = vst [vmem:[#allocation130_spill] sm:$0xff] %v11115_v18  ;;  %v17882_v18 = vld [vmem:[#allocation140_spill] sm:$0xff] }
 0x2b2   :  { %2571 = vmatmul.f32.gmra.mxu3 %v17878_v62  ;;  %2264 = vmatmul.f32.gmra.mxu2 %v17879_v25 }
 0x2b3   :  { %v11119_v21 = vpop.f32.mrf.mxu0 }
 0x2b5   :  { %v2508_v27 = vpop.f32.mrf.mxu3  ;;  %v11123_v32 = vpop.f32.mrf.mxu1 }
 0x2b6   :  { %1674 = vmatmul.f32.gmra.mxu0 %v17878_v62  ;;  %v2137_v48 = vpop.f32.mrf.mxu2 }
 0x2b7   :  { %v11125_v9 = vadd.f32 %v2508_v27, %v2137_v48  ;;  %v17884_v27 = vld [vmem:[#allocation145_spill] sm:$0xff] }
 0x2b8   :  { %1901 = vmatmul.f32.gmra.mxu1 %v17878_v62 }
 0x2b9   :  { %17880 = vst [vmem:[#allocation135_spill] sm:$0xff] %v11125_v9 }
 0x2ba   :  { %2575 = vmatmul.f32.gmra.mxu3 %v17881_v55  ;;  %2272 = vmatmul.f32.gmra.mxu2 %v17882_v18 }
 0x2bb   :  { %v11129_v6 = vpop.f32.mrf.mxu0 }
 0x2bd   :  { %v2512_v5 = vpop.f32.mrf.mxu3  ;;  %v11133_v25 = vpop.f32.mrf.mxu1 }
 0x2be   :  { %1678 = vmatmul.f32.gmra.mxu0 %v17881_v55  ;;  %v2145_v41 = vpop.f32.mrf.mxu2 }
 0x2bf   :  { %v11135_v57 = vadd.f32 %v2512_v5, %v2145_v41 }
 0x2c0   :  { %1905 = vmatmul.f32.gmra.mxu1 %v17881_v55 }
 0x2c1   :  { %17883 = vst [vmem:[#allocation140_spill] sm:$0xff] %v11135_v57 }
 0x2c2   :  { %2579 = vmatmul.f32.gmra.mxu3 %v10459_v47  ;;  %2280 = vmatmul.f32.gmra.mxu2 %v17884_v27 }
 0x2c3   :  { %v11139_v48 = vpop.f32.mrf.mxu0 }
 0x2c5   :  { %v2516_v9 = vpop.f32.mrf.mxu3  ;;  %v11143_v18 = vpop.f32.mrf.mxu1 }
 0x2c6   :  { %1682 = vmatmul.f32.gmra.mxu0 %v10459_v47  ;;  %v2153_v62 = vpop.f32.mrf.mxu2 }
 0x2c7   :  { %v11145_v34 = vadd.f32 %v2516_v9, %v2153_v62  ;;  %v17887_v9 = vld [vmem:[#allocation147_spill] sm:$0xff] }
 0x2c8   :  { %1909 = vmatmul.f32.gmra.mxu1 %v10459_v47 }
 0x2c9   :  { %17885 = vst [vmem:[#allocation145_spill] sm:$0xff] %v11145_v34  ;;  %v17888_v34 = vld [vmem:[#allocation154_spill] sm:$0xff] }
 0x2ca   :  { %2583 = vmatmul.f32.gmra.mxu3 %v10481_v52  ;;  %2288 = vmatmul.f32.gmra.mxu2 %v10525_v40 }
 0x2cb   :  { %v11149_v41 = vpop.f32.mrf.mxu0 }
 0x2cd   :  { %v2520_v5 = vpop.f32.mrf.mxu3  ;;  %v11153_v27 = vpop.f32.mrf.mxu1 }
 0x2ce   :  { %1686 = vmatmul.f32.gmra.mxu0 %v10481_v52  ;;  %v2161_v57 = vpop.f32.mrf.mxu2 }
 0x2cf   :  { %v11155_v55 = vadd.f32 %v2520_v5, %v2161_v57  ;;  %v17890_v57 = vld [vmem:[#allocation151_spill] sm:$0xff]  ;;  %v17891_v5 = vld [vmem:[#allocation60_spill] sm:$0xff] }
 0x2d0   :  { %1913 = vmatmul.f32.gmra.mxu1 %v10481_v52  ;;  %v17892_v52 = vld [vmem:[#allocation113_spill] sm:$0xff] }
 0x2d1   :  { %17886 = vst [vmem:[#allocation239_spill] sm:$0xff] %v11155_v55  ;;  %v1544_v55 = vadd.f32 %v10949_v29, %v17891_v5  ;;  %v1588_v33 = vadd.f32 %v11059_v49, %v17892_v52 }
 0x2d2   :  { %2587 = vmatmul.f32.gmra.mxu3 %v17887_v9  ;;  %2296 = vmatmul.f32.gmra.mxu2 %v17888_v34  ;;  %v17893_v34 = vld [vmem:[#allocation159_spill] sm:$0xff] }
 0x2d3   :  { %v11159_v62 = vpop.f32.mrf.mxu0 }
 0x2d5   :  { %v2524_v47 = vpop.f32.mrf.mxu3  ;;  %v11163_v40 = vpop.f32.mrf.mxu1 }
 0x2d6   :  { %1690 = vmatmul.f32.gmra.mxu0 %v17887_v9  ;;  %v2169_v37 = vpop.f32.mrf.mxu2 }
 0x2d7   :  { %v11165_v24 = vadd.f32 %v2524_v47, %v2169_v37 }
 0x2d8   :  { %1917 = vmatmul.f32.gmra.mxu1 %v17887_v9  ;;  %v11180_v9 = vadd.f32 %v11063_v39, %v1588_v33 }
 0x2d9   :  { %17889 = vst [vmem:[#allocation154_spill] sm:$0xff] %v11165_v24  ;;  %v11177_v24 = vadd.f32 %v10953_v38, %v1544_v55  ;;  %v17898_v55 = vld [vmem:[#allocation118_spill] sm:$0xff] }
 0x2da   :  { %2591 = vmatmul.f32.gmra.mxu3 %v17890_v57  ;;  %2304 = vmatmul.f32.gmra.mxu2 %v17893_v34  ;;  %v1592_v33 = vadd.f32 %v11069_v17, %v17898_v55 }
 0x2db   :  { %v1631_v12 = vpop.f32.mrf.mxu0 }
 0x2dc   :  { %v1632_v8 = vadd.f32 %v1631_v12, %v17894_v16  ;;  %v17896_v12 = vld [vmem:[#allocation156_spill] sm:$0xff] }
 0x2dd   :  { %v2528_v4 = vpop.f32.mrf.mxu3  ;;  %v1858_v47 = vpop.f32.mrf.mxu1  ;;  %v17897_v16 = vld [vmem:[#allocation64_spill] sm:$0xff] }
 0x2de   :  { %1694 = vmatmul.f32.gmra.mxu0 %v17890_v57  ;;  %v2177_v37 = vpop.f32.mrf.mxu2  ;;  %v1859_v29 = vadd.f32 %v1858_v47, %v1632_v8  ;;  %v1548_v38 = vadd.f32 %v10959_v59, %v17897_v16  ;;  %v17899_v8 = vld [vmem:[#allocation164_spill] sm:$0xff] }
 0x2df   :  { %v11182_v5 = vadd.f32 %v2528_v4, %v2177_v37  ;;  %v17900_v4 = vld [vmem:[#allocation172_spill] sm:$0xff] }
 0x2e0   :  { %v11185_v52 = vmul.f32 %v1859_v29, %v11177_v24  ;;  %v11188_v49 = vmul.f32 %v1859_v29, %v11180_v9  ;;  %1921 = vmatmul.f32.gmra.mxu1 %v17890_v57  ;;  %v11203_v57 = vadd.f32 %v11073_v51, %v1592_v33 }
 0x2e1   :  { %17895 = vst [vmem:[#allocation60_spill] sm:$0xff] %v11182_v5  ;;  %v11200_v5 = vadd.f32 %v10963_v26, %v1548_v38  ;;  %v17904_v38 = vld [vmem:[#allocation123_spill] sm:$0xff] }
 0x2e2   :  { %2595 = vmatmul.f32.gmra.mxu3 %v17896_v12  ;;  %2312 = vmatmul.f32.gmra.mxu2 %v17899_v8  ;;  %v17903_v8 = vld [vmem:[#allocation68_spill] sm:$0xff]  ;;  %v1596_v51 = vadd.f32 %v11079_v11, %v17904_v38 }
 0x2e3   :  { %v1635_v39 = vpop.f32.mrf.mxu0  ;;  %v1552_v26 = vadd.f32 %v10969_v2, %v17903_v8 }
 0x2e4   :  { %v1636_v34 = vadd.f32 %v1635_v39, %v17900_v4  ;;  %v17902_v39 = vld [vmem:[#allocation161_spill] sm:$0xff] }
 0x2e5   :  { %v2532_v47 = vpop.f32.mrf.mxu3  ;;  %v1862_v37 = vpop.f32.mrf.mxu1  ;;  %v17905_v4 = vld [vmem:[#allocation169_spill] sm:$0xff] }
 0x2e6   :  { %1698 = vmatmul.f32.gmra.mxu0 %v17896_v12  ;;  %v2185_v29 = vpop.f32.mrf.mxu2  ;;  %v1863_v59 = vadd.f32 %v1862_v37, %v1636_v34  ;;  %v17906_v34 = vld [vmem:[#allocation177_spill] sm:$0xff] }
 0x2e7   :  { %v11205_v16 = vadd.f32 %v2532_v47, %v2185_v29 }
 0x2e8   :  { %v11208_v17 = vmul.f32 %v1863_v59, %v11200_v5  ;;  %v11211_v55 = vmul.f32 %v1863_v59, %v11203_v57  ;;  %1925 = vmatmul.f32.gmra.mxu1 %v17896_v12  ;;  %v11226_v12 = vadd.f32 %v11083_v20, %v1596_v51 }
 0x2e9   :  { %17901 = vst [vmem:[#allocation113_spill] sm:$0xff] %v11205_v16  ;;  %v11223_v16 = vadd.f32 %v10973_v35, %v1552_v26  ;;  %v17910_v26 = vld [vmem:[#allocation128_spill] sm:$0xff] }
 0x2ea   :  { %2599 = vmatmul.f32.gmra.mxu3 %v17902_v39  ;;  %2320 = vmatmul.f32.gmra.mxu2 %v17905_v4  ;;  %v17909_v4 = vld [vmem:[#allocation73_spill] sm:$0xff]  ;;  %v1600_v20 = vadd.f32 %v11089_v43, %v17910_v26 }
 0x2eb   :  { %v1639_v33 = vpop.f32.mrf.mxu0  ;;  %v1556_v35 = vadd.f32 %v10979_v63, %v17909_v4 }
 0x2ec   :  { %v1640_v47 = vadd.f32 %v1639_v33, %v17906_v34  ;;  %v17908_v33 = vld [vmem:[#allocation166_spill] sm:$0xff] }
 0x2ed   :  { %v2536_v37 = vpop.f32.mrf.mxu3  ;;  %v1866_v29 = vpop.f32.mrf.mxu1  ;;  %v17911_v34 = vld [vmem:[#allocation174_spill] sm:$0xff] }
 0x2ee   :  { %1702 = vmatmul.f32.gmra.mxu0 %v17902_v39  ;;  %v2193_v59 = vpop.f32.mrf.mxu2  ;;  %v1867_v2 = vadd.f32 %v1866_v29, %v1640_v47  ;;  %v17912_v47 = vld [vmem:[#allocation182_spill] sm:$0xff] }
 0x2ef   :  { %v11228_v8 = vadd.f32 %v2536_v37, %v2193_v59 }
 0x2f0   :  { %v11231_v11 = vmul.f32 %v1867_v2, %v11223_v16  ;;  %v11234_v38 = vmul.f32 %v1867_v2, %v11226_v12  ;;  %1929 = vmatmul.f32.gmra.mxu1 %v17902_v39  ;;  %v11249_v39 = vadd.f32 %v11093_v3, %v1600_v20 }
 0x2f1   :  { %17907 = vst [vmem:[#allocation159_spill] sm:$0xff] %v11228_v8  ;;  %v11246_v8 = vadd.f32 %v10983_v10, %v1556_v35  ;;  %v17916_v35 = vld [vmem:[#allocation133_spill] sm:$0xff] }
 0x2f2   :  { %2603 = vmatmul.f32.gmra.mxu3 %v17908_v33  ;;  %2328 = vmatmul.f32.gmra.mxu2 %v17911_v34  ;;  %v17915_v34 = vld [vmem:[#allocation78_spill] sm:$0xff]  ;;  %v1604_v3 = vadd.f32 %v11099_v31, %v17916_v35 }
 0x2f3   :  { %v1643_v51 = vpop.f32.mrf.mxu0  ;;  %v1560_v10 = vadd.f32 %v10989_v13, %v17915_v34 }
 0x2f4   :  { %v1644_v37 = vadd.f32 %v1643_v51, %v17912_v47  ;;  %v17914_v51 = vld [vmem:[#allocation171_spill] sm:$0xff] }
 0x2f5   :  { %v2540_v29 = vpop.f32.mrf.mxu3  ;;  %v1870_v59 = vpop.f32.mrf.mxu1  ;;  %v17917_v47 = vld [vmem:[#allocation179_spill] sm:$0xff] }
 0x2f6   :  { %1706 = vmatmul.f32.gmra.mxu0 %v17908_v33  ;;  %v2201_v2 = vpop.f32.mrf.mxu2  ;;  %v1871_v63 = vadd.f32 %v1870_v59, %v1644_v37  ;;  %v17918_v37 = vld [vmem:[#allocation187_spill] sm:$0xff] }
 0x2f7   :  { %v11251_v4 = vadd.f32 %v2540_v29, %v2201_v2 }
 0x2f8   :  { %v11254_v43 = vmul.f32 %v1871_v63, %v11246_v8  ;;  %v11257_v26 = vmul.f32 %v1871_v63, %v11249_v39  ;;  %1933 = vmatmul.f32.gmra.mxu1 %v17908_v33  ;;  %v11272_v33 = vadd.f32 %v11103_v42, %v1604_v3 }
 0x2f9   :  { %17913 = vst [vmem:[#allocation167_spill] sm:$0xff] %v11251_v4  ;;  %v11269_v4 = vadd.f32 %v10993_v54, %v1560_v10  ;;  %v17922_v10 = vld [vmem:[#allocation138_spill] sm:$0xff] }
 0x2fa   :  { %2607 = vmatmul.f32.gmra.mxu3 %v17914_v51  ;;  %2336 = vmatmul.f32.gmra.mxu2 %v17917_v47  ;;  %v17921_v47 = vld [vmem:[#allocation83_spill] sm:$0xff]  ;;  %v1608_v42 = vadd.f32 %v11109_v56, %v17922_v10 }
 0x2fb   :  { %v1647_v20 = vpop.f32.mrf.mxu0  ;;  %v1564_v54 = vadd.f32 %v10999_v50, %v17921_v47 }
 0x2fc   :  { %v1648_v29 = vadd.f32 %v1647_v20, %v17918_v37  ;;  %v17920_v20 = vld [vmem:[#allocation176_spill] sm:$0xff] }
 0x2fd   :  { %v2544_v59 = vpop.f32.mrf.mxu3  ;;  %v1874_v2 = vpop.f32.mrf.mxu1  ;;  %v17923_v37 = vld [vmem:[#allocation184_spill] sm:$0xff] }
 0x2fe   :  { %1710 = vmatmul.f32.gmra.mxu0 %v17914_v51  ;;  %v2209_v63 = vpop.f32.mrf.mxu2  ;;  %v1875_v13 = vadd.f32 %v1874_v2, %v1648_v29  ;;  %v17924_v29 = vld [vmem:[#allocation192_spill] sm:$0xff] }
 0x2ff   :  { %v11274_v34 = vadd.f32 %v2544_v59, %v2209_v63 }
 0x300   :  { %v11277_v31 = vmul.f32 %v1875_v13, %v11269_v4  ;;  %v11280_v35 = vmul.f32 %v1875_v13, %v11272_v33  ;;  %1937 = vmatmul.f32.gmra.mxu1 %v17914_v51  ;;  %v11295_v51 = vadd.f32 %v11113_v15, %v1608_v42 }
 0x301   :  { %17919 = vst [vmem:[#allocation64_spill] sm:$0xff] %v11274_v34  ;;  %v11292_v34 = vadd.f32 %v11003_v60, %v1564_v54  ;;  %v17928_v54 = vld [vmem:[#allocation143_spill] sm:$0xff] }
 0x302   :  { %2611 = vmatmul.f32.gmra.mxu3 %v17920_v20  ;;  %2344 = vmatmul.f32.gmra.mxu2 %v17923_v37  ;;  %v17927_v37 = vld [vmem:[#allocation88_spill] sm:$0xff]  ;;  %v1612_v15 = vadd.f32 %v11119_v21, %v17928_v54 }
 0x303   :  { %v1651_v3 = vpop.f32.mrf.mxu0  ;;  %v1568_v60 = vadd.f32 %v11009_v22, %v17927_v37 }
 0x304   :  { %v1652_v59 = vadd.f32 %v1651_v3, %v17924_v29  ;;  %v17926_v3 = vld [vmem:[#allocation181_spill] sm:$0xff] }
 0x305   :  { %v2548_v2 = vpop.f32.mrf.mxu3  ;;  %v1878_v63 = vpop.f32.mrf.mxu1  ;;  %v17929_v29 = vld [vmem:[#allocation189_spill] sm:$0xff] }
 0x306   :  { %1714 = vmatmul.f32.gmra.mxu0 %v17920_v20  ;;  %v2217_v13 = vpop.f32.mrf.mxu2  ;;  %v1879_v50 = vadd.f32 %v1878_v63, %v1652_v59  ;;  %v17930_v59 = vld [vmem:[#allocation197_spill] sm:$0xff] }
 0x307   :  { %v11297_v47 = vadd.f32 %v2548_v2, %v2217_v13 }
 0x308   :  { %v11300_v56 = vmul.f32 %v1879_v50, %v11292_v34  ;;  %v11303_v10 = vmul.f32 %v1879_v50, %v11295_v51  ;;  %1941 = vmatmul.f32.gmra.mxu1 %v17920_v20  ;;  %v11318_v20 = vadd.f32 %v11123_v32, %v1612_v15 }
 0x309   :  { %17925 = vst [vmem:[#allocation118_spill] sm:$0xff] %v11297_v47  ;;  %v11315_v47 = vadd.f32 %v11013_v53, %v1568_v60  ;;  %v17934_v60 = vld [vmem:[#allocation148_spill] sm:$0xff] }
 0x30a   :  { %2615 = vmatmul.f32.gmra.mxu3 %v17926_v3  ;;  %2352 = vmatmul.f32.gmra.mxu2 %v17929_v29  ;;  %v17933_v29 = vld [vmem:[#allocation93_spill] sm:$0xff]  ;;  %v1616_v32 = vadd.f32 %v11129_v6, %v17934_v60 }
 0x30b   :  { %v1655_v42 = vpop.f32.mrf.mxu0  ;;  %v1572_v53 = vadd.f32 %v11019_v1, %v17933_v29 }
 0x30c   :  { %v1656_v2 = vadd.f32 %v1655_v42, %v17930_v59  ;;  %v17932_v42 = vld [vmem:[#allocation186_spill] sm:$0xff] }
 0x30d   :  { %v2552_v63 = vpop.f32.mrf.mxu3  ;;  %v1882_v13 = vpop.f32.mrf.mxu1  ;;  %v17935_v59 = vld [vmem:[#allocation194_spill] sm:$0xff] }
 0x30e   :  { %1718 = vmatmul.f32.gmra.mxu0 %v17926_v3  ;;  %v2225_v50 = vpop.f32.mrf.mxu2  ;;  %v1883_v22 = vadd.f32 %v1882_v13, %v1656_v2  ;;  %v17936_v2 = vld [vmem:[#allocation201_spill] sm:$0xff] }
 0x30f   :  { %v11320_v37 = vadd.f32 %v2552_v63, %v2225_v50 }
 0x310   :  { %v11323_v21 = vmul.f32 %v1883_v22, %v11315_v47  ;;  %v11326_v54 = vmul.f32 %v1883_v22, %v11318_v20  ;;  %1945 = vmatmul.f32.gmra.mxu1 %v17926_v3  ;;  %v11341_v3 = vadd.f32 %v11133_v25, %v1616_v32 }
 0x311   :  { %17931 = vst [vmem:[#allocation164_spill] sm:$0xff] %v11320_v37  ;;  %v11338_v37 = vadd.f32 %v11023_v19, %v1572_v53  ;;  %v17940_v53 = vld [vmem:[#allocation152_spill] sm:$0xff] }
 0x312   :  { %2619 = vmatmul.f32.gmra.mxu3 %v17932_v42  ;;  %2360 = vmatmul.f32.gmra.mxu2 %v17935_v59  ;;  %v17939_v59 = vld [vmem:[#allocation98_spill] sm:$0xff]  ;;  %v1620_v25 = vadd.f32 %v11139_v48, %v17940_v53 }
 0x313   :  { %v1659_v15 = vpop.f32.mrf.mxu0  ;;  %v1576_v19 = vadd.f32 %v11029_v36, %v17939_v59 }
 0x314   :  { %v1660_v63 = vadd.f32 %v1659_v15, %v17936_v2  ;;  %v17938_v15 = vld [vmem:[#allocation191_spill] sm:$0xff] }
 0x315   :  { %v2556_v13 = vpop.f32.mrf.mxu3  ;;  %v1886_v50 = vpop.f32.mrf.mxu1  ;;  %v17941_v2 = vld [vmem:[#allocation199_spill] sm:$0xff] }
 0x316   :  { %1722 = vmatmul.f32.gmra.mxu0 %v17932_v42  ;;  %v2233_v22 = vpop.f32.mrf.mxu2  ;;  %v1887_v1 = vadd.f32 %v1886_v50, %v1660_v63  ;;  %v17942_v63 = vld [vmem:[#allocation206_spill] sm:$0xff] }
 0x317   :  { %v11343_v29 = vadd.f32 %v2556_v13, %v2233_v22 }
 0x318   :  { %v11346_v6 = vmul.f32 %v1887_v1, %v11338_v37  ;;  %v11349_v60 = vmul.f32 %v1887_v1, %v11341_v3  ;;  %1949 = vmatmul.f32.gmra.mxu1 %v17932_v42  ;;  %v11364_v42 = vadd.f32 %v11143_v18, %v1620_v25 }
 0x319   :  { %17937 = vst [vmem:[#allocation172_spill] sm:$0xff] %v11343_v29  ;;  %v11361_v29 = vadd.f32 %v11033_v0, %v1576_v19  ;;  %v17946_v19 = vld [vmem:[#allocation157_spill] sm:$0xff] }
 0x31a   :  { %2623 = vmatmul.f32.gmra.mxu3 %v17938_v15  ;;  %2368 = vmatmul.f32.gmra.mxu2 %v17941_v2  ;;  %v17945_v2 = vld [vmem:[#allocation103_spill] sm:$0xff]  ;;  %v1624_v18 = vadd.f32 %v11149_v41, %v17946_v19 }
 0x31b   :  { %v1663_v32 = vpop.f32.mrf.mxu0  ;;  %v1580_v0 = vadd.f32 %v11039_v30, %v17945_v2 }
 0x31c   :  { %v1664_v13 = vadd.f32 %v1663_v32, %v17942_v63  ;;  %v17944_v32 = vld [vmem:[#allocation196_spill] sm:$0xff]  ;;  %v17947_v63 = vld [vmem:[#allocation203_spill] sm:$0xff] }
 0x31d   :  { %v2560_v50 = vpop.f32.mrf.mxu3  ;;  %v1890_v22 = vpop.f32.mrf.mxu1 }
 0x31e   :  { %1726 = vmatmul.f32.gmra.mxu0 %v17938_v15  ;;  %v2241_v1 = vpop.f32.mrf.mxu2  ;;  %v1891_v36 = vadd.f32 %v1890_v22, %v1664_v13  ;;  %v17948_v13 = vld [vmem:[#allocation210_spill] sm:$0xff] }
 0x31f   :  { %v11366_v59 = vadd.f32 %v2560_v50, %v2241_v1 }
 0x320   :  { %v11369_v48 = vmul.f32 %v1891_v36, %v11361_v29  ;;  %v11372_v53 = vmul.f32 %v1891_v36, %v11364_v42  ;;  %1953 = vmatmul.f32.gmra.mxu1 %v17938_v15  ;;  %v11387_v15 = vadd.f32 %v11153_v27, %v1624_v18 }
 0x321   :  { %17943 = vst [vmem:[#allocation68_spill] sm:$0xff] %v11366_v59  ;;  %v11384_v59 = vadd.f32 %v11043_v46, %v1580_v0  ;;  %v17950_v0 = vld [vmem:[#allocation162_spill] sm:$0xff] }
 0x322   :  { %2627 = vmatmul.f32.gmra.mxu3 %v17944_v32  ;;  %2376 = vmatmul.f32.gmra.mxu2 %v17947_v63  ;;  %v1628_v27 = vadd.f32 %v11159_v62, %v17950_v0  ;;  %v17951_v63 = vld [vmem:[#allocation208_spill] sm:$0xff] }
 0x323   :  { %v1667_v25 = vpop.f32.mrf.mxu0 }
 0x324   :  { %v1668_v50 = vadd.f32 %v1667_v25, %v17948_v13  ;;  %v17949_v25 = vld [vmem:[#allocation108_spill] sm:$0xff] }
 0x325   :  { %v2564_v22 = vpop.f32.mrf.mxu3  ;;  %v1894_v1 = vpop.f32.mrf.mxu1  ;;  %v1584_v46 = vadd.f32 %v11049_v7, %v17949_v25 }
 0x326   :  { %1730 = vmatmul.f32.gmra.mxu0 %v17944_v32  ;;  %v2249_v36 = vpop.f32.mrf.mxu2  ;;  %v1895_v30 = vadd.f32 %v1894_v1, %v1668_v50 }
 0x327   :  { %v11389_v2 = vadd.f32 %v2564_v22, %v2249_v36  ;;  %v11407_v36 = vadd.f32 %v11053_v58, %v1584_v46  ;;  %v17955_v58 = vld [vmem:[#allocation217_spill] sm:$0xff] }
 0x328   :  { %v11392_v41 = vmul.f32 %v1895_v30, %v11384_v59  ;;  %v11395_v19 = vmul.f32 %v1895_v30, %v11387_v15  ;;  %1957 = vmatmul.f32.gmra.mxu1 %v17944_v32  ;;  %v11410_v30 = vadd.f32 %v11163_v40, %v1628_v27 }
 0x32a   :  { %2631 = vmatmul.f32.gmra.mxu3 %v10751_v45  ;;  %2384 = vmatmul.f32.gmra.mxu2 %v17951_v63  ;;  %v17954_v63 = vld [vmem:[#allocation212_spill] sm:$0xff] }
 0x32b   :  { %v1671_v18 = vpop.f32.mrf.mxu0 }
 0x32c   :  { %v1672_v13 = vadd.f32 %v1671_v18, %v10819_v44  ;;  %v17953_v44 = vld [vmem:[#allocation205_spill] sm:$0xff] }
 0x32d   :  { %v2568_v50 = vpop.f32.mrf.mxu3  ;;  %v1898_v22 = vpop.f32.mrf.mxu1 }
 0x32e   :  { %1734 = vmatmul.f32.gmra.mxu0 %v10751_v45  ;;  %v2257_v1 = vpop.f32.mrf.mxu2  ;;  %v1899_v7 = vadd.f32 %v1898_v22, %v1672_v13 }
 0x32f   :  { %v11412_v25 = vadd.f32 %v2568_v50, %v2257_v1 }
 0x330   :  { %v11415_v62 = vmul.f32 %v1899_v7, %v11407_v36  ;;  %v11418_v0 = vmul.f32 %v1899_v7, %v11410_v30  ;;  %1961 = vmatmul.f32.gmra.mxu1 %v10751_v45 }
 0x331   :  { %17952 = vst [vmem:[#allocation123_spill] sm:$0xff] %v11412_v25  ;;  %v17956_v25 = vld [vmem:[#allocation215_spill] sm:$0xff] }
 0x332   :  { %2635 = vmatmul.f32.gmra.mxu3 %v17953_v44  ;;  %2392 = vmatmul.f32.gmra.mxu2 %v17954_v63 }
 0x333   :  { %v1675_v18 = vpop.f32.mrf.mxu0 }
 0x334   :  { %v1676_v46 = vadd.f32 %v1675_v18, %v17955_v58 }
 0x335   :  { %v2572_v40 = vpop.f32.mrf.mxu3  ;;  %v1902_v27 = vpop.f32.mrf.mxu1 }
 0x336   :  { %1738 = vmatmul.f32.gmra.mxu0 %v17953_v44  ;;  %v2265_v13 = vpop.f32.mrf.mxu2  ;;  %v1903_v50 = vadd.f32 %v1902_v27, %v1676_v46 }
 0x337   :  { %v11425_v22 = vadd.f32 %v2572_v40, %v2265_v13 }
 0x338   :  { %v3741_v1 = vmul.f32 %v1903_v50, %v11180_v9  ;;  %v3785_v7 = vmul.f32 %v1903_v50, %v11177_v24  ;;  %1965 = vmatmul.f32.gmra.mxu1 %v17953_v44 }
 0x33a   :  { %2639 = vmatmul.f32.gmra.mxu3 %v10795_v28  ;;  %v11432_v63 = vsub.f32 %v11185_v52, %v3741_v1  ;;  %v11435_v18 = vadd.f32 %v11188_v49, %v3785_v7  ;;  %2400 = vmatmul.f32.gmra.mxu2 %v17956_v25  ;;  %v17957_v1 = vld [vmem:[#allocation218_spill] sm:$0xff] }
 0x33b   :  { %v1679_v58 = vpop.f32.mrf.mxu0 }
 0x33c   :  { %v1680_v46 = vadd.f32 %v1679_v58, %v10845_v61 }
 0x33d   :  { %v2576_v40 = vpop.f32.mrf.mxu3  ;;  %v1906_v9 = vpop.f32.mrf.mxu1 }
 0x33e   :  { %1742 = vmatmul.f32.gmra.mxu0 %v10795_v28  ;;  %v2273_v24 = vpop.f32.mrf.mxu2  ;;  %v1907_v27 = vadd.f32 %v1906_v9, %v1680_v46 }
 0x33f   :  { %v11440_v13 = vadd.f32 %v2576_v40, %v2273_v24 }
 0x340   :  { %v3743_v50 = vmul.f32 %v1907_v27, %v11203_v57  ;;  %v3787_v52 = vmul.f32 %v1907_v27, %v11200_v5  ;;  %1969 = vmatmul.f32.gmra.mxu1 %v10795_v28 }
 0x342   :  { %2643 = vmatmul.f32.gmra.mxu3 %v10817_v14  ;;  %v11447_v49 = vsub.f32 %v11208_v17, %v3743_v50  ;;  %v11450_v61 = vadd.f32 %v11211_v55, %v3787_v52  ;;  %2408 = vmatmul.f32.gmra.mxu2 %v10843_v23  ;;  %v17958_v55 = vld [vmem:[#allocation2_spill] sm:$0xff]  ;;  %v17959_v50 = vld [vmem:[#allocation219_spill] sm:$0xff] }
 0x343   :  { %v1683_v25 = vpop.f32.mrf.mxu0 }
 0x344   :  { %v1684_v7 = vadd.f32 %v1683_v25, %v17957_v1 }
 0x345   :  { %v2580_v58 = vpop.f32.mrf.mxu3  ;;  %v1910_v57 = vpop.f32.mrf.mxu1 }
 0x346   :  { %1746 = vmatmul.f32.gmra.mxu0 %v10817_v14  ;;  %v2281_v5 = vpop.f32.mrf.mxu2  ;;  %v1911_v46 = vadd.f32 %v1910_v57, %v1684_v7  ;;  %v17960_v7 = vld [vmem:[#allocation4_spill] sm:$0xff] }
 0x347   :  { %v11455_v40 = vadd.f32 %v2580_v58, %v2281_v5  ;;  %v17962_v5 = vld [vmem:[#allocation6_spill] sm:$0xff] }
 0x348   :  { %v3745_v9 = vmul.f32 %v1911_v46, %v11226_v12  ;;  %v3789_v17 = vmul.f32 %v1911_v46, %v11223_v16  ;;  %1973 = vmatmul.f32.gmra.mxu1 %v10817_v14 }
 0x34a   :  { %3509 = vmatmul.f32.vlgmr.msra.gmra.mxu3 %v17958_v55  ;;  %v11462_v23 = vsub.f32 %v11231_v11, %v3745_v9  ;;  %v3833_v24 = vadd.f32 %v11234_v38, %v3789_v17  ;;  %3282 = vmatmul.f32.vlgmr.msra.gmra.mxu2 %v17958_v55  ;;  %v17963_v38 = vld [vmem:[#allocation3_spill] sm:$0xff]  ;;  %v17964_v55 = vld [vmem:[#allocation220_spill] sm:$0xff] }
 0x34b   :  { %v1687_v27 = vpop.f32.mrf.mxu0 }
 0x34c   :  { %v1688_v52 = vadd.f32 %v1687_v27, %v17959_v50 }
 0x34d   :  { %v2584_v25 = vpop.f32.mrf.mxu3  ;;  %v1914_v1 = vpop.f32.mrf.mxu1 }
 0x34e   :  { %2669 = vmatmul.f32.vlgmr.msra.gmra.mxu0 %v17960_v7  ;;  %v2289_v12 = vpop.f32.mrf.mxu2  ;;  %v1915_v16 = vadd.f32 %v1914_v1, %v1688_v52 }
 0x34f   :  { %v11468_v58 = vadd.f32 %v2584_v25, %v2289_v12  ;;  %v17965_v25 = vld [vmem:[#allocation5_spill] sm:$0xff]  ;;  %v17967_v12 = vld [vmem:[#allocation7_spill] sm:$0xff] }
 0x350   :  { %v3747_v57 = vmul.f32 %v1915_v16, %v11249_v39  ;;  %v3791_v11 = vmul.f32 %v1915_v16, %v11246_v8  ;;  %2949 = vmatmul.f32.vlgmr.msra.gmra.mxu1 %v17962_v5  ;;  %v17968_v16 = vld [vmem:[#allocation8_spill] sm:$0xff] }
 0x351   :  { %17961 = vst [vmem:[#allocation169_spill] sm:$0xff] %v11468_v58 }
 0x352   :  { %3513 = vmatmul.f32.gmra.mxu3 %v17963_v38  ;;  %v11475_v46 = vsub.f32 %v11254_v43, %v3747_v57  ;;  %v3835_v9 = vadd.f32 %v11257_v26, %v3791_v11  ;;  %3286 = vmatmul.f32.gmra.mxu2 %v17963_v38  ;;  %v11489_v57 = vand.u32 4294901760, %v3833_v24 }
 0x353   :  { %v1691_v17 = vpop.f32.mrf.mxu0 }
 0x354   :  { %v1692_v27 = vadd.f32 %v1691_v17, %v17964_v55  ;;  %v11486_v26 = vand.u32 4294901760, %v3835_v9  ;;  %v17969_v17 = vld [vmem:[#allocation221_spill] sm:$0xff] }
 0x355   :  { %v2588_v50 = vpop.f32.mrf.mxu3  ;;  %v1918_v52 = vpop.f32.mrf.mxu1 }
 0x356   :  { %2674 = vmatmul.f32.gmra.mxu0 %v17965_v25  ;;  %v2297_v39 = vpop.f32.mrf.mxu2  ;;  %v1919_v8 = vadd.f32 %v1918_v52, %v1692_v27  ;;  %v17970_v25 = vld [vmem:[#allocation9_spill] sm:$0xff] }
 0x357   :  { %v11481_v1 = vadd.f32 %v2588_v50, %v2297_v39  ;;  %v11503_v50 = vsub.f32 %v3835_v9, %v11486_v26  ;;  %v11510_v39 = vand.u32 4294901760, %v11435_v18 }
 0x358   :  { %v3749_v7 = vmul.f32 %v1919_v8, %v11272_v33  ;;  %v3793_v43 = vmul.f32 %v1919_v8, %v11269_v4  ;;  %2955 = vmatmul.f32.gmra.mxu1 %v17967_v12  ;;  %v11498_v4 = vand.u32 4294901760, %v11450_v61 }
 0x359   :  { %17966 = vst [vmem:[#allocation177_spill] sm:$0xff] %v11481_v1 }
 0x35a   :  { %3517 = vmatmul.f32.gmra.mxu3 %v17968_v16  ;;  %v11492_v11 = vsub.f32 %v11277_v31, %v3749_v7  ;;  %v3837_v5 = vadd.f32 %v11280_v35, %v3793_v43  ;;  %3290 = vmatmul.f32.gmra.mxu2 %v17968_v16  ;;  %v11507_v35 = vsub.f32 %v3833_v24, %v11489_v57  ;;  %v17972_v16 = vld [vmem:[#allocation10_spill] sm:$0xff] }
 0x35b   :  { %v1695_v38 = vpop.f32.mrf.mxu0  ;;  %v11521_v43 = vsub.f32 %v11450_v61, %v11498_v4  ;;  %v11533_v61 = vsub.f32 %v11435_v18, %v11510_v39 }
 0x35c   :  { %v1696_v33 = vadd.f32 %v1695_v38, %v17969_v17  ;;  %v11500_v55 = vand.u32 4294901760, %v3837_v5  ;;  %v17262_v17 = vand.u32 4294901760, %v11503_v50 }
 0x35d   :  { %v2592_v27 = vpop.f32.mrf.mxu3  ;;  %v1922_v52 = vpop.f32.mrf.mxu1 }
 0x35e   :  { %2679 = vmatmul.f32.gmra.mxu0 %v17970_v25  ;;  %v2305_v31 = vpop.f32.mrf.mxu2  ;;  %v1923_v8 = vadd.f32 %v1922_v52, %v1696_v33  ;;  %4230 = vmatpush.msrb.mxu3 %v11500_v55  ;;  %v11517_v9 = vsub.f32 %v3837_v5, %v11500_v55  ;;  %v17973_v5 = vld [vmem:[#allocation11_spill] sm:$0xff]  ;;  %v17266_v52 = vand.u32 4294901760, %v11507_v35  ;;  %v17974_v25 = vld [vmem:[#allocation222_spill] sm:$0xff] }
 0x35f   :  { %3898 = vmatpush.msrb.mxu0 %v11500_v55  ;;  %v11514_v7 = vadd.f32 %v2592_v27, %v2305_v31  ;;  %v4011_v31 = vsub.f32 %v11503_v50, %v17262_v17 }
 0x360   :  { %v3751_v24 = vmul.f32 %v1923_v8, %v11295_v51  ;;  %v3795_v12 = vmul.f32 %v1923_v8, %v11292_v34  ;;  %2961 = vmatmul.f32.gmra.mxu1 %v17972_v16  ;;  %v17263_v38 = vand.u32 4294901760, %v11517_v9  ;;  %4137 = vmatpush.msrb.mxu2 %v11517_v9  ;;  %v17264_v8 = vand.u32 4294901760, %v11521_v43 }
 0x361   :  { %17971 = vst [vmem:[#allocation73_spill] sm:$0xff] %v11514_v7  ;;  %3900 = vmatpush.msrb.mxu0 %v11486_v26  ;;  %4232 = vmatpush.msrb.mxu3 %v11486_v26 }
 0x362   :  { %v11536_v51 = vsub.f32 %v11300_v56, %v3751_v24  ;;  %v11539_v34 = vadd.f32 %v11303_v10, %v3795_v12  ;;  %3521 = vmatmul.f32.gmra.mxu3 %v17973_v5  ;;  %3294 = vmatmul.f32.gmra.mxu2 %v17973_v5  ;;  %v4005_v27 = vsub.f32 %v11517_v9, %v17263_v38  ;;  %v17975_v5 = vld [vmem:[#allocation12_spill] sm:$0xff] }
 0x363   :  { %v1699_v33 = vpop.f32.mrf.mxu0  ;;  %3902 = vmatpush.msrb.mxu0 %v11489_v57  ;;  %4140 = vmatpush.msrb.mxu2 %v11503_v50 }
 0x364   :  { %v1700_v18 = vadd.f32 %v1699_v33, %v17974_v25  ;;  %4234 = vmatpush.msrb.mxu3 %v11489_v57  ;;  %v4006_v56 = vand.u32 4294901760, %v4005_v27  ;;  %v4017_v27 = vsub.f32 %v11507_v35, %v17266_v52  ;;  %v17265_v25 = vand.u32 4294901760, %v11533_v61 }
 0x365   :  { %v2596_v10 = vpop.f32.mrf.mxu3  ;;  %3904 = vmatpush.msrb.mxu0 %v11498_v4  ;;  %4143 = vmatpush.msrb.mxu2 %v11507_v35  ;;  %v1926_v24 = vpop.f32.mrf.mxu1  ;;  %v11855_v1 = vand.u32 4294901760, %v11539_v34 }
 0x366   :  { %v2313_v12 = vpop.f32.mrf.mxu2  ;;  %4236 = vmatpush.msrb.mxu3 %v11498_v4  ;;  %v1927_v16 = vadd.f32 %v1926_v24, %v1700_v18  ;;  %2684 = vmatmul.f32.gmra.mxu0 %v17975_v5  ;;  %v4012_v18 = vand.u32 4294901760, %v4011_v31  ;;  %v17977_v24 = vld [vmem:[#allocation13_spill] sm:$0xff]  ;;  %v4029_v31 = vsub.f32 %v11533_v61, %v17265_v25  ;;  %v17979_v5 = vld [vmem:[#allocation223_spill] sm:$0xff] }
 0x367   :  { %v11559_v33 = vadd.f32 %v2596_v10, %v2313_v12  ;;  %3906 = vmatpush.msrb.mxu0 %v11510_v39  ;;  %4007 = vmatpush.msrb.mxu1 %v4006_v56  ;;  %v4023_v10 = vsub.f32 %v11521_v43, %v17264_v8 }
 0x368   :  { %v3753_v17 = vmul.f32 %v1927_v16, %v11318_v20  ;;  %v3797_v38 = vmul.f32 %v1927_v16, %v11315_v47  ;;  %4146 = vmatpush.msrb.mxu2 %v11521_v43  ;;  %4238 = vmatpush.msrb.mxu3 %v11510_v39  ;;  %v4018_v47 = vand.u32 4294901760, %v4017_v27  ;;  %v17978_v16 = vld [vmem:[#allocation14_spill] sm:$0xff]  ;;  %v17982_v27 = vld [vmem:[#allocation15_spill] sm:$0xff] }
 0x369   :  { %17976 = vst [vmem:[#allocation128_spill] sm:$0xff] %v11559_v33  ;;  %2967 = vmatmul.f32.gmra.mxu1 %v17977_v24  ;;  %v4030_v24 = vand.u32 4294901760, %v4029_v31 }
 0x36a   :  { %v11575_v12 = vsub.f32 %v11323_v21, %v3753_v17  ;;  %v11578_v56 = vadd.f32 %v11326_v54, %v3797_v38  ;;  %4013 = vmatpush.msrb.mxu1 %v4012_v18  ;;  %4149 = vmatpush.msrb.mxu2 %v11533_v61  ;;  %v4024_v21 = vand.u32 4294901760, %v4023_v10 }
 0x36b   :  { %v1703_v20 = vpop.f32.mrf.mxu0  ;;  %3525 = vmatmul.f32.gmra.mxu3 %v17978_v16  ;;  %3298 = vmatmul.f32.gmra.mxu2 %v17978_v16 }
 0x36c   :  { %v1704_v8 = vadd.f32 %v1703_v20, %v17979_v5  ;;  %4019 = vmatpush.msrb.mxu1 %v4018_v47  ;;  %v17983_v20 = vld [vmem:[#allocation16_spill] sm:$0xff]  ;;  %v17984_v5 = vld [vmem:[#allocation17_spill] sm:$0xff] }
 0x36d   :  { %v11587_v17 = vpop.f32.mrf.mxu3  ;;  %v1930_v54 = vpop.f32.mrf.mxu1 }
 0x36e   :  { %17980 = vst [vmem:[#allocation174_spill] sm:$0xff] %v11587_v17  ;;  %v11589_v38 = vpop.f32.mrf.mxu2  ;;  %4025 = vmatpush.msrb.mxu1 %v4024_v21  ;;  %v1931_v18 = vadd.f32 %v1930_v54, %v1704_v8  ;;  %2689 = vmatmul.f32.gmra.mxu0 %v17982_v27  ;;  %v17985_v8 = vld [vmem:[#allocation224_spill] sm:$0xff] }
 0x36f   :  { %17981 = vst [vmem:[#allocation182_spill] sm:$0xff] %v11589_v38 }
 0x370   :  { %v3755_v25 = vmul.f32 %v1931_v18, %v11341_v3  ;;  %v3799_v52 = vmul.f32 %v1931_v18, %v11338_v37  ;;  %4031 = vmatpush.msrb.mxu1 %v4030_v24  ;;  %v17988_v18 = vld [vmem:[#allocation18_spill] sm:$0xff] }
 0x371   :  { %2973 = vmatmul.f32.gmra.mxu1 %v17983_v20  ;;  %v17990_v20 = vld [vmem:[#allocation20_spill] sm:$0xff] }
 0x372   :  { %v11596_v47 = vsub.f32 %v11346_v6, %v3755_v25  ;;  %v11599_v10 = vadd.f32 %v11349_v60, %v3799_v52  ;;  %v17989_v52 = vld [vmem:[#allocation19_spill] sm:$0xff] }
 0x373   :  { %v1707_v16 = vpop.f32.mrf.mxu0  ;;  %3529 = vmatmul.f32.gmra.mxu3 %v17984_v5  ;;  %3302 = vmatmul.f32.gmra.mxu2 %v17984_v5 }
 0x374   :  { %v1708_v21 = vadd.f32 %v1707_v16, %v17985_v8  ;;  %v17991_v16 = vld [vmem:[#allocation225_spill] sm:$0xff] }
 0x375   :  { %v11604_v31 = vpop.f32.mrf.mxu3  ;;  %v1934_v3 = vpop.f32.mrf.mxu1 }
 0x376   :  { %17986 = vst [vmem:[#allocation78_spill] sm:$0xff] %v11604_v31  ;;  %v11606_v37 = vpop.f32.mrf.mxu2  ;;  %v1935_v54 = vadd.f32 %v1934_v3, %v1708_v21  ;;  %2694 = vmatmul.f32.gmra.mxu0 %v17988_v18  ;;  %v17994_v3 = vld [vmem:[#allocation21_spill] sm:$0xff] }
 0x377   :  { %17987 = vst [vmem:[#allocation133_spill] sm:$0xff] %v11606_v37 }
 0x378   :  { %v3757_v6 = vmul.f32 %v1935_v54, %v11364_v42  ;;  %v3801_v60 = vmul.f32 %v1935_v54, %v11361_v29  ;;  %v17995_v54 = vld [vmem:[#allocation22_spill] sm:$0xff] }
 0x379   :  { %2979 = vmatmul.f32.gmra.mxu1 %v17989_v52  ;;  %v17996_v52 = vld [vmem:[#allocation23_spill] sm:$0xff] }
 0x37a   :  { %v3779_v25 = vsub.f32 %v11369_v48, %v3757_v6  ;;  %v11614_v27 = vadd.f32 %v11372_v53, %v3801_v60 }
 0x37b   :  { %v1711_v24 = vpop.f32.mrf.mxu0  ;;  %3533 = vmatmul.f32.gmra.mxu3 %v17990_v20  ;;  %3306 = vmatmul.f32.gmra.mxu2 %v17990_v20 }
 0x37c   :  { %v1712_v5 = vadd.f32 %v1711_v24, %v17991_v16  ;;  %v17997_v24 = vld [vmem:[#allocation226_spill] sm:$0xff] }
 0x37d   :  { %v11619_v8 = vpop.f32.mrf.mxu3  ;;  %v1938_v21 = vpop.f32.mrf.mxu1 }
 0x37e   :  { %17992 = vst [vmem:[#allocation179_spill] sm:$0xff] %v11619_v8  ;;  %v11621_v42 = vpop.f32.mrf.mxu2  ;;  %v1939_v29 = vadd.f32 %v1938_v21, %v1712_v5  ;;  %2699 = vmatmul.f32.gmra.mxu0 %v17994_v3  ;;  %v18000_v21 = vld [vmem:[#allocation24_spill] sm:$0xff]  ;;  %v18001_v3 = vld [vmem:[#allocation25_spill] sm:$0xff] }
 0x37f   :  { %17993 = vst [vmem:[#allocation187_spill] sm:$0xff] %v11621_v42 }
 0x380   :  { %v3759_v48 = vmul.f32 %v1939_v29, %v11387_v15  ;;  %v3803_v53 = vmul.f32 %v1939_v29, %v11384_v59 }
 0x381   :  { %2985 = vmatmul.f32.gmra.mxu1 %v17995_v54 }
 0x382   :  { %v3781_v18 = vsub.f32 %v11392_v41, %v3759_v48  ;;  %v11629_v6 = vadd.f32 %v11395_v19, %v3803_v53 }
 0x383   :  { %v1715_v60 = vpop.f32.mrf.mxu0  ;;  %3537 = vmatmul.f32.gmra.mxu3 %v17996_v52  ;;  %3310 = vmatmul.f32.gmra.mxu2 %v17996_v52  ;;  %v11652_v52 = vand.u32 4294901760, %v3779_v25 }
 0x384   :  { %v1716_v20 = vadd.f32 %v1715_v60, %v17997_v24  ;;  %v11641_v29 = vand.u32 4294901760, %v3781_v18  ;;  %v18003_v60 = vld [vmem:[#allocation26_spill] sm:$0xff] }
 0x385   :  { %v11634_v16 = vpop.f32.mrf.mxu3  ;;  %v1942_v5 = vpop.f32.mrf.mxu1 }
 0x386   :  { %17998 = vst [vmem:[#allocation83_spill] sm:$0xff] %v11634_v16  ;;  %v11636_v15 = vpop.f32.mrf.mxu2  ;;  %v1943_v59 = vadd.f32 %v1942_v5, %v1716_v20  ;;  %2704 = vmatmul.f32.gmra.mxu0 %v18000_v21  ;;  %v11659_v24 = vsub.f32 %v3781_v18, %v11641_v29  ;;  %v18007_v5 = vld [vmem:[#allocation27_spill] sm:$0xff]  ;;  %v11675_v21 = vsub.f32 %v3779_v25, %v11652_v52  ;;  %v11678_v18 = vand.u32 4294901760, %v11575_v12 }
 0x387   :  { %17999 = vst [vmem:[#allocation138_spill] sm:$0xff] %v11636_v15  ;;  %v18017_v16 = vld [vmem:[#allocation31_spill] sm:$0xff] }
 0x388   :  { %v3761_v41 = vmul.f32 %v1943_v59, %v11410_v30  ;;  %v3805_v19 = vmul.f32 %v1943_v59, %v11407_v36 }
 0x389   :  { %2991 = vmatmul.f32.gmra.mxu1 %v18001_v3 }
 0x38a   :  { %v3783_v48 = vsub.f32 %v11415_v62, %v3761_v41  ;;  %v11646_v53 = vadd.f32 %v11418_v0, %v3805_v19  ;;  %v11666_v0 = vand.u32 4294901760, %v11596_v47  ;;  %v18008_v19 = vld [vmem:[#allocation28_spill] sm:$0xff] }
 0x38b   :  { %v11648_v54 = vpop.f32.mrf.mxu0  ;;  %3541 = vmatmul.f32.gmra.mxu3 %v18003_v60  ;;  %3314 = vmatmul.f32.gmra.mxu2 %v18003_v60  ;;  %v11694_v60 = vand.u32 4294901760, %v11536_v51 }
 0x38c   :  { %18002 = vst [vmem:[#allocation184_spill] sm:$0xff] %v11648_v54  ;;  %v11654_v30 = vand.u32 4294901760, %v3783_v48  ;;  %v11686_v3 = vsub.f32 %v11596_v47, %v11666_v0  ;;  %v11719_v47 = vand.u32 4294901760, %v11492_v11  ;;  %v11751_v54 = vand.u32 4294901760, %v11629_v6 }
 0x38d   :  { %v11656_v36 = vpop.f32.mrf.mxu3  ;;  %v11661_v20 = vpop.f32.mrf.mxu1 }
 0x38e   :  { %18004 = vst [vmem:[#allocation192_spill] sm:$0xff] %v11656_v36  ;;  %v11663_v62 = vpop.f32.mrf.mxu2  ;;  %2709 = vmatmul.f32.gmra.mxu0 %v18007_v5  ;;  %4240 = vmatpush.msrb.mxu3 %v11654_v30  ;;  %v11672_v59 = vsub.f32 %v3783_v48, %v11654_v30  ;;  %v18010_v5 = vld [vmem:[#allocation29_spill] sm:$0xff]  ;;  %v11788_v17 = vsub.f32 %v11629_v6, %v11751_v54 }
 0x38f   :  { %18005 = vst [vmem:[#allocation88_spill] sm:$0xff] %v11661_v20  ;;  %3908 = vmatpush.msrb.mxu0 %v11654_v30 }
 0x390   :  { %18006 = vst [vmem:[#allocation143_spill] sm:$0xff] %v11663_v62  ;;  %4242 = vmatpush.msrb.mxu3 %v11641_v29  ;;  %4152 = vmatpush.msrb.mxu2 %v11672_v59  ;;  %v17267_v25 = vand.u32 4294901760, %v11672_v59  ;;  %v18012_v62 = vand.u32 4294901760, %v11659_v24 }
 0x391   :  { %2997 = vmatmul.f32.gmra.mxu1 %v18008_v19  ;;  %3910 = vmatpush.msrb.mxu0 %v11641_v29  ;;  %v11700_v19 = vsub.f32 %v11575_v12, %v11678_v18  ;;  %18026 = vst [vmem:[#allocation206_spill] sm:$0xff] %v11788_v17 }
 0x392   :  { %4244 = vmatpush.msrb.mxu3 %v11652_v52  ;;  %4155 = vmatpush.msrb.mxu2 %v11659_v24  ;;  %v4035_v41 = vsub.f32 %v11672_v59, %v17267_v25 }
 0x393   :  { %v11689_v48 = vpop.f32.mrf.mxu0  ;;  %3545 = vmatmul.f32.gmra.mxu3 %v18010_v5  ;;  %3318 = vmatmul.f32.gmra.mxu2 %v18010_v5  ;;  %v4041_v5 = vsub.f32 %v11659_v24, %v18012_v62  ;;  %v11729_v62 = vand.u32 4294901760, %v11646_v53  ;;  %v18021_v8 = vand.u32 4294901760, %v11700_v19 }
 0x394   :  { %18009 = vst [vmem:[#allocation189_spill] sm:$0xff] %v11689_v48  ;;  %3912 = vmatpush.msrb.mxu0 %v11652_v52  ;;  %4246 = vmatpush.msrb.mxu3 %v11666_v0  ;;  %v4036_v25 = vand.u32 4294901760, %v4035_v41 }
 0x395   :  { %v11708_v36 = vpop.f32.mrf.mxu3  ;;  %v11714_v12 = vpop.f32.mrf.mxu1  ;;  %4158 = vmatpush.msrb.mxu2 %v11675_v21  ;;  %v4042_v41 = vand.u32 4294901760, %v4041_v5  ;;  %v18022_v5 = vld [vmem:[#allocation32_spill] sm:$0xff] }
 0x396   :  { %18011 = vst [vmem:[#allocation197_spill] sm:$0xff] %v11708_v36  ;;  %v11716_v48 = vpop.f32.mrf.mxu2  ;;  %3914 = vmatpush.msrb.mxu0 %v11666_v0  ;;  %v11726_v36 = vsub.f32 %v11536_v51, %v11694_v60  ;;  %4248 = vmatpush.msrb.mxu3 %v11678_v18  ;;  %v11739_v51 = vand.u32 4294901760, %v11475_v46 }
 0x397   :  { %18013 = vst [vmem:[#allocation93_spill] sm:$0xff] %v11714_v12  ;;  %v18015_v12 = vld [vmem:[#allocation30_spill] sm:$0xff]  ;;  %4037 = vmatpush.msrb.mxu1 %v4036_v25  ;;  %4161 = vmatpush.msrb.mxu2 %v11686_v3 }
 0x398   :  { %18014 = vst [vmem:[#allocation148_spill] sm:$0xff] %v11716_v48  ;;  %2714 = vmatmul.f32.gmra.mxu0 %v18015_v12  ;;  %v18016_v48 = vand.u32 4294901760, %v11675_v21  ;;  %v18018_v12 = vand.u32 4294901760, %v11686_v3  ;;  %4250 = vmatpush.msrb.mxu3 %v11694_v60 }
 0x399   :  { %3916 = vmatpush.msrb.mxu0 %v11678_v18  ;;  %3003 = vmatmul.f32.gmra.mxu1 %v18017_v16  ;;  %v11759_v16 = vsub.f32 %v11646_v53, %v11729_v62  ;;  %v11776_v53 = vsub.f32 %v11475_v46, %v11739_v51  ;;  %v11793_v46 = vand.u32 4294901760, %v11447_v49 }
 0x39a   :  { %v4047_v20 = vsub.f32 %v11675_v21, %v18016_v48  ;;  %v4053_v15 = vsub.f32 %v11686_v3, %v18018_v12  ;;  %v11748_v48 = vsub.f32 %v11492_v11, %v11719_v47  ;;  %4043 = vmatpush.msrb.mxu1 %v4042_v41  ;;  %4164 = vmatpush.msrb.mxu2 %v11700_v19  ;;  %v11764_v12 = vand.u32 4294901760, %v11462_v23 }
 0x39b   :  { %3918 = vmatpush.msrb.mxu0 %v11694_v60  ;;  %v11754_v25 = vpop.f32.mrf.mxu0  ;;  %18020 = vst [vmem:[#allocation201_spill] sm:$0xff] %v11759_v16  ;;  %v4059_v41 = vsub.f32 %v11700_v19, %v18021_v8  ;;  %3549 = vmatmul.f32.gmra.mxu3 %v18022_v5  ;;  %v18033_v33 = vand.u32 4294901760, %v11759_v16 }
 0x39c   :  { %18019 = vst [vmem:[#allocation194_spill] sm:$0xff] %v11754_v25  ;;  %v4048_v11 = vand.u32 4294901760, %v4047_v20  ;;  %v11770_v25 = vand.u32 4294901760, %v11614_v27  ;;  %3322 = vmatmul.f32.gmra.mxu2 %v18022_v5  ;;  %v4054_v20 = vand.u32 4294901760, %v4053_v15  ;;  %4252 = vmatpush.msrb.mxu3 %v11719_v47  ;;  %v18027_v5 = vand.u32 4294901760, %v11726_v36 }
 0x39d   :  { %v11778_v42 = vpop.f32.mrf.mxu3  ;;  %3920 = vmatpush.msrb.mxu0 %v11719_v47  ;;  %v11781_v31 = vpop.f32.mrf.mxu1  ;;  %4167 = vmatpush.msrb.mxu2 %v11726_v36  ;;  %v4060_v37 = vand.u32 4294901760, %v4059_v41  ;;  %v11804_v6 = vsub.f32 %v11462_v23, %v11764_v12  ;;  %v18029_v41 = vld [vmem:[#allocation33_spill] sm:$0xff]  ;;  %v18030_v23 = vand.u32 4294901760, %v11748_v48 }
 0x39e   :  { %18023 = vst [vmem:[#allocation98_spill] sm:$0xff] %v11778_v42  ;;  %4049 = vmatpush.msrb.mxu1 %v4048_v11  ;;  %v11783_v8 = vpop.f32.mrf.mxu2  ;;  %v4065_v15 = vsub.f32 %v11726_v36, %v18027_v5  ;;  %v11799_v11 = vand.u32 4294901760, %v11599_v10  ;;  %4254 = vmatpush.msrb.mxu3 %v11739_v51  ;;  %v11814_v5 = vand.u32 4294901760, %v11432_v63 }
 0x39f   :  { %18024 = vst [vmem:[#allocation152_spill] sm:$0xff] %v11781_v31  ;;  %3922 = vmatpush.msrb.mxu0 %v11739_v51  ;;  %4170 = vmatpush.msrb.mxu2 %v11748_v48  ;;  %v4071_v42 = vsub.f32 %v11748_v48, %v18030_v23  ;;  %v11822_v31 = vand.u32 4294901760, %v11578_v56  ;;  %v18032_v23 = vld [vmem:[#allocation34_spill] sm:$0xff] }
 0x3a0   :  { %18025 = vst [vmem:[#allocation199_spill] sm:$0xff] %v11783_v8  ;;  %4055 = vmatpush.msrb.mxu1 %v4054_v20  ;;  %v11809_v8 = vsub.f32 %v11614_v27, %v11770_v25  ;;  %2719 = vmatmul.f32.gmra.mxu0 %v18029_v41  ;;  %v4066_v27 = vand.u32 4294901760, %v4065_v15  ;;  %v11830_v20 = vsub.f32 %v11447_v49, %v11793_v46  ;;  %v18034_v49 = vand.u32 4294901760, %v11776_v53 }
 0x3a1   :  { %3924 = vmatpush.msrb.mxu0 %v11764_v12  ;;  %4173 = vmatpush.msrb.mxu2 %v11776_v53  ;;  %v11835_v41 = vsub.f32 %v11599_v10, %v11799_v11  ;;  %v4594_v15 = vsub.f32 %v11759_v16, %v18033_v33  ;;  %v11849_v10 = vsub.f32 %v11432_v63, %v11814_v5  ;;  %v4072_v33 = vand.u32 4294901760, %v4071_v42  ;;  %v18044_v16 = vld [vmem:[#allocation36_spill] sm:$0xff] }
 0x3a2   :  { %18028 = vst [vmem:[#allocation196_spill] sm:$0xff] %v11809_v8  ;;  %4061 = vmatpush.msrb.mxu1 %v4060_v37  ;;  %4256 = vmatpush.msrb.mxu3 %v11764_v12  ;;  %v4077_v37 = vsub.f32 %v11776_v53, %v18034_v49  ;;  %v11865_v63 = vsub.f32 %v11578_v56, %v11822_v31  ;;  %v18038_v49 = vld [vmem:[#allocation35_spill] sm:$0xff]  ;;  %v18041_v58 = vand.u32 4294901760, %v11809_v8 }
 0x3a3   :  { %v11826_v38 = vpop.f32.mrf.mxu0  ;;  %3009 = vmatmul.f32.gmra.mxu1 %v18032_v23  ;;  %3926 = vmatpush.msrb.mxu0 %v11793_v46  ;;  %v18039_v23 = vand.u32 4294901760, %v11788_v17  ;;  %v4595_v42 = vand.u32 4294901760, %v4594_v15  ;;  %v11886_v15 = vsub.f32 %v11539_v34, %v11855_v1 }
 0x3a4   :  { %18031 = vst [vmem:[#allocation103_spill] sm:$0xff] %v11826_v38  ;;  %4067 = vmatpush.msrb.mxu1 %v4066_v27  ;;  %4176 = vmatpush.msrb.mxu2 %v11804_v6 }
 0x3a5   :  { %v11851_v7 = vpop.f32.mrf.mxu3  ;;  %4258 = vmatpush.msrb.mxu3 %v11793_v46  ;;  %v11859_v27 = vpop.f32.mrf.mxu1  ;;  %3326 = vmatmul.f32.gmra.mxu2 %v18038_v49 }
 0x3a6   :  { %18035 = vst [vmem:[#allocation157_spill] sm:$0xff] %v11851_v7  ;;  %v11861_v38 = vpop.f32.mrf.mxu2  ;;  %3553 = vmatmul.f32.gmra.mxu3 %v18038_v49  ;;  %v4600_v7 = vsub.f32 %v11788_v17, %v18039_v23  ;;  %3928 = vmatpush.msrb.mxu0 %v11814_v5  ;;  %v4078_v49 = vand.u32 4294901760, %v4077_v37  ;;  %v4606_v23 = vsub.f32 %v11809_v8, %v18041_v58  ;;  %v18043_v37 = vand.u32 4294901760, %v11830_v20 }
 0x3a7   :  { %18036 = vst [vmem:[#allocation203_spill] sm:$0xff] %v11859_v27  ;;  %4073 = vmatpush.msrb.mxu1 %v4072_v33  ;;  %4179 = vmatpush.msrb.mxu2 %v11830_v20  ;;  %v18042_v33 = vand.u32 4294901760, %v11517_v9  ;;  %v18045_v9 = vand.u32 4294901760, %v11835_v41 }
 0x3a8   :  { %18037 = vst [vmem:[#allocation210_spill] sm:$0xff] %v11861_v38  ;;  %v18040_v38 = vand.u32 4294901760, %v11804_v6  ;;  %4260 = vmatpush.msrb.mxu3 %v11814_v5  ;;  %v4089_v56 = vsub.f32 %v11830_v20, %v18043_v37  ;;  %2724 = vmatmul.f32.gmra.mxu0 %v18044_v16 }
 0x3a9   :  { %4319 = vmatpush.msra.mxu0 %v18042_v33  ;;  %4079 = vmatpush.msrb.mxu1 %v4078_v49  ;;  %v18046_v49 = vand.u32 4294901760, %v11503_v50  ;;  %v18047_v33 = vand.u32 4294901760, %v11849_v10 }
 0x3aa   :  { %v4083_v27 = vsub.f32 %v11804_v6, %v18040_v38  ;;  %4596 = vmatpush.msra.mxu3 %v4595_v42  ;;  %4182 = vmatpush.msrb.mxu2 %v11849_v10  ;;  %v4601_v38 = vand.u32 4294901760, %v4600_v7  ;;  %v4612_v42 = vsub.f32 %v11835_v41, %v18045_v9  ;;  %v4607_v7 = vand.u32 4294901760, %v4606_v23 }
 0x3ab   :  { %v1735_v17 = vpop.f32.mrf.mxu0  ;;  %4323 = vmatpush.msra.mxu0 %v18046_v49  ;;  %v4095_v37 = vsub.f32 %v11849_v10, %v18047_v33  ;;  %v18050_v9 = vand.u32 4294901760, %v11507_v35  ;;  %v4090_v50 = vand.u32 4294901760, %v4089_v56  ;;  %v18051_v23 = vand.u32 4294901760, %v11865_v63  ;;  %v18052_v49 = vld [vmem:[#allocation37_spill] sm:$0xff]  ;;  %v18053_v33 = vld [vmem:[#allocation38_spill] sm:$0xff] }
 0x3ac   :  { %4497 = vmatpush.msra.mxu2 %v11729_v62  ;;  %v4084_v34 = vand.u32 4294901760, %v4083_v27  ;;  %4602 = vmatpush.msra.mxu3 %v4601_v38  ;;  %v18055_v35 = vand.u32 4294901760, %v11886_v15 }
 0x3ad   :  { %v11905_v8 = vpop.f32.mrf.mxu3  ;;  %v1962_v16 = vpop.f32.mrf.mxu1  ;;  %4327 = vmatpush.msra.mxu0 %v18050_v9  ;;  %v4618_v38 = vsub.f32 %v11865_v63, %v18051_v23  ;;  %3015 = vmatmul.f32.gmra.mxu1 %v18052_v49  ;;  %v4096_v27 = vand.u32 4294901760, %v4095_v37 }
 0x3ae   :  { %18048 = vst [vmem:[#allocation108_spill] sm:$0xff] %v11905_v8  ;;  %4085 = vmatpush.msrb.mxu1 %v4084_v34  ;;  %4499 = vmatpush.msra.mxu2 %v11751_v54  ;;  %v11909_v58 = vpop.f32.mrf.mxu2  ;;  %v4613_v34 = vand.u32 4294901760, %v4612_v42  ;;  %v18054_v8 = vand.u32 4294901760, %v11521_v43  ;;  %v4624_v56 = vsub.f32 %v11886_v15, %v18055_v35  ;;  %v18057_v42 = vand.u32 4294901760, %v11533_v61  ;;  %v18058_v43 = vld [vmem:[#allocation232_spill] sm:$0xff] }
 0x3af   :  { %18049 = vst [vmem:[#allocation162_spill] sm:$0xff] %v11909_v58  ;;  %4608 = vmatpush.msra.mxu3 %v4607_v7  ;;  %v18056_v7 = vld [vmem:[#allocation231_spill] sm:$0xff]  ;;  %3330 = vmatmul.f32.gmra.mxu2 %v18053_v33  ;;  %v4619_v23 = vand.u32 4294901760, %v4618_v38  ;;  %v18062_v61 = vand.u32 4294901760, %v11672_v59  ;;  %v18065_v35 = vld [vmem:[#allocation40_spill] sm:$0xff]  ;;  %v18067_v59 = vand.u32 4294901760, %v11675_v21 }
 0x3b0   :  { %3557 = vmatmul.f32.gmra.mxu3 %v18053_v33  ;;  %4091 = vmatpush.msrb.mxu1 %v4090_v50  ;;  %v1736_v9 = vadd.f32 %v1735_v17, %v18056_v7  ;;  %v18060_v50 = vld [vmem:[#allocation39_spill] sm:$0xff]  ;;  %v4625_v17 = vand.u32 4294901760, %v4624_v56  ;;  %v18066_v56 = vld [vmem:[#allocation41_spill] sm:$0xff]  ;;  %v18071_v7 = vld [vmem:[#allocation42_spill] sm:$0xff]  ;;  %v18074_v21 = vand.u32 4294901760, %v11700_v19 }
 0x3b1   :  { %4331 = vmatpush.msra.mxu0 %v18054_v8  ;;  %4501 = vmatpush.msra.mxu2 %v11770_v25 }
 0x3b2   :  { %4614 = vmatpush.msra.mxu3 %v4613_v34  ;;  %4097 = vmatpush.msrb.mxu1 %v4096_v27  ;;  %v1963_v33 = vadd.f32 %v1962_v16, %v1736_v9  ;;  %v18063_v34 = vand.u32 4294901760, %v11659_v24 }
 0x3b3   :  { %v1739_v49 = vpop.f32.mrf.mxu0  ;;  %4335 = vmatpush.msra.mxu0 %v18057_v42  ;;  %4503 = vmatpush.msra.mxu2 %v11799_v11 }
 0x3b4   :  { %4418 = vmatpush.msra.mxu1 %v11500_v55  ;;  %v1740_v8 = vadd.f32 %v1739_v49, %v18058_v43  ;;  %4620 = vmatpush.msra.mxu3 %v4619_v23  ;;  %v18078_v49 = vand.u32 4294901760, %v11748_v48  ;;  %v18085_v48 = vand.u32 4294901760, %v11804_v6  ;;  %v18090_v6 = vld [vmem:[#allocation235_spill] sm:$0xff] }
 0x3b5   :  { %v11931_v37 = vpop.f32.mrf.mxu3  ;;  %2729 = vmatmul.f32.gmra.mxu0 %v18060_v50  ;;  %v1966_v27 = vpop.f32.mrf.mxu1  ;;  %4505 = vmatpush.msra.mxu2 %v11822_v31 }
 0x3b6   :  { %18059 = vst [vmem:[#allocation208_spill] sm:$0xff] %v11931_v37  ;;  %4420 = vmatpush.msra.mxu1 %v11486_v26  ;;  %v11935_v38 = vpop.f32.mrf.mxu2  ;;  %4339 = vmatpush.msra.mxu0 %v18062_v61  ;;  %v1967_v55 = vadd.f32 %v1966_v27, %v1740_v8  ;;  %v18089_v8 = vand.u32 4294901760, %v11849_v10  ;;  %v18092_v61 = vld [vmem:[#allocation49_spill] sm:$0xff]  ;;  %v18190_v37 = vld [vmem:[#allocation163_spill] sm:$0xff] }
 0x3b7   :  { %18061 = vst [vmem:[#allocation205_spill] sm:$0xff] %v11935_v38  ;;  %4626 = vmatpush.msra.mxu3 %v4625_v17  ;;  %4507 = vmatpush.msra.mxu2 %v11855_v1 }
 0x3b8   :  { %4422 = vmatpush.msra.mxu1 %v11489_v57  ;;  %4343 = vmatpush.msra.mxu0 %v18063_v34  ;;  %v11944_v26 = vmul.f32 %v1967_v55, %v1963_v33  ;;  %v18069_v57 = vand.u32 4294901760, %v11686_v3  ;;  %v18076_v3 = vld [vmem:[#allocation43_spill] sm:$0xff]  ;;  %v18094_v34 = vld [vmem:[#allocation236_spill] sm:$0xff] }
 0x3b9   :  { %3021 = vmatmul.f32.gmra.mxu1 %v18065_v35  ;;  %3561 = vmatmul.f32.gmra.mxu3 %v18066_v56 }
 0x3ba   :  { %18064 = vst [vmem:[#allocation212_spill] sm:$0xff] %v11944_v26  ;;  %4347 = vmatpush.msra.mxu0 %v18067_v59  ;;  %4424 = vmatpush.msra.mxu1 %v11498_v4  ;;  %v18075_v4 = vand.u32 4294901760, %v11726_v36  ;;  %v18095_v59 = vld [vmem:[#allocation51_spill] sm:$0xff]  ;;  %v18198_v26 = vld [vmem:[#allocation173_spill] sm:$0xff] }
 0x3bb   :  { %v11951_v16 = vpop.f32.mrf.mxu0  ;;  %3334 = vmatmul.f32.gmra.mxu2 %v18066_v56 }
 0x3bc   :  { %18068 = vst [vmem:[#allocation217_spill] sm:$0xff] %v11951_v16  ;;  %4351 = vmatpush.msra.mxu0 %v18069_v57  ;;  %4426 = vmatpush.msra.mxu1 %v11510_v39  ;;  %v18077_v39 = vld [vmem:[#allocation44_spill] sm:$0xff]  ;;  %v18204_v16 = vld [vmem:[#allocation178_spill] sm:$0xff] }
 0x3bd   :  { %v11957_v24 = vpop.f32.mrf.mxu3  ;;  %2734 = vmatmul.f32.gmra.mxu0 %v18071_v7  ;;  %v11960_v9 = vpop.f32.mrf.mxu1 }
 0x3be   :  { %18070 = vst [vmem:[#allocation215_spill] sm:$0xff] %v11957_v24  ;;  %v11962_v23 = vpop.f32.mrf.mxu2  ;;  %4355 = vmatpush.msra.mxu0 %v18074_v21  ;;  %4428 = vmatpush.msra.mxu1 %v11654_v30  ;;  %v18080_v30 = vand.u32 4294901760, %v11776_v53  ;;  %v18087_v53 = vld [vmem:[#allocation46_spill] sm:$0xff]  ;;  %v18096_v21 = vld [vmem:[#allocation52_spill] sm:$0xff] }
 0x3bf   :  { %18072 = vst [vmem:[#allocation218_spill] sm:$0xff] %v11960_v9 }
 0x3c0   :  { %18073 = vst [vmem:[#allocation2_spill] sm:$0xff] %v11962_v23  ;;  %4359 = vmatpush.msra.mxu0 %v18075_v4  ;;  %4430 = vmatpush.msra.mxu1 %v11641_v29  ;;  %v18082_v29 = vld [vmem:[#allocation45_spill] sm:$0xff] }
 0x3c1   :  { %3027 = vmatmul.f32.gmra.mxu1 %v18076_v3  ;;  %3565 = vmatmul.f32.gmra.mxu3 %v18077_v39  ;;  %v18097_v4 = vld [vmem:[#allocation53_spill] sm:$0xff] }
 0x3c2   :  { %4363 = vmatpush.msra.mxu0 %v18078_v49  ;;  %4432 = vmatpush.msra.mxu1 %v11652_v52  ;;  %v18086_v52 = vand.u32 4294901760, %v11830_v20  ;;  %v18091_v20 = vld [vmem:[#allocation48_spill] sm:$0xff] }
 0x3c3   :  { %v11975_v42 = vpop.f32.mrf.mxu0  ;;  %3338 = vmatmul.f32.gmra.mxu2 %v18077_v39  ;;  %v18098_v39 = vld [vmem:[#allocation237_spill] sm:$0xff] }
 0x3c4   :  { %18079 = vst [vmem:[#allocation219_spill] sm:$0xff] %v11975_v42  ;;  %4367 = vmatpush.msra.mxu0 %v18080_v30  ;;  %4434 = vmatpush.msra.mxu1 %v11666_v0  ;;  %v18088_v0 = vld [vmem:[#allocation47_spill] sm:$0xff] }
 0x3c5   :  { %v11981_v36 = vpop.f32.mrf.mxu3  ;;  %2739 = vmatmul.f32.gmra.mxu0 %v18082_v29  ;;  %v11984_v19 = vpop.f32.mrf.mxu1  ;;  %v18099_v29 = vld [vmem:[#allocation54_spill] sm:$0xff] }
 0x3c6   :  { %18081 = vst [vmem:[#allocation4_spill] sm:$0xff] %v11981_v36  ;;  %v11986_v43 = vpop.f32.mrf.mxu2  ;;  %4371 = vmatpush.msra.mxu0 %v18085_v48  ;;  %4436 = vmatpush.msra.mxu1 %v11678_v18 }
 0x3c7   :  { %18083 = vst [vmem:[#allocation6_spill] sm:$0xff] %v11984_v19  ;;  %v18194_v19 = vld [vmem:[#allocation168_spill] sm:$0xff] }
 0x3c8   :  { %18084 = vst [vmem:[#allocation3_spill] sm:$0xff] %v11986_v43  ;;  %4375 = vmatpush.msra.mxu0 %v18086_v52  ;;  %4438 = vmatpush.msra.mxu1 %v11694_v60 }
 0x3c9   :  { %3033 = vmatmul.f32.gmra.mxu1 %v18087_v53  ;;  %3569 = vmatmul.f32.gmra.mxu3 %v18088_v0 }
 0x3ca   :  { %4379 = vmatpush.msra.mxu0 %v18089_v8  ;;  %4440 = vmatpush.msra.mxu1 %v11719_v47  ;;  %v18093_v47 = vld [vmem:[#allocation50_spill] sm:$0xff]  ;;  %v18100_v8 = vld [vmem:[#allocation55_spill] sm:$0xff] }
 0x3cb   :  { %v2670_v50 = vpop.f32.mrf.mxu0  ;;  %3342 = vmatmul.f32.gmra.mxu2 %v18088_v0 }
 0x3cc   :  { %v2671_v17 = vadd.f32 %v2670_v50, %v18090_v6  ;;  %4442 = vmatpush.msra.mxu1 %v11739_v51  ;;  %v18101_v50 = vld [vmem:[#allocation56_spill] sm:$0xff] }
 0x3cd   :  { %v3510_v18 = vpop.f32.mrf.mxu3  ;;  %2744 = vmatmul.f32.gmra.mxu0 %v18091_v20  ;;  %v2950_v60 = vpop.f32.mrf.mxu1 }
 0x3ce   :  { %v3283_v27 = vpop.f32.mrf.mxu2  ;;  %4444 = vmatpush.msra.mxu1 %v11764_v12  ;;  %v2951_v33 = vadd.f32 %v2950_v60, %v2671_v17  ;;  %v18103_v60 = vld [vmem:[#allocation57_spill] sm:$0xff] }
 0x3d0   :  { %4446 = vmatpush.msra.mxu1 %v11793_v46  ;;  %v3284_v10 = vadd.f32 %v3283_v27, %v2951_v33 }
 0x3d1   :  { %3039 = vmatmul.f32.gmra.mxu1 %v18092_v61  ;;  %3573 = vmatmul.f32.gmra.mxu3 %v18093_v47 }
 0x3d2   :  { %4448 = vmatpush.msra.mxu1 %v11814_v5  ;;  %v12008_v55 = vadd.f32 %v3510_v18, %v3284_v10  ;;  %v18102_v18 = vld [vmem:[#allocation238_spill] sm:$0xff] }
 0x3d3   :  { %v2675_v51 = vpop.f32.mrf.mxu0  ;;  %3346 = vmatmul.f32.gmra.mxu2 %v18093_v47  ;;  %v18104_v47 = vld [vmem:[#allocation58_spill] sm:$0xff] }
 0x3d4   :  { %v2676_v35 = vadd.f32 %v2675_v51, %v18094_v34  ;;  %v18105_v51 = vld [vmem:[#allocation59_spill] sm:$0xff] }
 0x3d5   :  { %v3514_v56 = vpop.f32.mrf.mxu3  ;;  %2749 = vmatmul.f32.gmra.mxu0 %v18095_v59  ;;  %v2956_v12 = vpop.f32.mrf.mxu1  ;;  %v18106_v59 = vld [vmem:[#allocation70_spill] sm:$0xff] }
 0x3d6   :  { %v3287_v57 = vpop.f32.mrf.mxu2  ;;  %v2957_v46 = vadd.f32 %v2956_v12, %v2676_v35 }
 0x3d8   :  { %v3288_v7 = vadd.f32 %v3287_v57, %v2957_v46  ;;  %v18107_v57 = vld [vmem:[#allocation61_spill] sm:$0xff] }
 0x3d9   :  { %3045 = vmatmul.f32.gmra.mxu1 %v18096_v21  ;;  %3577 = vmatmul.f32.gmra.mxu3 %v18097_v4 }
 0x3da   :  { %v12015_v3 = vadd.f32 %v3514_v56, %v3288_v7 }
 0x3db   :  { %v2680_v5 = vpop.f32.mrf.mxu0  ;;  %3350 = vmatmul.f32.gmra.mxu2 %v18097_v4 }
 0x3dc   :  { %v2681_v49 = vadd.f32 %v2680_v5, %v18098_v39  ;;  %v18108_v5 = vld [vmem:[#allocation62_spill] sm:$0xff]  ;;  %v18109_v39 = vld [vmem:[#allocation63_spill] sm:$0xff] }
 0x3dd   :  { %v3518_v30 = vpop.f32.mrf.mxu3  ;;  %2754 = vmatmul.f32.gmra.mxu0 %v18099_v29  ;;  %v2962_v48 = vpop.f32.mrf.mxu1 }
 0x3de   :  { %v3291_v52 = vpop.f32.mrf.mxu2  ;;  %v2963_v53 = vadd.f32 %v2962_v48, %v2681_v49  ;;  %v18110_v48 = vld [vmem:[#allocation75_spill] sm:$0xff] }
 0x3e0   :  { %v3292_v0 = vadd.f32 %v3291_v52, %v2963_v53  ;;  %v18111_v53 = vld [vmem:[#allocation65_spill] sm:$0xff] }
 0x3e1   :  { %3051 = vmatmul.f32.gmra.mxu1 %v18100_v8  ;;  %3581 = vmatmul.f32.gmra.mxu3 %v18101_v50 }
 0x3e2   :  { %v12022_v6 = vadd.f32 %v3518_v30, %v3292_v0 }
 0x3e3   :  { %3354 = vmatmul.f32.gmra.mxu2 %v18101_v50  ;;  %v2685_v17 = vpop.f32.mrf.mxu0 }
 0x3e4   :  { %v2686_v20 = vadd.f32 %v2685_v17, %v18102_v18  ;;  %v18112_v18 = vld [vmem:[#allocation66_spill] sm:$0xff] }
 0x3e5   :  { %2759 = vmatmul.f32.gmra.mxu0 %v18103_v60  ;;  %v3522_v33 = vpop.f32.mrf.mxu3 }
 0x3e6   :  { %v3295_v27 = vpop.f32.mrf.mxu2  ;;  %v2968_v10 = vpop.f32.mrf.mxu1 }
 0x3e7   :  { %v2969_v61 = vadd.f32 %v2968_v10, %v2686_v20  ;;  %v18113_v20 = vld [vmem:[#allocation67_spill] sm:$0xff]  ;;  %v18114_v10 = vld [vmem:[#allocation80_spill] sm:$0xff] }
 0x3e9   :  { %3057 = vmatmul.f32.gmra.mxu1 %v18104_v47  ;;  %3585 = vmatmul.f32.gmra.mxu3 %v18105_v51  ;;  %v3296_v34 = vadd.f32 %v3295_v27, %v2969_v61  ;;  %v18115_v47 = vld [vmem:[#allocation69_spill] sm:$0xff] }
 0x3eb   :  { %3358 = vmatmul.f32.gmra.mxu2 %v18105_v51  ;;  %v12030_v35 = vadd.f32 %v3522_v33, %v3296_v34  ;;  %v2690_v56 = vpop.f32.mrf.mxu0 }
 0x3ec   :  { %v2691_v12 = vadd.f32 %v2690_v56, %v18106_v59 }
 0x3ed   :  { %2764 = vmatmul.f32.gmra.mxu0 %v18107_v57  ;;  %v18117_v57 = vld [vmem:[#allocation72_spill] sm:$0xff] }
 0x3ee   :  { %v2974_v46 = vpop.f32.mrf.mxu1  ;;  %v3299_v7 = vpop.f32.mrf.mxu2 }
 0x3ef   :  { %v2975_v21 = vadd.f32 %v2974_v46, %v2691_v12  ;;  %v3526_v4 = vpop.f32.mrf.mxu3  ;;  %v18116_v12 = vld [vmem:[#allocation71_spill] sm:$0xff] }
 0x3f1   :  { %3063 = vmatmul.f32.gmra.mxu1 %v18108_v5  ;;  %3589 = vmatmul.f32.gmra.mxu3 %v18109_v39  ;;  %v3300_v49 = vadd.f32 %v3299_v7, %v2975_v21 }
 0x3f3   :  { %3362 = vmatmul.f32.gmra.mxu2 %v18109_v39  ;;  %v12037_v30 = vadd.f32 %v3526_v4, %v3300_v49  ;;  %v2695_v29 = vpop.f32.mrf.mxu0  ;;  %v18118_v4 = vld [vmem:[#allocation85_spill] sm:$0xff]  ;;  %v18119_v39 = vld [vmem:[#allocation74_spill] sm:$0xff] }
 0x3f4   :  { %v2696_v52 = vadd.f32 %v2695_v29, %v18110_v48 }
 0x3f5   :  { %2769 = vmatmul.f32.gmra.mxu0 %v18111_v53  ;;  %v18120_v53 = vld [vmem:[#allocation76_spill] sm:$0xff] }
 0x3f6   :  { %v2980_v0 = vpop.f32.mrf.mxu1  ;;  %v3303_v8 = vpop.f32.mrf.mxu2 }
 0x3f7   :  { %v2981_v50 = vadd.f32 %v2980_v0, %v2696_v52  ;;  %v3530_v17 = vpop.f32.mrf.mxu3  ;;  %v18121_v0 = vld [vmem:[#allocation77_spill] sm:$0xff] }
 0x3f9   :  { %3069 = vmatmul.f32.gmra.mxu1 %v18112_v18  ;;  %3593 = vmatmul.f32.gmra.mxu3 %v18113_v20  ;;  %v3304_v60 = vadd.f32 %v3303_v8, %v2981_v50  ;;  %v18122_v18 = vld [vmem:[#allocation90_spill] sm:$0xff] }
 0x3fb   :  { %3366 = vmatmul.f32.gmra.mxu2 %v18113_v20  ;;  %v12044_v27 = vadd.f32 %v3530_v17, %v3304_v60  ;;  %v2700_v33 = vpop.f32.mrf.mxu0  ;;  %v18123_v60 = vld [vmem:[#allocation79_spill] sm:$0xff] }
 0x3fc   :  { %v2701_v61 = vadd.f32 %v2700_v33, %v18114_v10 }
 0x3fd   :  { %2774 = vmatmul.f32.gmra.mxu0 %v18115_v47 }
 0x3fe   :  { %v2986_v51 = vpop.f32.mrf.mxu1  ;;  %v3307_v34 = vpop.f32.mrf.mxu2 }
 0x3ff   :  { %v2987_v56 = vadd.f32 %v2986_v51, %v2701_v61  ;;  %v3534_v59 = vpop.f32.mrf.mxu3  ;;  %v18124_v51 = vld [vmem:[#allocation81_spill] sm:$0xff] }
 0x401   :  { %3075 = vmatmul.f32.gmra.mxu1 %v18116_v12  ;;  %3597 = vmatmul.f32.gmra.mxu3 %v18117_v57  ;;  %v3308_v46 = vadd.f32 %v3307_v34, %v2987_v56  ;;  %v18125_v34 = vld [vmem:[#allocation82_spill] sm:$0xff] }
 0x403   :  { %3370 = vmatmul.f32.gmra.mxu2 %v18117_v57  ;;  %v12051_v7 = vadd.f32 %v3534_v59, %v3308_v46  ;;  %v2705_v21 = vpop.f32.mrf.mxu0  ;;  %v18126_v57 = vld [vmem:[#allocation84_spill] sm:$0xff]  ;;  %v18127_v46 = vld [vmem:[#allocation95_spill] sm:$0xff] }
 0x404   :  { %v2706_v5 = vadd.f32 %v2705_v21, %v18118_v4 }
 0x405   :  { %2779 = vmatmul.f32.gmra.mxu0 %v18119_v39 }
 0x406   :  { %v2992_v49 = vpop.f32.mrf.mxu1  ;;  %v3311_v29 = vpop.f32.mrf.mxu2 }
 0x407   :  { %v2993_v48 = vadd.f32 %v2992_v49, %v2706_v5  ;;  %v3538_v52 = vpop.f32.mrf.mxu3 }
 0x409   :  { %3081 = vmatmul.f32.gmra.mxu1 %v18120_v53  ;;  %3601 = vmatmul.f32.gmra.mxu3 %v18121_v0  ;;  %v3312_v8 = vadd.f32 %v3311_v29, %v2993_v48  ;;  %v18128_v29 = vld [vmem:[#allocation86_spill] sm:$0xff]  ;;  %v18129_v48 = vld [vmem:[#allocation87_spill] sm:$0xff] }
 0x40b   :  { %3374 = vmatmul.f32.gmra.mxu2 %v18121_v0  ;;  %v12058_v50 = vadd.f32 %v3538_v52, %v3312_v8  ;;  %v2710_v17 = vpop.f32.mrf.mxu0  ;;  %v18130_v0 = vld [vmem:[#allocation89_spill] sm:$0xff] }
 0x40c   :  { %v2711_v20 = vadd.f32 %v2710_v17, %v18122_v18  ;;  %v18131_v17 = vld [vmem:[#allocation100_spill] sm:$0xff] }
 0x40d   :  { %2784 = vmatmul.f32.gmra.mxu0 %v18123_v60 }
 0x40e   :  { %v2998_v33 = vpop.f32.mrf.mxu1  ;;  %v3315_v10 = vpop.f32.mrf.mxu2 }
 0x40f   :  { %v2999_v61 = vadd.f32 %v2998_v33, %v2711_v20  ;;  %v3542_v47 = vpop.f32.mrf.mxu3 }
 0x411   :  { %3087 = vmatmul.f32.gmra.mxu1 %v18124_v51  ;;  %3605 = vmatmul.f32.gmra.mxu3 %v18125_v34  ;;  %v3316_v56 = vadd.f32 %v3315_v10, %v2999_v61  ;;  %v18132_v10 = vld [vmem:[#allocation91_spill] sm:$0xff]  ;;  %v18133_v61 = vld [vmem:[#allocation92_spill] sm:$0xff] }
 0x413   :  { %3378 = vmatmul.f32.gmra.mxu2 %v18125_v34  ;;  %v12065_v59 = vadd.f32 %v3542_v47, %v3316_v56  ;;  %v18134_v34 = vld [vmem:[#allocation94_spill] sm:$0xff] }
 0x415   :  { %v2715_v12 = vpop.f32.mrf.mxu0  ;;  %2789 = vmatmul.f32.gmra.mxu0 %v18126_v57  ;;  %v18135_v57 = vld [vmem:[#allocation96_spill] sm:$0xff] }
 0x416   :  { %v2716_v21 = vadd.f32 %v2715_v12, %v18127_v46  ;;  %v3004_v4 = vpop.f32.mrf.mxu1  ;;  %v3319_v5 = vpop.f32.mrf.mxu2  ;;  %v18136_v46 = vld [vmem:[#allocation97_spill] sm:$0xff] }
 0x417   :  { %v3546_v49 = vpop.f32.mrf.mxu3 }
 0x418   :  { %v3005_v39 = vadd.f32 %v3004_v4, %v2716_v21  ;;  %v18137_v21 = vld [vmem:[#allocation105_spill] sm:$0xff] }
 0x419   :  { %3093 = vmatmul.f32.gmra.mxu1 %v18128_v29  ;;  %3609 = vmatmul.f32.gmra.mxu3 %v18129_v48  ;;  %v18138_v29 = vld [vmem:[#allocation99_spill] sm:$0xff] }
 0x41a   :  { %v3320_v52 = vadd.f32 %v3319_v5, %v3005_v39 }
 0x41b   :  { %3382 = vmatmul.f32.gmra.mxu2 %v18129_v48 }
 0x41c   :  { %v12072_v53 = vadd.f32 %v3546_v49, %v3320_v52 }
 0x41d   :  { %2794 = vmatmul.f32.gmra.mxu0 %v18130_v0  ;;  %v2720_v8 = vpop.f32.mrf.mxu0  ;;  %v18139_v0 = vld [vmem:[#allocation101_spill] sm:$0xff] }
 0x41e   :  { %v2721_v18 = vadd.f32 %v2720_v8, %v18131_v17  ;;  %v18140_v17 = vld [vmem:[#allocation102_spill] sm:$0xff] }
 0x41f   :  { %v3550_v20 = vpop.f32.mrf.mxu3  ;;  %v3323_v33 = vpop.f32.mrf.mxu2 }
 0x420   :  { %v3010_v60 = vpop.f32.mrf.mxu1 }
 0x421   :  { %3099 = vmatmul.f32.gmra.mxu1 %v18132_v10  ;;  %3613 = vmatmul.f32.gmra.mxu3 %v18133_v61  ;;  %v3011_v47 = vadd.f32 %v3010_v60, %v2721_v18  ;;  %v18141_v60 = vld [vmem:[#allocation110_spill] sm:$0xff]  ;;  %v18142_v10 = vld [vmem:[#allocation104_spill] sm:$0xff] }
 0x423   :  { %3386 = vmatmul.f32.gmra.mxu2 %v18133_v61  ;;  %v3324_v51 = vadd.f32 %v3323_v33, %v3011_v47 }
 0x425   :  { %2799 = vmatmul.f32.gmra.mxu0 %v18134_v34  ;;  %v12080_v56 = vadd.f32 %v3550_v20, %v3324_v51  ;;  %v2725_v12 = vpop.f32.mrf.mxu0 }
 0x426   :  { %v2726_v4 = vadd.f32 %v2725_v12, %v18137_v21  ;;  %v18143_v12 = vld [vmem:[#allocation106_spill] sm:$0xff] }
 0x428   :  { %v3327_v39 = vpop.f32.mrf.mxu2 }
 0x429   :  { %3105 = vmatmul.f32.gmra.mxu1 %v18135_v57  ;;  %3617 = vmatmul.f32.gmra.mxu3 %v18136_v46  ;;  %v3554_v5 = vpop.f32.mrf.mxu3  ;;  %v18144_v57 = vld [vmem:[#allocation107_spill] sm:$0xff] }
 0x42a   :  { %v3016_v49 = vpop.f32.mrf.mxu1 }
 0x42b   :  { %3390 = vmatmul.f32.gmra.mxu2 %v18136_v46  ;;  %v3017_v48 = vadd.f32 %v3016_v49, %v2726_v4  ;;  %v18145_v4 = vld [vmem:[#allocation115_spill] sm:$0xff]  ;;  %v18146_v49 = vld [vmem:[#allocation109_spill] sm:$0xff] }
 0x42d   :  { %2804 = vmatmul.f32.gmra.mxu0 %v18138_v29  ;;  %v3328_v52 = vadd.f32 %v3327_v39, %v3017_v48 }
 0x42f   :  { %v12088_v8 = vadd.f32 %v3554_v5, %v3328_v52 }
 0x431   :  { %3111 = vmatmul.f32.gmra.mxu1 %v18139_v0  ;;  %3621 = vmatmul.f32.gmra.mxu3 %v18140_v17 }
 0x432   :  { %v2730_v18 = vpop.f32.mrf.mxu0  ;;  %v3331_v61 = vpop.f32.mrf.mxu2 }
 0x433   :  { %v3558_v20 = vpop.f32.mrf.mxu3  ;;  %v2731_v33 = vadd.f32 %v2730_v18, %v18141_v60  ;;  %3394 = vmatmul.f32.gmra.mxu2 %v18140_v17  ;;  %v18147_v17 = vld [vmem:[#allocation111_spill] sm:$0xff]  ;;  %v18148_v18 = vld [vmem:[#allocation112_spill] sm:$0xff] }
 0x435   :  { %2809 = vmatmul.f32.gmra.mxu0 %v18142_v10 }
 0x436   :  { %v3022_v47 = vpop.f32.mrf.mxu1 }
 0x437   :  { %v3023_v51 = vadd.f32 %v3022_v47, %v2731_v33  ;;  %v18150_v47 = vld [vmem:[#allocation114_spill] sm:$0xff] }
 0x439   :  { %v3332_v34 = vadd.f32 %v3331_v61, %v3023_v51  ;;  %3117 = vmatmul.f32.gmra.mxu1 %v18143_v12  ;;  %3625 = vmatmul.f32.gmra.mxu3 %v18144_v57 }
 0x43a   :  { %v2735_v46 = vpop.f32.mrf.mxu0 }
 0x43b   :  { %v12096_v21 = vadd.f32 %v3558_v20, %v3332_v34  ;;  %v2736_v5 = vadd.f32 %v2735_v46, %v18145_v4  ;;  %3398 = vmatmul.f32.gmra.mxu2 %v18144_v57  ;;  %v18149_v20 = vld [vmem:[#allocation120_spill] sm:$0xff]  ;;  %v18152_v4 = vld [vmem:[#allocation117_spill] sm:$0xff] }
 0x43c   :  { %v3562_v39 = vpop.f32.mrf.mxu3  ;;  %v18151_v46 = vld [vmem:[#allocation116_spill] sm:$0xff] }
 0x43d   :  { %2814 = vmatmul.f32.gmra.mxu0 %v18146_v49 }
 0x43e   :  { %v3028_v29 = vpop.f32.mrf.mxu1  ;;  %v3335_v48 = vpop.f32.mrf.mxu2 }
 0x43f   :  { %v3029_v52 = vadd.f32 %v3028_v29, %v2736_v5 }
 0x441   :  { %v3336_v0 = vadd.f32 %v3335_v48, %v3029_v52  ;;  %3123 = vmatmul.f32.gmra.mxu1 %v18147_v17  ;;  %3629 = vmatmul.f32.gmra.mxu3 %v18148_v18  ;;  %v18154_v52 = vld [vmem:[#allocation119_spill] sm:$0xff] }
 0x442   :  { %v2740_v60 = vpop.f32.mrf.mxu0 }
 0x443   :  { %v12103_v33 = vadd.f32 %v3562_v39, %v3336_v0  ;;  %v2741_v10 = vadd.f32 %v2740_v60, %v18149_v20  ;;  %3402 = vmatmul.f32.gmra.mxu2 %v18148_v18  ;;  %v18153_v39 = vld [vmem:[#allocation125_spill] sm:$0xff] }
 0x444   :  { %v3566_v61 = vpop.f32.mrf.mxu3  ;;  %v18155_v20 = vld [vmem:[#allocation121_spill] sm:$0xff] }
 0x445   :  { %2819 = vmatmul.f32.gmra.mxu0 %v18150_v47 }
 0x446   :  { %v3034_v51 = vpop.f32.mrf.mxu1  ;;  %v3339_v34 = vpop.f32.mrf.mxu2 }
 0x447   :  { %v3035_v12 = vadd.f32 %v3034_v51, %v2741_v10  ;;  %v18156_v10 = vld [vmem:[#allocation122_spill] sm:$0xff] }
 0x449   :  { %v3340_v57 = vadd.f32 %v3339_v34, %v3035_v12  ;;  %3129 = vmatmul.f32.gmra.mxu1 %v18151_v46  ;;  %3633 = vmatmul.f32.gmra.mxu3 %v18152_v4 }
 0x44a   :  { %v2745_v5 = vpop.f32.mrf.mxu0 }
 0x44b   :  { %v12110_v49 = vadd.f32 %v3566_v61, %v3340_v57  ;;  %v2746_v29 = vadd.f32 %v2745_v5, %v18153_v39  ;;  %3406 = vmatmul.f32.gmra.mxu2 %v18152_v4  ;;  %v18157_v61 = vld [vmem:[#allocation130_spill] sm:$0xff]  ;;  %v18158_v57 = vld [vmem:[#allocation124_spill] sm:$0xff] }
 0x44c   :  { %v3570_v48 = vpop.f32.mrf.mxu3 }
 0x44d   :  { %2824 = vmatmul.f32.gmra.mxu0 %v18154_v52  ;;  %v18160_v52 = vld [vmem:[#allocation127_spill] sm:$0xff] }
 0x44e   :  { %v3040_v0 = vpop.f32.mrf.mxu1  ;;  %v3343_v17 = vpop.f32.mrf.mxu2 }
 0x44f   :  { %v3041_v18 = vadd.f32 %v3040_v0, %v2746_v29  ;;  %v18159_v29 = vld [vmem:[#allocation126_spill] sm:$0xff] }
 0x451   :  { %v3344_v60 = vadd.f32 %v3343_v17, %v3041_v18  ;;  %3135 = vmatmul.f32.gmra.mxu1 %v18155_v20  ;;  %3637 = vmatmul.f32.gmra.mxu3 %v18156_v10  ;;  %v18162_v20 = vld [vmem:[#allocation129_spill] sm:$0xff] }
 0x452   :  { %v2750_v47 = vpop.f32.mrf.mxu0 }
 0x453   :  { %v12117_v51 = vadd.f32 %v3570_v48, %v3344_v60  ;;  %v2751_v34 = vadd.f32 %v2750_v47, %v18157_v61  ;;  %3410 = vmatmul.f32.gmra.mxu2 %v18156_v10  ;;  %v18161_v48 = vld [vmem:[#allocation135_spill] sm:$0xff] }
 0x454   :  { %v3574_v12 = vpop.f32.mrf.mxu3 }
 0x455   :  { %2829 = vmatmul.f32.gmra.mxu0 %v18158_v57 }
 0x456   :  { %v3046_v46 = vpop.f32.mrf.mxu1  ;;  %v3347_v4 = vpop.f32.mrf.mxu2 }
 0x457   :  { %v3047_v5 = vadd.f32 %v3046_v46, %v2751_v34  ;;  %v18163_v34 = vld [vmem:[#allocation131_spill] sm:$0xff]  ;;  %v18164_v46 = vld [vmem:[#allocation132_spill] sm:$0xff] }
 0x459   :  { %v3348_v39 = vadd.f32 %v3347_v4, %v3047_v5  ;;  %3141 = vmatmul.f32.gmra.mxu1 %v18159_v29  ;;  %3641 = vmatmul.f32.gmra.mxu3 %v18160_v52 }
 0x45a   :  { %v2755_v0 = vpop.f32.mrf.mxu0 }
 0x45b   :  { %v12124_v17 = vadd.f32 %v3574_v12, %v3348_v39  ;;  %v2756_v18 = vadd.f32 %v2755_v0, %v18161_v48  ;;  %3414 = vmatmul.f32.gmra.mxu2 %v18160_v52  ;;  %v18165_v12 = vld [vmem:[#allocation140_spill] sm:$0xff]  ;;  %v18166_v52 = vld [vmem:[#allocation134_spill] sm:$0xff] }
 0x45c   :  { %v3578_v60 = vpop.f32.mrf.mxu3 }
 0x45d   :  { %2834 = vmatmul.f32.gmra.mxu0 %v18162_v20 }
 0x45e   :  { %v3052_v10 = vpop.f32.mrf.mxu1  ;;  %v3351_v47 = vpop.f32.mrf.mxu2 }
 0x45f   :  { %v3053_v61 = vadd.f32 %v3052_v10, %v2756_v18  ;;  %v18167_v18 = vld [vmem:[#allocation136_spill] sm:$0xff]  ;;  %v18168_v10 = vld [vmem:[#allocation137_spill] sm:$0xff] }
 0x461   :  { %v3352_v57 = vadd.f32 %v3351_v47, %v3053_v61  ;;  %3147 = vmatmul.f32.gmra.mxu1 %v18163_v34  ;;  %3645 = vmatmul.f32.gmra.mxu3 %v18164_v46 }
 0x462   :  { %v2760_v4 = vpop.f32.mrf.mxu0 }
 0x463   :  { %v12131_v5 = vadd.f32 %v3578_v60, %v3352_v57  ;;  %v2761_v39 = vadd.f32 %v2760_v4, %v18165_v12  ;;  %3418 = vmatmul.f32.gmra.mxu2 %v18164_v46  ;;  %v18169_v60 = vld [vmem:[#allocation145_spill] sm:$0xff]  ;;  %v18170_v46 = vld [vmem:[#allocation139_spill] sm:$0xff] }
 0x464   :  { %v3582_v29 = vpop.f32.mrf.mxu3 }
 0x465   :  { %2839 = vmatmul.f32.gmra.mxu0 %v18166_v52 }
 0x466   :  { %v3058_v0 = vpop.f32.mrf.mxu1  ;;  %v3355_v48 = vpop.f32.mrf.mxu2 }
 0x467   :  { %v3059_v20 = vadd.f32 %v3058_v0, %v2761_v39  ;;  %v18171_v39 = vld [vmem:[#allocation141_spill] sm:$0xff]  ;;  %v18172_v0 = vld [vmem:[#allocation142_spill] sm:$0xff] }
 0x469   :  { %v3356_v36 = vadd.f32 %v3355_v48, %v3059_v20  ;;  %3153 = vmatmul.f32.gmra.mxu1 %v18167_v18  ;;  %3649 = vmatmul.f32.gmra.mxu3 %v18168_v10 }
 0x46a   :  { %v2765_v47 = vpop.f32.mrf.mxu0 }
 0x46b   :  { %v12138_v61 = vadd.f32 %v3582_v29, %v3356_v36  ;;  %v2766_v57 = vadd.f32 %v2765_v47, %v18169_v60  ;;  %3422 = vmatmul.f32.gmra.mxu2 %v18168_v10  ;;  %v18173_v36 = vld [vmem:[#allocation239_spill] sm:$0xff]  ;;  %v18174_v10 = vld [vmem:[#allocation144_spill] sm:$0xff] }
 0x46c   :  { %v3586_v34 = vpop.f32.mrf.mxu3 }
 0x46d   :  { %2844 = vmatmul.f32.gmra.mxu0 %v18170_v46 }
 0x46e   :  { %v3064_v4 = vpop.f32.mrf.mxu1  ;;  %v3359_v12 = vpop.f32.mrf.mxu2 }
 0x46f   :  { %v3065_v52 = vadd.f32 %v3064_v4, %v2766_v57  ;;  %v18175_v57 = vld [vmem:[#allocation146_spill] sm:$0xff]  ;;  %v18176_v4 = vld [vmem:[#allocation147_spill] sm:$0xff] }
 0x471   :  { %v3360_v43 = vadd.f32 %v3359_v12, %v3065_v52  ;;  %3159 = vmatmul.f32.gmra.mxu1 %v18171_v39  ;;  %3653 = vmatmul.f32.gmra.mxu3 %v18172_v0 }
 0x472   :  { %v2770_v48 = vpop.f32.mrf.mxu0 }
 0x473   :  { %v12145_v20 = vadd.f32 %v3586_v34, %v3360_v43  ;;  %v2771_v29 = vadd.f32 %v2770_v48, %v18173_v36  ;;  %3426 = vmatmul.f32.gmra.mxu2 %v18172_v0  ;;  %v18177_v43 = vld [vmem:[#allocation154_spill] sm:$0xff]  ;;  %v18178_v0 = vld [vmem:[#allocation149_spill] sm:$0xff] }
 0x474   :  { %v3590_v18 = vpop.f32.mrf.mxu3 }
 0x475   :  { %2849 = vmatmul.f32.gmra.mxu0 %v18174_v10 }
 0x476   :  { %v3070_v47 = vpop.f32.mrf.mxu1  ;;  %v3363_v60 = vpop.f32.mrf.mxu2 }
 0x477   :  { %v3071_v46 = vadd.f32 %v3070_v47, %v2771_v29  ;;  %v18179_v29 = vld [vmem:[#allocation150_spill] sm:$0xff]  ;;  %v18180_v47 = vld [vmem:[#allocation151_spill] sm:$0xff] }
 0x479   :  { %v3364_v58 = vadd.f32 %v3363_v60, %v3071_v46  ;;  %3165 = vmatmul.f32.gmra.mxu1 %v18175_v57  ;;  %3657 = vmatmul.f32.gmra.mxu3 %v18176_v4 }
 0x47a   :  { %v2775_v12 = vpop.f32.mrf.mxu0 }
 0x47b   :  { %v12152_v52 = vadd.f32 %v3590_v18, %v3364_v58  ;;  %v2776_v34 = vadd.f32 %v2775_v12, %v18177_v43  ;;  %3430 = vmatmul.f32.gmra.mxu2 %v18176_v4  ;;  %v18181_v58 = vld [vmem:[#allocation60_spill] sm:$0xff]  ;;  %v18182_v4 = vld [vmem:[#allocation153_spill] sm:$0xff] }
 0x47c   :  { %v3594_v39 = vpop.f32.mrf.mxu3 }
 0x47d   :  { %2854 = vmatmul.f32.gmra.mxu0 %v18178_v0 }
 0x47e   :  { %v3076_v48 = vpop.f32.mrf.mxu1  ;;  %v3367_v36 = vpop.f32.mrf.mxu2 }
 0x47f   :  { %v3077_v10 = vadd.f32 %v3076_v48, %v2776_v34  ;;  %v18183_v34 = vld [vmem:[#allocation155_spill] sm:$0xff]  ;;  %v18184_v48 = vld [vmem:[#allocation156_spill] sm:$0xff] }
 0x481   :  { %v3368_v24 = vadd.f32 %v3367_v36, %v3077_v10  ;;  %3171 = vmatmul.f32.gmra.mxu1 %v18179_v29  ;;  %3661 = vmatmul.f32.gmra.mxu3 %v18180_v47  ;;  %v18185_v29 = vld [vmem:[#allocation113_spill] sm:$0xff] }
 0x482   :  { %v2780_v60 = vpop.f32.mrf.mxu0 }
 0x483   :  { %v12159_v46 = vadd.f32 %v3594_v39, %v3368_v24  ;;  %v2781_v18 = vadd.f32 %v2780_v60, %v18181_v58  ;;  %3434 = vmatmul.f32.gmra.mxu2 %v18180_v47  ;;  %v18186_v58 = vld [vmem:[#allocation158_spill] sm:$0xff] }
 0x484   :  { %v3598_v57 = vpop.f32.mrf.mxu3 }
 0x485   :  { %2859 = vmatmul.f32.gmra.mxu0 %v18182_v4 }
 0x486   :  { %v3082_v12 = vpop.f32.mrf.mxu1  ;;  %v3371_v43 = vpop.f32.mrf.mxu2 }
 0x487   :  { %v3083_v0 = vadd.f32 %v3082_v12, %v2781_v18 }
 0x489   :  { %v3372_v23 = vadd.f32 %v3371_v43, %v3083_v0  ;;  %3177 = vmatmul.f32.gmra.mxu1 %v18183_v34  ;;  %3665 = vmatmul.f32.gmra.mxu3 %v18184_v48  ;;  %v18187_v0 = vld [vmem:[#allocation160_spill] sm:$0xff] }
 0x48a   :  { %v2785_v36 = vpop.f32.mrf.mxu0 }
 0x48b   :  { %v3599_v10 = vadd.f32 %v3598_v57, %v3372_v23  ;;  %v2786_v24 = vadd.f32 %v2785_v36, %v18185_v29  ;;  %3438 = vmatmul.f32.gmra.mxu2 %v18184_v48  ;;  %v18188_v23 = vld [vmem:[#allocation161_spill] sm:$0xff]  ;;  %v18189_v48 = vld [vmem:[#allocation159_spill] sm:$0xff] }
 0x48c   :  { %v3602_v39 = vpop.f32.mrf.mxu3 }
 0x48d   :  { %v12169_v47 = vmul.f32 %v3599_v10, %v12008_v55  ;;  %v12172_v60 = vmul.f32 %v3599_v10, %v12088_v8  ;;  %2864 = vmatmul.f32.gmra.mxu0 %v18186_v58 }
 0x48e   :  { %v3088_v18 = vpop.f32.mrf.mxu1  ;;  %v3375_v4 = vpop.f32.mrf.mxu2 }
 0x48f   :  { %v3089_v12 = vadd.f32 %v3088_v18, %v2786_v24 }
 0x491   :  { %v3376_v43 = vadd.f32 %v3375_v4, %v3089_v12  ;;  %3183 = vmatmul.f32.gmra.mxu1 %v18187_v0  ;;  %3669 = vmatmul.f32.gmra.mxu3 %v18188_v23  ;;  %v18191_v0 = vld [vmem:[#allocation165_spill] sm:$0xff] }
 0x492   :  { %v2790_v57 = vpop.f32.mrf.mxu0 }
 0x493   :  { %v3603_v34 = vadd.f32 %v3602_v39, %v3376_v43  ;;  %v2791_v36 = vadd.f32 %v2790_v57, %v18189_v48  ;;  %3442 = vmatmul.f32.gmra.mxu2 %v18188_v23  ;;  %v18192_v39 = vld [vmem:[#allocation166_spill] sm:$0xff]  ;;  %v18193_v23 = vld [vmem:[#allocation167_spill] sm:$0xff] }
 0x494   :  { %v3606_v29 = vpop.f32.mrf.mxu3 }
 0x495   :  { %v12180_v10 = vmul.f32 %v3603_v34, %v12015_v3  ;;  %v12183_v58 = vmul.f32 %v3603_v34, %v12096_v21  ;;  %2869 = vmatmul.f32.gmra.mxu0 %v18190_v37 }
 0x496   :  { %v3094_v24 = vpop.f32.mrf.mxu1  ;;  %v3379_v18 = vpop.f32.mrf.mxu2 }
 0x497   :  { %v3095_v4 = vadd.f32 %v3094_v24, %v2791_v36 }
 0x499   :  { %v3380_v12 = vadd.f32 %v3379_v18, %v3095_v4  ;;  %3189 = vmatmul.f32.gmra.mxu1 %v18191_v0  ;;  %3673 = vmatmul.f32.gmra.mxu3 %v18192_v39  ;;  %v18195_v0 = vld [vmem:[#allocation170_spill] sm:$0xff] }
 0x49a   :  { %v2795_v43 = vpop.f32.mrf.mxu0 }
 0x49b   :  { %v3607_v57 = vadd.f32 %v3606_v29, %v3380_v12  ;;  %v2796_v48 = vadd.f32 %v2795_v43, %v18193_v23  ;;  %3446 = vmatmul.f32.gmra.mxu2 %v18192_v39  ;;  %v18196_v29 = vld [vmem:[#allocation171_spill] sm:$0xff]  ;;  %v18197_v39 = vld [vmem:[#allocation64_spill] sm:$0xff] }
 0x49c   :  { %v3610_v38 = vpop.f32.mrf.mxu3 }
 0x49d   :  { %v12191_v34 = vmul.f32 %v3607_v57, %v12022_v6  ;;  %v12194_v37 = vmul.f32 %v3607_v57, %v12103_v33  ;;  %2874 = vmatmul.f32.gmra.mxu0 %v18194_v19 }
 0x49e   :  { %v3100_v36 = vpop.f32.mrf.mxu1  ;;  %v3383_v24 = vpop.f32.mrf.mxu2 }
 0x49f   :  { %v3101_v18 = vadd.f32 %v3100_v36, %v2796_v48 }
 0x4a1   :  { %v3384_v4 = vadd.f32 %v3383_v24, %v3101_v18  ;;  %3195 = vmatmul.f32.gmra.mxu1 %v18195_v0  ;;  %3677 = vmatmul.f32.gmra.mxu3 %v18196_v29  ;;  %v18199_v0 = vld [vmem:[#allocation175_spill] sm:$0xff] }
 0x4a2   :  { %v2800_v12 = vpop.f32.mrf.mxu0 }
 0x4a3   :  { %v3611_v43 = vadd.f32 %v3610_v38, %v3384_v4  ;;  %v2801_v23 = vadd.f32 %v2800_v12, %v18197_v39  ;;  %3450 = vmatmul.f32.gmra.mxu2 %v18196_v29  ;;  %v18200_v38 = vld [vmem:[#allocation176_spill] sm:$0xff]  ;;  %v18201_v29 = vld [vmem:[#allocation118_spill] sm:$0xff] }
 0x4a4   :  { %v3614_v42 = vpop.f32.mrf.mxu3 }
 0x4a5   :  { %v12202_v57 = vmul.f32 %v3611_v43, %v12030_v35  ;;  %v12205_v19 = vmul.f32 %v3611_v43, %v12110_v49  ;;  %2879 = vmatmul.f32.gmra.mxu0 %v18198_v26 }
 0x4a6   :  { %v3106_v48 = vpop.f32.mrf.mxu1  ;;  %v3387_v36 = vpop.f32.mrf.mxu2 }
 0x4a7   :  { %v3107_v24 = vadd.f32 %v3106_v48, %v2801_v23 }
 0x4a9   :  { %v3388_v18 = vadd.f32 %v3387_v36, %v3107_v24  ;;  %3201 = vmatmul.f32.gmra.mxu1 %v18199_v0  ;;  %3681 = vmatmul.f32.gmra.mxu3 %v18200_v38  ;;  %v18205_v0 = vld [vmem:[#allocation180_spill] sm:$0xff] }
 0x4aa   :  { %v2805_v4 = vpop.f32.mrf.mxu0 }
 0x4ab   :  { %v3615_v12 = vadd.f32 %v3614_v42, %v3388_v18  ;;  %v2806_v39 = vadd.f32 %v2805_v4, %v18201_v29  ;;  %3454 = vmatmul.f32.gmra.mxu2 %v18200_v38  ;;  %v18206_v42 = vld [vmem:[#allocation181_spill] sm:$0xff]  ;;  %v18207_v38 = vld [vmem:[#allocation164_spill] sm:$0xff] }
 0x4ac   :  { %v3618_v9 = vpop.f32.mrf.mxu3 }
 0x4ad   :  { %v12213_v43 = vmul.f32 %v3615_v12, %v12037_v30  ;;  %v12216_v26 = vmul.f32 %v3615_v12, %v12117_v51  ;;  %2884 = vmatmul.f32.gmra.mxu0 %v18204_v16 }
 0x4ae   :  { %v3112_v23 = vpop.f32.mrf.mxu1  ;;  %v3391_v48 = vpop.f32.mrf.mxu2 }
 0x4af   :  { %18202 = vst [vmem:[#allocation220_spill] sm:$0xff] %v12213_v43  ;;  %v3113_v36 = vadd.f32 %v3112_v23, %v2806_v39 }
 0x4b0   :  { %18203 = vst [vmem:[#allocation5_spill] sm:$0xff] %v12216_v26  ;;  %v18210_v26 = vld [vmem:[#allocation183_spill] sm:$0xff] }
 0x4b1   :  { %v3392_v24 = vadd.f32 %v3391_v48, %v3113_v36  ;;  %3207 = vmatmul.f32.gmra.mxu1 %v18205_v0  ;;  %3685 = vmatmul.f32.gmra.mxu3 %v18206_v42  ;;  %v18211_v0 = vld [vmem:[#allocation185_spill] sm:$0xff] }
 0x4b2   :  { %v2810_v18 = vpop.f32.mrf.mxu0 }
 0x4b3   :  { %v3619_v4 = vadd.f32 %v3618_v9, %v3392_v24  ;;  %v2811_v29 = vadd.f32 %v2810_v18, %v18207_v38  ;;  %3458 = vmatmul.f32.gmra.mxu2 %v18206_v42  ;;  %v18212_v9 = vld [vmem:[#allocation186_spill] sm:$0xff]  ;;  %v18213_v42 = vld [vmem:[#allocation172_spill] sm:$0xff] }
 0x4b4   :  { %v3622_v43 = vpop.f32.mrf.mxu3 }
 0x4b5   :  { %v12224_v12 = vmul.f32 %v3619_v4, %v12044_v27  ;;  %v12227_v16 = vmul.f32 %v3619_v4, %v12124_v17  ;;  %2889 = vmatmul.f32.gmra.mxu0 %v18210_v26 }
 0x4b6   :  { %v3118_v39 = vpop.f32.mrf.mxu1  ;;  %v3395_v23 = vpop.f32.mrf.mxu2 }
 0x4b7   :  { %18208 = vst [vmem:[#allocation7_spill] sm:$0xff] %v12224_v12  ;;  %v3119_v48 = vadd.f32 %v3118_v39, %v2811_v29 }
 0x4b8   :  { %18209 = vst [vmem:[#allocation8_spill] sm:$0xff] %v12227_v16  ;;  %v18216_v16 = vld [vmem:[#allocation188_spill] sm:$0xff] }
 0x4b9   :  { %v3396_v36 = vadd.f32 %v3395_v23, %v3119_v48  ;;  %3213 = vmatmul.f32.gmra.mxu1 %v18211_v0  ;;  %3689 = vmatmul.f32.gmra.mxu3 %v18212_v9  ;;  %v18217_v0 = vld [vmem:[#allocation190_spill] sm:$0xff] }
 0x4ba   :  { %v2815_v24 = vpop.f32.mrf.mxu0 }
 0x4bb   :  { %v3623_v18 = vadd.f32 %v3622_v43, %v3396_v36  ;;  %v2816_v38 = vadd.f32 %v2815_v24, %v18213_v42  ;;  %3462 = vmatmul.f32.gmra.mxu2 %v18212_v9  ;;  %v18218_v43 = vld [vmem:[#allocation191_spill] sm:$0xff]  ;;  %v18219_v9 = vld [vmem:[#allocation68_spill] sm:$0xff] }
 0x4bc   :  { %v3626_v12 = vpop.f32.mrf.mxu3 }
 0x4bd   :  { %v12235_v4 = vmul.f32 %v3623_v18, %v12051_v7  ;;  %v12238_v26 = vmul.f32 %v3623_v18, %v12131_v5  ;;  %2894 = vmatmul.f32.gmra.mxu0 %v18216_v16 }
 0x4be   :  { %v3124_v29 = vpop.f32.mrf.mxu1  ;;  %v3399_v39 = vpop.f32.mrf.mxu2 }
 0x4bf   :  { %18214 = vst [vmem:[#allocation221_spill] sm:$0xff] %v12235_v4  ;;  %v3125_v23 = vadd.f32 %v3124_v29, %v2816_v38 }
 0x4c0   :  { %18215 = vst [vmem:[#allocation9_spill] sm:$0xff] %v12238_v26  ;;  %v18220_v26 = vld [vmem:[#allocation193_spill] sm:$0xff] }
 0x4c1   :  { %v3400_v48 = vadd.f32 %v3399_v39, %v3125_v23  ;;  %3219 = vmatmul.f32.gmra.mxu1 %v18217_v0  ;;  %3693 = vmatmul.f32.gmra.mxu3 %v18218_v43  ;;  %v18221_v0 = vld [vmem:[#allocation195_spill] sm:$0xff] }
 0x4c2   :  { %v2820_v36 = vpop.f32.mrf.mxu0 }
 0x4c3   :  { %v3627_v24 = vadd.f32 %v3626_v12, %v3400_v48  ;;  %v2821_v42 = vadd.f32 %v2820_v36, %v18219_v9  ;;  %3466 = vmatmul.f32.gmra.mxu2 %v18218_v43  ;;  %v18223_v9 = vld [vmem:[#allocation198_spill] sm:$0xff] }
 0x4c4   :  { %v3630_v4 = vpop.f32.mrf.mxu3 }
 0x4c5   :  { %v12246_v18 = vmul.f32 %v3627_v24, %v12058_v50  ;;  %v12249_v16 = vmul.f32 %v3627_v24, %v12138_v61  ;;  %2899 = vmatmul.f32.gmra.mxu0 %v18220_v26 }
 0x4c6   :  { %v3130_v38 = vpop.f32.mrf.mxu1  ;;  %v3403_v29 = vpop.f32.mrf.mxu2 }
 0x4c7   :  { %v3131_v39 = vadd.f32 %v3130_v38, %v2821_v42 }
 0x4c9   :  { %v3404_v23 = vadd.f32 %v3403_v29, %v3131_v39  ;;  %3225 = vmatmul.f32.gmra.mxu1 %v18221_v0  ;;  %3697 = vmatmul.f32.gmra.mxu3 %v17944_v32  ;;  %v18224_v0 = vld [vmem:[#allocation200_spill] sm:$0xff] }
 0x4ca   :  { %v2825_v12 = vpop.f32.mrf.mxu0 }
 0x4cb   :  { %v3631_v48 = vadd.f32 %v3630_v4, %v3404_v23  ;;  %v2826_v43 = vadd.f32 %v2825_v12, %v11389_v2  ;;  %3470 = vmatmul.f32.gmra.mxu2 %v17944_v32  ;;  %v18225_v32 = vld [vmem:[#allocation123_spill] sm:$0xff] }
 0x4cc   :  { %v3634_v36 = vpop.f32.mrf.mxu3 }
 0x4cd   :  { %v12257_v24 = vmul.f32 %v3631_v48, %v12065_v59  ;;  %v12260_v26 = vmul.f32 %v3631_v48, %v12145_v20  ;;  %2904 = vmatmul.f32.gmra.mxu0 %v18223_v9 }
 0x4ce   :  { %v3136_v42 = vpop.f32.mrf.mxu1  ;;  %v3407_v38 = vpop.f32.mrf.mxu2 }
 0x4cf   :  { %18222 = vst [vmem:[#allocation10_spill] sm:$0xff] %v12260_v26  ;;  %v3137_v29 = vadd.f32 %v3136_v42, %v2826_v43  ;;  %v18226_v26 = vld [vmem:[#allocation202_spill] sm:$0xff] }
 0x4d1   :  { %v3408_v39 = vadd.f32 %v3407_v38, %v3137_v29  ;;  %3231 = vmatmul.f32.gmra.mxu1 %v18224_v0  ;;  %3701 = vmatmul.f32.gmra.mxu3 %v10751_v45  ;;  %v18227_v0 = vld [vmem:[#allocation204_spill] sm:$0xff] }
 0x4d2   :  { %v2830_v2 = vpop.f32.mrf.mxu0 }
 0x4d3   :  { %v3635_v4 = vadd.f32 %v3634_v36, %v3408_v39  ;;  %v2831_v23 = vadd.f32 %v2830_v2, %v18225_v32  ;;  %3474 = vmatmul.f32.gmra.mxu2 %v10751_v45  ;;  %v18230_v32 = vld [vmem:[#allocation207_spill] sm:$0xff] }
 0x4d4   :  { %v3638_v12 = vpop.f32.mrf.mxu3 }
 0x4d5   :  { %v12268_v48 = vmul.f32 %v3635_v4, %v12072_v53  ;;  %v12271_v9 = vmul.f32 %v3635_v4, %v12152_v52  ;;  %2909 = vmatmul.f32.gmra.mxu0 %v18226_v26 }
 0x4d6   :  { %v3142_v43 = vpop.f32.mrf.mxu1  ;;  %v3411_v42 = vpop.f32.mrf.mxu2 }
 0x4d7   :  { %v3143_v38 = vadd.f32 %v3142_v43, %v2831_v23 }
 0x4d9   :  { %v3412_v29 = vadd.f32 %v3411_v42, %v3143_v38  ;;  %3237 = vmatmul.f32.gmra.mxu1 %v18227_v0  ;;  %3705 = vmatmul.f32.gmra.mxu3 %v17953_v44  ;;  %v3851_v42 = vld [vmem:[%s17001_s2] sm:$0xff] }
 0x4da   :  { %v2835_v36 = vpop.f32.mrf.mxu0 }
 0x4db   :  { %v3639_v39 = vadd.f32 %v3638_v12, %v3412_v29  ;;  %v2836_v45 = vadd.f32 %v2835_v36, %v11425_v22  ;;  %3478 = vmatmul.f32.gmra.mxu2 %v17953_v44  ;;  %v18231_v22 = vld [vmem:[#allocation209_spill] sm:$0xff]  ;;  %v12290_v44 = vand.u32 4294901760, %v3851_v42 }
 0x4dc   :  { %v3642_v2 = vpop.f32.mrf.mxu3 }
 0x4dd   :  { %v12279_v4 = vmul.f32 %v3639_v39, %v12080_v56  ;;  %v12282_v26 = vmul.f32 %v3639_v39, %v12159_v46  ;;  %2914 = vmatmul.f32.gmra.mxu0 %v18230_v32  ;;  %18232 = vst [vmem:[#allocation12_spill] sm:$0xff] %v12290_v44 }
 0x4de   :  { %v3148_v23 = vpop.f32.mrf.mxu1  ;;  %v3415_v43 = vpop.f32.mrf.mxu2 }
 0x4df   :  { %18228 = vst [vmem:[#allocation11_spill] sm:$0xff] %v12279_v4  ;;  %v3149_v12 = vadd.f32 %v3148_v23, %v2836_v45  ;;  %v18233_v4 = vld [vmem:[#allocation211_spill] sm:$0xff]  ;;  %v12298_v45 = vsub.f32 %v3851_v42, %v12290_v44 }
 0x4e0   :  { %18229 = vst [vmem:[#allocation222_spill] sm:$0xff] %v12282_v26 }
 0x4e1   :  { %v3416_v38 = vadd.f32 %v3415_v43, %v3149_v12  ;;  %3243 = vmatmul.f32.gmra.mxu1 %v18231_v22  ;;  %3709 = vmatmul.f32.gmra.mxu3 %v10795_v28  ;;  %18234 = vst [vmem:[#allocation13_spill] sm:$0xff] %v12298_v45 }
 0x4e2   :  { %v2840_v29 = vpop.f32.mrf.mxu0 }
 0x4e3   :  { %v3643_v0 = vadd.f32 %v3642_v2, %v3416_v38  ;;  %v2841_v36 = vadd.f32 %v2840_v29, %v11440_v13  ;;  %3482 = vmatmul.f32.gmra.mxu2 %v10795_v28  ;;  %v18235_v38 = vld [vmem:[#allocation213_spill] sm:$0xff] }
 0x4e4   :  { %v3646_v39 = vpop.f32.mrf.mxu3 }
 0x4e5   :  { %v3742_v32 = vmul.f32 %v3643_v0, %v12088_v8  ;;  %v3786_v26 = vmul.f32 %v3643_v0, %v12008_v55  ;;  %2919 = vmatmul.f32.gmra.mxu0 %v18233_v4  ;;  %v12309_v55 = vand.u32 4294901760, %v12298_v45  ;;  %v3853_v8 = vld [vmem:[%s17001_s2 + $0x10] sm:$0xff]  ;;  %v18238_v0 = vld [vmem:[#allocation214_spill] sm:$0xff] }
 0x4e6   :  { %v3154_v23 = vpop.f32.mrf.mxu1  ;;  %v3419_v43 = vpop.f32.mrf.mxu2 }
 0x4e7   :  { %v12301_v12 = vsub.f32 %v12169_v47, %v3742_v32  ;;  %v12304_v2 = vadd.f32 %v12172_v60, %v3786_v26  ;;  %v3155_v13 = vadd.f32 %v3154_v23, %v2841_v36  ;;  %18236 = vst [vmem:[#allocation14_spill] sm:$0xff] %v12309_v55  ;;  %v12316_v26 = vand.u32 4294901760, %v3853_v8 }
 0x4e8   :  { %v3932_v36 = vsub.f32 %v12298_v45, %v12309_v55 }
 0x4e9   :  { %v3420_v28 = vadd.f32 %v3419_v43, %v3155_v13  ;;  %3249 = vmatmul.f32.gmra.mxu1 %v18235_v38  ;;  %3713 = vmatmul.f32.gmra.mxu3 %v10817_v14  ;;  %18237 = vst [vmem:[#allocation223_spill] sm:$0xff] %v12316_v26  ;;  %v12330_v43 = vsub.f32 %v3853_v8, %v12316_v26  ;;  %v18240_v13 = vld [vmem:[#allocation216_spill] sm:$0xff]  ;;  %v18242_v38 = vld [vmem:[#allocation169_spill] sm:$0xff] }
 0x4ea   :  { %v2845_v4 = vpop.f32.mrf.mxu0  ;;  %v18243_v8 = vld [vmem:[#allocation201_spill] sm:$0xff] }
 0x4eb   :  { %v3647_v42 = vadd.f32 %v3646_v39, %v3420_v28  ;;  %v2846_v47 = vadd.f32 %v2845_v4, %v11455_v40  ;;  %3486 = vmatmul.f32.gmra.mxu2 %v10817_v14  ;;  %18239 = vst [vmem:[#allocation15_spill] sm:$0xff] %v12330_v43  ;;  %v3855_v28 = vld [vmem:[%s17001_s2 + $0x20] sm:$0xff] }
 0x4ec   :  { %v3650_v60 = vpop.f32.mrf.mxu3 }
 0x4ed   :  { %v3744_v22 = vmul.f32 %v3647_v42, %v12096_v21  ;;  %v3788_v29 = vmul.f32 %v3647_v42, %v12015_v3  ;;  %2924 = vmatmul.f32.gmra.mxu0 %v18238_v0  ;;  %v12334_v3 = vand.u32 4294901760, %v3932_v36  ;;  %v18244_v42 = vand.u32 4294901760, %v18243_v8 }
 0x4ee   :  { %v3160_v32 = vpop.f32.mrf.mxu1  ;;  %v3423_v23 = vpop.f32.mrf.mxu2 }
 0x4ef   :  { %v12324_v39 = vsub.f32 %v12180_v10, %v3744_v22  ;;  %v12327_v40 = vadd.f32 %v12183_v58, %v3788_v29  ;;  %v3161_v14 = vadd.f32 %v3160_v32, %v2846_v47  ;;  %18241 = vst [vmem:[#allocation16_spill] sm:$0xff] %v12334_v3  ;;  %v12346_v22 = vand.u32 4294901760, %v12330_v43 }
 0x4f0   :  { %v12348_v29 = vand.u32 4294901760, %v3855_v28 }
 0x4f1   :  { %v3424_v21 = vadd.f32 %v3423_v23, %v3161_v14  ;;  %3255 = vmatmul.f32.gmra.mxu1 %v18240_v13  ;;  %4264 = vmatmul.f32.vlgmr.msrb.gmra.mxu3 %v12309_v55  ;;  %18245 = vst [vmem:[#allocation17_spill] sm:$0xff] %v12346_v22 }
 0x4f2   :  { %4897 = vmatpush.msrb.mxu3 %v11729_v62  ;;  %v2850_v10 = vpop.f32.mrf.mxu0  ;;  %18246 = vst [vmem:[#allocation224_spill] sm:$0xff] %v12348_v29 }
 0x4f3   :  { %v3651_v58 = vadd.f32 %v3650_v60, %v3424_v21  ;;  %v2851_v4 = vadd.f32 %v2850_v10, %v18242_v38  ;;  %4185 = vmatmul.f32.vlgmr.msrb.gmra.mxu2 %v12298_v45  ;;  %v18247_v60 = vld [vmem:[#allocation206_spill] sm:$0xff]  ;;  %v12369_v38 = vsub.f32 %v3855_v28, %v12348_v29  ;;  %v18253_v28 = vld [vmem:[#allocation177_spill] sm:$0xff] }
 0x4f4   :  { %4828 = vmatpush.msrb.mxu2 %v18244_v42  ;;  %4899 = vmatpush.msrb.mxu3 %v11751_v54  ;;  %v3654_v47 = vpop.f32.mrf.mxu3  ;;  %v18248_v32 = vand.u32 4294901760, %v18247_v60 }
 0x4f5   :  { %v3746_v0 = vmul.f32 %v3651_v58, %v12103_v33  ;;  %v3790_v36 = vmul.f32 %v3651_v58, %v12022_v6  ;;  %3934 = vmatmul.f32.vlgmr.msrb.gmra.mxu0 %v12334_v3  ;;  %v18249_v33 = vld [vmem:[#allocation196_spill] sm:$0xff]  ;;  %v3940_v58 = vsub.f32 %v12330_v43, %v12346_v22  ;;  %18251 = vst [vmem:[#allocation18_spill] sm:$0xff] %v12369_v38 }
 0x4f6   :  { %4832 = vmatpush.msrb.mxu2 %v18248_v32  ;;  %v3166_v23 = vpop.f32.mrf.mxu1  ;;  %4676 = vmatpush.msrb.mxu0 %v18243_v8  ;;  %v3427_v14 = vpop.f32.mrf.mxu2  ;;  %v18250_v6 = vand.u32 4294901760, %v18249_v33 }
 0x4f7   :  { %v12357_v21 = vsub.f32 %v12191_v34, %v3746_v0  ;;  %v12360_v13 = vadd.f32 %v12194_v37, %v3790_v36  ;;  %v3167_v10 = vadd.f32 %v3166_v23, %v2851_v4  ;;  %4901 = vmatpush.msrb.mxu3 %v11770_v25  ;;  %v3857_v34 = vld [vmem:[%s17001_s2 + $0x30] sm:$0xff]  ;;  %v18252_v37 = vand.u32 4294901760, %v11835_v41 }
 0x4f8   :  { %4836 = vmatpush.msrb.mxu2 %v18250_v6  ;;  %4679 = vmatpush.msrb.mxu0 %v18247_v60  ;;  %v12384_v36 = vand.u32 4294901760, %v3940_v58  ;;  %v12389_v32 = vand.u32 4294901760, %v3857_v34 }
 0x4f9   :  { %v3428_v8 = vadd.f32 %v3427_v14, %v3167_v10  ;;  %4903 = vmatpush.msrb.mxu3 %v11799_v11  ;;  %4099 = vmatmul.f32.vlgmr.msrb.gmra.mxu1 %v12290_v44  ;;  %v18257_v14 = vand.u32 4294901760, %v11865_v63 }
 0x4fa   :  { %4749 = vmatpush.msrb.mxu1 %v11729_v62  ;;  %4840 = vmatpush.msrb.mxu2 %v18252_v37  ;;  %v2855_v4 = vpop.f32.mrf.mxu0  ;;  %18254 = vst [vmem:[#allocation19_spill] sm:$0xff] %v12384_v36  ;;  %v12387_v62 = vand.u32 4294901760, %v12369_v38  ;;  %v18260_v37 = vld [vmem:[#allocation73_spill] sm:$0xff] }
 0x4fb   :  { %v3655_v42 = vadd.f32 %v3654_v47, %v3428_v8  ;;  %4270 = vmatmul.f32.gmra.mxu3 %v12346_v22  ;;  %4682 = vmatpush.msrb.mxu0 %v18249_v33  ;;  %v2856_v0 = vadd.f32 %v2855_v4, %v18253_v28  ;;  %18256 = vst [vmem:[#allocation225_spill] sm:$0xff] %v12389_v32 }
 0x4fc   :  { %4905 = vmatpush.msrb.mxu3 %v11822_v31  ;;  %4190 = vmatmul.f32.gmra.mxu2 %v12330_v43  ;;  %v3658_v60 = vpop.f32.mrf.mxu3  ;;  %18255 = vst [vmem:[#allocation20_spill] sm:$0xff] %v12387_v62 }
 0x4fd   :  { %v3748_v47 = vmul.f32 %v3655_v42, %v12110_v49  ;;  %v3792_v23 = vmul.f32 %v3655_v42, %v12030_v35  ;;  %4751 = vmatpush.msrb.mxu1 %v11751_v54  ;;  %4844 = vmatpush.msrb.mxu2 %v18257_v14  ;;  %v18258_v35 = vand.u32 4294901760, %v11886_v15  ;;  %v12411_v49 = vsub.f32 %v3857_v34, %v12389_v32 }
 0x4fe   :  { %4685 = vmatpush.msrb.mxu0 %v11835_v41  ;;  %4907 = vmatpush.msrb.mxu3 %v11855_v1  ;;  %v3172_v10 = vpop.f32.mrf.mxu1  ;;  %v3431_v33 = vpop.f32.mrf.mxu2  ;;  %v3948_v41 = vsub.f32 %v12369_v38, %v12387_v62 }
 0x4ff   :  { %v12399_v6 = vsub.f32 %v12202_v57, %v3748_v47  ;;  %v12402_v58 = vadd.f32 %v12205_v19, %v3792_v23  ;;  %4753 = vmatpush.msrb.mxu1 %v11770_v25  ;;  %4848 = vmatpush.msrb.mxu2 %v18258_v35  ;;  %v3173_v54 = vadd.f32 %v3172_v10, %v2856_v0  ;;  %v3859_v25 = vld [vmem:[%s17001_s2 + $0x40] sm:$0xff]  ;;  %v12427_v4 = vand.u32 4294901760, %v12411_v49  ;;  %v18265_v23 = vld [vmem:[#allocation5_spill] sm:$0xff] }
 0x500   :  { %3942 = vmatmul.f32.gmra.mxu0 %v12384_v36  ;;  %18259 = vst [vmem:[#allocation21_spill] sm:$0xff] %v12411_v49  ;;  %v12429_v42 = vand.u32 4294901760, %v3859_v25 }
 0x501   :  { %4688 = vmatpush.msrb.mxu0 %v11865_v63  ;;  %4755 = vmatpush.msrb.mxu1 %v11799_v11  ;;  %v3432_v57 = vadd.f32 %v3431_v33, %v3173_v54  ;;  %v12424_v11 = vand.u32 4294901760, %v3948_v41  ;;  %18262 = vst [vmem:[#allocation23_spill] sm:$0xff] %v12427_v4  ;;  %v3956_v33 = vsub.f32 %v12411_v49, %v12427_v4  ;;  %v18267_v41 = vld [vmem:[#allocation128_spill] sm:$0xff] }
 0x502   :  { %4103 = vmatmul.f32.gmra.mxu1 %v12316_v26  ;;  %v2860_v19 = vpop.f32.mrf.mxu0  ;;  %18263 = vst [vmem:[#allocation226_spill] sm:$0xff] %v12429_v42 }
 0x503   :  { %4691 = vmatpush.msrb.mxu0 %v11886_v15  ;;  %4757 = vmatpush.msrb.mxu1 %v11822_v31  ;;  %v3659_v8 = vadd.f32 %v3658_v60, %v3432_v57  ;;  %v2861_v34 = vadd.f32 %v2860_v19, %v18260_v37  ;;  %18261 = vst [vmem:[#allocation22_spill] sm:$0xff] %v12424_v11  ;;  %v18264_v60 = vld [vmem:[#allocation220_spill] sm:$0xff]  ;;  %v12453_v19 = vand.u32 4294901760, %v3956_v33 }
 0x504   :  { %4276 = vmatmul.f32.gmra.mxu3 %v12387_v62  ;;  %4195 = vmatmul.f32.gmra.mxu2 %v12369_v38  ;;  %v3662_v63 = vpop.f32.mrf.mxu3 }
 0x505   :  { %v3750_v28 = vmul.f32 %v3659_v8, %v12117_v51  ;;  %v3794_v15 = vmul.f32 %v3659_v8, %v12037_v30  ;;  %4759 = vmatpush.msrb.mxu1 %v11855_v1  ;;  %v12444_v51 = vsub.f32 %v3859_v25, %v12429_v42  ;;  %v3861_v1 = vld [vmem:[%s17001_s2 + $0x50] sm:$0xff]  ;;  %18268 = vst [vmem:[#allocation25_spill] sm:$0xff] %v12453_v19 }
 0x506   :  { %v3178_v31 = vpop.f32.mrf.mxu1  ;;  %v3435_v0 = vpop.f32.mrf.mxu2  ;;  %v12458_v37 = vand.u32 4294901760, %v3861_v1 }
 0x507   :  { %v12435_v47 = vsub.f32 %v18264_v60, %v3750_v28  ;;  %v12438_v14 = vadd.f32 %v18265_v23, %v3794_v15  ;;  %v3179_v10 = vadd.f32 %v3178_v31, %v2861_v34  ;;  %18266 = vst [vmem:[#allocation24_spill] sm:$0xff] %v12444_v51  ;;  %v12456_v25 = vand.u32 4294901760, %v12444_v51  ;;  %v18271_v31 = vld [vmem:[#allocation7_spill] sm:$0xff]  ;;  %v18272_v60 = vld [vmem:[#allocation8_spill] sm:$0xff] }
 0x508   :  { %3950 = vmatmul.f32.gmra.mxu0 %v12424_v11  ;;  %18270 = vst [vmem:[#allocation27_spill] sm:$0xff] %v12458_v37 }
 0x509   :  { %v3436_v30 = vadd.f32 %v3435_v0, %v3179_v10  ;;  %18269 = vst [vmem:[#allocation26_spill] sm:$0xff] %v12456_v25  ;;  %v3964_v33 = vsub.f32 %v12444_v51, %v12456_v25  ;;  %v12813_v45 = vand.u32 4294901760, %v12435_v47 }
 0x50a   :  { %4107 = vmatmul.f32.gmra.mxu1 %v12348_v29  ;;  %v2865_v35 = vpop.f32.mrf.mxu0 }
 0x50b   :  { %v3663_v54 = vadd.f32 %v3662_v63, %v3436_v30  ;;  %v2866_v57 = vadd.f32 %v2865_v35, %v18267_v41  ;;  %v12472_v30 = vsub.f32 %v3861_v1, %v12458_v37  ;;  %v18275_v35 = vld [vmem:[#allocation174_spill] sm:$0xff]  ;;  %18338 = vst [vmem:[#allocation67_spill] sm:$0xff] %v12813_v45 }
 0x50c   :  { %4282 = vmatmul.f32.gmra.mxu3 %v12427_v4  ;;  %4200 = vmatmul.f32.gmra.mxu2 %v12411_v49  ;;  %v3666_v8 = vpop.f32.mrf.mxu3  ;;  %v3863_v41 = vld [vmem:[%s17001_s2 + $0x60] sm:$0xff] }
 0x50d   :  { %v3752_v34 = vmul.f32 %v3663_v54, %v12124_v17  ;;  %v3796_v28 = vmul.f32 %v3663_v54, %v12044_v27  ;;  %18273 = vst [vmem:[#allocation28_spill] sm:$0xff] %v12472_v30  ;;  %v18274_v17 = vld [vmem:[#allocation182_spill] sm:$0xff] }
 0x50e   :  { %v3184_v15 = vpop.f32.mrf.mxu1  ;;  %v3439_v63 = vpop.f32.mrf.mxu2  ;;  %v2601_v27 = vadd.f32 %v18275_v35, %v18274_v17 }
 0x50f   :  { %v12463_v0 = vsub.f32 %v18271_v31, %v3752_v34  ;;  %v12466_v23 = vadd.f32 %v18272_v60, %v3796_v28  ;;  %v3185_v10 = vadd.f32 %v3184_v15, %v2866_v57  ;;  %v12482_v15 = vand.u32 4294901760, %v3964_v33 }
 0x510   :  { %3958 = vmatmul.f32.gmra.mxu0 %v12453_v19  ;;  %v12485_v31 = vand.u32 4294901760, %v12472_v30  ;;  %v18283_v19 = vld [vmem:[#allocation78_spill] sm:$0xff] }
 0x511   :  { %v3440_v54 = vadd.f32 %v3439_v63, %v3185_v10  ;;  %18276 = vst [vmem:[#allocation29_spill] sm:$0xff] %v12482_v15  ;;  %v12487_v63 = vand.u32 4294901760, %v3863_v41 }
 0x512   :  { %4111 = vmatmul.f32.gmra.mxu1 %v12389_v32  ;;  %v2870_v34 = vpop.f32.mrf.mxu0  ;;  %18277 = vst [vmem:[#allocation30_spill] sm:$0xff] %v12485_v31 }
 0x513   :  { %v3667_v57 = vadd.f32 %v3666_v8, %v3440_v54  ;;  %v2871_v28 = vadd.f32 %v2870_v34, %v2601_v27  ;;  %18278 = vst [vmem:[#allocation31_spill] sm:$0xff] %v12487_v63  ;;  %v18279_v8 = vld [vmem:[#allocation221_spill] sm:$0xff] }
 0x514   :  { %4288 = vmatmul.f32.gmra.mxu3 %v12456_v25  ;;  %4205 = vmatmul.f32.gmra.mxu2 %v12444_v51  ;;  %v3670_v1 = vpop.f32.mrf.mxu3  ;;  %v18280_v54 = vld [vmem:[#allocation9_spill] sm:$0xff]  ;;  %v3972_v51 = vsub.f32 %v12472_v30, %v12485_v31  ;;  %v12501_v25 = vsub.f32 %v3863_v41, %v12487_v63 }
 0x515   :  { %v3754_v60 = vmul.f32 %v3667_v57, %v12131_v5  ;;  %v3798_v10 = vmul.f32 %v3667_v57, %v12051_v7  ;;  %v18282_v5 = vld [vmem:[#allocation133_spill] sm:$0xff] }
 0x516   :  { %v3190_v17 = vpop.f32.mrf.mxu1  ;;  %v3443_v35 = vpop.f32.mrf.mxu2  ;;  %18281 = vst [vmem:[#allocation32_spill] sm:$0xff] %v12501_v25  ;;  %v2605_v7 = vadd.f32 %v18283_v19, %v18282_v5 }
 0x517   :  { %v12492_v27 = vsub.f32 %v18279_v8, %v3754_v60  ;;  %v12495_v34 = vadd.f32 %v18280_v54, %v3798_v10  ;;  %v3191_v33 = vadd.f32 %v3190_v17, %v2871_v28  ;;  %v3865_v60 = vld [vmem:[%s17001_s2 + $0x70] sm:$0xff]  ;;  %v12511_v8 = vand.u32 4294901760, %v3972_v51 }
 0x518   :  { %3966 = vmatmul.f32.gmra.mxu0 %v12482_v15  ;;  %v12514_v54 = vand.u32 4294901760, %v12501_v25  ;;  %v12516_v19 = vand.u32 4294901760, %v3865_v60 }
 0x519   :  { %v3444_v57 = vadd.f32 %v3443_v35, %v3191_v33  ;;  %18284 = vst [vmem:[#allocation33_spill] sm:$0xff] %v12511_v8 }
 0x51a   :  { %4115 = vmatmul.f32.gmra.mxu1 %v12429_v42  ;;  %v2875_v10 = vpop.f32.mrf.mxu0  ;;  %18285 = vst [vmem:[#allocation34_spill] sm:$0xff] %v12514_v54 }
 0x51b   :  { %v3671_v28 = vadd.f32 %v3670_v1, %v3444_v57  ;;  %v2876_v17 = vadd.f32 %v2875_v10, %v2605_v7  ;;  %18286 = vst [vmem:[#allocation35_spill] sm:$0xff] %v12516_v19  ;;  %v3980_v57 = vsub.f32 %v12501_v25, %v12514_v54  ;;  %v12530_v10 = vsub.f32 %v3865_v60, %v12516_v19 }
 0x51c   :  { %4294 = vmatmul.f32.gmra.mxu3 %v12485_v31  ;;  %4210 = vmatmul.f32.gmra.mxu2 %v12472_v30  ;;  %v3674_v41 = vpop.f32.mrf.mxu3  ;;  %v18289_v30 = vld [vmem:[#allocation179_spill] sm:$0xff] }
 0x51d   :  { %v3756_v35 = vmul.f32 %v3671_v28, %v12138_v61  ;;  %v3800_v33 = vmul.f32 %v3671_v28, %v12058_v50  ;;  %18287 = vst [vmem:[#allocation36_spill] sm:$0xff] %v12530_v10  ;;  %v18288_v61 = vld [vmem:[#allocation187_spill] sm:$0xff]  ;;  %v12546_v60 = vand.u32 4294901760, %v12530_v10 }
 0x51e   :  { %v3196_v5 = vpop.f32.mrf.mxu1  ;;  %v3447_v15 = vpop.f32.mrf.mxu2  ;;  %v2609_v50 = vadd.f32 %v18289_v30, %v18288_v61  ;;  %v12543_v30 = vand.u32 4294901760, %v3980_v57 }
 0x51f   :  { %v12521_v1 = vsub.f32 %v12246_v18, %v3756_v35  ;;  %v12524_v7 = vadd.f32 %v12249_v16, %v3800_v33  ;;  %v3197_v51 = vadd.f32 %v3196_v5, %v2876_v17  ;;  %v3867_v18 = vld [vmem:[%s17001_s2 + $0x80] sm:$0xff]  ;;  %v3852_v17 = vld [vmem:[%s17001_s2 + $0x8] sm:$0xff]  ;;  %18291 = vst [vmem:[#allocation38_spill] sm:$0xff] %v12546_v60 }
 0x520   :  { %3974 = vmatmul.f32.gmra.mxu0 %v12511_v8  ;;  %18290 = vst [vmem:[#allocation37_spill] sm:$0xff] %v12543_v30  ;;  %v12548_v5 = vand.u32 4294901760, %v3867_v18  ;;  %v3871_v8 = vsel %vm3869_vm2, %v3852_v17, 0  ;;  %v18296_v17 = vld [vmem:[#allocation138_spill] sm:$0xff] }
 0x521   :  { %v3448_v28 = vadd.f32 %v3447_v15, %v3197_v51 }
 0x522   :  { %4119 = vmatmul.f32.gmra.mxu1 %v12458_v37  ;;  %v2880_v16 = vpop.f32.mrf.mxu0  ;;  %18292 = vst [vmem:[#allocation231_spill] sm:$0xff] %v12548_v5 }
 0x523   :  { %v3675_v35 = vadd.f32 %v3674_v41, %v3448_v28  ;;  %v2881_v33 = vadd.f32 %v2880_v16, %v2609_v50  ;;  %v18293_v16 = vld [vmem:[#allocation10_spill] sm:$0xff] }
 0x524   :  { %4300 = vmatmul.f32.gmra.mxu3 %v12514_v54  ;;  %4215 = vmatmul.f32.gmra.mxu2 %v12501_v25  ;;  %v3678_v15 = vpop.f32.mrf.mxu3  ;;  %v3988_v54 = vsub.f32 %v12530_v10, %v12546_v60 }
 0x525   :  { %v3758_v51 = vmul.f32 %v3675_v35, %v12145_v20  ;;  %v3802_v61 = vmul.f32 %v3675_v35, %v12065_v59  ;;  %v12563_v20 = vsub.f32 %v3867_v18, %v12548_v5  ;;  %v12565_v59 = vand.u32 4294901760, %v3871_v8  ;;  %v18297_v35 = vld [vmem:[#allocation83_spill] sm:$0xff] }
 0x526   :  { %v3202_v41 = vpop.f32.mrf.mxu1  ;;  %v3451_v50 = vpop.f32.mrf.mxu2  ;;  %v2613_v31 = vadd.f32 %v18297_v35, %v18296_v17 }
 0x527   :  { %v12554_v28 = vsub.f32 %v12257_v24, %v3758_v51  ;;  %v12557_v57 = vadd.f32 %v18293_v16, %v3802_v61  ;;  %v3203_v25 = vadd.f32 %v3202_v41, %v2881_v33  ;;  %18294 = vst [vmem:[#allocation232_spill] sm:$0xff] %v12563_v20  ;;  %v12572_v33 = vand.u32 4294901760, %v3988_v54 }
 0x528   :  { %3982 = vmatmul.f32.gmra.mxu0 %v12543_v30  ;;  %18295 = vst [vmem:[#allocation39_spill] sm:$0xff] %v12565_v59  ;;  %v12575_v18 = vand.u32 4294901760, %v12563_v20  ;;  %v12578_v16 = vsub.f32 %v3871_v8, %v12565_v59 }
 0x529   :  { %v3452_v49 = vadd.f32 %v3451_v50, %v3203_v25  ;;  %18298 = vst [vmem:[#allocation40_spill] sm:$0xff] %v12572_v33  ;;  %v3854_v25 = vld [vmem:[%s17001_s2 + $0x18] sm:$0xff] }
 0x52a   :  { %4123 = vmatmul.f32.gmra.mxu1 %v12487_v63  ;;  %v2885_v24 = vpop.f32.mrf.mxu0  ;;  %18299 = vst [vmem:[#allocation41_spill] sm:$0xff] %v12575_v18  ;;  %v3874_v8 = vsel %vm3869_vm2, %v3854_v25, 0 }
 0x52b   :  { %v3679_v51 = vadd.f32 %v3678_v15, %v3452_v49  ;;  %v2886_v61 = vadd.f32 %v2885_v24, %v2613_v31  ;;  %18300 = vst [vmem:[#allocation42_spill] sm:$0xff] %v12578_v16  ;;  %v3996_v24 = vsub.f32 %v12563_v20, %v12575_v18 }
 0x52c   :  { %4306 = vmatmul.f32.gmra.mxu3 %v12546_v60  ;;  %4220 = vmatmul.f32.gmra.mxu2 %v12530_v10  ;;  %v3682_v41 = vpop.f32.mrf.mxu3 }
 0x52d   :  { %v3760_v49 = vmul.f32 %v3679_v51, %v12152_v52  ;;  %v3804_v31 = vmul.f32 %v3679_v51, %v12072_v53  ;;  %v12596_v52 = vand.u32 4294901760, %v12578_v16  ;;  %v12608_v25 = vand.u32 4294901760, %v3996_v24 }
 0x52e   :  { %v3208_v15 = vpop.f32.mrf.mxu1  ;;  %v3455_v50 = vpop.f32.mrf.mxu2 }
 0x52f   :  { %v12586_v54 = vsub.f32 %v12268_v48, %v3760_v49  ;;  %v12589_v17 = vadd.f32 %v12271_v9, %v3804_v31  ;;  %v3209_v35 = vadd.f32 %v3208_v15, %v2886_v61  ;;  %18301 = vst [vmem:[#allocation43_spill] sm:$0xff] %v12596_v52  ;;  %v12602_v48 = vand.u32 4294901760, %v12438_v14 }
 0x530   :  { %3990 = vmatmul.f32.gmra.mxu0 %v12572_v33  ;;  %v12604_v9 = vand.u32 4294901760, %v3874_v8  ;;  %18303 = vst [vmem:[#allocation45_spill] sm:$0xff] %v12608_v25  ;;  %v4511_v31 = vsub.f32 %v12578_v16, %v12596_v52 }
 0x531   :  { %v3456_v53 = vadd.f32 %v3455_v50, %v3209_v35  ;;  %v12617_v35 = vand.u32 4294901760, %v12402_v58  ;;  %v12625_v24 = vsub.f32 %v12438_v14, %v12602_v48  ;;  %v12709_v60 = vand.u32 4294901760, %v12586_v54 }
 0x532   :  { %4127 = vmatmul.f32.gmra.mxu1 %v12516_v19  ;;  %v12599_v51 = vpop.f32.mrf.mxu0 }
 0x533   :  { %18302 = vst [vmem:[#allocation44_spill] sm:$0xff] %v12599_v51  ;;  %v3683_v61 = vadd.f32 %v3682_v41, %v3456_v53  ;;  %v12628_v53 = vsub.f32 %v3874_v8, %v12604_v9  ;;  %v12645_v14 = vsub.f32 %v12402_v58, %v12617_v35  ;;  %v12648_v8 = vand.u32 4294901760, %v12327_v40 }
 0x534   :  { %4312 = vmatmul.f32.gmra.mxu3 %v12575_v18  ;;  %4225 = vmatmul.f32.gmra.mxu2 %v12563_v20  ;;  %v12610_v49 = vpop.f32.mrf.mxu3 }
 0x535   :  { %18304 = vst [vmem:[#allocation46_spill] sm:$0xff] %v12610_v49  ;;  %v3762_v15 = vmul.f32 %v3683_v61, %v12159_v46  ;;  %v3806_v50 = vmul.f32 %v3683_v61, %v12080_v56  ;;  %v3856_v46 = vld [vmem:[%s17001_s2 + $0x28] sm:$0xff]  ;;  %v18309_v61 = vld [vmem:[#allocation222_spill] sm:$0xff] }
 0x536   :  { %v12619_v51 = vpop.f32.mrf.mxu1  ;;  %v12621_v41 = vpop.f32.mrf.mxu2  ;;  %18307 = vst [vmem:[#allocation48_spill] sm:$0xff] %v12628_v53  ;;  %v18308_v49 = vld [vmem:[#allocation11_spill] sm:$0xff]  ;;  %v3877_v18 = vsel %vm3869_vm2, %v3856_v46, 0  ;;  %v12667_v46 = vand.u32 4294901760, %v12304_v2 }
 0x537   :  { %18305 = vst [vmem:[#allocation47_spill] sm:$0xff] %v12619_v51  ;;  %v3784_v56 = vsub.f32 %v18308_v49, %v3762_v15  ;;  %v12635_v20 = vadd.f32 %v18309_v61, %v3806_v50  ;;  %v12638_v51 = vand.u32 4294901760, %v12360_v13  ;;  %v12656_v50 = vand.u32 4294901760, %v12628_v53 }
 0x538   :  { %18306 = vst [vmem:[#allocation235_spill] sm:$0xff] %v12621_v41  ;;  %3998 = vmatmul.f32.gmra.mxu0 %v12608_v25  ;;  %v12641_v41 = vand.u32 4294901760, %v4511_v31  ;;  %v12669_v61 = vand.u32 4294901760, %v3877_v18  ;;  %v12675_v15 = vsub.f32 %v12327_v40, %v12648_v8 }
 0x539   :  { %18312 = vst [vmem:[#allocation236_spill] sm:$0xff] %v12656_v50  ;;  %v12660_v31 = vsub.f32 %v12360_v13, %v12638_v51  ;;  %v4519_v33 = vsub.f32 %v12628_v53, %v12656_v50  ;;  %v12689_v10 = vand.u32 4294901760, %v3784_v56  ;;  %v12695_v13 = vsub.f32 %v12304_v2, %v12667_v46 }
 0x53a   :  { %18310 = vst [vmem:[#allocation49_spill] sm:$0xff] %v12641_v41  ;;  %4131 = vmatmul.f32.gmra.mxu1 %v12548_v5  ;;  %v12652_v49 = vpop.f32.mrf.mxu0  ;;  %v12727_v2 = vand.u32 4294901760, %v12554_v28 }
 0x53b   :  { %18311 = vst [vmem:[#allocation50_spill] sm:$0xff] %v12652_v49  ;;  %v12716_v4 = vand.u32 4294901760, %v4519_v33  ;;  %v12724_v38 = vsub.f32 %v3784_v56, %v12689_v10 }
 0x53c   :  { %4628 = vmatmul.f32.vlgmr.msra.gmra.mxu3 %v12565_v59  ;;  %4513 = vmatmul.f32.vlgmr.msra.gmra.mxu2 %v12641_v41  ;;  %v12664_v58 = vpop.f32.mrf.mxu3  ;;  %18322 = vst [vmem:[#allocation56_spill] sm:$0xff] %v12727_v2 }
 0x53d   :  { %18313 = vst [vmem:[#allocation51_spill] sm:$0xff] %v12664_v58  ;;  %5278 = vmatpush.msra.mxu3 %v12602_v48  ;;  %5185 = vmatpush.msra.mxu2 %v12625_v24  ;;  %v18316_v58 = vand.u32 4294901760, %v12625_v24  ;;  %v18333_v43 = vand.u32 4294901760, %v12724_v38 }
 0x53e   :  { %v12678_v49 = vpop.f32.mrf.mxu1  ;;  %v12680_v41 = vpop.f32.mrf.mxu2  ;;  %18320 = vst [vmem:[#allocation55_spill] sm:$0xff] %v12716_v4 }
 0x53f   :  { %18314 = vst [vmem:[#allocation52_spill] sm:$0xff] %v12678_v49  ;;  %v5053_v25 = vsub.f32 %v12625_v24, %v18316_v58  ;;  %5280 = vmatpush.msra.mxu3 %v12617_v35  ;;  %5188 = vmatpush.msra.mxu2 %v12645_v14  ;;  %v3858_v58 = vld [vmem:[%s17001_s2 + $0x38] sm:$0xff]  ;;  %v18318_v49 = vand.u32 4294901760, %v12645_v14  ;;  %v5083_v22 = vsub.f32 %v12724_v38, %v18333_v43 }
 0x540   :  { %18315 = vst [vmem:[#allocation53_spill] sm:$0xff] %v12680_v41  ;;  %4381 = vmatmul.f32.vlgmr.msra.gmra.mxu0 %v12290_v44  ;;  %v12698_v41 = vsub.f32 %v3877_v18, %v12669_v61 }
 0x541   :  { %4946 = vmatpush.msra.mxu0 %v12602_v48  ;;  %5282 = vmatpush.msra.mxu3 %v12638_v51  ;;  %v5059_v40 = vsub.f32 %v12645_v14, %v18318_v49  ;;  %v5054_v18 = vand.u32 4294901760, %v5053_v25  ;;  %v18321_v49 = vand.u32 4294901760, %v12660_v31  ;;  %v3880_v25 = vsel %vm3869_vm2, %v3858_v58, 0 }
 0x542   :  { %18317 = vst [vmem:[#allocation237_spill] sm:$0xff] %v12698_v41  ;;  %5191 = vmatpush.msra.mxu2 %v12660_v31  ;;  %4450 = vmatmul.f32.vlgmr.msra.gmra.mxu1 %v12290_v44  ;;  %v12714_v30 = vpop.f32.mrf.mxu0  ;;  %v12735_v62 = vand.u32 4294901760, %v12698_v41  ;;  %v12744_v58 = vsub.f32 %v12586_v54, %v12709_v60  ;;  %v12760_v54 = vsub.f32 %v12554_v28, %v12727_v2  ;;  %v12772_v28 = vand.u32 4294901760, %v12492_v27 }
 0x543   :  { %18319 = vst [vmem:[#allocation54_spill] sm:$0xff] %v12714_v30  ;;  %4948 = vmatpush.msra.mxu0 %v12617_v35  ;;  %5284 = vmatpush.msra.mxu3 %v12648_v8  ;;  %v5065_v11 = vsub.f32 %v12660_v31, %v18321_v49  ;;  %v5060_v56 = vand.u32 4294901760, %v5059_v40  ;;  %v18325_v49 = vand.u32 4294901760, %v12675_v15  ;;  %v12755_v40 = vand.u32 4294901760, %v3880_v25 }
 0x544   :  { %5055 = vmatpush.msra.mxu1 %v5054_v18  ;;  %5194 = vmatpush.msra.mxu2 %v12675_v15  ;;  %v12732_v30 = vpop.f32.mrf.mxu3  ;;  %18324 = vst [vmem:[#allocation57_spill] sm:$0xff] %v12735_v62  ;;  %v18337_v43 = vand.u32 4294901760, %v12744_v58  ;;  %v18342_v55 = vand.u32 4294901760, %v12760_v54 }
 0x545   :  { %18323 = vst [vmem:[#allocation238_spill] sm:$0xff] %v12732_v30  ;;  %4632 = vmatmul.f32.gmra.mxu3 %v12604_v9  ;;  %4950 = vmatpush.msra.mxu0 %v12638_v51  ;;  %v5071_v36 = vsub.f32 %v12675_v15, %v18325_v49  ;;  %v12753_v30 = vand.u32 4294901760, %v12521_v1  ;;  %v5066_v49 = vand.u32 4294901760, %v5065_v11 }
 0x546   :  { %5286 = vmatpush.msra.mxu3 %v12667_v46  ;;  %4521 = vmatmul.f32.gmra.mxu2 %v12716_v4  ;;  %v12748_v18 = vpop.f32.mrf.mxu1  ;;  %v12750_v33 = vpop.f32.mrf.mxu2 }
 0x547   :  { %18326 = vst [vmem:[#allocation58_spill] sm:$0xff] %v12748_v18  ;;  %5061 = vmatpush.msra.mxu1 %v5060_v56  ;;  %5197 = vmatpush.msra.mxu2 %v12695_v13  ;;  %v4527_v56 = vsub.f32 %v12698_v41, %v12735_v62  ;;  %v5072_v11 = vand.u32 4294901760, %v5071_v36  ;;  %v3860_v36 = vld [vmem:[%s17001_s2 + $0x48] sm:$0xff] }
 0x548   :  { %18327 = vst [vmem:[#allocation59_spill] sm:$0xff] %v12750_v33  ;;  %4952 = vmatpush.msra.mxu0 %v12648_v8  ;;  %5288 = vmatpush.msra.mxu3 %v12689_v10  ;;  %v18329_v33 = vand.u32 4294901760, %v12695_v13 }
 0x549   :  { %18328 = vst [vmem:[#allocation70_spill] sm:$0xff] %v12753_v30  ;;  %5067 = vmatpush.msra.mxu1 %v5066_v49  ;;  %5200 = vmatpush.msra.mxu2 %v12724_v38  ;;  %v12784_v49 = vsub.f32 %v3880_v25, %v12755_v40  ;;  %v12799_v44 = vand.u32 4294901760, %v4527_v56 }
 0x54a   :  { %v5077_v18 = vsub.f32 %v12695_v13, %v18329_v33  ;;  %4385 = vmatmul.f32.gmra.mxu0 %v12316_v26  ;;  %5290 = vmatpush.msra.mxu3 %v12709_v60  ;;  %v12777_v4 = vpop.f32.mrf.mxu0  ;;  %v12781_v33 = vsub.f32 %v12521_v1, %v12753_v30  ;;  %v12810_v1 = vsub.f32 %v12492_v27, %v12772_v28  ;;  %v5084_v27 = vand.u32 4294901760, %v5083_v22 }
 0x54b   :  { %18330 = vst [vmem:[#allocation61_spill] sm:$0xff] %v12777_v4  ;;  %4954 = vmatpush.msra.mxu0 %v12667_v46  ;;  %5073 = vmatpush.msra.mxu1 %v5072_v11  ;;  %v12794_v4 = vand.u32 4294901760, %v12463_v0  ;;  %v5089_v11 = vsub.f32 %v12744_v58, %v18337_v43  ;;  %v12823_v43 = vand.u32 4294901760, %v12784_v49 }
 0x54c   :  { %18331 = vst [vmem:[#allocation62_spill] sm:$0xff] %v12781_v33  ;;  %5203 = vmatpush.msra.mxu2 %v12744_v58  ;;  %5292 = vmatpush.msra.mxu3 %v12727_v2  ;;  %v5078_v25 = vand.u32 4294901760, %v5077_v18  ;;  %v12801_v3 = vpop.f32.mrf.mxu3  ;;  %v3883_v18 = vsel %vm3869_vm2, %v3860_v36, 0  ;;  %v5095_v36 = vsub.f32 %v12760_v54, %v18342_v55  ;;  %v12844_v55 = vsub.f32 %v12435_v47, %v12813_v45  ;;  %v3862_v47 = vld [vmem:[%s17001_s2 + $0x58] sm:$0xff] }
 0x54d   :  { %18332 = vst [vmem:[#allocation63_spill] sm:$0xff] %v12784_v49  ;;  %4956 = vmatpush.msra.mxu0 %v12689_v10  ;;  %4454 = vmatmul.f32.gmra.mxu1 %v12316_v26  ;;  %v12837_v26 = vand.u32 4294901760, %v12399_v6  ;;  %v5090_v22 = vand.u32 4294901760, %v5089_v11  ;;  %v12857_v11 = vand.u32 4294901760, %v12357_v21 }
 0x54e   :  { %18334 = vst [vmem:[#allocation75_spill] sm:$0xff] %v12794_v4  ;;  %5079 = vmatpush.msra.mxu1 %v5078_v25  ;;  %5206 = vmatpush.msra.mxu2 %v12760_v54  ;;  %v12817_v56 = vpop.f32.mrf.mxu1  ;;  %v12832_v25 = vsub.f32 %v12463_v0, %v12794_v4  ;;  %v5096_v0 = vand.u32 4294901760, %v5095_v36  ;;  %v18348_v36 = vand.u32 4294901760, %v12810_v1 }
 0x54f   :  { %18335 = vst [vmem:[#allocation65_spill] sm:$0xff] %v12799_v44  ;;  %4636 = vmatmul.f32.gmra.mxu3 %v12669_v61  ;;  %4958 = vmatpush.msra.mxu0 %v12709_v60 }
 0x550   :  { %18336 = vst [vmem:[#allocation66_spill] sm:$0xff] %v12801_v3  ;;  %v12819_v3 = vpop.f32.mrf.mxu2  ;;  %5294 = vmatpush.msra.mxu3 %v12753_v30  ;;  %4529 = vmatmul.f32.gmra.mxu2 %v12799_v44 }
 0x551   :  { %18339 = vst [vmem:[#allocation80_spill] sm:$0xff] %v12817_v56  ;;  %5085 = vmatpush.msra.mxu1 %v5084_v27  ;;  %5209 = vmatpush.msra.mxu2 %v12781_v33  ;;  %v18343_v56 = vand.u32 4294901760, %v12781_v33  ;;  %v4535_v27 = vsub.f32 %v12784_v49, %v12823_v43 }
 0x552   :  { %18340 = vst [vmem:[#allocation69_spill] sm:$0xff] %v12819_v3  ;;  %v12839_v3 = vand.u32 4294901760, %v3883_v18  ;;  %4960 = vmatpush.msra.mxu0 %v12727_v2  ;;  %5296 = vmatpush.msra.mxu3 %v12772_v28  ;;  %v12852_v62 = vpop.f32.mrf.mxu0  ;;  %v5107_v2 = vsub.f32 %v12810_v1, %v18348_v36  ;;  %v12897_v36 = vand.u32 4294901760, %v12301_v12 }
 0x553   :  { %18341 = vst [vmem:[#allocation71_spill] sm:$0xff] %v12823_v43  ;;  %v5101_v44 = vsub.f32 %v12781_v33, %v18343_v56  ;;  %5091 = vmatpush.msra.mxu1 %v5090_v22  ;;  %5212 = vmatpush.msra.mxu2 %v12810_v1  ;;  %v12865_v56 = vand.u32 4294901760, %v12324_v39  ;;  %v3886_v33 = vsel %vm3869_vm2, %v3862_v47, 0  ;;  %v18352_v47 = vand.u32 4294901760, %v12832_v25 }
 0x554   :  { %18344 = vst [vmem:[#allocation72_spill] sm:$0xff] %v12852_v62  ;;  %4389 = vmatmul.f32.gmra.mxu0 %v12348_v29  ;;  %5298 = vmatpush.msra.mxu3 %v12794_v4  ;;  %v12871_v62 = vsub.f32 %v12399_v6, %v12837_v26  ;;  %v12873_v43 = vpop.f32.mrf.mxu3  ;;  %v12876_v22 = vsub.f32 %v3883_v18, %v12839_v3 }
 0x555   :  { %18345 = vst [vmem:[#allocation85_spill] sm:$0xff] %v12865_v56  ;;  %4962 = vmatpush.msra.mxu0 %v12753_v30  ;;  %5097 = vmatpush.msra.mxu1 %v5096_v0  ;;  %v5102_v6 = vand.u32 4294901760, %v5101_v44  ;;  %v12890_v18 = vsub.f32 %v12357_v21, %v12857_v11  ;;  %v5113_v44 = vsub.f32 %v12832_v25, %v18352_v47  ;;  %v18355_v47 = vand.u32 4294901760, %v12844_v55 }
 0x556   :  { %18346 = vst [vmem:[#allocation74_spill] sm:$0xff] %v12873_v43  ;;  %5215 = vmatpush.msra.mxu2 %v12832_v25  ;;  %5300 = vmatpush.msra.mxu3 %v12813_v45  ;;  %v12886_v43 = vand.u32 4294901760, %v4535_v27  ;;  %v12892_v0 = vpop.f32.mrf.mxu1  ;;  %v12906_v27 = vsub.f32 %v12324_v39, %v12865_v56  ;;  %v12911_v49 = vand.u32 4294901760, %v12876_v22 }
 0x557   :  { %18347 = vst [vmem:[#allocation76_spill] sm:$0xff] %v12876_v22  ;;  %4964 = vmatpush.msra.mxu0 %v12772_v28  ;;  %4458 = vmatmul.f32.gmra.mxu1 %v12348_v29  ;;  %v5119_v39 = vsub.f32 %v12844_v55, %v18355_v47  ;;  %v5114_v47 = vand.u32 4294901760, %v5113_v44 }
 0x558   :  { %18349 = vst [vmem:[#allocation77_spill] sm:$0xff] %v12886_v43  ;;  %v12894_v30 = vpop.f32.mrf.mxu2  ;;  %5103 = vmatpush.msra.mxu1 %v5102_v6  ;;  %5218 = vmatpush.msra.mxu2 %v12844_v55  ;;  %v12924_v6 = vsub.f32 %v12301_v12, %v12897_v36  ;;  %v18357_v12 = vand.u32 4294901760, %v12871_v62  ;;  %v4543_v29 = vsub.f32 %v12876_v22, %v12911_v49 }
 0x559   :  { %18350 = vst [vmem:[#allocation90_spill] sm:$0xff] %v12892_v0  ;;  %4640 = vmatmul.f32.gmra.mxu3 %v12755_v40  ;;  %4966 = vmatpush.msra.mxu0 %v12794_v4  ;;  %v5108_v0 = vand.u32 4294901760, %v5107_v2  ;;  %v3864_v2 = vld [vmem:[%s17001_s2 + $0x68] sm:$0xff]  ;;  %v5120_v44 = vand.u32 4294901760, %v5119_v39  ;;  %v18363_v39 = vand.u32 4294901760, %v12906_v27 }
 0x55a   :  { %18351 = vst [vmem:[#allocation79_spill] sm:$0xff] %v12894_v30  ;;  %v12913_v30 = vand.u32 4294901760, %v3886_v33  ;;  %5302 = vmatpush.msra.mxu3 %v12837_v26  ;;  %4537 = vmatmul.f32.gmra.mxu2 %v12886_v43  ;;  %v12926_v21 = vpop.f32.mrf.mxu0  ;;  %v3889_v4 = vsel %vm3869_vm2, %v3864_v2, 0  ;;  %v12964_v22 = vand.u32 4294901760, %v4543_v29  ;;  %v3866_v29 = vld [vmem:[%s17001_s2 + $0x78] sm:$0xff] }
 0x55b   :  { %18353 = vst [vmem:[#allocation81_spill] sm:$0xff] %v12911_v49  ;;  %5109 = vmatpush.msra.mxu1 %v5108_v0  ;;  %5221 = vmatpush.msra.mxu2 %v12871_v62  ;;  %v5137_v2 = vsub.f32 %v12906_v27, %v18363_v39  ;;  %v18367_v39 = vand.u32 4294901760, %v12924_v6 }
 0x55c   :  { %18354 = vst [vmem:[#allocation82_spill] sm:$0xff] %v12913_v30  ;;  %4968 = vmatpush.msra.mxu0 %v12813_v45  ;;  %5304 = vmatpush.msra.mxu3 %v12857_v11  ;;  %v12941_v43 = vpop.f32.mrf.mxu3  ;;  %v12944_v0 = vsub.f32 %v3886_v33, %v12913_v30 }
 0x55d   :  { %18356 = vst [vmem:[#allocation84_spill] sm:$0xff] %v12926_v21  ;;  %v5125_v21 = vsub.f32 %v12871_v62, %v18357_v12  ;;  %5115 = vmatpush.msra.mxu1 %v5114_v47  ;;  %5224 = vmatpush.msra.mxu2 %v12890_v18  ;;  %v18360_v12 = vand.u32 4294901760, %v12890_v18 }
 0x55e   :  { %18358 = vst [vmem:[#allocation95_spill] sm:$0xff] %v12941_v43  ;;  %4393 = vmatmul.f32.gmra.mxu0 %v12389_v32  ;;  %5306 = vmatpush.msra.mxu3 %v12865_v56  ;;  %v12953_v49 = vpop.f32.mrf.mxu1  ;;  %v12969_v43 = vand.u32 4294901760, %v3889_v4 }
 0x55f   :  { %18359 = vst [vmem:[#allocation86_spill] sm:$0xff] %v12944_v0  ;;  %v5131_v45 = vsub.f32 %v12890_v18, %v18360_v12  ;;  %4970 = vmatpush.msra.mxu0 %v12837_v26  ;;  %5121 = vmatpush.msra.mxu1 %v5120_v44  ;;  %v5126_v47 = vand.u32 4294901760, %v5125_v21  ;;  %v12967_v12 = vand.u32 4294901760, %v12944_v0 }
 0x560   :  { %18361 = vst [vmem:[#allocation87_spill] sm:$0xff] %v12953_v49  ;;  %v12956_v33 = vpop.f32.mrf.mxu2  ;;  %5227 = vmatpush.msra.mxu2 %v12906_v27  ;;  %5308 = vmatpush.msra.mxu3 %v12897_v36 }
 0x561   :  { %18362 = vst [vmem:[#allocation89_spill] sm:$0xff] %v12956_v33  ;;  %4972 = vmatpush.msra.mxu0 %v12857_v11  ;;  %4462 = vmatmul.f32.gmra.mxu1 %v12389_v32  ;;  %v5132_v44 = vand.u32 4294901760, %v5131_v45  ;;  %v5143_v33 = vsub.f32 %v12924_v6, %v18367_v39  ;;  %v4551_v45 = vsub.f32 %v12944_v0, %v12967_v12 }
 0x562   :  { %18364 = vst [vmem:[#allocation100_spill] sm:$0xff] %v12964_v22  ;;  %5127 = vmatpush.msra.mxu1 %v5126_v47  ;;  %5230 = vmatpush.msra.mxu2 %v12924_v6  ;;  %v12977_v21 = vpop.f32.mrf.mxu0  ;;  %v5138_v47 = vand.u32 4294901760, %v5137_v2  ;;  %v12990_v39 = vsub.f32 %v3889_v4, %v12969_v43 }
 0x563   :  { %18365 = vst [vmem:[#allocation91_spill] sm:$0xff] %v12967_v12  ;;  %4644 = vmatmul.f32.gmra.mxu3 %v12839_v3  ;;  %4974 = vmatpush.msra.mxu0 %v12865_v56  ;;  %v5144_v32 = vand.u32 4294901760, %v5143_v33  ;;  %v12999_v2 = vand.u32 4294901760, %v4551_v45  ;;  %v3868_v33 = vld [vmem:[%s17001_s2 + $0x88] sm:$0xff] }
 0x564   :  { %18366 = vst [vmem:[#allocation92_spill] sm:$0xff] %v12969_v43  ;;  %4545 = vmatmul.f32.gmra.mxu2 %v12964_v22  ;;  %5133 = vmatpush.msra.mxu1 %v5132_v44  ;;  %v12987_v49 = vpop.f32.mrf.mxu3  ;;  %v3895_v45 = vsel %vm3869_vm2, %v3868_v33, 0 }
 0x565   :  { %18368 = vst [vmem:[#allocation94_spill] sm:$0xff] %v12977_v21  ;;  %4976 = vmatpush.msra.mxu0 %v12897_v36  ;;  %v3892_v21 = vsel %vm3869_vm2, %v3866_v29, 0 }
 0x566   :  { %18369 = vst [vmem:[#allocation96_spill] sm:$0xff] %v12987_v49  ;;  %5139 = vmatpush.msra.mxu1 %v5138_v47  ;;  %4397 = vmatmul.f32.gmra.mxu0 %v12429_v42  ;;  %v12995_v56 = vpop.f32.mrf.mxu1  ;;  %v13002_v49 = vand.u32 4294901760, %v12990_v39  ;;  %v13004_v4 = vand.u32 4294901760, %v3892_v21 }
 0x567   :  { %18370 = vst [vmem:[#allocation97_spill] sm:$0xff] %v12990_v39 }
 0x568   :  { %18371 = vst [vmem:[#allocation105_spill] sm:$0xff] %v12995_v56  ;;  %v12997_v44 = vpop.f32.mrf.mxu2  ;;  %5145 = vmatpush.msra.mxu1 %v5144_v32  ;;  %v4559_v32 = vsub.f32 %v12990_v39, %v13002_v49  ;;  %v13019_v47 = vsub.f32 %v3892_v21, %v13004_v4 }
 0x569   :  { %18372 = vst [vmem:[#allocation99_spill] sm:$0xff] %v12997_v44  ;;  %4466 = vmatmul.f32.gmra.mxu1 %v12429_v42  ;;  %v13032_v42 = vand.u32 4294901760, %v3895_v45 }
 0x56a   :  { %18373 = vst [vmem:[#allocation101_spill] sm:$0xff] %v12999_v2  ;;  %v13007_v22 = vpop.f32.mrf.mxu0  ;;  %v13027_v56 = vand.u32 4294901760, %v4559_v32 }
 0x56b   :  { %18374 = vst [vmem:[#allocation102_spill] sm:$0xff] %v13002_v49  ;;  %4648 = vmatmul.f32.gmra.mxu3 %v12913_v30  ;;  %v13044_v32 = vsub.f32 %v3895_v45, %v13032_v42  ;;  %v13062_v45 = vand.u32 4294901760, %v12589_v17 }
 0x56c   :  { %18375 = vst [vmem:[#allocation110_spill] sm:$0xff] %v13004_v4  ;;  %4553 = vmatmul.f32.gmra.mxu2 %v12999_v2  ;;  %v13016_v29 = vpop.f32.mrf.mxu3  ;;  %v13030_v2 = vand.u32 4294901760, %v13019_v47 }
 0x56d   :  { %18376 = vst [vmem:[#allocation104_spill] sm:$0xff] %v13007_v22 }
 0x56e   :  { %18377 = vst [vmem:[#allocation106_spill] sm:$0xff] %v13016_v29  ;;  %4401 = vmatmul.f32.gmra.mxu0 %v12458_v37  ;;  %v13023_v44 = vpop.f32.mrf.mxu1  ;;  %v4567_v33 = vsub.f32 %v13019_v47, %v13030_v2 }
 0x56f   :  { %18378 = vst [vmem:[#allocation107_spill] sm:$0xff] %v13019_v47 }
 0x570   :  { %18379 = vst [vmem:[#allocation115_spill] sm:$0xff] %v13023_v44  ;;  %v13025_v22 = vpop.f32.mrf.mxu2 }
 0x571   :  { %18380 = vst [vmem:[#allocation109_spill] sm:$0xff] %v13025_v22  ;;  %4470 = vmatmul.f32.gmra.mxu1 %v12458_v37  ;;  %v13051_v37 = vand.u32 4294901760, %v4567_v33 }
 0x572   :  { %18381 = vst [vmem:[#allocation111_spill] sm:$0xff] %v13027_v56  ;;  %v13036_v21 = vpop.f32.mrf.mxu0 }
 0x573   :  { %18382 = vst [vmem:[#allocation112_spill] sm:$0xff] %v13030_v2  ;;  %4652 = vmatmul.f32.gmra.mxu3 %v12969_v43 }
 0x574   :  { %18383 = vst [vmem:[#allocation120_spill] sm:$0xff] %v13032_v42  ;;  %4561 = vmatmul.f32.gmra.mxu2 %v13027_v56  ;;  %v13041_v29 = vpop.f32.mrf.mxu3  ;;  %v13058_v56 = vand.u32 4294901760, %v12635_v20 }
 0x575   :  { %18384 = vst [vmem:[#allocation114_spill] sm:$0xff] %v13036_v21  ;;  %v13054_v21 = vand.u32 4294901760, %v13044_v32 }
 0x576   :  { %18385 = vst [vmem:[#allocation116_spill] sm:$0xff] %v13041_v29  ;;  %4405 = vmatmul.f32.gmra.mxu0 %v12487_v63  ;;  %v13047_v22 = vpop.f32.mrf.mxu1 }
 0x577   :  { %18386 = vst [vmem:[#allocation117_spill] sm:$0xff] %v13044_v32  ;;  %v4575_v29 = vsub.f32 %v13044_v32, %v13054_v21 }
 0x578   :  { %18387 = vst [vmem:[#allocation125_spill] sm:$0xff] %v13047_v22  ;;  %v13049_v44 = vpop.f32.mrf.mxu2  ;;  %v13074_v22 = vsub.f32 %v12635_v20, %v13058_v56 }
 0x579   :  { %18388 = vst [vmem:[#allocation119_spill] sm:$0xff] %v13049_v44  ;;  %4474 = vmatmul.f32.gmra.mxu1 %v12487_v63  ;;  %v13070_v44 = vand.u32 4294901760, %v12557_v57 }
 0x57a   :  { %18389 = vst [vmem:[#allocation121_spill] sm:$0xff] %v13051_v37 }
 0x57b   :  { %18390 = vst [vmem:[#allocation122_spill] sm:$0xff] %v13054_v21  ;;  %4656 = vmatmul.f32.gmra.mxu3 %v13004_v4  ;;  %v13090_v21 = vand.u32 4294901760, %v4575_v29  ;;  %v13095_v20 = vsub.f32 %v12557_v57, %v13070_v44  ;;  %v13109_v29 = vand.u32 4294901760, %v12466_v23 }
 0x57c   :  { %4569 = vmatmul.f32.gmra.mxu2 %v13051_v37  ;;  %18392 = vst [vmem:[#allocation124_spill] sm:$0xff] %v13074_v22  ;;  %v13084_v37 = vand.u32 4294901760, %v12524_v7 }
 0x57d   :  { %v13067_v33 = vpop.f32.mrf.mxu0  ;;  %18396 = vst [vmem:[#allocation129_spill] sm:$0xff] %v13090_v21  ;;  %v17361_v32 = vand.u32 4294901760, %v13095_v20 }
 0x57e   :  { %18391 = vst [vmem:[#allocation130_spill] sm:$0xff] %v13067_v33  ;;  %4409 = vmatmul.f32.gmra.mxu0 %v12516_v19  ;;  %v13077_v63 = vpop.f32.mrf.mxu3  ;;  %v13088_v33 = vsub.f32 %v12589_v17, %v13062_v45 }
 0x57f   :  { %18393 = vst [vmem:[#allocation126_spill] sm:$0xff] %v13077_v63  ;;  %v13079_v2 = vpop.f32.mrf.mxu1  ;;  %v17356_v63 = vand.u32 4294901760, %v13074_v22 }
 0x580   :  { %18394 = vst [vmem:[#allocation127_spill] sm:$0xff] %v13079_v2  ;;  %v13081_v47 = vpop.f32.mrf.mxu2  ;;  %v13099_v2 = vand.u32 4294901760, %v12495_v34 }
 0x581   :  { %18395 = vst [vmem:[#allocation135_spill] sm:$0xff] %v13081_v47  ;;  %4478 = vmatmul.f32.gmra.mxu1 %v12516_v19  ;;  %v13104_v47 = vsub.f32 %v12524_v7, %v13084_v37  ;;  %v5642_v19 = vsub.f32 %v13074_v22, %v17356_v63  ;;  %v13134_v63 = vsub.f32 %v12466_v23, %v13109_v29 }
 0x582   :  { %v13120_v7 = vsub.f32 %v12495_v34, %v13099_v2  ;;  %v5654_v22 = vsub.f32 %v13095_v20, %v17361_v32 }
 0x583   :  { %4660 = vmatmul.f32.gmra.mxu3 %v13032_v42  ;;  %18397 = vst [vmem:[#allocation131_spill] sm:$0xff] %v13104_v47  ;;  %v18400_v42 = vand.u32 4294901760, %v13088_v33  ;;  %v17362_v4 = vand.u32 4294901760, %v13104_v47  ;;  %v5643_v34 = vand.u32 4294901760, %v5642_v19 }
 0x584   :  { %4577 = vmatmul.f32.gmra.mxu2 %v13090_v21  ;;  %v5655_v32 = vand.u32 4294901760, %v5654_v22  ;;  %v18402_v22 = vand.u32 4294901760, %v12645_v14 }
 0x585   :  { %v13111_v57 = vpop.f32.mrf.mxu0  ;;  %v5660_v23 = vsub.f32 %v13104_v47, %v17362_v4 }
 0x586   :  { %18398 = vst [vmem:[#allocation132_spill] sm:$0xff] %v13111_v57  ;;  %4413 = vmatmul.f32.gmra.mxu0 %v12548_v5  ;;  %v5648_v57 = vsub.f32 %v13088_v33, %v18400_v42 }
 0x587   :  { %v13122_v21 = vpop.f32.mrf.mxu1  ;;  %v13130_v49 = vpop.f32.mrf.mxu3  ;;  %v5661_v47 = vand.u32 4294901760, %v5660_v23  ;;  %v18404_v23 = vand.u32 4294901760, %v12660_v31 }
 0x588   :  { %v13124_v17 = vpop.f32.mrf.mxu2  ;;  %v5649_v42 = vand.u32 4294901760, %v5648_v57 }
 0x589   :  { %18399 = vst [vmem:[#allocation140_spill] sm:$0xff] %v13124_v17  ;;  %4482 = vmatmul.f32.gmra.mxu1 %v12548_v5  ;;  %v17367_v17 = vand.u32 4294901760, %v13120_v7 }
 0x58b   :  { %4909 = vmatmul.f32.vlgmr.msrb.gmra.mxu3 %v12565_v59  ;;  %v5666_v57 = vsub.f32 %v13120_v7, %v17367_v17 }
 0x58c   :  { %5644 = vmatpush.msrb.mxu3 %v5643_v34  ;;  %4850 = vmatmul.f32.vlgmr.msrb.gmra.mxu2 %v12565_v59  ;;  %v18401_v34 = vand.u32 4294901760, %v12625_v24  ;;  %v18403_v24 = vand.u32 4294901760, %v13134_v63 }
 0x58d   :  { %5545 = vmatpush.msrb.mxu2 %v13058_v56  ;;  %v13147_v5 = vpop.f32.mrf.mxu0 }
 0x58e   :  { %5650 = vmatpush.msrb.mxu3 %v5649_v42  ;;  %4694 = vmatmul.f32.vlgmr.msrb.gmra.mxu0 %v12578_v16  ;;  %v5672_v42 = vsub.f32 %v13134_v63, %v18403_v24  ;;  %v18410_v24 = vld [vmem:[#allocation62_spill] sm:$0xff] }
 0x58f   :  { %5547 = vmatpush.msrb.mxu2 %v13062_v45  ;;  %5367 = vmatpush.msrb.mxu0 %v18401_v34  ;;  %v13157_v4 = vpop.f32.mrf.mxu1  ;;  %v13161_v19 = vpop.f32.mrf.mxu3  ;;  %v18438_v16 = vld [vmem:[#allocation14_spill] sm:$0xff] }
 0x590   :  { %v13159_v59 = vpop.f32.mrf.mxu2  ;;  %5656 = vmatpush.msrb.mxu3 %v5655_v32  ;;  %v5667_v32 = vand.u32 4294901760, %v5666_v57  ;;  %v5673_v14 = vand.u32 4294901760, %v5672_v42  ;;  %v18411_v42 = vand.u32 4294901760, %v18410_v24  ;;  %v18422_v24 = vld [vmem:[#allocation71_spill] sm:$0xff] }
 0x591   :  { %5549 = vmatpush.msrb.mxu2 %v13070_v44  ;;  %5371 = vmatpush.msrb.mxu0 %v18402_v22  ;;  %v18408_v22 = vand.u32 4294901760, %v12744_v58  ;;  %v18412_v58 = vld [vmem:[#allocation56_spill] sm:$0xff] }
 0x592   :  { %5662 = vmatpush.msrb.mxu3 %v5661_v47  ;;  %4763 = vmatmul.f32.vlgmr.msrb.gmra.mxu1 %v12596_v52 }
 0x593   :  { %5466 = vmatpush.msrb.mxu1 %v12602_v48  ;;  %5551 = vmatpush.msrb.mxu2 %v13084_v37  ;;  %v18405_v48 = vand.u32 4294901760, %v12675_v15  ;;  %v18407_v15 = vand.u32 4294901760, %v12724_v38  ;;  %v18409_v38 = vand.u32 4294901760, %v12760_v54  ;;  %v18416_v54 = vand.u32 4294901760, %v12832_v25  ;;  %v18421_v25 = vld [vmem:[#allocation67_spill] sm:$0xff] }
 0x594   :  { %4913 = vmatmul.f32.gmra.mxu3 %v12604_v9  ;;  %5375 = vmatpush.msrb.mxu0 %v18404_v23  ;;  %v18415_v23 = vld [vmem:[#allocation70_spill] sm:$0xff] }
 0x595   :  { %5668 = vmatpush.msrb.mxu3 %v5667_v32  ;;  %4854 = vmatmul.f32.gmra.mxu2 %v12604_v9  ;;  %v13176_v34 = vpop.f32.mrf.mxu0  ;;  %v18413_v32 = vld [vmem:[#allocation57_spill] sm:$0xff] }
 0x596   :  { %5468 = vmatpush.msrb.mxu1 %v12617_v35  ;;  %5553 = vmatpush.msrb.mxu2 %v13099_v2  ;;  %v18406_v35 = vand.u32 4294901760, %v12695_v13 }
 0x597   :  { %5379 = vmatpush.msrb.mxu0 %v18405_v48  ;;  %5674 = vmatpush.msrb.mxu3 %v5673_v14  ;;  %v13182_v47 = vpop.f32.mrf.mxu1  ;;  %v13188_v31 = vpop.f32.mrf.mxu3 }
 0x598   :  { %v13184_v57 = vpop.f32.mrf.mxu2  ;;  %5470 = vmatpush.msrb.mxu1 %v12638_v51  ;;  %5555 = vmatpush.msrb.mxu2 %v13109_v29 }
 0x599   :  { %4699 = vmatmul.f32.gmra.mxu0 %v12628_v53  ;;  %v18437_v53 = vld [vmem:[#allocation122_spill] sm:$0xff] }
 0x59a   :  { %5383 = vmatpush.msrb.mxu0 %v18406_v35  ;;  %5472 = vmatpush.msrb.mxu1 %v12648_v8  ;;  %v18418_v35 = vld [vmem:[#allocation75_spill] sm:$0xff] }
 0x59b   :  { %4769 = vmatmul.f32.gmra.mxu1 %v12656_v50 }
 0x59c   :  { %5387 = vmatpush.msrb.mxu0 %v18407_v15  ;;  %5474 = vmatpush.msrb.mxu1 %v12667_v46 }
 0x59d   :  { %4917 = vmatmul.f32.gmra.mxu3 %v12669_v61  ;;  %4858 = vmatmul.f32.gmra.mxu2 %v12669_v61  ;;  %v13200_v51 = vpop.f32.mrf.mxu0 }
 0x59e   :  { %5391 = vmatpush.msrb.mxu0 %v18408_v22  ;;  %5476 = vmatpush.msrb.mxu1 %v12689_v10  ;;  %v18414_v10 = vand.u32 4294901760, %v12810_v1  ;;  %v18417_v1 = vand.u32 4294901760, %v12844_v55  ;;  %v18419_v22 = vld [vmem:[#allocation63_spill] sm:$0xff] }
 0x59f   :  { %v13205_v13 = vpop.f32.mrf.mxu1  ;;  %v13212_v46 = vpop.f32.mrf.mxu3 }
 0x5a0   :  { %v13207_v8 = vpop.f32.mrf.mxu2  ;;  %5395 = vmatpush.msrb.mxu0 %v18409_v38  ;;  %5478 = vmatpush.msrb.mxu1 %v12709_v60  ;;  %v18420_v38 = vand.u32 4294901760, %v12871_v62 }
 0x5a1   :  { %4704 = vmatmul.f32.gmra.mxu0 %v12698_v41  ;;  %v18436_v41 = vld [vmem:[#allocation117_spill] sm:$0xff] }
 0x5a2   :  { %5399 = vmatpush.msrb.mxu0 %v18411_v42  ;;  %5480 = vmatpush.msrb.mxu1 %v18412_v58  ;;  %v18424_v42 = vand.u32 4294901760, %v12906_v27 }
 0x5a3   :  { %4775 = vmatmul.f32.gmra.mxu1 %v18413_v32 }
 0x5a4   :  { %5403 = vmatpush.msrb.mxu0 %v18414_v10  ;;  %5482 = vmatpush.msrb.mxu1 %v18415_v23  ;;  %v18426_v10 = vld [vmem:[#allocation85_spill] sm:$0xff]  ;;  %v18427_v23 = vld [vmem:[#allocation76_spill] sm:$0xff] }
 0x5a5   :  { %4921 = vmatmul.f32.gmra.mxu3 %v12755_v40  ;;  %4862 = vmatmul.f32.gmra.mxu2 %v12755_v40  ;;  %v13224_v60 = vpop.f32.mrf.mxu0 }
 0x5a6   :  { %5407 = vmatpush.msrb.mxu0 %v18416_v54  ;;  %5484 = vmatpush.msrb.mxu1 %v12772_v28  ;;  %v18423_v28 = vand.u32 4294901760, %v12890_v18  ;;  %v18425_v18 = vand.u32 4294901760, %v12924_v6  ;;  %v18428_v54 = vld [vmem:[#allocation81_spill] sm:$0xff] }
 0x5a7   :  { %v13229_v14 = vpop.f32.mrf.mxu1  ;;  %v13236_v15 = vpop.f32.mrf.mxu3 }
 0x5a8   :  { %v13231_v48 = vpop.f32.mrf.mxu2  ;;  %5411 = vmatpush.msrb.mxu0 %v18417_v1  ;;  %5486 = vmatpush.msrb.mxu1 %v18418_v35 }
 0x5a9   :  { %4709 = vmatmul.f32.gmra.mxu0 %v18419_v22  ;;  %v18435_v22 = vld [vmem:[#allocation120_spill] sm:$0xff] }
 0x5aa   :  { %5415 = vmatpush.msrb.mxu0 %v18420_v38  ;;  %5488 = vmatpush.msrb.mxu1 %v18421_v25 }
 0x5ab   :  { %4781 = vmatmul.f32.gmra.mxu1 %v18422_v24 }
 0x5ac   :  { %5419 = vmatpush.msrb.mxu0 %v18423_v28  ;;  %5490 = vmatpush.msrb.mxu1 %v12837_v26  ;;  %v18429_v28 = vld [vmem:[#allocation102_spill] sm:$0xff] }
 0x5ad   :  { %4925 = vmatmul.f32.gmra.mxu3 %v12839_v3  ;;  %4866 = vmatmul.f32.gmra.mxu2 %v12839_v3  ;;  %v13248_v55 = vpop.f32.mrf.mxu0 }
 0x5ae   :  { %5423 = vmatpush.msrb.mxu0 %v18424_v42  ;;  %5492 = vmatpush.msrb.mxu1 %v12857_v11  ;;  %v18430_v42 = vld [vmem:[#allocation110_spill] sm:$0xff] }
 0x5af   :  { %v13253_v62 = vpop.f32.mrf.mxu1  ;;  %v13260_v26 = vpop.f32.mrf.mxu3 }
 0x5b0   :  { %v13255_v58 = vpop.f32.mrf.mxu2  ;;  %5427 = vmatpush.msrb.mxu0 %v18425_v18  ;;  %5494 = vmatpush.msrb.mxu1 %v18426_v10  ;;  %v18431_v10 = vld [vmem:[#allocation132_spill] sm:$0xff] }
 0x5b1   :  { %4714 = vmatmul.f32.gmra.mxu0 %v18427_v23  ;;  %v4109_v17 = vadd.f32 %v13122_v21, %v18431_v10  ;;  %v4113_v10 = vadd.f32 %v13157_v4, %v13147_v5  ;;  %v18442_v5 = vand.u32 4294901760, %v13088_v33  ;;  %v18443_v4 = vld [vmem:[#allocation16_spill] sm:$0xff] }
 0x5b2   :  { %5496 = vmatpush.msrb.mxu1 %v12897_v36 }
 0x5b3   :  { %4787 = vmatmul.f32.gmra.mxu1 %v18428_v54 }
 0x5b5   :  { %4929 = vmatmul.f32.gmra.mxu3 %v12913_v30  ;;  %4870 = vmatmul.f32.gmra.mxu2 %v12913_v30  ;;  %v13267_v11 = vpop.f32.mrf.mxu0 }
 0x5b7   :  { %v13269_v27 = vpop.f32.mrf.mxu1  ;;  %v13273_v1 = vpop.f32.mrf.mxu3 }
 0x5b8   :  { %v13271_v6 = vpop.f32.mrf.mxu2 }
 0x5b9   :  { %4719 = vmatmul.f32.gmra.mxu0 %v12944_v0  ;;  %v18432_v0 = vld [vmem:[#allocation107_spill] sm:$0xff] }
 0x5bb   :  { %4793 = vmatmul.f32.gmra.mxu1 %v12967_v12 }
 0x5bd   :  { %4933 = vmatmul.f32.gmra.mxu3 %v12969_v43  ;;  %4874 = vmatmul.f32.gmra.mxu2 %v12969_v43  ;;  %v13279_v36 = vpop.f32.mrf.mxu0 }
 0x5bf   :  { %v13283_v38 = vpop.f32.mrf.mxu1  ;;  %v13285_v25 = vpop.f32.mrf.mxu3 }
 0x5c0   :  { %v13281_v35 = vpop.f32.mrf.mxu2 }
 0x5c1   :  { %4724 = vmatmul.f32.gmra.mxu0 %v12990_v39  ;;  %v18433_v39 = vld [vmem:[#allocation112_spill] sm:$0xff] }
 0x5c3   :  { %4799 = vmatmul.f32.gmra.mxu1 %v18429_v28  ;;  %v18434_v28 = vld [vmem:[#allocation140_spill] sm:$0xff] }
 0x5c4   :  { %v4197_v24 = vadd.f32 %v18434_v28, %v4109_v17  ;;  %v18439_v17 = vld [vmem:[#allocation13_spill] sm:$0xff] }
 0x5c5   :  { %4937 = vmatmul.f32.gmra.mxu3 %v18430_v42  ;;  %4878 = vmatmul.f32.gmra.mxu2 %v18430_v42 }
 0x5c6   :  { %v4278_v32 = vadd.f32 %v13130_v49, %v4197_v24  ;;  %v18440_v49 = vld [vmem:[#allocation124_spill] sm:$0xff] }
 0x5c7   :  { %v13291_v18 = vpop.f32.mrf.mxu0  ;;  %v18441_v24 = vand.u32 4294901760, %v18440_v49 }
 0x5c8   :  { %v13295_v12 = vpop.f32.mrf.mxu3 }
 0x5c9   :  { %4729 = vmatmul.f32.gmra.mxu0 %v18432_v0  ;;  %v13298_v54 = vpop.f32.mrf.mxu2 }
 0x5ca   :  { %v13300_v23 = vpop.f32.mrf.mxu1 }
 0x5cb   :  { %4805 = vmatmul.f32.gmra.mxu1 %v18433_v39 }
 0x5cd   :  { %4941 = vmatmul.f32.gmra.mxu3 %v18435_v22  ;;  %4882 = vmatmul.f32.gmra.mxu2 %v18435_v22  ;;  %v4202_v22 = vadd.f32 %v13159_v59, %v4113_v10  ;;  %v4117_v59 = vadd.f32 %v13182_v47, %v13176_v34 }
 0x5d1   :  { %4734 = vmatmul.f32.gmra.mxu0 %v18436_v41  ;;  %v4390_v21 = vpop.f32.mrf.mxu0 }
 0x5d2   :  { %v4391_v0 = vadd.f32 %v4390_v21, %v4278_v32  ;;  %v4637_v50 = vpop.f32.mrf.mxu3  ;;  %v18448_v21 = vld [vmem:[#allocation17_spill] sm:$0xff] }
 0x5d3   :  { %4811 = vmatmul.f32.gmra.mxu1 %v18437_v53  ;;  %v4530_v52 = vpop.f32.mrf.mxu2 }
 0x5d4   :  { %v4459_v39 = vpop.f32.mrf.mxu1 }
 0x5d5   :  { %5312 = vmatmul.f32.vlgmr.msra.gmra.mxu3 %v18438_v16  ;;  %5233 = vmatmul.f32.vlgmr.msra.gmra.mxu2 %v18439_v17  ;;  %v4460_v28 = vadd.f32 %v4459_v39, %v4391_v0  ;;  %v4284_v16 = vadd.f32 %v13161_v19, %v4202_v22  ;;  %v18445_v0 = vld [vmem:[#allocation12_spill] sm:$0xff]  ;;  %v18446_v19 = vld [vmem:[#allocation131_spill] sm:$0xff]  ;;  %v4207_v22 = vadd.f32 %v13184_v57, %v4117_v59  ;;  %v18455_v59 = vld [vmem:[#allocation18_spill] sm:$0xff] }
 0x5d6   :  { %5945 = vmatpush.msra.mxu3 %v13058_v56  ;;  %5876 = vmatpush.msra.mxu2 %v18441_v24  ;;  %v18447_v34 = vand.u32 4294901760, %v18446_v19  ;;  %v18452_v24 = vld [vmem:[#allocation19_spill] sm:$0xff] }
 0x5d7   :  { %v4531_v41 = vadd.f32 %v4530_v52, %v4460_v28  ;;  %v18444_v52 = vand.u32 4294901760, %v13095_v20  ;;  %v4290_v28 = vadd.f32 %v13188_v31, %v4207_v22 }
 0x5d8   :  { %5947 = vmatpush.msra.mxu3 %v13062_v45  ;;  %5880 = vmatpush.msra.mxu2 %v18442_v5 }
 0x5d9   :  { %4982 = vmatmul.f32.vlgmr.msra.gmra.mxu0 %v18443_v4  ;;  %v13321_v32 = vadd.f32 %v4637_v50, %v4531_v41 }
 0x5da   :  { %5724 = vmatpush.msra.mxu0 %v18440_v49  ;;  %5949 = vmatpush.msra.mxu3 %v13070_v44  ;;  %v18451_v49 = vand.u32 4294901760, %v13134_v63 }
 0x5db   :  { %5884 = vmatpush.msra.mxu2 %v18444_v52  ;;  %5147 = vmatmul.f32.vlgmr.msra.gmra.mxu1 %v18445_v0  ;;  %v4394_v39 = vpop.f32.mrf.mxu0 }
 0x5dc   :  { %5727 = vmatpush.msra.mxu0 %v13088_v33  ;;  %5951 = vmatpush.msra.mxu3 %v13084_v37  ;;  %v4395_v41 = vadd.f32 %v4394_v39, %v4284_v16  ;;  %v4641_v50 = vpop.f32.mrf.mxu3  ;;  %v18449_v33 = vld [vmem:[#allocation15_spill] sm:$0xff] }
 0x5dd   :  { %5797 = vmatpush.msra.mxu1 %v13058_v56  ;;  %5888 = vmatpush.msra.mxu2 %v18447_v34  ;;  %v4538_v47 = vpop.f32.mrf.mxu2  ;;  %v18450_v56 = vand.u32 4294901760, %v13120_v7 }
 0x5de   :  { %5318 = vmatmul.f32.gmra.mxu3 %v18448_v21  ;;  %5730 = vmatpush.msra.mxu0 %v13095_v20  ;;  %v4463_v10 = vpop.f32.mrf.mxu1  ;;  %v4121_v20 = vadd.f32 %v13205_v13, %v13200_v51  ;;  %v18454_v13 = vld [vmem:[#allocation20_spill] sm:$0xff]  ;;  %v18458_v21 = vld [vmem:[#allocation23_spill] sm:$0xff] }
 0x5df   :  { %5953 = vmatpush.msra.mxu3 %v13099_v2  ;;  %5238 = vmatmul.f32.gmra.mxu2 %v18449_v33  ;;  %v4464_v17 = vadd.f32 %v4463_v10, %v4395_v41  ;;  %v18456_v41 = vld [vmem:[#allocation22_spill] sm:$0xff] }
 0x5e0   :  { %5799 = vmatpush.msra.mxu1 %v13062_v45  ;;  %5892 = vmatpush.msra.mxu2 %v18450_v56  ;;  %v18453_v45 = vld [vmem:[#allocation223_spill] sm:$0xff]  ;;  %v4212_v16 = vadd.f32 %v13207_v8, %v4121_v20  ;;  %v4125_v8 = vadd.f32 %v13229_v14, %v13224_v60  ;;  %v4129_v14 = vadd.f32 %v13253_v62, %v13248_v55  ;;  %v18461_v56 = vld [vmem:[#allocation225_spill] sm:$0xff] }
 0x5e1   :  { %5733 = vmatpush.msra.mxu0 %v18446_v19  ;;  %5955 = vmatpush.msra.mxu3 %v13109_v29  ;;  %v4539_v57 = vadd.f32 %v4538_v47, %v4464_v17  ;;  %v18460_v17 = vld [vmem:[#allocation25_spill] sm:$0xff]  ;;  %v4133_v62 = vadd.f32 %v13269_v27, %v13267_v11 }
 0x5e2   :  { %5801 = vmatpush.msra.mxu1 %v13070_v44  ;;  %5896 = vmatpush.msra.mxu2 %v18451_v49  ;;  %v4217_v34 = vadd.f32 %v13231_v48, %v4125_v8  ;;  %v4222_v20 = vadd.f32 %v13255_v58, %v4129_v14  ;;  %v18466_v8 = vld [vmem:[#allocation30_spill] sm:$0xff]  ;;  %v18468_v27 = vld [vmem:[#allocation33_spill] sm:$0xff] }
 0x5e3   :  { %4990 = vmatmul.f32.gmra.mxu0 %v18452_v24  ;;  %5151 = vmatmul.f32.gmra.mxu1 %v18453_v45  ;;  %v13354_v5 = vadd.f32 %v4641_v50, %v4539_v57  ;;  %v4398_v4 = vpop.f32.mrf.mxu0 }
 0x5e4   :  { %5736 = vmatpush.msra.mxu0 %v13120_v7  ;;  %5803 = vmatpush.msra.mxu1 %v13084_v37  ;;  %v4399_v31 = vadd.f32 %v4398_v4, %v4290_v28  ;;  %v4296_v37 = vadd.f32 %v13212_v46, %v4212_v16  ;;  %v4302_v60 = vadd.f32 %v13236_v15, %v4217_v34  ;;  %v18462_v4 = vld [vmem:[#allocation26_spill] sm:$0xff]  ;;  %v18469_v34 = vld [vmem:[#allocation27_spill] sm:$0xff] }
 0x5e5   :  { %v4308_v55 = vadd.f32 %v13260_v26, %v4222_v20 }
 0x5e6   :  { %5739 = vmatpush.msra.mxu0 %v13134_v63  ;;  %5805 = vmatpush.msra.mxu1 %v13099_v2  ;;  %v4467_v44 = vpop.f32.mrf.mxu1  ;;  %v4645_v51 = vpop.f32.mrf.mxu3  ;;  %v18457_v63 = vld [vmem:[#allocation224_spill] sm:$0xff] }
 0x5e7   :  { %5324 = vmatmul.f32.gmra.mxu3 %v18454_v13  ;;  %5243 = vmatmul.f32.gmra.mxu2 %v18455_v59  ;;  %v4468_v52 = vadd.f32 %v4467_v44, %v4399_v31  ;;  %v4546_v39 = vpop.f32.mrf.mxu2  ;;  %v18463_v31 = vld [vmem:[#allocation24_spill] sm:$0xff]  ;;  %v18465_v13 = vld [vmem:[#allocation226_spill] sm:$0xff] }
 0x5e8   :  { %5807 = vmatpush.msra.mxu1 %v13109_v29  ;;  %v18459_v29 = vld [vmem:[#allocation21_spill] sm:$0xff] }
 0x5e9   :  { %v4547_v7 = vadd.f32 %v4546_v39, %v4468_v52  ;;  %v4227_v39 = vadd.f32 %v13271_v6, %v4133_v62  ;;  %v18479_v62 = vld [vmem:[#allocation232_spill] sm:$0xff] }
 0x5eb   :  { %4998 = vmatmul.f32.gmra.mxu0 %v18456_v41  ;;  %5155 = vmatmul.f32.gmra.mxu1 %v18457_v63  ;;  %v13369_v2 = vadd.f32 %v4645_v51, %v4547_v7  ;;  %v4402_v50 = vpop.f32.mrf.mxu0  ;;  %v18464_v51 = vld [vmem:[#allocation29_spill] sm:$0xff]  ;;  %v18467_v41 = vld [vmem:[#allocation28_spill] sm:$0xff]  ;;  %v4314_v11 = vadd.f32 %v13273_v1, %v4227_v39  ;;  %v18473_v1 = vld [vmem:[#allocation31_spill] sm:$0xff] }
 0x5ec   :  { %v4403_v19 = vadd.f32 %v4402_v50, %v4296_v37  ;;  %v18480_v39 = vld [vmem:[#allocation45_spill] sm:$0xff] }
 0x5ee   :  { %v4471_v47 = vpop.f32.mrf.mxu1  ;;  %v4649_v22 = vpop.f32.mrf.mxu3 }
 0x5ef   :  { %5330 = vmatmul.f32.gmra.mxu3 %v18458_v21  ;;  %5248 = vmatmul.f32.gmra.mxu2 %v18459_v29  ;;  %v4472_v46 = vadd.f32 %v4471_v47, %v4403_v19  ;;  %v4554_v10 = vpop.f32.mrf.mxu2 }
 0x5f1   :  { %v4555_v33 = vadd.f32 %v4554_v10, %v4472_v46  ;;  %v18470_v46 = vld [vmem:[#allocation34_spill] sm:$0xff]  ;;  %v18471_v10 = vld [vmem:[#allocation32_spill] sm:$0xff] }
 0x5f3   :  { %5006 = vmatmul.f32.gmra.mxu0 %v18460_v17  ;;  %5159 = vmatmul.f32.gmra.mxu1 %v18461_v56  ;;  %v13379_v57 = vadd.f32 %v4649_v22, %v4555_v33  ;;  %v4406_v48 = vpop.f32.mrf.mxu0  ;;  %v18472_v17 = vld [vmem:[#allocation37_spill] sm:$0xff] }
 0x5f4   :  { %v4407_v28 = vadd.f32 %v4406_v48, %v4302_v60 }
 0x5f6   :  { %v4475_v49 = vpop.f32.mrf.mxu1  ;;  %v4653_v24 = vpop.f32.mrf.mxu3 }
 0x5f7   :  { %5336 = vmatmul.f32.gmra.mxu3 %v18462_v4  ;;  %5253 = vmatmul.f32.gmra.mxu2 %v18463_v31  ;;  %v4476_v15 = vadd.f32 %v4475_v49, %v4407_v28  ;;  %v4562_v16 = vpop.f32.mrf.mxu2  ;;  %v18474_v49 = vld [vmem:[#allocation38_spill] sm:$0xff] }
 0x5f9   :  { %v4563_v44 = vadd.f32 %v4562_v16, %v4476_v15  ;;  %v18476_v15 = vld [vmem:[#allocation40_spill] sm:$0xff]  ;;  %v18477_v16 = vld [vmem:[#allocation35_spill] sm:$0xff] }
 0x5fb   :  { %5014 = vmatmul.f32.gmra.mxu0 %v18464_v51  ;;  %5163 = vmatmul.f32.gmra.mxu1 %v18465_v13  ;;  %v13389_v59 = vadd.f32 %v4653_v24, %v4563_v44  ;;  %v4410_v58 = vpop.f32.mrf.mxu0  ;;  %v18475_v24 = vld [vmem:[#allocation36_spill] sm:$0xff] }
 0x5fc   :  { %v4411_v52 = vadd.f32 %v4410_v58, %v4308_v55  ;;  %v18478_v55 = vld [vmem:[#allocation41_spill] sm:$0xff] }
 0x5fe   :  { %v4479_v7 = vpop.f32.mrf.mxu1  ;;  %v4657_v37 = vpop.f32.mrf.mxu3 }
 0x5ff   :  { %5342 = vmatmul.f32.gmra.mxu3 %v18466_v8  ;;  %5258 = vmatmul.f32.gmra.mxu2 %v18467_v41  ;;  %v4480_v26 = vadd.f32 %v4479_v7, %v4411_v52  ;;  %v4570_v50 = vpop.f32.mrf.mxu2  ;;  %v18481_v7 = vld [vmem:[#allocation231_spill] sm:$0xff]  ;;  %v18483_v41 = vld [vmem:[#allocation49_spill] sm:$0xff] }
 0x600   :  { %v18482_v8 = vld [vmem:[#allocation39_spill] sm:$0xff] }
 0x601   :  { %v4571_v19 = vadd.f32 %v4570_v50, %v4480_v26 }
 0x603   :  { %5022 = vmatmul.f32.gmra.mxu0 %v18468_v27  ;;  %5167 = vmatmul.f32.gmra.mxu1 %v18469_v34  ;;  %v13397_v47 = vadd.f32 %v4657_v37, %v4571_v19  ;;  %v4414_v22 = vpop.f32.mrf.mxu0  ;;  %v18485_v27 = vld [vmem:[#allocation127_spill] sm:$0xff] }
 0x604   :  { %v4415_v21 = vadd.f32 %v4414_v22, %v4314_v11  ;;  %v18484_v11 = vld [vmem:[#allocation130_spill] sm:$0xff] }
 0x605   :  { %v4105_v22 = vadd.f32 %v18485_v27, %v18484_v11  ;;  %v18493_v27 = vld [vmem:[#allocation65_spill] sm:$0xff] }
 0x606   :  { %v4483_v6 = vpop.f32.mrf.mxu1  ;;  %v4661_v29 = vpop.f32.mrf.mxu3 }
 0x607   :  { %5348 = vmatmul.f32.gmra.mxu3 %v18470_v46  ;;  %5263 = vmatmul.f32.gmra.mxu2 %v18471_v10  ;;  %v4484_v33 = vadd.f32 %v4483_v6, %v4415_v21  ;;  %v4578_v60 = vpop.f32.mrf.mxu2  ;;  %v18486_v21 = vld [vmem:[#allocation114_spill] sm:$0xff]  ;;  %v18487_v6 = vld [vmem:[#allocation125_spill] sm:$0xff]  ;;  %v18488_v46 = vld [vmem:[#allocation135_spill] sm:$0xff] }
 0x608   :  { %v4192_v10 = vadd.f32 %v18488_v46, %v4105_v22 }
 0x609   :  { %v4579_v14 = vadd.f32 %v4578_v60, %v4484_v33  ;;  %v18489_v60 = vld [vmem:[#allocation55_spill] sm:$0xff] }
 0x60b   :  { %5030 = vmatmul.f32.gmra.mxu0 %v18472_v17  ;;  %5171 = vmatmul.f32.gmra.mxu1 %v18473_v1  ;;  %v13403_v48 = vadd.f32 %v4661_v29, %v4579_v14  ;;  %v13405_v28 = vpop.f32.mrf.mxu0  ;;  %v4101_v29 = vadd.f32 %v18487_v6, %v18486_v21 }
 0x60e   :  { %v13407_v20 = vpop.f32.mrf.mxu3 }
 0x60f   :  { %5354 = vmatmul.f32.gmra.mxu3 %v18474_v49  ;;  %5268 = vmatmul.f32.gmra.mxu2 %v18475_v24  ;;  %v13411_v4 = vpop.f32.mrf.mxu1  ;;  %v13413_v31 = vpop.f32.mrf.mxu2  ;;  %v18490_v24 = vld [vmem:[#allocation119_spill] sm:$0xff] }
 0x613   :  { %5038 = vmatmul.f32.gmra.mxu0 %v18476_v15  ;;  %5175 = vmatmul.f32.gmra.mxu1 %v18477_v16  ;;  %v4187_v15 = vadd.f32 %v18490_v24, %v4101_v29 }
 0x616   :  { %v4700_v44 = vpop.f32.mrf.mxu0 }
 0x617   :  { %5360 = vmatmul.f32.gmra.mxu3 %v18478_v55  ;;  %5273 = vmatmul.f32.gmra.mxu2 %v18479_v62  ;;  %v13419_v51 = vpop.f32.mrf.mxu3  ;;  %v18491_v55 = vld [vmem:[#allocation126_spill] sm:$0xff] }
 0x618   :  { %v4770_v58 = vpop.f32.mrf.mxu1  ;;  %v13421_v52 = vpop.f32.mrf.mxu2  ;;  %v4272_v62 = vadd.f32 %v18491_v55, %v4192_v10 }
 0x61b   :  { %5046 = vmatmul.f32.gmra.mxu0 %v18480_v39  ;;  %5179 = vmatmul.f32.gmra.mxu1 %v18481_v7  ;;  %v18492_v39 = vld [vmem:[#allocation116_spill] sm:$0xff] }
 0x61e   :  { %v4705_v37 = vpop.f32.mrf.mxu0 }
 0x61f   :  { %5676 = vmatmul.f32.vlgmr.msrb.gmra.mxu3 %v18482_v8  ;;  %5561 = vmatmul.f32.vlgmr.msrb.gmra.mxu2 %v18483_v41  ;;  %v4266_v41 = vadd.f32 %v18492_v39, %v4187_v15 }
 0x620   :  { %v4776_v26 = vpop.f32.mrf.mxu1  ;;  %v4859_v50 = vpop.f32.mrf.mxu2 }
 0x621   :  { %v13427_v19 = vpop.f32.mrf.mxu3  ;;  %v4383_v22 = vadd.f32 %v13279_v36, %v4266_v41  ;;  %v18496_v41 = vld [vmem:[#allocation194_spill] sm:$0xff] }
 0x623   :  { %5429 = vmatmul.f32.vlgmr.msrb.gmra.mxu0 %v18445_v0  ;;  %5498 = vmatmul.f32.vlgmr.msrb.gmra.mxu1 %v18445_v0  ;;  %v4387_v0 = vadd.f32 %v13291_v18, %v4272_v62  ;;  %v4452_v18 = vadd.f32 %v13283_v38, %v4383_v22  ;;  %v4706_v62 = vadd.f32 %v4705_v37, %v13321_v32 }
 0x625   :  { %v4456_v21 = vadd.f32 %v13300_v23, %v4387_v0  ;;  %v4515_v36 = vadd.f32 %v13281_v35, %v4452_v18  ;;  %v18495_v35 = vld [vmem:[#allocation229_spill] sm:$0xff] }
 0x626   :  { %v4710_v33 = vpop.f32.mrf.mxu0 }
 0x627   :  { %5680 = vmatmul.f32.gmra.mxu3 %v12604_v9  ;;  %5569 = vmatmul.f32.gmra.mxu2 %v18489_v60  ;;  %v18494_v60 = vld [vmem:[#allocation77_spill] sm:$0xff]  ;;  %v4711_v32 = vadd.f32 %v4710_v33, %v13354_v5 }
 0x628   :  { %v4782_v14 = vpop.f32.mrf.mxu1  ;;  %v13438_v17 = vpop.f32.mrf.mxu2 }
 0x629   :  { %v13440_v49 = vpop.f32.mrf.mxu3 }
 0x62b   :  { %5433 = vmatmul.f32.gmra.mxu0 %v18453_v45  ;;  %5502 = vmatmul.f32.gmra.mxu1 %v18453_v45  ;;  %v4523_v45 = vadd.f32 %v13298_v54, %v4456_v21  ;;  %v4630_v54 = vadd.f32 %v13285_v25, %v4515_v36  ;;  %v18498_v21 = vld [vmem:[#allocation184_spill] sm:$0xff] }
 0x62d   :  { %v4634_v23 = vadd.f32 %v13295_v12, %v4523_v45  ;;  %v1728_v12 = vadd.f32 %v18496_v41, %v18495_v35 }
 0x62e   :  { %v4715_v11 = vpop.f32.mrf.mxu0 }
 0x62f   :  { %5684 = vmatmul.f32.gmra.mxu3 %v12669_v61  ;;  %5577 = vmatmul.f32.gmra.mxu2 %v18493_v27  ;;  %v4701_v0 = vadd.f32 %v4700_v44, %v4634_v23  ;;  %v4716_v38 = vadd.f32 %v4715_v11, %v13369_v2  ;;  %v4777_v27 = vadd.f32 %v4776_v26, %v4706_v62  ;;  %v18497_v44 = vld [vmem:[#allocation227_spill] sm:$0xff]  ;;  %v18500_v26 = vld [vmem:[#allocation152_spill] sm:$0xff] }
 0x630   :  { %v4788_v6 = vpop.f32.mrf.mxu1  ;;  %v4867_v29 = vpop.f32.mrf.mxu2  ;;  %v1720_v18 = vadd.f32 %v18498_v21, %v18497_v44  ;;  %v4783_v23 = vadd.f32 %v4782_v14, %v4711_v32 }
 0x631   :  { %v4926_v46 = vpop.f32.mrf.mxu3  ;;  %v4771_v22 = vadd.f32 %v4770_v58, %v4701_v0  ;;  %v4789_v2 = vadd.f32 %v4788_v6, %v4716_v38 }
 0x632   :  { %v4864_v0 = vadd.f32 %v13438_v17, %v4783_v23 }
 0x633   :  { %5437 = vmatmul.f32.gmra.mxu0 %v18457_v63  ;;  %5506 = vmatmul.f32.gmra.mxu1 %v18457_v63  ;;  %v4856_v36 = vadd.f32 %v13421_v52, %v4771_v22  ;;  %v4868_v6 = vadd.f32 %v4867_v29, %v4789_v2 }
 0x635   :  { %v13497_v14 = vadd.f32 %v13419_v51, %v4856_v36  ;;  %v13508_v38 = vadd.f32 %v4926_v46, %v4868_v6 }
 0x636   :  { %v4720_v10 = vpop.f32.mrf.mxu0 }
 0x637   :  { %5688 = vmatmul.f32.gmra.mxu3 %v12755_v40  ;;  %5585 = vmatmul.f32.gmra.mxu2 %v18494_v60  ;;  %v4721_v24 = vadd.f32 %v4720_v10, %v13379_v57  ;;  %v4696_v57 = vadd.f32 %v13405_v28, %v4630_v54  ;;  %v13476_v60 = vadd.f32 %v18500_v26, %v1728_v12  ;;  %v18513_v26 = vld [vmem:[#allocation217_spill] sm:$0xff] }
 0x638   :  { %v4794_v15 = vpop.f32.mrf.mxu1  ;;  %v4871_v55 = vpop.f32.mrf.mxu2  ;;  %v4860_v28 = vadd.f32 %v4859_v50, %v4777_v27 }
 0x639   :  { %v4930_v63 = vpop.f32.mrf.mxu3  ;;  %v4795_v39 = vadd.f32 %v4794_v15, %v4721_v24  ;;  %v4765_v33 = vadd.f32 %v13411_v4, %v4696_v57  ;;  %v18501_v24 = vld [vmem:[#allocation88_spill] sm:$0xff]  ;;  %v13488_v50 = vperm.slane %v13476_v60, 3 }
 0x63a   :  { %v13481_v15 = vadd.f32 %v18501_v24, %v1720_v18  ;;  %v13491_v62 = vadd.f32 %v13427_v19, %v4860_v28 }
 0x63b   :  { %5441 = vmatmul.f32.gmra.mxu0 %v18461_v56  ;;  %5510 = vmatmul.f32.gmra.mxu1 %v18461_v56  ;;  %v18499_v56 = vld [vmem:[#allocation100_spill] sm:$0xff]  ;;  %v4872_v11 = vadd.f32 %v4871_v55, %v4795_v39  ;;  %18502 = vst [vmem:[#allocation134_spill] sm:$0xff] %v13488_v50  ;;  %v4852_v52 = vadd.f32 %v13413_v31, %v4765_v33 }
 0x63c   :  { %18503 = vst [vmem:[#allocation136_spill] sm:$0xff] %v13491_v62  ;;  %v6093_v32 = vmul.f32 %v13488_v50, %v13508_v38 }
 0x63d   :  { %v13485_v55 = vadd.f32 %v4930_v63, %v4872_v11  ;;  %v18506_v63 = vld [vmem:[#allocation101_spill] sm:$0xff]  ;;  %v13515_v12 = vadd.f32 %v13407_v20, %v4852_v52  ;;  %v13559_v52 = vperm.slane %v13481_v15, 1 }
 0x63e   :  { %v4725_v37 = vpop.f32.mrf.mxu0 }
 0x63f   :  { %5692 = vmatmul.f32.gmra.mxu3 %v12839_v3  ;;  %v4726_v25 = vadd.f32 %v4725_v37, %v13389_v59  ;;  %5593 = vmatmul.f32.gmra.mxu2 %v18499_v56  ;;  %v6095_v17 = vmul.f32 %v13488_v50, %v13485_v55  ;;  %v13527_v37 = vperm.slane %v13476_v60, 2  ;;  %18514 = vst [vmem:[#allocation144_spill] sm:$0xff] %v13559_v52 }
 0x640   :  { %v4800_v45 = vpop.f32.mrf.mxu1  ;;  %v4875_v10 = vpop.f32.mrf.mxu2 }
 0x641   :  { %v4801_v58 = vadd.f32 %v4800_v45, %v4726_v25  ;;  %v4934_v5 = vpop.f32.mrf.mxu3  ;;  %18507 = vst [vmem:[#allocation139_spill] sm:$0xff] %v13527_v37  ;;  %v18510_v25 = vld [vmem:[#allocation111_spill] sm:$0xff]  ;;  %v13548_v45 = vperm.slane %v13481_v15, 0 }
 0x643   :  { %5445 = vmatmul.f32.gmra.mxu0 %v18465_v13  ;;  %v4876_v59 = vadd.f32 %v4875_v10, %v4801_v58  ;;  %5514 = vmatmul.f32.gmra.mxu1 %v18465_v13  ;;  %v13501_v13 = vperm.slane %v13481_v15, 3  ;;  %18511 = vst [vmem:[#allocation239_spill] sm:$0xff] %v13548_v45  ;;  %v18512_v10 = vld [vmem:[#allocation233_spill] sm:$0xff] }
 0x644   :  { %v1744_v28 = vadd.f32 %v18513_v26, %v18512_v10 }
 0x645   :  { %v13493_v4 = vadd.f32 %v4934_v5, %v4876_v59  ;;  %18505 = vst [vmem:[#allocation145_spill] sm:$0xff] %v13501_v13  ;;  %v6087_v41 = vmul.f32 %v13501_v13, %v13491_v62  ;;  %v6085_v46 = vmul.f32 %v13501_v13, %v13497_v14 }
 0x646   :  { %v4730_v54 = vpop.f32.mrf.mxu0 }
 0x647   :  { %18504 = vst [vmem:[#allocation137_spill] sm:$0xff] %v13493_v4  ;;  %5696 = vmatmul.f32.gmra.mxu3 %v12913_v30  ;;  %v4731_v29 = vadd.f32 %v4730_v54, %v13397_v47  ;;  %5601 = vmatmul.f32.gmra.mxu2 %v18506_v63  ;;  %v6097_v19 = vmul.f32 %v13488_v50, %v13493_v4 }
 0x648   :  { %v4806_v31 = vpop.f32.mrf.mxu1  ;;  %v4879_v51 = vpop.f32.mrf.mxu2  ;;  %v13518_v47 = vadd.f32 %v13440_v49, %v4864_v0  ;;  %v6103_v22 = vsub.f32 %v6085_v46, %v6095_v17  ;;  %v13532_v49 = vperm.slane %v13481_v15, 2  ;;  %v6069_v6 = vmul.f32 %v13527_v37, %v13493_v4  ;;  %v18516_v17 = vld [vmem:[#allocation218_spill] sm:$0xff] }
 0x649   :  { %v4807_v39 = vadd.f32 %v4806_v31, %v4731_v29  ;;  %v4938_v35 = vpop.f32.mrf.mxu3  ;;  %v6105_v57 = vsub.f32 %v6087_v41, %v6097_v19  ;;  %v13562_v0 = vperm.slane %v13481_v15, 6  ;;  %v6067_v29 = vmul.f32 %v13527_v37, %v13485_v55 }
 0x64a   :  { %18509 = vst [vmem:[#allocation142_spill] sm:$0xff] %v13532_v49  ;;  %v6089_v21 = vmul.f32 %v13501_v13, %v13518_v47  ;;  %v13552_v33 = vand.u32 4294901760, %v6103_v22  ;;  %v6061_v59 = vmul.f32 %v13532_v49, %v13518_v47  ;;  %v6059_v54 = vmul.f32 %v13532_v49, %v13491_v62 }
 0x64b   :  { %5449 = vmatmul.f32.gmra.mxu0 %v18469_v34  ;;  %v4880_v27 = vadd.f32 %v4879_v51, %v4807_v39  ;;  %5518 = vmatmul.f32.gmra.mxu1 %v18469_v34  ;;  %v6083_v34 = vmul.f32 %v13501_v13, %v13515_v12  ;;  %v13543_v2 = vand.u32 4294901760, %v6105_v57  ;;  %18515 = vst [vmem:[#allocation146_spill] sm:$0xff] %v13562_v0 }
 0x64c   :  { %v1971_v39 = vadd.f32 %v18516_v17, %v1744_v28  ;;  %v13579_v41 = vsub.f32 %v6103_v22, %v13552_v33  ;;  %v6057_v46 = vmul.f32 %v13532_v49, %v13497_v14  ;;  %v13683_v13 = vmul.f32 %v13548_v45, %v13497_v14 }
 0x64d   :  { %v13529_v20 = vadd.f32 %v4938_v35, %v4880_v27  ;;  %v13573_v31 = vsub.f32 %v6105_v57, %v13543_v2  ;;  %v13584_v27 = vperm.slane %v13481_v15, 7 }
 0x64e   :  { %v4735_v44 = vpop.f32.mrf.mxu0 }
 0x64f   :  { %18508 = vst [vmem:[#allocation141_spill] sm:$0xff] %v13529_v20  ;;  %5700 = vmatmul.f32.gmra.mxu3 %v12969_v43  ;;  %v4736_v18 = vadd.f32 %v4735_v44, %v13403_v48  ;;  %5609 = vmatmul.f32.gmra.mxu2 %v18510_v25  ;;  %v6099_v56 = vmul.f32 %v13488_v50, %v13529_v20  ;;  %v13592_v44 = vperm.slane %v13476_v60, 1  ;;  %v17378_v26 = vand.u32 4294901760, %v13573_v31 }
 0x650   :  { %v6071_v11 = vmul.f32 %v13527_v37, %v13529_v20  ;;  %v4812_v58 = vpop.f32.mrf.mxu1  ;;  %v4883_v5 = vpop.f32.mrf.mxu2  ;;  %v6101_v48 = vsub.f32 %v6083_v34, %v6093_v32  ;;  %18517 = vst [vmem:[#allocation147_spill] sm:$0xff] %v13584_v27  ;;  %v6077_v32 = vsub.f32 %v6059_v54, %v6069_v6  ;;  %v6055_v34 = vmul.f32 %v13532_v49, %v13515_v12 }
 0x651   :  { %v4813_v36 = vadd.f32 %v4812_v58, %v4736_v18  ;;  %v4942_v23 = vpop.f32.mrf.mxu3  ;;  %v6107_v24 = vsub.f32 %v6089_v21, %v6099_v56  ;;  %18518 = vst [vmem:[#allocation154_spill] sm:$0xff] %v13592_v44  ;;  %v6075_v21 = vsub.f32 %v6057_v46, %v6067_v29  ;;  %v6065_v18 = vmul.f32 %v13527_v37, %v13508_v38  ;;  %v18520_v56 = vld [vmem:[#allocation121_spill] sm:$0xff] }
 0x652   :  { %v6079_v51 = vsub.f32 %v6061_v59, %v6071_v11  ;;  %v13576_v35 = vand.u32 4294901760, %v6101_v48  ;;  %v18523_v59 = vld [vmem:[#allocation212_spill] sm:$0xff]  ;;  %v13633_v29 = vand.u32 4294901760, %v6077_v32  ;;  %v6033_v46 = vmul.f32 %v13559_v52, %v13518_v47 }
 0x653   :  { %5453 = vmatmul.f32.gmra.mxu0 %v18473_v1  ;;  %v4884_v63 = vadd.f32 %v4883_v5, %v4813_v36  ;;  %5522 = vmatmul.f32.gmra.mxu1 %v18473_v1  ;;  %v13570_v19 = vand.u32 4294901760, %v6107_v24  ;;  %v17383_v36 = vand.u32 4294901760, %v13579_v41  ;;  %v13639_v17 = vand.u32 4294901760, %v6075_v21 }
 0x654   :  { %v13602_v11 = vand.u32 4294901760, %v6079_v51  ;;  %v13613_v5 = vsub.f32 %v6101_v48, %v13576_v35  ;;  %18526 = vst [vmem:[#allocation155_spill] sm:$0xff] %v13633_v29  ;;  %v6029_v50 = vmul.f32 %v13559_v52, %v13497_v14  ;;  %v13718_v49 = vperm.slane %v13476_v60, 0 }
 0x655   :  { %v4943_v1 = vadd.f32 %v4942_v23, %v4884_v63  ;;  %6475 = vmatpush.msrb.mxu0 %v13570_v19  ;;  %6671 = vmatpush.msrb.mxu3 %v13570_v19  ;;  %v13589_v57 = vsub.f32 %v6107_v24, %v13570_v19  ;;  %v13618_v23 = vmul.f32 %v13559_v52, %v13515_v12 }
 0x656   :  { %v13594_v22 = vpop.f32.mrf.mxu0  ;;  %v13622_v24 = vmul.f32 %v13548_v45, %v13515_v12  ;;  %v6043_v63 = vmul.f32 %v13592_v44, %v13529_v20  ;;  %18527 = vst [vmem:[#allocation156_spill] sm:$0xff] %v13639_v17 }
 0x657   :  { %18519 = vst [vmem:[#allocation149_spill] sm:$0xff] %v13594_v22  ;;  %v5993_v25 = vmul.f32 %v4943_v1, %v1971_v39  ;;  %5704 = vmatmul.f32.gmra.mxu3 %v18430_v42  ;;  %5617 = vmatmul.f32.gmra.mxu2 %v18520_v56  ;;  %v17377_v10 = vand.u32 4294901760, %v13589_v57  ;;  %v6073_v39 = vsub.f32 %v6055_v34, %v6065_v18 }
 0x658   :  { %6477 = vmatpush.msrb.mxu0 %v13543_v2  ;;  %6618 = vmatpush.msrb.mxu2 %v13589_v57  ;;  %v13608_v28 = vpop.f32.mrf.mxu1  ;;  %v13610_v58 = vpop.f32.mrf.mxu2  ;;  %v13645_v1 = vmul.f32 %v13584_v27, %v13515_v12  ;;  %v6524_v56 = vsub.f32 %v13573_v31, %v17378_v26  ;;  %v6041_v34 = vmul.f32 %v13592_v44, %v13493_v4 }
 0x659   :  { %18521 = vst [vmem:[#allocation150_spill] sm:$0xff] %v13608_v28  ;;  %v13625_v6 = vadd.f32 %v5993_v25, %v18523_v59  ;;  %6673 = vmatpush.msrb.mxu3 %v13543_v2  ;;  %v13628_v54 = vpop.f32.mrf.mxu3  ;;  %v6518_v48 = vsub.f32 %v13589_v57, %v17377_v10  ;;  %v13653_v59 = vsub.f32 %v6079_v51, %v13602_v11  ;;  %v13696_v28 = vperm.slane %v13476_v60, 7 }
 0x65a   :  { %18522 = vst [vmem:[#allocation151_spill] sm:$0xff] %v13610_v58  ;;  %6479 = vmatpush.msrb.mxu0 %v13552_v33  ;;  %6621 = vmatpush.msrb.mxu2 %v13573_v31  ;;  %v6031_v10 = vmul.f32 %v13559_v52, %v13491_v62  ;;  %v13666_v26 = vmul.f32 %v13562_v0, %v13515_v12 }
 0x65b   :  { %18524 = vst [vmem:[#allocation60_spill] sm:$0xff] %v13625_v6  ;;  %5457 = vmatmul.f32.gmra.mxu0 %v18477_v16  ;;  %6675 = vmatpush.msrb.mxu3 %v13552_v33  ;;  %v6519_v25 = vand.u32 4294901760, %v6518_v48  ;;  %v6039_v48 = vmul.f32 %v13592_v44, %v13485_v55  ;;  %v13674_v51 = vsub.f32 %v6077_v32, %v13633_v29  ;;  %v13677_v6 = vand.u32 4294901760, %v6073_v39  ;;  %v18530_v32 = vld [vmem:[#allocation129_spill] sm:$0xff] }
 0x65c   :  { %18525 = vst [vmem:[#allocation153_spill] sm:$0xff] %v13628_v54  ;;  %5526 = vmatmul.f32.gmra.mxu1 %v18477_v16  ;;  %6481 = vmatpush.msrb.mxu0 %v13576_v35  ;;  %v6530_v16 = vsub.f32 %v13579_v41, %v17383_v36  ;;  %v6051_v18 = vsub.f32 %v6033_v46, %v6043_v63  ;;  %v18529_v36 = vld [vmem:[#allocation120_spill] sm:$0xff]  ;;  %v6525_v63 = vand.u32 4294901760, %v6524_v56 }
 0x65d   :  { %6624 = vmatpush.msrb.mxu2 %v13579_v41  ;;  %6677 = vmatpush.msrb.mxu3 %v13576_v35  ;;  %18528 = vst [vmem:[#allocation113_spill] sm:$0xff] %v13677_v6  ;;  %v13687_v54 = vmul.f32 %v13584_v27, %v13497_v14  ;;  %v13692_v46 = vsub.f32 %v6075_v21, %v13639_v17 }
 0x65e   :  { %6483 = vmatpush.msrb.mxu0 %v13602_v11  ;;  %6520 = vmatpush.msrb.mxu1 %v6519_v25  ;;  %v6049_v58 = vsub.f32 %v6031_v10, %v6041_v34  ;;  %18531 = vst [vmem:[#allocation158_spill] sm:$0xff] %v13696_v28  ;;  %v6037_v21 = vmul.f32 %v13592_v44, %v13508_v38  ;;  %v6531_v34 = vand.u32 4294901760, %v6530_v16 }
 0x65f   :  { %5708 = vmatmul.f32.gmra.mxu3 %v18529_v36  ;;  %5625 = vmatmul.f32.gmra.mxu2 %v18530_v32  ;;  %v18534_v32 = vand.u32 4294901760, %v13613_v5  ;;  %v6003_v10 = vmul.f32 %v13548_v45, %v13491_v62  ;;  %v6047_v37 = vsub.f32 %v6029_v50, %v6039_v48  ;;  %18537 = vst [vmem:[#allocation165_spill] sm:$0xff] %v13718_v49  ;;  %v18539_v50 = vand.u32 4294901760, %v13653_v59 }
 0x660   :  { %v13698_v22 = vpop.f32.mrf.mxu0  ;;  %6627 = vmatpush.msrb.mxu2 %v13613_v5  ;;  %6679 = vmatpush.msrb.mxu3 %v13602_v11  ;;  %v13702_v52 = vpop.f32.mrf.mxu1  ;;  %v13725_v44 = vsub.f32 %v6073_v39, %v13677_v6  ;;  %v6199_v16 = vmul.f32 %v13584_v27, %v13491_v62  ;;  %v6211_v39 = vmul.f32 %v13696_v28, %v13529_v20  ;;  %v18543_v43 = vand.u32 4294901760, %v13692_v46 }
 0x661   :  { %18532 = vst [vmem:[#allocation160_spill] sm:$0xff] %v13698_v22  ;;  %v6536_v56 = vsub.f32 %v13613_v5, %v18534_v32  ;;  %6485 = vmatpush.msrb.mxu0 %v13633_v29  ;;  %6526 = vmatpush.msrb.mxu1 %v6525_v63  ;;  %v13712_v25 = vpop.f32.mrf.mxu3  ;;  %v13714_v22 = vand.u32 4294901760, %v6051_v18  ;;  %v13731_v63 = vmul.f32 %v13562_v0, %v13491_v62 }
 0x662   :  { %18533 = vst [vmem:[#allocation161_spill] sm:$0xff] %v13702_v52  ;;  %6630 = vmatpush.msrb.mxu2 %v13653_v59  ;;  %6681 = vmatpush.msrb.mxu3 %v13633_v29  ;;  %v13722_v32 = vpop.f32.mrf.mxu2  ;;  %v6542_v48 = vsub.f32 %v13653_v59, %v18539_v50  ;;  %v13737_v52 = vand.u32 4294901760, %v6049_v58  ;;  %v6045_v53 = vsub.f32 %v13618_v23, %v6037_v21 }
 0x663   :  { %18535 = vst [vmem:[#allocation159_spill] sm:$0xff] %v13712_v25  ;;  %5461 = vmatmul.f32.gmra.mxu0 %v18481_v7  ;;  %6532 = vmatpush.msrb.mxu1 %v6531_v34  ;;  %v6015_v34 = vmul.f32 %v13718_v49, %v13529_v20  ;;  %v6201_v50 = vmul.f32 %v13584_v27, %v13518_v47  ;;  %v18541_v25 = vand.u32 4294901760, %v13674_v51 }
 0x664   :  { %18536 = vst [vmem:[#allocation163_spill] sm:$0xff] %v13714_v22  ;;  %6487 = vmatpush.msrb.mxu0 %v13639_v17  ;;  %6633 = vmatpush.msrb.mxu2 %v13674_v51  ;;  %v13755_v42 = vsub.f32 %v6051_v18, %v13714_v22  ;;  %v6013_v23 = vmul.f32 %v13718_v49, %v13493_v4  ;;  %v13783_v29 = vand.u32 4294901760, %v6045_v53 }
 0x665   :  { %18538 = vst [vmem:[#allocation166_spill] sm:$0xff] %v13722_v32  ;;  %v6537_v32 = vand.u32 4294901760, %v6536_v56  ;;  %6683 = vmatpush.msrb.mxu3 %v13639_v17  ;;  %5530 = vmatmul.f32.gmra.mxu1 %v18481_v7  ;;  %v6548_v36 = vsub.f32 %v13674_v51, %v18541_v25  ;;  %v13757_v56 = vand.u32 4294901760, %v6047_v37  ;;  %v6005_v7 = vmul.f32 %v13548_v45, %v13518_v47 }
 0x666   :  { %18540 = vst [vmem:[#allocation167_spill] sm:$0xff] %v13737_v52  ;;  %6489 = vmatpush.msrb.mxu0 %v13677_v6  ;;  %v6009_v27 = vmul.f32 %v13718_v49, %v13508_v38  ;;  %v6209_v18 = vmul.f32 %v13696_v28, %v13493_v4  ;;  %6636 = vmatpush.msrb.mxu2 %v13692_v46  ;;  %v6543_v25 = vand.u32 4294901760, %v6542_v48 }
 0x667   :  { %18542 = vst [vmem:[#allocation168_spill] sm:$0xff] %v13757_v56  ;;  %6538 = vmatpush.msrb.mxu1 %v6537_v32  ;;  %6685 = vmatpush.msrb.mxu3 %v13677_v6  ;;  %v6554_v32 = vsub.f32 %v13692_v46, %v18543_v43  ;;  %v13775_v21 = vsub.f32 %v6049_v58, %v13737_v52  ;;  %v6549_v58 = vand.u32 4294901760, %v6548_v36 }
 0x668   :  { %v6219_v30 = vsub.f32 %v6201_v50, %v6211_v39  ;;  %5957 = vmatmul.f32.vlgmr.msra.gmra.mxu3 %v18482_v8  ;;  %v13778_v45 = vpop.f32.mrf.mxu0  ;;  %5898 = vmatmul.f32.vlgmr.msra.gmra.mxu2 %v18482_v8  ;;  %v13781_v17 = vpop.f32.mrf.mxu1  ;;  %18547 = vst [vmem:[#allocation173_spill] sm:$0xff] %v13783_v29  ;;  %v6023_v6 = vsub.f32 %v6005_v7, %v6015_v34  ;;  %v18550_v7 = vand.u32 4294901760, %v13725_v44 }
 0x669   :  { %18544 = vst [vmem:[#allocation170_spill] sm:$0xff] %v13775_v21  ;;  %v6011_v48 = vmul.f32 %v13718_v49, %v13485_v55  ;;  %v6207_v43 = vmul.f32 %v13696_v28, %v13485_v55  ;;  %6491 = vmatpush.msrb.mxu0 %v13714_v22  ;;  %6544 = vmatpush.msrb.mxu1 %v6543_v25 }
 0x66a   :  { %18545 = vst [vmem:[#allocation171_spill] sm:$0xff] %v13778_v45  ;;  %v13791_v39 = vsub.f32 %v6047_v37, %v13757_v56  ;;  %v6021_v50 = vsub.f32 %v6003_v10, %v6013_v23  ;;  %6639 = vmatpush.msrb.mxu2 %v13725_v44  ;;  %6687 = vmatpush.msrb.mxu3 %v13714_v22  ;;  %v13799_v34 = vpop.f32.mrf.mxu2  ;;  %v13804_v36 = vpop.f32.mrf.mxu3  ;;  %v6555_v10 = vand.u32 4294901760, %v6554_v32  ;;  %v13810_v45 = vand.u32 4294901760, %v6219_v30 }
 0x66b   :  { %18546 = vst [vmem:[#allocation64_spill] sm:$0xff] %v13781_v17  ;;  %v13795_v17 = vperm.slane %v13476_v60, 6  ;;  %v6560_v25 = vsub.f32 %v13725_v44, %v18550_v7  ;;  %v6217_v37 = vsub.f32 %v6199_v16, %v6209_v18  ;;  %v6205_v8 = vmul.f32 %v13696_v28, %v13508_v38  ;;  %6493 = vmatpush.msrb.mxu0 %v13737_v52 }
 0x66c   :  { %18549 = vst [vmem:[#allocation176_spill] sm:$0xff] %v13799_v34  ;;  %6550 = vmatpush.msrb.mxu1 %v6549_v58  ;;  %v6173_v34 = vmul.f32 %v13562_v0, %v13518_v47  ;;  %6642 = vmatpush.msrb.mxu2 %v13755_v42  ;;  %v13816_v7 = vand.u32 4294901760, %v6023_v6  ;;  %v13819_v16 = vsub.f32 %v6045_v53, %v13783_v29  ;;  %v18553_v58 = vld [vmem:[#allocation42_spill] sm:$0xff]  ;;  %v18554_v23 = vand.u32 4294901760, %v13755_v42 }
 0x66d   :  { %18548 = vst [vmem:[#allocation175_spill] sm:$0xff] %v13795_v17  ;;  %6689 = vmatpush.msrb.mxu3 %v13737_v52  ;;  %v6017_v18 = vsub.f32 %v13622_v24, %v6009_v27  ;;  %v6215_v32 = vsub.f32 %v13687_v54, %v6207_v43  ;;  %5742 = vmatmul.f32.vlgmr.msra.gmra.mxu0 %v18553_v58  ;;  %v6561_v53 = vand.u32 4294901760, %v6560_v25  ;;  %v13833_v27 = vand.u32 4294901760, %v6217_v37 }
 0x66e   :  { %18551 = vst [vmem:[#allocation118_spill] sm:$0xff] %v13804_v36  ;;  %6556 = vmatpush.msrb.mxu1 %v6555_v10  ;;  %v6566_v28 = vsub.f32 %v13755_v42, %v18554_v23  ;;  %v13827_v36 = vand.u32 4294901760, %v6021_v50  ;;  %v6019_v49 = vsub.f32 %v13683_v13, %v6011_v48  ;;  %6495 = vmatpush.msrb.mxu0 %v13757_v56  ;;  %v13839_v43 = vperm.slane %v13476_v60, 5  ;;  %v18557_v13 = vld [vmem:[#allocation43_spill] sm:$0xff] }
 0x66f   :  { %18552 = vst [vmem:[#allocation178_spill] sm:$0xff] %v13816_v7  ;;  %6645 = vmatpush.msrb.mxu2 %v13775_v21  ;;  %v6213_v24 = vsub.f32 %v13645_v1, %v6205_v8  ;;  %v6183_v54 = vmul.f32 %v13795_v17, %v13529_v20  ;;  %6691 = vmatpush.msrb.mxu3 %v13757_v56  ;;  %v18558_v48 = vand.u32 4294901760, %v13775_v21  ;;  %v13860_v52 = vand.u32 4294901760, %v6215_v32 }
 0x670   :  { %18555 = vst [vmem:[#allocation180_spill] sm:$0xff] %v13827_v36  ;;  %5811 = vmatmul.f32.vlgmr.msra.gmra.mxu1 %v18557_v13  ;;  %v13847_v25 = vsub.f32 %v6219_v30, %v13810_v45  ;;  %v6177_v1 = vmul.f32 %v13795_v17, %v13508_v38  ;;  %6497 = vmatpush.msrb.mxu0 %v13783_v29  ;;  %v13852_v8 = vpop.f32.mrf.mxu0  ;;  %v13857_v58 = vpop.f32.mrf.mxu1  ;;  %v13878_v56 = vand.u32 4294901760, %v6017_v18 }
 0x671   :  { %18556 = vst [vmem:[#allocation181_spill] sm:$0xff] %v13839_v43  ;;  %v6572_v10 = vsub.f32 %v13775_v21, %v18558_v48  ;;  %6562 = vmatpush.msrb.mxu1 %v6561_v53  ;;  %v13855_v23 = vsub.f32 %v6023_v6, %v13816_v7  ;;  %v6181_v30 = vmul.f32 %v13795_v17, %v13493_v4  ;;  %v6567_v48 = vand.u32 4294901760, %v6566_v28 }
 0x672   :  { %18559 = vst [vmem:[#allocation164_spill] sm:$0xff] %v13847_v25  ;;  %6648 = vmatpush.msrb.mxu2 %v13791_v39  ;;  %6693 = vmatpush.msrb.mxu3 %v13783_v29  ;;  %v13866_v53 = vand.u32 4294901760, %v6019_v49  ;;  %v13876_v13 = vpop.f32.mrf.mxu2  ;;  %v13880_v22 = vpop.f32.mrf.mxu3  ;;  %v13883_v28 = vsub.f32 %v6217_v37, %v13833_v27  ;;  %v13885_v29 = vand.u32 4294901760, %v6213_v24  ;;  %v6191_v21 = vsub.f32 %v6173_v34, %v6183_v54 }
 0x673   :  { %18560 = vst [vmem:[#allocation183_spill] sm:$0xff] %v13852_v8  ;;  %v18563_v8 = vand.u32 4294901760, %v13791_v39  ;;  %5961 = vmatmul.f32.gmra.mxu3 %v12604_v9  ;;  %5902 = vmatmul.f32.gmra.mxu2 %v12604_v9  ;;  %v6169_v9 = vmul.f32 %v13562_v0, %v13497_v14  ;;  %v18568_v37 = vand.u32 4294901760, %v13819_v16  ;;  %v17419_v54 = vand.u32 4294901760, %v13855_v23 }
 0x674   :  { %18561 = vst [vmem:[#allocation185_spill] sm:$0xff] %v13857_v58  ;;  %v13872_v58 = vsub.f32 %v6021_v50, %v13827_v36  ;;  %6499 = vmatpush.msrb.mxu0 %v13816_v7  ;;  %6568 = vmatpush.msrb.mxu1 %v6567_v48  ;;  %v6573_v50 = vand.u32 4294901760, %v6572_v10  ;;  %v13900_v10 = vsub.f32 %v6215_v32, %v13860_v52 }
 0x675   :  { %18562 = vst [vmem:[#allocation186_spill] sm:$0xff] %v13866_v53  ;;  %v6578_v6 = vsub.f32 %v13791_v39, %v18563_v8  ;;  %6651 = vmatpush.msrb.mxu2 %v13819_v16  ;;  %6695 = vmatpush.msrb.mxu3 %v13816_v7  ;;  %v6584_v34 = vsub.f32 %v13819_v16, %v18568_v37  ;;  %v18583_v7 = vand.u32 4294901760, %v13573_v31 }
 0x676   :  { %18564 = vst [vmem:[#allocation172_spill] sm:$0xff] %v13872_v58  ;;  %v6189_v48 = vsub.f32 %v13731_v63, %v6181_v30  ;;  %6501 = vmatpush.msrb.mxu0 %v13827_v36  ;;  %6574 = vmatpush.msrb.mxu1 %v6573_v50  ;;  %v13909_v0 = vsub.f32 %v13666_v26, %v6177_v1  ;;  %v18570_v50 = vld [vmem:[#allocation48_spill] sm:$0xff]  ;;  %v18571_v26 = vand.u32 4294901760, %v13847_v25 }
 0x677   :  { %18565 = vst [vmem:[#allocation188_spill] sm:$0xff] %v13876_v13  ;;  %v6179_v13 = vmul.f32 %v13795_v17, %v13485_v55  ;;  %v6579_v8 = vand.u32 4294901760, %v6578_v6  ;;  %6654 = vmatpush.msrb.mxu2 %v13855_v23  ;;  %6697 = vmatpush.msrb.mxu3 %v13827_v36  ;;  %v13914_v32 = vsub.f32 %v6017_v18, %v13878_v56  ;;  %v13920_v6 = vand.u32 4294901760, %v6191_v21 }
 0x678   :  { %18566 = vst [vmem:[#allocation190_spill] sm:$0xff] %v13880_v22  ;;  %v13905_v22 = vsub.f32 %v6019_v49, %v13866_v53  ;;  %v13918_v30 = vsub.f32 %v6213_v24, %v13885_v29  ;;  %v13923_v49 = vperm.slane %v13481_v15, 5  ;;  %5747 = vmatmul.f32.gmra.mxu0 %v18570_v50  ;;  %v6859_v1 = vsub.f32 %v13847_v25, %v18571_v26  ;;  %v13933_v63 = vpop.f32.mrf.mxu0 }
 0x679   :  { %18567 = vst [vmem:[#allocation191_spill] sm:$0xff] %v13883_v28  ;;  %6580 = vmatpush.msrb.mxu1 %v6579_v8  ;;  %v6187_v37 = vsub.f32 %v6169_v9, %v6179_v13  ;;  %v6155_v18 = vmul.f32 %v13839_v43, %v13529_v20  ;;  %6503 = vmatpush.msrb.mxu0 %v13866_v53  ;;  %v6585_v24 = vand.u32 4294901760, %v6584_v34  ;;  %v13938_v8 = vpop.f32.mrf.mxu1  ;;  %v13941_v26 = vand.u32 4294901760, %v6189_v48  ;;  %v18574_v13 = vld [vmem:[#allocation236_spill] sm:$0xff] }
 0x67a   :  { %18569 = vst [vmem:[#allocation68_spill] sm:$0xff] %v13900_v10  ;;  %6657 = vmatpush.msrb.mxu2 %v13872_v58  ;;  %v6590_v50 = vsub.f32 %v13855_v23, %v17419_v54  ;;  %6699 = vmatpush.msrb.mxu3 %v13866_v53  ;;  %v18575_v9 = vand.u32 4294901760, %v13872_v58  ;;  %v6145_v25 = vmul.f32 %v13923_v49, %v13518_v47  ;;  %v18576_v17 = vand.u32 4294901760, %v13883_v28 }
 0x67b   :  { %18572 = vst [vmem:[#allocation193_spill] sm:$0xff] %v13933_v63  ;;  %5817 = vmatmul.f32.gmra.mxu1 %v18574_v13  ;;  %v6143_v54 = vmul.f32 %v13923_v49, %v13491_v62  ;;  %6505 = vmatpush.msrb.mxu0 %v13878_v56  ;;  %v13957_v13 = vpop.f32.mrf.mxu2  ;;  %v13963_v63 = vsub.f32 %v6191_v21, %v13920_v6  ;;  %v18579_v53 = vand.u32 4294901760, %v13589_v57 }
 0x67c   :  { %18573 = vst [vmem:[#allocation195_spill] sm:$0xff] %v13938_v8  ;;  %v6596_v34 = vsub.f32 %v13872_v58, %v18575_v9  ;;  %6586 = vmatpush.msrb.mxu1 %v6585_v24  ;;  %v6865_v8 = vsub.f32 %v13883_v28, %v18576_v17  ;;  %v13960_v9 = vpop.f32.mrf.mxu3  ;;  %v6153_v36 = vmul.f32 %v13839_v43, %v13493_v4  ;;  %v6860_v24 = vand.u32 4294901760, %v6859_v1 }
 0x67d   :  { %18577 = vst [vmem:[#allocation198_spill] sm:$0xff] %v13957_v13  ;;  %6660 = vmatpush.msrb.mxu2 %v13905_v22  ;;  %6701 = vmatpush.msrb.mxu3 %v13878_v56  ;;  %v13970_v17 = vand.u32 4294901760, %v6187_v37  ;;  %v6163_v13 = vsub.f32 %v6145_v25, %v6155_v18  ;;  %v6591_v21 = vand.u32 4294901760, %v6590_v50  ;;  %v13979_v58 = vsub.f32 %v6189_v48, %v13941_v26 }
 0x67e   :  { %18578 = vst [vmem:[#allocation200_spill] sm:$0xff] %v13960_v9  ;;  %5965 = vmatmul.f32.gmra.mxu3 %v12669_v61  ;;  %6712 = vmatpush.msra.mxu0 %v18579_v53  ;;  %v18580_v9 = vand.u32 4294901760, %v13900_v10  ;;  %v13982_v1 = vand.u32 4294901760, %v13909_v0  ;;  %v6597_v25 = vand.u32 4294901760, %v6596_v34  ;;  %v18581_v18 = vand.u32 4294901760, %v13905_v22 }
 0x67f   :  { %6861 = vmatpush.msra.mxu3 %v6860_v24  ;;  %5906 = vmatmul.f32.gmra.mxu2 %v12669_v61  ;;  %v6141_v53 = vmul.f32 %v13923_v49, %v13497_v14  ;;  %v6151_v50 = vmul.f32 %v13839_v43, %v13485_v55  ;;  %v6866_v48 = vand.u32 4294901760, %v6865_v8  ;;  %v6161_v34 = vsub.f32 %v6143_v54, %v6153_v36 }
 0x680   :  { %v6871_v28 = vsub.f32 %v13900_v10, %v18580_v9  ;;  %v6602_v57 = vsub.f32 %v13905_v22, %v18581_v18  ;;  %6592 = vmatpush.msrb.mxu1 %v6591_v21  ;;  %6663 = vmatpush.msrb.mxu2 %v13914_v32  ;;  %v18582_v9 = vand.u32 4294901760, %v13918_v30  ;;  %v18584_v18 = vand.u32 4294901760, %v13914_v32  ;;  %v14013_v36 = vpop.f32.mrf.mxu0 }
 0x681   :  { %6716 = vmatpush.msra.mxu0 %v18583_v7  ;;  %v14004_v21 = vsub.f32 %v6187_v37, %v13970_v17  ;;  %v14006_v8 = vand.u32 4294901760, %v6163_v13  ;;  %v14011_v61 = vperm.slane %v13476_v60, 4  ;;  %6867 = vmatpush.msra.mxu3 %v6866_v48  ;;  %18585 = vst [vmem:[#allocation123_spill] sm:$0xff] %v14013_v36  ;;  %v14016_v54 = vpop.f32.mrf.mxu1  ;;  %v14020_v37 = vsub.f32 %v13909_v0, %v13982_v1 }
 0x682   :  { %v6877_v24 = vsub.f32 %v13918_v30, %v18582_v9  ;;  %6816 = vmatpush.msra.mxu2 %v13810_v45  ;;  %v6608_v10 = vsub.f32 %v13914_v32, %v18584_v18  ;;  %v6149_v9 = vmul.f32 %v13839_v43, %v13508_v38  ;;  %6598 = vmatpush.msrb.mxu1 %v6597_v25  ;;  %v6872_v31 = vand.u32 4294901760, %v6871_v28  ;;  %v18587_v43 = vld [vmem:[#allocation237_spill] sm:$0xff] }
 0x683   :  { %18586 = vst [vmem:[#allocation202_spill] sm:$0xff] %v14016_v54  ;;  %v14023_v18 = vperm.slane %v13481_v15, 4  ;;  %5752 = vmatmul.f32.gmra.mxu0 %v18587_v43  ;;  %v6603_v60 = vand.u32 4294901760, %v6602_v57  ;;  %v6159_v25 = vsub.f32 %v6141_v53, %v6151_v50  ;;  %v6139_v28 = vmul.f32 %v13923_v49, %v13515_v12  ;;  %v14034_v15 = vpop.f32.mrf.mxu2  ;;  %v18594_v53 = vld [vmem:[#allocation57_spill] sm:$0xff] }
 0x684   :  { %6818 = vmatpush.msra.mxu2 %v13833_v27  ;;  %v18588_v48 = vand.u32 4294901760, %v13579_v41  ;;  %6873 = vmatpush.msra.mxu3 %v6872_v31  ;;  %v6878_v7 = vand.u32 4294901760, %v6877_v24  ;;  %v18589_v0 = vand.u32 4294901760, %v13963_v63  ;;  %18590 = vst [vmem:[#allocation204_spill] sm:$0xff] %v14034_v15  ;;  %v14036_v36 = vpop.f32.mrf.mxu3  ;;  %v14038_v43 = vand.u32 4294901760, %v6161_v34 }
 0x685   :  { %18591 = vst [vmem:[#allocation207_spill] sm:$0xff] %v14036_v36  ;;  %v6127_v57 = vmul.f32 %v14011_v61, %v13529_v20  ;;  %6604 = vmatpush.msrb.mxu1 %v6603_v60  ;;  %v6609_v41 = vand.u32 4294901760, %v6608_v10  ;;  %v14045_v50 = vsub.f32 %v6163_v13, %v14006_v8  ;;  %v6157_v24 = vsub.f32 %v6139_v28, %v6149_v9 }
 0x686   :  { %6720 = vmatpush.msra.mxu0 %v18588_v48  ;;  %v6883_v54 = vsub.f32 %v13963_v63, %v18589_v0  ;;  %6820 = vmatpush.msra.mxu2 %v13860_v52  ;;  %v18592_v31 = vand.u32 4294901760, %v13613_v5  ;;  %v18593_v48 = vand.u32 4294901760, %v13979_v58  ;;  %v17430_v36 = vand.u32 4294901760, %v14020_v37 }
 0x687   :  { %6879 = vmatpush.msra.mxu3 %v6878_v7  ;;  %v6117_v60 = vmul.f32 %v14023_v18, %v13518_v47  ;;  %v6125_v10 = vmul.f32 %v14011_v61, %v13493_v4  ;;  %5823 = vmatmul.f32.gmra.mxu1 %v18594_v53  ;;  %v14059_v13 = vand.u32 4294901760, %v6159_v25  ;;  %v18595_v5 = vand.u32 4294901760, %v13653_v59 }
 0x688   :  { %6724 = vmatpush.msra.mxu0 %v18592_v31  ;;  %v6889_v0 = vsub.f32 %v13979_v58, %v18593_v48  ;;  %5969 = vmatmul.f32.gmra.mxu3 %v12755_v40  ;;  %v6884_v9 = vand.u32 4294901760, %v6883_v54  ;;  %v14064_v7 = vsub.f32 %v6161_v34, %v14038_v43  ;;  %v6115_v31 = vmul.f32 %v14023_v18, %v13491_v62 }
 0x689   :  { %6610 = vmatpush.msrb.mxu1 %v6609_v41  ;;  %v6135_v28 = vsub.f32 %v6117_v60, %v6127_v57  ;;  %6822 = vmatpush.msra.mxu2 %v13885_v29  ;;  %v18596_v53 = vand.u32 4294901760, %v14004_v21  ;;  %v14073_v41 = vand.u32 4294901760, %v6157_v24  ;;  %v6123_v59 = vmul.f32 %v14011_v61, %v13485_v55  ;;  %v14082_v57 = vpop.f32.mrf.mxu0  ;;  %v14084_v60 = vpop.f32.mrf.mxu1 }
 0x68a   :  { %6728 = vmatpush.msra.mxu0 %v18595_v5  ;;  %6885 = vmatpush.msra.mxu3 %v6884_v9  ;;  %v6890_v34 = vand.u32 4294901760, %v6889_v0  ;;  %v6901_v54 = vsub.f32 %v14020_v37, %v17430_v36  ;;  %18597 = vst [vmem:[#allocation209_spill] sm:$0xff] %v14082_v57  ;;  %v6133_v5 = vsub.f32 %v6115_v31, %v6125_v10  ;;  %v18603_v36 = vand.u32 4294901760, %v13692_v46 }
 0x68b   :  { %6779 = vmatpush.msra.mxu1 %v13570_v19  ;;  %v6895_v48 = vsub.f32 %v14004_v21, %v18596_v53  ;;  %5910 = vmatmul.f32.gmra.mxu2 %v12755_v40  ;;  %18598 = vst [vmem:[#allocation211_spill] sm:$0xff] %v14084_v60  ;;  %v18599_v53 = vand.u32 4294901760, %v13674_v51  ;;  %v14090_v9 = vsub.f32 %v6159_v25, %v14059_v13  ;;  %v14098_v10 = vpop.f32.mrf.mxu2  ;;  %v14102_v31 = vand.u32 4294901760, %v6135_v28 }
 0x68c   :  { %v6113_v40 = vmul.f32 %v14023_v18, %v13497_v14  ;;  %v6121_v0 = vmul.f32 %v14011_v61, %v13508_v38  ;;  %6824 = vmatpush.msra.mxu2 %v13920_v6  ;;  %6891 = vmatpush.msra.mxu3 %v6890_v34  ;;  %18600 = vst [vmem:[#allocation213_spill] sm:$0xff] %v14098_v10  ;;  %v14100_v51 = vpop.f32.mrf.mxu3  ;;  %v18606_v46 = vand.u32 4294901760, %v14064_v7  ;;  %v18700_v10 = vand.u32 4294901760, %v14004_v21 }
 0x68d   :  { %6732 = vmatpush.msra.mxu0 %v18599_v53  ;;  %6781 = vmatpush.msra.mxu1 %v13543_v2  ;;  %18601 = vst [vmem:[#allocation214_spill] sm:$0xff] %v14100_v51  ;;  %v18602_v2 = vld [vmem:[#allocation63_spill] sm:$0xff]  ;;  %v6896_v25 = vand.u32 4294901760, %v6895_v48  ;;  %v14107_v53 = vsub.f32 %v6157_v24, %v14073_v41  ;;  %v6111_v34 = vmul.f32 %v14023_v18, %v13515_v12  ;;  %v18604_v51 = vand.u32 4294901760, %v14045_v50 }
 0x68e   :  { %5757 = vmatmul.f32.gmra.mxu0 %v18602_v2  ;;  %v6131_v19 = vsub.f32 %v6113_v40, %v6123_v59  ;;  %6826 = vmatpush.msra.mxu2 %v13941_v26  ;;  %v14117_v2 = vand.u32 4294901760, %v6133_v5  ;;  %v17431_v24 = vand.u32 4294901760, %v14090_v9  ;;  %v18605_v59 = vand.u32 4294901760, %v13725_v44 }
 0x68f   :  { %6783 = vmatpush.msra.mxu1 %v13552_v33  ;;  %6736 = vmatpush.msra.mxu0 %v18603_v36  ;;  %v6907_v15 = vsub.f32 %v14045_v50, %v18604_v51  ;;  %v6902_v33 = vand.u32 4294901760, %v6901_v54  ;;  %v6129_v48 = vsub.f32 %v6111_v34, %v6121_v0  ;;  %v6913_v36 = vsub.f32 %v14064_v7, %v18606_v46  ;;  %v18607_v51 = vld [vmem:[#allocation71_spill] sm:$0xff] }
 0x690   :  { %6897 = vmatpush.msra.mxu3 %v6896_v25  ;;  %6828 = vmatpush.msra.mxu2 %v13970_v17  ;;  %v14128_v40 = vsub.f32 %v6135_v28, %v14102_v31  ;;  %v14132_v54 = vand.u32 4294901760, %v6131_v19  ;;  %v18608_v44 = vand.u32 4294901760, %v13755_v42  ;;  %v14140_v34 = vsub.f32 %v6133_v5, %v14117_v2 }
 0x691   :  { %6785 = vmatpush.msra.mxu1 %v13576_v35  ;;  %6740 = vmatpush.msra.mxu0 %v18605_v59  ;;  %v17432_v35 = vand.u32 4294901760, %v14107_v53  ;;  %v6908_v0 = vand.u32 4294901760, %v6907_v15  ;;  %v14137_v25 = vpop.f32.mrf.mxu0  ;;  %v14142_v28 = vpop.f32.mrf.mxu1  ;;  %v14149_v59 = vand.u32 4294901760, %v6129_v48  ;;  %v6914_v42 = vand.u32 4294901760, %v6913_v36  ;;  %v18616_v36 = vld [vmem:[#allocation76_spill] sm:$0xff] }
 0x692   :  { %6903 = vmatpush.msra.mxu3 %v6902_v33  ;;  %5829 = vmatmul.f32.gmra.mxu1 %v18607_v51  ;;  %18609 = vst [vmem:[#allocation216_spill] sm:$0xff] %v14137_v25  ;;  %v6919_v33 = vsub.f32 %v14090_v9, %v17431_v24  ;;  %v18613_v51 = vld [vmem:[#allocation170_spill] sm:$0xff]  ;;  %v18617_v15 = vld [vmem:[#allocation156_spill] sm:$0xff] }
 0x693   :  { %5973 = vmatmul.f32.gmra.mxu3 %v12839_v3  ;;  %6744 = vmatpush.msra.mxu0 %v18608_v44  ;;  %18610 = vst [vmem:[#allocation169_spill] sm:$0xff] %v14142_v28  ;;  %v14153_v5 = vpop.f32.mrf.mxu2  ;;  %v18615_v44 = vld [vmem:[#allocation155_spill] sm:$0xff]  ;;  %v6925_v24 = vsub.f32 %v14107_v53, %v17432_v35 }
 0x694   :  { %6787 = vmatpush.msra.mxu1 %v13602_v11  ;;  %6830 = vmatpush.msra.mxu2 %v13982_v1  ;;  %18611 = vst [vmem:[#allocation201_spill] sm:$0xff] %v14153_v5  ;;  %v14155_v46 = vpop.f32.mrf.mxu3  ;;  %v18614_v11 = vand.u32 4294901760, %v18613_v51  ;;  %v6920_v51 = vand.u32 4294901760, %v6919_v33  ;;  %v18621_v33 = vand.u32 4294901760, %v13819_v16  ;;  %v18627_v16 = vand.u32 4294901760, %v13855_v23  ;;  %v18709_v28 = vld [vmem:[#allocation203_spill] sm:$0xff] }
 0x695   :  { %6909 = vmatpush.msra.mxu3 %v6908_v0  ;;  %5914 = vmatmul.f32.gmra.mxu2 %v12839_v3  ;;  %18612 = vst [vmem:[#allocation206_spill] sm:$0xff] %v14155_v46  ;;  %v14164_v0 = vsub.f32 %v6131_v19, %v14132_v54  ;;  %v18619_v19 = vand.u32 4294901760, %v14128_v40  ;;  %v6926_v3 = vand.u32 4294901760, %v6925_v24  ;;  %v18632_v46 = vld [vmem:[#allocation172_spill] sm:$0xff] }
 0x696   :  { %6748 = vmatpush.msra.mxu0 %v18614_v11  ;;  %6789 = vmatpush.msra.mxu1 %v18615_v44  ;;  %v14171_v11 = vsub.f32 %v6129_v48, %v14149_v59  ;;  %v18618_v44 = vand.u32 4294901760, %v13791_v39  ;;  %v18622_v39 = vand.u32 4294901760, %v14140_v34  ;;  %v18633_v23 = vand.u32 4294901760, %v18632_v46 }
 0x697   :  { %6832 = vmatpush.msra.mxu2 %v14006_v8  ;;  %6915 = vmatpush.msra.mxu3 %v6914_v42  ;;  %v6931_v35 = vsub.f32 %v14128_v40, %v18619_v19  ;;  %v18620_v42 = vld [vmem:[#allocation113_spill] sm:$0xff]  ;;  %v18626_v19 = vld [vmem:[#allocation82_spill] sm:$0xff] }
 0x698   :  { %5762 = vmatmul.f32.gmra.mxu0 %v18616_v36  ;;  %6791 = vmatpush.msra.mxu1 %v18617_v15  ;;  %v6937_v48 = vsub.f32 %v14140_v34, %v18622_v39  ;;  %v18630_v39 = vld [vmem:[#allocation163_spill] sm:$0xff] }
 0x699   :  { %6752 = vmatpush.msra.mxu0 %v18618_v44  ;;  %6834 = vmatpush.msra.mxu2 %v14038_v43  ;;  %v14187_v15 = vpop.f32.mrf.mxu0  ;;  %v14189_v44 = vpop.f32.mrf.mxu1 }
 0x69a   :  { %6921 = vmatpush.msra.mxu3 %v6920_v51  ;;  %6793 = vmatpush.msra.mxu1 %v18620_v42  ;;  %18623 = vst [vmem:[#allocation196_spill] sm:$0xff] %v14187_v15  ;;  %v18625_v51 = vld [vmem:[#allocation81_spill] sm:$0xff]  ;;  %v6932_v42 = vand.u32 4294901760, %v6931_v35  ;;  %v6938_v24 = vand.u32 4294901760, %v6937_v48  ;;  %v18634_v35 = vld [vmem:[#allocation167_spill] sm:$0xff]  ;;  %v18670_v15 = vld [vmem:[#allocation122_spill] sm:$0xff] }
 0x69b   :  { %6756 = vmatpush.msra.mxu0 %v18621_v33  ;;  %6836 = vmatpush.msra.mxu2 %v14059_v13  ;;  %18624 = vst [vmem:[#allocation177_spill] sm:$0xff] %v14189_v44  ;;  %v14196_v33 = vpop.f32.mrf.mxu2 }
 0x69c   :  { %6927 = vmatpush.msra.mxu3 %v6926_v3  ;;  %5835 = vmatmul.f32.gmra.mxu1 %v18625_v51  ;;  %18628 = vst [vmem:[#allocation73_spill] sm:$0xff] %v14196_v33  ;;  %v14198_v36 = vpop.f32.mrf.mxu3  ;;  %v18631_v3 = vand.u32 4294901760, %v14164_v0  ;;  %v18637_v33 = vld [vmem:[#allocation168_spill] sm:$0xff] }
 0x69d   :  { %5977 = vmatmul.f32.gmra.mxu3 %v18626_v19  ;;  %6760 = vmatpush.msra.mxu0 %v18627_v16  ;;  %18629 = vst [vmem:[#allocation220_spill] sm:$0xff] %v14198_v36  ;;  %v18635_v16 = vand.u32 4294901760, %v14171_v11 }
 0x69e   :  { %6795 = vmatpush.msra.mxu1 %v18630_v39  ;;  %6838 = vmatpush.msra.mxu2 %v14073_v41  ;;  %v6943_v51 = vsub.f32 %v14164_v0, %v18631_v3  ;;  %v18636_v39 = vld [vmem:[#allocation86_spill] sm:$0xff]  ;;  %v18639_v3 = vld [vmem:[#allocation173_spill] sm:$0xff] }
 0x69f   :  { %6933 = vmatpush.msra.mxu3 %v6932_v42  ;;  %5918 = vmatmul.f32.gmra.mxu2 %v18626_v19  ;;  %v6949_v36 = vsub.f32 %v14171_v11, %v18635_v16  ;;  %v18638_v19 = vand.u32 4294901760, %v13905_v22  ;;  %v18641_v22 = vld [vmem:[#allocation91_spill] sm:$0xff]  ;;  %v18643_v16 = vld [vmem:[#allocation178_spill] sm:$0xff] }
 0x6a0   :  { %6764 = vmatpush.msra.mxu0 %v18633_v23  ;;  %6797 = vmatpush.msra.mxu1 %v18634_v35  ;;  %v6944_v42 = vand.u32 4294901760, %v6943_v51  ;;  %v18642_v35 = vld [vmem:[#allocation92_spill] sm:$0xff] }
 0x6a1   :  { %6840 = vmatpush.msra.mxu2 %v14102_v31  ;;  %6939 = vmatpush.msra.mxu3 %v6938_v24  ;;  %v14218_v46 = vpop.f32.mrf.mxu0  ;;  %v14220_v48 = vpop.f32.mrf.mxu1  ;;  %v6950_v23 = vand.u32 4294901760, %v6949_v36  ;;  %v18640_v24 = vand.u32 4294901760, %v13914_v32  ;;  %v18644_v36 = vld [vmem:[#allocation180_spill] sm:$0xff]  ;;  %v18645_v32 = vld [vmem:[#allocation97_spill] sm:$0xff] }
 0x6a2   :  { %5767 = vmatmul.f32.gmra.mxu0 %v18636_v39  ;;  %6799 = vmatpush.msra.mxu1 %v18637_v33  ;;  %v18646_v39 = vld [vmem:[#allocation186_spill] sm:$0xff] }
 0x6a3   :  { %6768 = vmatpush.msra.mxu0 %v18638_v19  ;;  %6842 = vmatpush.msra.mxu2 %v14117_v2  ;;  %v14226_v33 = vpop.f32.mrf.mxu2 }
 0x6a4   :  { %6945 = vmatpush.msra.mxu3 %v6944_v42  ;;  %6801 = vmatpush.msra.mxu1 %v18639_v3  ;;  %v14228_v51 = vpop.f32.mrf.mxu3  ;;  %v6465_v3 = vld [vmem:[%s17002_s3] sm:$0xff] }
 0x6a5   :  { %6772 = vmatpush.msra.mxu0 %v18640_v24  ;;  %6844 = vmatpush.msra.mxu2 %v14132_v54 }
 0x6a6   :  { %6951 = vmatpush.msra.mxu3 %v6950_v23  ;;  %5841 = vmatmul.f32.gmra.mxu1 %v18641_v22  ;;  %v18651_v22 = vld [vmem:[#allocation102_spill] sm:$0xff] }
 0x6a7   :  { %5981 = vmatmul.f32.gmra.mxu3 %v18642_v35  ;;  %6803 = vmatpush.msra.mxu1 %v18643_v16  ;;  %v14252_v16 = vand.u32 4294901760, %v6465_v3 }
 0x6a8   :  { %6846 = vmatpush.msra.mxu2 %v14149_v59 }
 0x6a9   :  { %5922 = vmatmul.f32.gmra.mxu2 %v18642_v35  ;;  %6805 = vmatpush.msra.mxu1 %v18644_v36  ;;  %v14238_v42 = vpop.f32.mrf.mxu0  ;;  %v14240_v19 = vpop.f32.mrf.mxu1  ;;  %v18652_v35 = vld [vmem:[#allocation110_spill] sm:$0xff]  ;;  %18653 = vst [vmem:[#allocation182_spill] sm:$0xff] %v14252_v16  ;;  %v18654_v36 = vld [vmem:[#allocation107_spill] sm:$0xff] }
 0x6aa   :  { %5772 = vmatmul.f32.gmra.mxu0 %v18645_v32  ;;  %18647 = vst [vmem:[#allocation5_spill] sm:$0xff] %v14238_v42  ;;  %v14257_v32 = vsub.f32 %v6465_v3, %v14252_v16 }
 0x6ab   :  { %6807 = vmatpush.msra.mxu1 %v18646_v39  ;;  %18648 = vst [vmem:[#allocation128_spill] sm:$0xff] %v14240_v19  ;;  %v14246_v23 = vpop.f32.mrf.mxu2  ;;  %v18660_v19 = vld [vmem:[#allocation112_spill] sm:$0xff] }
 0x6ac   :  { %18649 = vst [vmem:[#allocation7_spill] sm:$0xff] %v14246_v23  ;;  %v14248_v24 = vpop.f32.mrf.mxu3 }
 0x6ad   :  { %6809 = vmatpush.msra.mxu1 %v13878_v56  ;;  %18650 = vst [vmem:[#allocation8_spill] sm:$0xff] %v14248_v24 }
 0x6ae   :  { %5847 = vmatmul.f32.gmra.mxu1 %v18651_v22  ;;  %18655 = vst [vmem:[#allocation174_spill] sm:$0xff] %v14257_v32  ;;  %v6466_v22 = vld [vmem:[%s17002_s3 + $0x8] sm:$0xff] }
 0x6af   :  { %5985 = vmatmul.f32.gmra.mxu3 %v18652_v35  ;;  %v14275_v3 = vand.u32 4294901760, %v6466_v22 }
 0x6b1   :  { %5926 = vmatmul.f32.gmra.mxu2 %v18652_v35  ;;  %v14259_v39 = vpop.f32.mrf.mxu0  ;;  %v14261_v56 = vpop.f32.mrf.mxu1  ;;  %v18661_v35 = vld [vmem:[#allocation120_spill] sm:$0xff]  ;;  %18663 = vst [vmem:[#allocation179_spill] sm:$0xff] %v14275_v3 }
 0x6b2   :  { %5777 = vmatmul.f32.gmra.mxu0 %v18654_v36  ;;  %18656 = vst [vmem:[#allocation221_spill] sm:$0xff] %v14259_v39  ;;  %v14273_v36 = vand.u32 4294901760, %v14257_v32 }
 0x6b3   :  { %18657 = vst [vmem:[#allocation9_spill] sm:$0xff] %v14261_v56  ;;  %v14263_v23 = vpop.f32.mrf.mxu2  ;;  %v18664_v56 = vld [vmem:[#allocation117_spill] sm:$0xff] }
 0x6b4   :  { %18658 = vst [vmem:[#allocation133_spill] sm:$0xff] %v14263_v23  ;;  %v14265_v24 = vpop.f32.mrf.mxu3 }
 0x6b5   :  { %18659 = vst [vmem:[#allocation78_spill] sm:$0xff] %v14265_v24  ;;  %v6509_v24 = vsub.f32 %v14257_v32, %v14273_v36 }
 0x6b6   :  { %5853 = vmatmul.f32.gmra.mxu1 %v18660_v19  ;;  %18662 = vst [vmem:[#allocation187_spill] sm:$0xff] %v14273_v36  ;;  %v14286_v19 = vsub.f32 %v6466_v22, %v14275_v3 }
 0x6b7   :  { %5989 = vmatmul.f32.gmra.mxu3 %v18661_v35 }
 0x6b8   :  { %18667 = vst [vmem:[#allocation83_spill] sm:$0xff] %v14286_v19 }
 0x6b9   :  { %5930 = vmatmul.f32.gmra.mxu2 %v18661_v35  ;;  %v14281_v23 = vpop.f32.mrf.mxu0  ;;  %v14283_v39 = vpop.f32.mrf.mxu1  ;;  %v14294_v35 = vand.u32 4294901760, %v6509_v24  ;;  %v18677_v24 = vld [vmem:[#allocation191_spill] sm:$0xff] }
 0x6ba   :  { %5782 = vmatmul.f32.gmra.mxu0 %v18664_v56  ;;  %18665 = vst [vmem:[#allocation10_spill] sm:$0xff] %v14281_v23  ;;  %v14298_v56 = vand.u32 4294901760, %v14286_v19  ;;  %v18681_v23 = vld [vmem:[#allocation68_spill] sm:$0xff] }
 0x6bb   :  { %18666 = vst [vmem:[#allocation138_spill] sm:$0xff] %v14283_v39  ;;  %v14288_v42 = vpop.f32.mrf.mxu2  ;;  %v18673_v39 = vld [vmem:[#allocation164_spill] sm:$0xff] }
 0x6bc   :  { %18668 = vst [vmem:[#allocation11_spill] sm:$0xff] %v14288_v42  ;;  %v14290_v44 = vpop.f32.mrf.mxu3  ;;  %v18674_v22 = vand.u32 4294901760, %v18673_v39  ;;  %v6850_v42 = vsub.f32 %v14286_v19, %v14298_v56 }
 0x6bd   :  { %18669 = vst [vmem:[#allocation222_spill] sm:$0xff] %v14290_v44 }
 0x6be   :  { %5859 = vmatmul.f32.gmra.mxu1 %v18670_v15  ;;  %18671 = vst [vmem:[#allocation62_spill] sm:$0xff] %v14294_v35 }
 0x6bf   :  { %6705 = vmatmul.f32.vlgmr.msrb.gmra.mxu3 %v14273_v36  ;;  %18672 = vst [vmem:[#allocation56_spill] sm:$0xff] %v14298_v56  ;;  %v18678_v36 = vand.u32 4294901760, %v18677_v24 }
 0x6c0   :  { %7120 = vmatpush.msrb.mxu3 %v13810_v45 }
 0x6c1   :  { %6666 = vmatmul.f32.vlgmr.msrb.gmra.mxu2 %v14257_v32  ;;  %v14305_v44 = vpop.f32.mrf.mxu0  ;;  %v14307_v15 = vpop.f32.mrf.mxu1 }
 0x6c2   :  { %7053 = vmatpush.msrb.mxu2 %v18674_v22  ;;  %7122 = vmatpush.msrb.mxu3 %v13833_v27  ;;  %18675 = vst [vmem:[#allocation70_spill] sm:$0xff] %v14305_v44  ;;  %v18698_v44 = vld [vmem:[#allocation149_spill] sm:$0xff] }
 0x6c3   :  { %6511 = vmatmul.f32.vlgmr.msrb.gmra.mxu0 %v14294_v35  ;;  %18676 = vst [vmem:[#allocation75_spill] sm:$0xff] %v14307_v15  ;;  %v14315_v32 = vpop.f32.mrf.mxu2  ;;  %v18682_v35 = vand.u32 4294901760, %v18681_v23 }
 0x6c4   :  { %7057 = vmatpush.msrb.mxu2 %v18678_v36  ;;  %6959 = vmatpush.msrb.mxu0 %v18673_v39  ;;  %18679 = vst [vmem:[#allocation67_spill] sm:$0xff] %v14315_v32  ;;  %v14317_v22 = vpop.f32.mrf.mxu3  ;;  %v18683_v39 = vand.u32 4294901760, %v13918_v30  ;;  %v14327_v36 = vand.u32 4294901760, %v6850_v42  ;;  %v18688_v42 = vld [vmem:[#allocation142_spill] sm:$0xff]  ;;  %v18693_v32 = vld [vmem:[#allocation228_spill] sm:$0xff] }
 0x6c5   :  { %7124 = vmatpush.msrb.mxu3 %v13860_v52  ;;  %18680 = vst [vmem:[#allocation85_spill] sm:$0xff] %v14317_v22  ;;  %v6301_v60 = vmul.f32 %v18688_v42, %v13493_v4 }
 0x6c6   :  { %7061 = vmatpush.msrb.mxu2 %v18682_v35  ;;  %6962 = vmatpush.msrb.mxu0 %v18677_v24  ;;  %18684 = vst [vmem:[#allocation132_spill] sm:$0xff] %v14327_v36  ;;  %v18685_v35 = vand.u32 4294901760, %v13963_v63 }
 0x6c7   :  { %7126 = vmatpush.msrb.mxu3 %v13885_v29  ;;  %6612 = vmatmul.f32.vlgmr.msrb.gmra.mxu1 %v14252_v16 }
 0x6c8   :  { %7012 = vmatpush.msrb.mxu1 %v13810_v45  ;;  %7065 = vmatpush.msrb.mxu2 %v18683_v39  ;;  %v6297_v39 = vmul.f32 %v18688_v42, %v13508_v38 }
 0x6c9   :  { %6965 = vmatpush.msrb.mxu0 %v18681_v23  ;;  %7128 = vmatpush.msrb.mxu3 %v13920_v6  ;;  %v14336_v24 = vpop.f32.mrf.mxu0  ;;  %v14338_v45 = vpop.f32.mrf.mxu1 }
 0x6ca   :  { %7014 = vmatpush.msrb.mxu1 %v13833_v27  ;;  %7069 = vmatpush.msrb.mxu2 %v18685_v35  ;;  %18686 = vst [vmem:[#allocation140_spill] sm:$0xff] %v14336_v24  ;;  %v18689_v27 = vand.u32 4294901760, %v13979_v58  ;;  %v18692_v35 = vld [vmem:[#allocation139_spill] sm:$0xff] }
 0x6cb   :  { %6968 = vmatpush.msrb.mxu0 %v13918_v30  ;;  %7130 = vmatpush.msrb.mxu3 %v13941_v26  ;;  %18687 = vst [vmem:[#allocation14_spill] sm:$0xff] %v14338_v45  ;;  %v14347_v23 = vpop.f32.mrf.mxu2  ;;  %v6305_v22 = vmul.f32 %v18692_v35, %v13515_v12  ;;  %v18694_v45 = vld [vmem:[#allocation189_spill] sm:$0xff]  ;;  %v6307_v5 = vmul.f32 %v18692_v35, %v13497_v14 }
 0x6cc   :  { %6852 = vmatmul.f32.vlgmr.msra.gmra.mxu2 %v14327_v36  ;;  %7016 = vmatpush.msrb.mxu1 %v13860_v52  ;;  %18690 = vst [vmem:[#allocation13_spill] sm:$0xff] %v14347_v23  ;;  %v14349_v30 = vpop.f32.mrf.mxu3  ;;  %v1724_v15 = vadd.f32 %v18694_v45, %v18693_v32  ;;  %v6299_v52 = vmul.f32 %v18688_v42, %v13485_v55  ;;  %v18697_v23 = vld [vmem:[#allocation103_spill] sm:$0xff]  ;;  %v18699_v32 = vld [vmem:[#allocation150_spill] sm:$0xff] }
 0x6cd   :  { %7073 = vmatpush.msrb.mxu2 %v18689_v27  ;;  %6971 = vmatpush.msrb.mxu0 %v13963_v63  ;;  %18691 = vst [vmem:[#allocation124_spill] sm:$0xff] %v14349_v30  ;;  %v6313_v63 = vadd.f32 %v6305_v22, %v6297_v39  ;;  %v18695_v27 = vld [vmem:[#allocation144_spill] sm:$0xff]  ;;  %v18696_v30 = vld [vmem:[#allocation230_spill] sm:$0xff]  ;;  %v5149_v45 = vadd.f32 %v18699_v32, %v18698_v44  ;;  %v18702_v39 = vld [vmem:[#allocation239_spill] sm:$0xff] }
 0x6ce   :  { %7132 = vmatpush.msrb.mxu3 %v13970_v17  ;;  %6774 = vmatmul.f32.vlgmr.msra.gmra.mxu0 %v14252_v16  ;;  %v6273_v36 = vmul.f32 %v18695_v27, %v13508_v38  ;;  %v1732_v24 = vadd.f32 %v18697_v23, %v18696_v30  ;;  %v6249_v23 = vmul.f32 %v18702_v39, %v13508_v38  ;;  %v18703_v30 = vld [vmem:[#allocation93_spill] sm:$0xff] }
 0x6cf   :  { %6953 = vmatmul.f32.vlgmr.msra.gmra.mxu3 %v14275_v3  ;;  %7018 = vmatpush.msrb.mxu1 %v13885_v29  ;;  %v18701_v29 = vld [vmem:[#allocation154_spill] sm:$0xff]  ;;  %v1951_v44 = vadd.f32 %v18703_v30, %v1724_v15  ;;  %v6315_v32 = vadd.f32 %v6307_v5, %v6299_v52  ;;  %v14392_v15 = vand.u32 4294901760, %v6313_v63  ;;  %v18708_v30 = vld [vmem:[#allocation165_spill] sm:$0xff]  ;;  %v18710_v5 = vld [vmem:[#allocation151_spill] sm:$0xff] }
 0x6d0   :  { %7077 = vmatpush.msrb.mxu2 %v18700_v10  ;;  %6974 = vmatpush.msrb.mxu0 %v13979_v58  ;;  %v6281_v22 = vmul.f32 %v18701_v29, %v13515_v12  ;;  %v18704_v10 = vand.u32 4294901760, %v14020_v37  ;;  %v6303_v58 = vmul.f32 %v18688_v42, %v13529_v20  ;;  %v1959_v25 = vadd.f32 %v18709_v28, %v1732_v24 }
 0x6d1   :  { %7134 = vmatpush.msrb.mxu3 %v13982_v1  ;;  %6811 = vmatmul.f32.vlgmr.msra.gmra.mxu1 %v14252_v16  ;;  %v14386_v16 = vpop.f32.mrf.mxu0  ;;  %v14390_v57 = vpop.f32.mrf.mxu1  ;;  %18707 = vst [vmem:[#allocation131_spill] sm:$0xff] %v14392_v15  ;;  %v5235_v52 = vadd.f32 %v18710_v5, %v5149_v45  ;;  %v6311_v42 = vmul.f32 %v18692_v35, %v13518_v47  ;;  %v18714_v45 = vand.u32 4294901760, %v14064_v7 }
 0x6d2   :  { %7020 = vmatpush.msrb.mxu1 %v13920_v6  ;;  %7081 = vmatpush.msrb.mxu2 %v18704_v10  ;;  %18705 = vst [vmem:[#allocation16_spill] sm:$0xff] %v14386_v16  ;;  %v6289_v6 = vadd.f32 %v6281_v22, %v6273_v36  ;;  %v6257_v10 = vmul.f32 %v18708_v30, %v13515_v12 }
 0x6d3   :  { %6977 = vmatpush.msrb.mxu0 %v14004_v21  ;;  %7136 = vmatpush.msrb.mxu3 %v14006_v8  ;;  %18706 = vst [vmem:[#allocation12_spill] sm:$0xff] %v14390_v57  ;;  %v18711_v21 = vand.u32 4294901760, %v14045_v50  ;;  %v6309_v36 = vmul.f32 %v18692_v35, %v13491_v62  ;;  %v14407_v22 = vpop.f32.mrf.mxu2  ;;  %v6319_v5 = vadd.f32 %v6311_v42, %v6303_v58  ;;  %v18719_v58 = vld [vmem:[#allocation153_spill] sm:$0xff] }
 0x6d4   :  { %7022 = vmatpush.msrb.mxu1 %v13941_v26  ;;  %18712 = vst [vmem:[#allocation17_spill] sm:$0xff] %v14407_v22  ;;  %v14409_v28 = vpop.f32.mrf.mxu3  ;;  %v6275_v26 = vmul.f32 %v18695_v27, %v13485_v55  ;;  %v6265_v24 = vadd.f32 %v6257_v10, %v6249_v23  ;;  %v14425_v23 = vand.u32 4294901760, %v6289_v6  ;;  %v14429_v10 = vperm.slane %v1959_v25, 0 }
 0x6d5   :  { %7085 = vmatpush.msrb.mxu2 %v18711_v21  ;;  %6980 = vmatpush.msrb.mxu0 %v14020_v37  ;;  %18713 = vst [vmem:[#allocation15_spill] sm:$0xff] %v14409_v28  ;;  %v6283_v37 = vmul.f32 %v18701_v29, %v13497_v14  ;;  %v6317_v35 = vadd.f32 %v6309_v36, %v6301_v60  ;;  %v14420_v21 = vand.u32 4294901760, %v6315_v32  ;;  %v14448_v36 = vand.u32 4294901760, %v6319_v5 }
 0x6d6   :  { %7138 = vmatpush.msrb.mxu3 %v14038_v43  ;;  %7024 = vmatpush.msrb.mxu1 %v13970_v17  ;;  %v14423_v28 = vsub.f32 %v6313_v63, %v14392_v15  ;;  %18716 = vst [vmem:[#allocation223_spill] sm:$0xff] %v14425_v23  ;;  %v14427_v17 = vperm.slane %v1951_v44, 0  ;;  %v5314_v42 = vadd.f32 %v18719_v58, %v5235_v52  ;;  %v14443_v52 = vand.u32 4294901760, %v6265_v24 }
 0x6d7   :  { %7089 = vmatpush.msrb.mxu2 %v18714_v45  ;;  %6983 = vmatpush.msrb.mxu0 %v14045_v50  ;;  %18715 = vst [vmem:[#allocation19_spill] sm:$0xff] %v14420_v21  ;;  %v18720_v50 = vand.u32 4294901760, %v14090_v9  ;;  %v6251_v60 = vmul.f32 %v18702_v39, %v13485_v55  ;;  %v6287_v63 = vmul.f32 %v18701_v29, %v13518_v47 }
 0x6d8   :  { %7140 = vmatpush.msrb.mxu3 %v14059_v13  ;;  %18717 = vst [vmem:[#allocation20_spill] sm:$0xff] %v14427_v17  ;;  %7026 = vmatpush.msrb.mxu1 %v13982_v1  ;;  %v6285_v25 = vmul.f32 %v18701_v29, %v13491_v62  ;;  %v6291_v44 = vadd.f32 %v6283_v37, %v6275_v26  ;;  %v18722_v1 = vand.u32 4294901760, %v14107_v53  ;;  %v14458_v29 = vand.u32 4294901760, %v6317_v35 }
 0x6d9   :  { %18718 = vst [vmem:[#allocation18_spill] sm:$0xff] %v14429_v10  ;;  %7093 = vmatpush.msrb.mxu2 %v18720_v50  ;;  %6986 = vmatpush.msrb.mxu0 %v14064_v7  ;;  %v6279_v7 = vmul.f32 %v18695_v27, %v13529_v20  ;;  %v6277_v45 = vmul.f32 %v18695_v27, %v13493_v4  ;;  %v14463_v26 = vpop.f32.mrf.mxu0  ;;  %v18724_v27 = vand.u32 4294901760, %v14128_v40 }
 0x6da   :  { %7142 = vmatpush.msrb.mxu3 %v14073_v41  ;;  %18721 = vst [vmem:[#allocation22_spill] sm:$0xff] %v14443_v52  ;;  %7028 = vmatpush.msrb.mxu1 %v14006_v8  ;;  %v6259_v58 = vmul.f32 %v18708_v30, %v13497_v14  ;;  %v14461_v8 = vsub.f32 %v6315_v32, %v14420_v21 }
 0x6db   :  { %7097 = vmatpush.msrb.mxu2 %v18722_v1  ;;  %6989 = vmatpush.msrb.mxu0 %v14090_v9  ;;  %18723 = vst [vmem:[#allocation224_spill] sm:$0xff] %v14463_v26  ;;  %v14467_v50 = vsub.f32 %v6289_v6, %v14425_v23  ;;  %v14472_v9 = vpop.f32.mrf.mxu1  ;;  %v6263_v1 = vmul.f32 %v18708_v30, %v13518_v47  ;;  %v14480_v6 = vand.u32 4294901760, %v6291_v44  ;;  %v14482_v37 = vpop.f32.mrf.mxu2 }
 0x6dc   :  { %7144 = vmatpush.msrb.mxu3 %v14102_v31  ;;  %7030 = vmatpush.msrb.mxu1 %v14038_v43  ;;  %18725 = vst [vmem:[#allocation23_spill] sm:$0xff] %v14472_v9  ;;  %v6261_v32 = vmul.f32 %v18708_v30, %v13491_v62  ;;  %v6267_v22 = vadd.f32 %v6259_v58, %v6251_v60  ;;  %v14484_v43 = vpop.f32.mrf.mxu3  ;;  %v18729_v9 = vand.u32 4294901760, %v14423_v28 }
 0x6dd   :  { %7101 = vmatpush.msrb.mxu2 %v18724_v27  ;;  %6992 = vmatpush.msrb.mxu0 %v14107_v53  ;;  %18726 = vst [vmem:[#allocation21_spill] sm:$0xff] %v14482_v37  ;;  %v14487_v27 = vsub.f32 %v6265_v24, %v14443_v52  ;;  %v14491_v57 = vmul.f32 %v14427_v17, %v13518_v47  ;;  %v18728_v53 = vand.u32 4294901760, %v14140_v34  ;;  %v17439_v37 = vand.u32 4294901760, %v14461_v8 }
 0x6de   :  { %7146 = vmatpush.msrb.mxu3 %v14117_v2  ;;  %18727 = vst [vmem:[#allocation25_spill] sm:$0xff] %v14484_v43  ;;  %v6235_v30 = vmul.f32 %v14429_v10, %v13485_v55  ;;  %7032 = vmatpush.msrb.mxu1 %v14059_v13  ;;  %v14499_v60 = vsub.f32 %v6319_v5, %v14448_v36 }
 0x6df   :  { %7105 = vmatpush.msrb.mxu2 %v18728_v53  ;;  %v6295_v58 = vadd.f32 %v6287_v63, %v6279_v7  ;;  %v6293_v43 = vadd.f32 %v6285_v25, %v6277_v45  ;;  %6995 = vmatpush.msrb.mxu0 %v14128_v40  ;;  %v14504_v24 = vsub.f32 %v6317_v35, %v14458_v29  ;;  %v17440_v53 = vand.u32 4294901760, %v14467_v50 }
 0x6e0   :  { %7148 = vmatpush.msrb.mxu3 %v14132_v54  ;;  %v14510_v13 = vsub.f32 %v14423_v28, %v18729_v9  ;;  %v5431_v5 = vadd.f32 %v14218_v46, %v5314_v42  ;;  %7034 = vmatpush.msrb.mxu1 %v14073_v41  ;;  %v18730_v40 = vand.u32 4294901760, %v14164_v0  ;;  %v14517_v63 = vand.u32 4294901760, %v6267_v22 }
 0x6e1   :  { %v6227_v35 = vmul.f32 %v14427_v17, %v13491_v62  ;;  %v6225_v25 = vmul.f32 %v14427_v17, %v13497_v14  ;;  %6998 = vmatpush.msrb.mxu0 %v14140_v34  ;;  %v14526_v7 = vsub.f32 %v6291_v44, %v14480_v6  ;;  %v6255_v41 = vmul.f32 %v18702_v39, %v13529_v20  ;;  %v14549_v42 = vpop.f32.mrf.mxu0 }
 0x6e2   :  { %7109 = vmatpush.msrb.mxu2 %v18730_v40  ;;  %18731 = vst [vmem:[#allocation225_spill] sm:$0xff] %v14517_v63  ;;  %7150 = vmatpush.msrb.mxu3 %v14149_v59  ;;  %v6253_v46 = vmul.f32 %v18702_v39, %v13493_v4  ;;  %v18732_v45 = vand.u32 4294901760, %v14171_v11  ;;  %v14537_v9 = vand.u32 4294901760, %v6295_v58  ;;  %v14539_v40 = vand.u32 4294901760, %v6293_v43 }
 0x6e3   :  { %7036 = vmatpush.msrb.mxu1 %v14102_v31  ;;  %v6243_v44 = vsub.f32 %v6225_v25, %v6235_v30  ;;  %7001 = vmatpush.msrb.mxu0 %v14164_v0  ;;  %v14547_v31 = vsub.f32 %v14461_v8, %v17439_v37  ;;  %18734 = vst [vmem:[#allocation24_spill] sm:$0xff] %v14549_v42  ;;  %v14569_v42 = vpop.f32.mrf.mxu1 }
 0x6e4   :  { %7113 = vmatpush.msrb.mxu2 %v18732_v45  ;;  %18733 = vst [vmem:[#allocation26_spill] sm:$0xff] %v14537_v9  ;;  %7353 = vmatpush.msra.mxu3 %v14448_v36  ;;  %v14554_v45 = vsub.f32 %v14467_v50, %v17440_v53  ;;  %v6223_v30 = vmul.f32 %v14427_v17, %v13515_v12 }
 0x6e5   :  { %v5500_v25 = vadd.f32 %v14220_v48, %v5431_v5  ;;  %7038 = vmatpush.msrb.mxu1 %v14117_v2  ;;  %v14562_v0 = vsub.f32 %v6267_v22, %v14517_v63  ;;  %v6237_v37 = vmul.f32 %v14429_v10, %v13493_v4  ;;  %7004 = vmatpush.msrb.mxu0 %v14171_v11  ;;  %v14571_v48 = vpop.f32.mrf.mxu2  ;;  %v18737_v2 = vand.u32 4294901760, %v14487_v27 }
 0x6e6   :  { %7300 = vmatpush.msra.mxu2 %v14499_v60  ;;  %7355 = vmatpush.msra.mxu3 %v14458_v29  ;;  %v6271_v39 = vadd.f32 %v6263_v1, %v6255_v41  ;;  %v6269_v34 = vadd.f32 %v6261_v32, %v6253_v46  ;;  %18735 = vst [vmem:[#allocation29_spill] sm:$0xff] %v14569_v42  ;;  %v18738_v5 = vand.u32 4294901760, %v14499_v60  ;;  %v14589_v41 = vpop.f32.mrf.mxu3  ;;  %v14591_v46 = vand.u32 4294901760, %v6243_v44 }
 0x6e7   :  { %18736 = vst [vmem:[#allocation226_spill] sm:$0xff] %v14571_v48  ;;  %v14576_v22 = vsub.f32 %v14487_v27, %v18737_v2  ;;  %7115 = vmatmul.f32.vlgmr.msrb.gmra.mxu2 %v14275_v3  ;;  %7007 = vmatmul.f32.vlgmr.msrb.gmra.mxu0 %v14286_v19  ;;  %v14584_v1 = vsub.f32 %v6295_v58, %v14537_v9  ;;  %v18742_v2 = vand.u32 4294901760, %v14504_v24 }
 0x6e8   :  { %v7200_v11 = vsub.f32 %v14499_v60, %v18738_v5  ;;  %v14587_v32 = vsub.f32 %v6293_v43, %v14539_v40  ;;  %18741 = vst [vmem:[#allocation33_spill] sm:$0xff] %v14589_v41  ;;  %7303 = vmatpush.msra.mxu2 %v14504_v24  ;;  %7040 = vmatpush.msrb.mxu1 %v14132_v54  ;;  %v18743_v43 = vld [vmem:[#allocation146_spill] sm:$0xff]  ;;  %v7213_v54 = vand.u32 4294901760, %v14547_v31  ;;  %v14611_v5 = vand.u32 4294901760, %v6271_v39 }
 0x6e9   :  { %18739 = vst [vmem:[#allocation30_spill] sm:$0xff] %v14584_v1  ;;  %v7206_v53 = vsub.f32 %v14504_v24, %v18742_v2  ;;  %v6233_v58 = vmul.f32 %v14429_v10, %v13508_v38  ;;  %v6397_v19 = vmul.f32 %v18743_v43, %v13493_v4  ;;  %v5563_v41 = vadd.f32 %v14226_v33, %v5500_v25  ;;  %v18746_v25 = vld [vmem:[#allocation175_spill] sm:$0xff] }
 0x6ea   :  { %18740 = vst [vmem:[#allocation28_spill] sm:$0xff] %v14587_v32  ;;  %7157 = vmatpush.msra.mxu0 %v14448_v36  ;;  %7357 = vmatpush.msra.mxu3 %v14420_v21  ;;  %v6239_v48 = vmul.f32 %v14429_v10, %v13529_v20  ;;  %v6245_v2 = vsub.f32 %v6227_v35, %v6237_v37  ;;  %v14613_v42 = vand.u32 4294901760, %v6269_v34  ;;  %v7201_v31 = vand.u32 4294901760, %v7200_v11 }
 0x6eb   :  { %7152 = vmatmul.f32.vlgmr.msrb.gmra.mxu3 %v14275_v3  ;;  %7306 = vmatpush.msra.mxu2 %v14461_v8  ;;  %18744 = vst [vmem:[#allocation27_spill] sm:$0xff] %v14611_v5  ;;  %v6405_v17 = vmul.f32 %v18746_v25, %v13491_v62  ;;  %v14622_v35 = vsub.f32 %v6243_v44, %v14591_v46  ;;  %v7207_v33 = vand.u32 4294901760, %v7206_v53  ;;  %v17450_v10 = vand.u32 4294901760, %v14587_v32 }
 0x6ec   :  { %18745 = vst [vmem:[#allocation34_spill] sm:$0xff] %v14613_v42  ;;  %7042 = vmatpush.msrb.mxu1 %v14149_v59  ;;  %7159 = vmatpush.msra.mxu0 %v14458_v29  ;;  %v6399_v3 = vmul.f32 %v18743_v43, %v13529_v20  ;;  %v6241_v16 = vsub.f32 %v6223_v30, %v6233_v58  ;;  %v14632_v11 = vand.u32 4294901760, %v6245_v2  ;;  %v18748_v30 = vand.u32 4294901760, %v14584_v1 }
 0x6ed   :  { %7359 = vmatpush.msra.mxu3 %v14392_v15  ;;  %7046 = vmatmul.f32.vlgmr.msrb.gmra.mxu1 %v14298_v56  ;;  %v6413_v59 = vadd.f32 %v6405_v17, %v6397_v19  ;;  %v5678_v26 = vadd.f32 %v14228_v51, %v5563_v41  ;;  %v6247_v44 = vsub.f32 %v14491_v57, %v6239_v48  ;;  %v5743_v51 = vpop.f32.mrf.mxu0  ;;  %v5812_v56 = vpop.f32.mrf.mxu1 }
 0x6ee   :  { %7202 = vmatpush.msra.mxu1 %v7201_v31  ;;  %7309 = vmatpush.msra.mxu2 %v14423_v28  ;;  %v6407_v37 = vmul.f32 %v18746_v25, %v13518_v47  ;;  %v14639_v53 = vsub.f32 %v6271_v39, %v14611_v5  ;;  %v14642_v19 = vsub.f32 %v6269_v34, %v14613_v42  ;;  %v5958_v31 = vpop.f32.mrf.mxu3 }
 0x6ef   :  { %7161 = vmatpush.msra.mxu0 %v14420_v21  ;;  %7361 = vmatpush.msra.mxu3 %v14537_v9  ;;  %v6395_v57 = vmul.f32 %v18743_v43, %v13485_v55  ;;  %v7224_v48 = vsub.f32 %v14584_v1, %v18748_v30  ;;  %v5744_v41 = vadd.f32 %v5743_v51, %v5678_v26  ;;  %v14660_v21 = vand.u32 4294901760, %v6241_v16  ;;  %v5899_v26 = vpop.f32.mrf.mxu2 }
 0x6f0   :  { %18747 = vst [vmem:[#allocation32_spill] sm:$0xff] %v14642_v19  ;;  %7208 = vmatpush.msra.mxu1 %v7207_v33  ;;  %7312 = vmatpush.msra.mxu2 %v14584_v1  ;;  %v6415_v58 = vadd.f32 %v6407_v37, %v6399_v3  ;;  %v7230_v34 = vsub.f32 %v14587_v32, %v17450_v10  ;;  %v18749_v33 = vand.u32 4294901760, %v14526_v7  ;;  %v14662_v51 = vand.u32 4294901760, %v6413_v59 }
 0x6f1   :  { %7163 = vmatpush.msra.mxu0 %v14392_v15  ;;  %7363 = vmatpush.msra.mxu3 %v14539_v40  ;;  %v14665_v3 = vand.u32 4294901760, %v6247_v44  ;;  %v14668_v37 = vsub.f32 %v6245_v2, %v14632_v11  ;;  %v5813_v30 = vadd.f32 %v5812_v56, %v5744_v41  ;;  %v6403_v10 = vmul.f32 %v18746_v25, %v13497_v14  ;;  %v6467_v56 = vld [vmem:[%s17002_s3 + $0x10] sm:$0xff] }
 0x6f2   :  { %v7236_v17 = vsub.f32 %v14526_v7, %v18749_v33  ;;  %7214 = vmatpush.msra.mxu1 %v7213_v54  ;;  %7315 = vmatpush.msra.mxu2 %v14587_v32  ;;  %v18752_v54 = vand.u32 4294901760, %v14562_v0  ;;  %v18753_v41 = vand.u32 4294901760, %v14510_v13  ;;  %v14688_v15 = vand.u32 4294901760, %v6415_v58 }
 0x6f3   :  { %18750 = vst [vmem:[#allocation37_spill] sm:$0xff] %v14665_v3  ;;  %7165 = vmatpush.msra.mxu0 %v14537_v9  ;;  %7365 = vmatpush.msra.mxu3 %v14480_v6  ;;  %v7225_v9 = vand.u32 4294901760, %v7224_v48  ;;  %v5900_v33 = vadd.f32 %v5899_v26, %v5813_v30  ;;  %v6411_v39 = vadd.f32 %v6403_v10, %v6395_v57 }
 0x6f4   :  { %18751 = vst [vmem:[#allocation31_spill] sm:$0xff] %v14668_v37  ;;  %v14679_v32 = vsub.f32 %v14562_v0, %v18752_v54  ;;  %7220 = vmatpush.msra.mxu1 %v18753_v41  ;;  %7318 = vmatpush.msra.mxu2 %v14526_v7  ;;  %v7231_v54 = vand.u32 4294901760, %v7230_v34  ;;  %v14693_v1 = vsub.f32 %v6241_v16, %v14660_v21  ;;  %v14707_v34 = vand.u32 4294901760, %v6467_v56 }
 0x6f5   :  { %7167 = vmatpush.msra.mxu0 %v14539_v40  ;;  %7367 = vmatpush.msra.mxu3 %v14425_v23  ;;  %v14696_v2 = vsub.f32 %v6413_v59, %v14662_v51  ;;  %v6393_v13 = vmul.f32 %v18743_v43, %v13508_v38  ;;  %v14702_v48 = vsub.f32 %v6247_v44, %v14665_v3  ;;  %v7237_v16 = vand.u32 4294901760, %v7236_v17 }
 0x6f6   :  { %7226 = vmatpush.msra.mxu1 %v7225_v9  ;;  %7321 = vmatpush.msra.mxu2 %v14467_v50  ;;  %v14704_v10 = vadd.f32 %v5958_v31, %v5900_v33  ;;  %18757 = vst [vmem:[#allocation35_spill] sm:$0xff] %v14707_v34  ;;  %v18758_v59 = vand.u32 4294901760, %v14639_v53  ;;  %v6401_v43 = vmul.f32 %v18746_v25, %v13515_v12  ;;  %v18759_v31 = vand.u32 4294901760, %v14642_v19 }
 0x6f7   :  { %18754 = vst [vmem:[#allocation38_spill] sm:$0xff] %v14696_v2  ;;  %7169 = vmatpush.msra.mxu0 %v14480_v6  ;;  %7369 = vmatpush.msra.mxu3 %v14611_v5  ;;  %v6375_v44 = vmul.f32 %v13923_v49, %v13529_v20  ;;  %v14723_v30 = vsub.f32 %v6415_v58, %v14688_v15  ;;  %v18761_v17 = vand.u32 4294901760, %v14622_v35  ;;  %v14730_v41 = vand.u32 4294901760, %v6411_v39 }
 0x6f8   :  { %18755 = vst [vmem:[#allocation36_spill] sm:$0xff] %v14702_v48  ;;  %v7248_v9 = vsub.f32 %v14639_v53, %v18758_v59  ;;  %7232 = vmatpush.msra.mxu1 %v7231_v54  ;;  %7324 = vmatpush.msra.mxu2 %v14639_v53  ;;  %v7254_v26 = vsub.f32 %v14642_v19, %v18759_v31  ;;  %v7261_v25 = vand.u32 4294901760, %v14679_v32  ;;  %v14735_v54 = vpop.f32.mrf.mxu0  ;;  %v18763_v31 = vld [vmem:[#allocation181_spill] sm:$0xff] }
 0x6f9   :  { %18756 = vst [vmem:[#allocation40_spill] sm:$0xff] %v14704_v10  ;;  %v14728_v33 = vsub.f32 %v14622_v35, %v18761_v17  ;;  %7171 = vmatpush.msra.mxu0 %v14425_v23  ;;  %7371 = vmatpush.msra.mxu3 %v14613_v42  ;;  %v6409_v59 = vadd.f32 %v6401_v43, %v6393_v13  ;;  %v18764_v17 = vand.u32 4294901760, %v14668_v37  ;;  %v14751_v13 = vpop.f32.mrf.mxu3  ;;  %v18767_v23 = vand.u32 4294901760, %v14554_v45 }
 0x6fa   :  { %18760 = vst [vmem:[#allocation41_spill] sm:$0xff] %v14723_v30  ;;  %v6383_v58 = vmul.f32 %v18763_v31, %v13518_v47  ;;  %v6373_v57 = vmul.f32 %v13923_v49, %v13493_v4  ;;  %7238 = vmatpush.msra.mxu1 %v7237_v16  ;;  %7327 = vmatpush.msra.mxu2 %v14642_v19  ;;  %v7249_v16 = vand.u32 4294901760, %v7248_v9 }
 0x6fb   :  { %18762 = vst [vmem:[#allocation232_spill] sm:$0xff] %v14735_v54  ;;  %v14745_v10 = vsub.f32 %v14668_v37, %v18764_v17  ;;  %v14749_v32 = vsub.f32 %v6467_v56, %v14707_v34  ;;  %v6371_v43 = vmul.f32 %v13923_v49, %v13485_v55  ;;  %7173 = vmatpush.msra.mxu0 %v14611_v5  ;;  %v14767_v5 = vpop.f32.mrf.mxu2  ;;  %v14778_v56 = vand.u32 4294901760, %v6409_v59 }
 0x6fc   :  { %18766 = vst [vmem:[#allocation231_spill] sm:$0xff] %v14751_v13  ;;  %7373 = vmatpush.msra.mxu3 %v14517_v63  ;;  %v6391_v19 = vadd.f32 %v6383_v58, %v6375_v44  ;;  %v6381_v17 = vmul.f32 %v18763_v31, %v13491_v62  ;;  %7244 = vmatpush.msra.mxu1 %v18767_v23  ;;  %v7255_v23 = vand.u32 4294901760, %v7254_v26  ;;  %v14776_v58 = vpop.f32.mrf.mxu1  ;;  %v18771_v54 = vand.u32 4294901760, %v14696_v2 }
 0x6fd   :  { %18765 = vst [vmem:[#allocation45_spill] sm:$0xff] %v14749_v32  ;;  %7330 = vmatpush.msra.mxu2 %v14562_v0  ;;  %v14765_v13 = vsub.f32 %v6411_v39, %v14730_v41  ;;  %v6379_v9 = vmul.f32 %v18763_v31, %v13497_v14  ;;  %v6369_v44 = vmul.f32 %v13923_v49, %v13508_v38  ;;  %v14787_v49 = vand.u32 4294901760, %v14749_v32 }
 0x6fe   :  { %18769 = vst [vmem:[#allocation49_spill] sm:$0xff] %v14767_v5  ;;  %7175 = vmatpush.msra.mxu0 %v14613_v42  ;;  %7375 = vmatpush.msra.mxu3 %v14443_v52  ;;  %v6389_v39 = vadd.f32 %v6381_v17, %v6373_v57  ;;  %v14784_v5 = vsub.f32 %v14696_v2, %v18771_v54  ;;  %v18773_v57 = vand.u32 4294901760, %v14702_v48  ;;  %v14797_v45 = vand.u32 4294901760, %v6391_v19 }
 0x6ff   :  { %18768 = vst [vmem:[#allocation39_spill] sm:$0xff] %v14765_v13  ;;  %7250 = vmatpush.msra.mxu1 %v7249_v16  ;;  %7333 = vmatpush.msra.mxu2 %v14487_v27  ;;  %v6387_v42 = vadd.f32 %v6379_v9, %v6371_v43  ;;  %v6377_v26 = vmul.f32 %v18763_v31, %v13515_v12  ;;  %v18774_v31 = vand.u32 4294901760, %v14723_v30  ;;  %v7279_v9 = vand.u32 4294901760, %v14745_v10 }
 0x700   :  { %18770 = vst [vmem:[#allocation130_spill] sm:$0xff] %v14776_v58  ;;  %7177 = vmatpush.msra.mxu0 %v14517_v63  ;;  %7377 = vmatpush.msra.mxu3 %v14665_v3  ;;  %v7272_v16 = vsub.f32 %v14702_v48, %v18773_v57  ;;  %v6351_v54 = vmul.f32 %v14023_v18, %v13529_v20  ;;  %v14812_v17 = vand.u32 4294901760, %v6389_v39  ;;  %v7548_v10 = vand.u32 4294901760, %v14784_v5 }
 0x701   :  { %18772 = vst [vmem:[#allocation127_spill] sm:$0xff] %v14787_v49  ;;  %7256 = vmatpush.msra.mxu1 %v7255_v23  ;;  %7336 = vmatpush.msra.mxu2 %v14702_v48  ;;  %v7541_v43 = vsub.f32 %v14723_v30, %v18774_v31  ;;  %v6385_v2 = vadd.f32 %v6377_v26, %v6369_v44  ;;  %v14822_v26 = vand.u32 4294901760, %v6387_v42  ;;  %v18778_v48 = vand.u32 4294901760, %v14765_v13 }
 0x702   :  { %7179 = vmatpush.msra.mxu0 %v14443_v52  ;;  %7379 = vmatpush.msra.mxu3 %v14632_v11  ;;  %v14810_v57 = vsub.f32 %v6409_v59, %v14778_v56  ;;  %v6359_v23 = vmul.f32 %v14011_v61, %v13518_v47  ;;  %v6349_v31 = vmul.f32 %v14023_v18, %v13493_v4  ;;  %v7273_v58 = vand.u32 4294901760, %v7272_v16  ;;  %v14843_v16 = vpop.f32.mrf.mxu3 }
 0x703   :  { %7262 = vmatpush.msra.mxu1 %v7261_v25  ;;  %7339 = vmatpush.msra.mxu2 %v14668_v37  ;;  %v7191_v44 = vsub.f32 %v14749_v32, %v14787_v49  ;;  %v6347_v59 = vmul.f32 %v14023_v18, %v13485_v55  ;;  %v14829_v30 = vsub.f32 %v6391_v19, %v14797_v45  ;;  %v14831_v25 = vpop.f32.mrf.mxu0  ;;  %v18777_v52 = vand.u32 4294901760, %v14576_v22 }
 0x704   :  { %18775 = vst [vmem:[#allocation114_spill] sm:$0xff] %v14810_v57  ;;  %7181 = vmatpush.msra.mxu0 %v14665_v3  ;;  %7381 = vmatpush.msra.mxu3 %v14591_v46  ;;  %v6367_v37 = vadd.f32 %v6359_v23, %v6351_v54  ;;  %v6357_v5 = vmul.f32 %v14011_v61, %v13491_v62  ;;  %v14841_v63 = vand.u32 4294901760, %v6385_v2 }
 0x705   :  { %18776 = vst [vmem:[#allocation125_spill] sm:$0xff] %v14831_v25  ;;  %7268 = vmatpush.msra.mxu1 %v18777_v52  ;;  %7342 = vmatpush.msra.mxu2 %v14622_v35  ;;  %v7553_v3 = vsub.f32 %v14765_v13, %v18778_v48  ;;  %v6355_v19 = vmul.f32 %v14011_v61, %v13497_v14  ;;  %v7542_v52 = vand.u32 4294901760, %v7541_v43 }
 0x706   :  { %18779 = vst [vmem:[#allocation135_spill] sm:$0xff] %v14841_v63  ;;  %v6345_v54 = vmul.f32 %v14023_v18, %v13508_v38  ;;  %7183 = vmatpush.msra.mxu0 %v14632_v11  ;;  %7383 = vmatpush.msra.mxu3 %v14660_v21  ;;  %v14853_v23 = vsub.f32 %v6389_v39, %v14812_v17  ;;  %v14861_v18 = vpop.f32.mrf.mxu2  ;;  %v18783_v39 = vand.u32 4294901760, %v14693_v1 }
 0x707   :  { %18780 = vst [vmem:[#allocation55_spill] sm:$0xff] %v14843_v16  ;;  %v6365_v48 = vadd.f32 %v6357_v5, %v6349_v31  ;;  %7274 = vmatpush.msra.mxu1 %v7273_v58  ;;  %7345 = vmatpush.msra.mxu2 %v14693_v1  ;;  %v14856_v16 = vand.u32 4294901760, %v7191_v44  ;;  %v14859_v25 = vsub.f32 %v6387_v42, %v14822_v26  ;;  %v14870_v44 = vpop.f32.mrf.mxu1  ;;  %v14872_v5 = vand.u32 4294901760, %v6367_v37  ;;  %v18785_v42 = vld [vmem:[#allocation145_spill] sm:$0xff] }
 0x708   :  { %18782 = vst [vmem:[#allocation126_spill] sm:$0xff] %v14861_v18  ;;  %v6363_v13 = vadd.f32 %v6355_v19, %v6347_v59  ;;  %v6353_v43 = vmul.f32 %v14011_v61, %v13515_v12  ;;  %7543 = vmatpush.msrb.mxu3 %v7542_v52  ;;  %7185 = vmatpush.msra.mxu0 %v14591_v46  ;;  %v7554_v61 = vand.u32 4294901760, %v7553_v3  ;;  %v18787_v52 = vld [vmem:[#allocation134_spill] sm:$0xff]  ;;  %v18788_v31 = vand.u32 4294901760, %v14810_v57 }
 0x709   :  { %18781 = vst [vmem:[#allocation119_spill] sm:$0xff] %v14856_v16  ;;  %v7290_v58 = vsub.f32 %v14693_v1, %v18783_v39  ;;  %v6327_v22 = vmul.f32 %v18785_v42, %v13529_v20  ;;  %7498 = vmatpush.msrb.mxu2 %v14688_v15  ;;  %7280 = vmatpush.msra.mxu1 %v7279_v9  ;;  %v14887_v20 = vand.u32 4294901760, %v6365_v48 }
 0x70a   :  { %18784 = vst [vmem:[#allocation116_spill] sm:$0xff] %v14870_v44  ;;  %v14878_v59 = vsub.f32 %v6385_v2, %v14841_v63  ;;  %v6361_v19 = vadd.f32 %v6353_v43, %v6345_v54  ;;  %v6335_v39 = vmul.f32 %v18787_v52, %v13518_v47  ;;  %7549 = vmatpush.msrb.mxu3 %v7548_v10  ;;  %v14894_v9 = vand.u32 4294901760, %v6363_v13 }
 0x70b   :  { %7187 = vmatpush.msra.mxu0 %v14660_v21  ;;  %v7559_v18 = vsub.f32 %v14810_v57, %v18788_v31  ;;  %18789 = vst [vmem:[#allocation77_spill] sm:$0xff] %v14887_v20  ;;  %v6325_v3 = vmul.f32 %v18785_v42, %v13493_v4  ;;  %7348 = vmatmul.f32.vlgmr.msra.gmra.mxu2 %v14749_v32  ;;  %v18791_v43 = vand.u32 4294901760, %v14728_v33  ;;  %v7291_v31 = vand.u32 4294901760, %v7290_v58 }
 0x70c   :  { %18786 = vst [vmem:[#allocation65_spill] sm:$0xff] %v14878_v59  ;;  %7193 = vmatmul.f32.vlgmr.msra.gmra.mxu0 %v14856_v16  ;;  %v6333_v10 = vmul.f32 %v18787_v52, %v13491_v62  ;;  %v6323_v54 = vmul.f32 %v18785_v42, %v13485_v55  ;;  %7500 = vmatpush.msrb.mxu2 %v14662_v51  ;;  %v18792_v44 = vand.u32 4294901760, %v14829_v30  ;;  %v18794_v57 = vand.u32 4294901760, %v14499_v60  ;;  %v14936_v62 = vpop.f32.mrf.mxu3 }
 0x70d   :  { %18790 = vst [vmem:[#allocation229_spill] sm:$0xff] %v14894_v9  ;;  %7286 = vmatpush.msra.mxu1 %v18791_v43  ;;  %v14907_v2 = vsub.f32 %v6367_v37, %v14872_v5  ;;  %v6343_v16 = vadd.f32 %v6335_v39, %v6327_v22  ;;  %7555 = vmatpush.msrb.mxu3 %v7554_v61  ;;  %v14912_v4 = vand.u32 4294901760, %v6361_v19  ;;  %v7560_v37 = vand.u32 4294901760, %v7559_v18 }
 0x70e   :  { %v7565_v32 = vsub.f32 %v14829_v30, %v18792_v44  ;;  %7394 = vmatpush.msrb.mxu0 %v18794_v57  ;;  %v6331_v33 = vmul.f32 %v18787_v52, %v13497_v14  ;;  %v6321_v58 = vmul.f32 %v18785_v42, %v13508_v38  ;;  %7387 = vmatmul.f32.vlgmr.msra.gmra.mxu3 %v14787_v49  ;;  %v18795_v22 = vand.u32 4294901760, %v14853_v23  ;;  %v14926_v44 = vpop.f32.mrf.mxu0 }
 0x70f   :  { %18793 = vst [vmem:[#allocation194_spill] sm:$0xff] %v14907_v2  ;;  %7502 = vmatpush.msrb.mxu2 %v14730_v41  ;;  %v14924_v57 = vsub.f32 %v6365_v48, %v14887_v20  ;;  %v6341_v61 = vadd.f32 %v6333_v10, %v6325_v3  ;;  %7292 = vmatpush.msra.mxu1 %v7291_v31  ;;  %v18797_v39 = vand.u32 4294901760, %v14504_v24  ;;  %v18798_v42 = vand.u32 4294901760, %v14859_v25 }
 0x710   :  { %v7571_v60 = vsub.f32 %v14853_v23, %v18795_v22  ;;  %v14934_v18 = vsub.f32 %v6363_v13, %v14894_v9  ;;  %18800 = vst [vmem:[#allocation100_spill] sm:$0xff] %v14936_v62  ;;  %v6329_v48 = vmul.f32 %v18787_v52, %v13515_v12  ;;  %7561 = vmatpush.msrb.mxu3 %v7560_v37  ;;  %v7566_v3 = vand.u32 4294901760, %v7565_v32  ;;  %v14952_v52 = vpop.f32.mrf.mxu2 }
 0x711   :  { %18796 = vst [vmem:[#allocation227_spill] sm:$0xff] %v14924_v57  ;;  %7398 = vmatpush.msrb.mxu0 %v18797_v39  ;;  %v7577_v43 = vsub.f32 %v14859_v25, %v18798_v42  ;;  %7294 = vmatmul.f32.vlgmr.msra.gmra.mxu1 %v14707_v34  ;;  %v17481_v10 = vand.u32 4294901760, %v14907_v2  ;;  %v14942_v24 = vand.u32 4294901760, %v6343_v16  ;;  %v6339_v31 = vadd.f32 %v6331_v33, %v6323_v54  ;;  %v14957_v33 = vpop.f32.mrf.mxu1  ;;  %v18809_v54 = vld [vmem:[#allocation19_spill] sm:$0xff] }
 0x712   :  { %18799 = vst [vmem:[#allocation184_spill] sm:$0xff] %v14934_v18  ;;  %7461 = vmatpush.msrb.mxu1 %v14448_v36  ;;  %7504 = vmatpush.msrb.mxu2 %v14778_v56  ;;  %v18801_v13 = vand.u32 4294901760, %v14878_v59  ;;  %v14950_v39 = vsub.f32 %v6361_v19, %v14912_v4  ;;  %v18804_v32 = vand.u32 4294901760, %v14461_v8  ;;  %v7572_v37 = vand.u32 4294901760, %v7571_v60 }
 0x713   :  { %18803 = vst [vmem:[#allocation88_spill] sm:$0xff] %v14952_v52  ;;  %7567 = vmatpush.msrb.mxu3 %v7566_v3  ;;  %v14959_v36 = vand.u32 4294901760, %v6341_v61  ;;  %v6337_v42 = vadd.f32 %v6329_v48, %v6321_v58  ;;  %v7578_v8 = vand.u32 4294901760, %v7577_v43  ;;  %v7589_v60 = vsub.f32 %v14907_v2, %v17481_v10  ;;  %v18807_v58 = vld [vmem:[#allocation143_spill] sm:$0xff]  ;;  %v18823_v2 = vld [vmem:[#allocation160_spill] sm:$0xff]  ;;  %v18824_v52 = vld [vmem:[#allocation161_spill] sm:$0xff] }
 0x714   :  { %v7583_v22 = vsub.f32 %v14878_v59, %v18801_v13  ;;  %18802 = vst [vmem:[#allocation152_spill] sm:$0xff] %v14950_v39  ;;  %7402 = vmatpush.msrb.mxu0 %v18804_v32  ;;  %7463 = vmatpush.msrb.mxu1 %v14458_v29  ;;  %v18805_v13 = vand.u32 4294901760, %v14423_v28  ;;  %v14970_v3 = vsub.f32 %v6343_v16, %v14942_v24  ;;  %v14972_v32 = vand.u32 4294901760, %v6339_v31  ;;  %v18808_v29 = vld [vmem:[#allocation192_spill] sm:$0xff] }
 0x715   :  { %7506 = vmatpush.msrb.mxu2 %v14797_v45  ;;  %7573 = vmatpush.msrb.mxu3 %v7572_v37  ;;  %v2617_v48 = vadd.f32 %v18808_v29, %v18807_v58  ;;  %v18812_v43 = vand.u32 4294901760, %v14924_v57  ;;  %v14985_v19 = vsub.f32 %v6341_v61, %v14959_v36  ;;  %v14987_v49 = vand.u32 4294901760, %v6337_v42  ;;  %v18816_v29 = vld [vmem:[#allocation131_spill] sm:$0xff] }
 0x716   :  { %7406 = vmatpush.msrb.mxu0 %v18805_v13  ;;  %18806 = vst [vmem:[#allocation101_spill] sm:$0xff] %v14970_v3  ;;  %7465 = vmatpush.msrb.mxu1 %v18809_v54  ;;  %v7584_v28 = vand.u32 4294901760, %v7583_v22  ;;  %v18810_v13 = vld [vmem:[#allocation30_spill] sm:$0xff]  ;;  %v6468_v54 = vld [vmem:[%s17002_s3 + $0x18] sm:$0xff]  ;;  %v18815_v22 = vld [vmem:[#allocation44_spill] sm:$0xff]  ;;  %v18819_v61 = vand.u32 4294901760, %v14934_v18  ;;  %v15001_v62 = vpop.f32.mrf.mxu0 }
 0x717   :  { %7508 = vmatpush.msrb.mxu2 %v14812_v17  ;;  %v18811_v37 = vand.u32 4294901760, %v18810_v13  ;;  %7579 = vmatpush.msrb.mxu3 %v7578_v8  ;;  %v7595_v10 = vsub.f32 %v14924_v57, %v18812_v43  ;;  %18813 = vst [vmem:[#allocation111_spill] sm:$0xff] %v14985_v19  ;;  %v2891_v58 = vadd.f32 %v18815_v22, %v2617_v48  ;;  %v18817_v8 = vld [vmem:[#allocation28_spill] sm:$0xff]  ;;  %v18821_v48 = vld [vmem:[#allocation199_spill] sm:$0xff]  ;;  %v18822_v22 = vld [vmem:[#allocation98_spill] sm:$0xff]  ;;  %v18829_v16 = vand.u32 4294901760, %v14950_v39 }
 0x718   :  { %18814 = vst [vmem:[#allocation233_spill] sm:$0xff] %v14987_v49  ;;  %7467 = vmatpush.msrb.mxu1 %v18816_v29  ;;  %v18818_v13 = vand.u32 4294901760, %v18817_v8  ;;  %v7601_v43 = vsub.f32 %v14934_v18, %v18819_v61  ;;  %v15004_v57 = vsub.f32 %v6339_v31, %v14972_v32  ;;  %v2625_v29 = vadd.f32 %v18822_v22, %v18821_v48  ;;  %v18832_v18 = vld [vmem:[#allocation183_spill] sm:$0xff]  ;;  %v18843_v22 = vld [vmem:[#allocation166_spill] sm:$0xff] }
 0x719   :  { %7410 = vmatpush.msrb.mxu0 %v18811_v37  ;;  %7510 = vmatpush.msrb.mxu2 %v14822_v26  ;;  %v7590_v37 = vand.u32 4294901760, %v7589_v60  ;;  %18820 = vst [vmem:[#allocation217_spill] sm:$0xff] %v15001_v62  ;;  %v5153_v8 = vadd.f32 %v18824_v52, %v18823_v2  ;;  %v15012_v60 = vpop.f32.mrf.mxu3  ;;  %v18828_v61 = vand.u32 4294901760, %v14526_v7  ;;  %v7596_v31 = vand.u32 4294901760, %v7595_v10  ;;  %v18831_v52 = vld [vmem:[#allocation47_spill] sm:$0xff]  ;;  %v18834_v62 = vld [vmem:[#allocation216_spill] sm:$0xff]  ;;  %v15032_v10 = vpop.f32.mrf.mxu2 }
 0x71a   :  { %7585 = vmatpush.msrb.mxu3 %v7584_v28  ;;  %18826 = vst [vmem:[#allocation218_spill] sm:$0xff] %v15012_v60  ;;  %v15014_v28 = vand.u32 4294901760, %v6468_v54  ;;  %v7607_v48 = vsub.f32 %v14950_v39, %v18829_v16  ;;  %v15023_v2 = vsub.f32 %v6337_v42, %v14987_v49  ;;  %v18833_v60 = vld [vmem:[#allocation185_spill] sm:$0xff]  ;;  %v18839_v42 = vand.u32 4294901760, %v14467_v50 }
 0x71b   :  { %7414 = vmatpush.msrb.mxu0 %v18818_v13  ;;  %v18825_v13 = vld [vmem:[#allocation26_spill] sm:$0xff]  ;;  %7512 = vmatpush.msrb.mxu2 %v14841_v63  ;;  %v5161_v59 = vadd.f32 %v18833_v60, %v18832_v18  ;;  %v18835_v63 = vld [vmem:[#allocation169_spill] sm:$0xff]  ;;  %18836 = vst [vmem:[#allocation129_spill] sm:$0xff] %v15032_v10  ;;  %v5240_v39 = vadd.f32 %v18843_v22, %v5153_v8 }
 0x71c   :  { %7469 = vmatpush.msrb.mxu1 %v18825_v13  ;;  %18827 = vst [vmem:[#allocation121_spill] sm:$0xff] %v15014_v28  ;;  %7591 = vmatpush.msrb.mxu3 %v7590_v37  ;;  %v3215_v13 = vadd.f32 %v18831_v52, %v2891_v58  ;;  %v5177_v7 = vadd.f32 %v18835_v63, %v18834_v62  ;;  %v18837_v16 = vld [vmem:[#allocation209_spill] sm:$0xff]  ;;  %v18838_v37 = vld [vmem:[#allocation211_spill] sm:$0xff]  ;;  %v7602_v58 = vand.u32 4294901760, %v7601_v43  ;;  %v18840_v52 = vand.u32 4294901760, %v14970_v3  ;;  %v15042_v63 = vpop.f32.mrf.mxu1 }
 0x71d   :  { %7418 = vmatpush.msrb.mxu0 %v18828_v61  ;;  %18830 = vst [vmem:[#allocation212_spill] sm:$0xff] %v15023_v2  ;;  %7514 = vmatpush.msrb.mxu2 %v14872_v5  ;;  %v5173_v61 = vadd.f32 %v18838_v37, %v18837_v16  ;;  %v15049_v50 = vsub.f32 %v6468_v54, %v15014_v28  ;;  %v18845_v43 = vld [vmem:[#allocation171_spill] sm:$0xff]  ;;  %v18847_v37 = vand.u32 4294901760, %v14639_v53 }
 0x71e   :  { %7471 = vmatpush.msrb.mxu1 %v14539_v40  ;;  %7597 = vmatpush.msrb.mxu3 %v7596_v31  ;;  %v7613_v18 = vsub.f32 %v14970_v3, %v18840_v52  ;;  %18841 = vst [vmem:[#allocation42_spill] sm:$0xff] %v15042_v63  ;;  %v18842_v40 = vld [vmem:[#allocation54_spill] sm:$0xff]  ;;  %v18846_v31 = vld [vmem:[#allocation64_spill] sm:$0xff]  ;;  %v18848_v52 = vand.u32 4294901760, %v14985_v19  ;;  %v18851_v62 = vld [vmem:[#allocation195_spill] sm:$0xff] }
 0x71f   :  { %7422 = vmatpush.msrb.mxu0 %v18839_v42  ;;  %v2901_v60 = vadd.f32 %v18842_v40, %v2625_v29  ;;  %7516 = vmatpush.msrb.mxu2 %v14887_v20  ;;  %18844 = vst [vmem:[#allocation43_spill] sm:$0xff] %v15049_v50  ;;  %v5157_v16 = vadd.f32 %v18846_v31, %v18845_v43  ;;  %v7608_v42 = vand.u32 4294901760, %v7607_v48  ;;  %v18850_v40 = vld [vmem:[#allocation193_spill] sm:$0xff]  ;;  %v18853_v63 = vld [vmem:[#allocation223_spill] sm:$0xff] }
 0x720   :  { %7473 = vmatpush.msrb.mxu1 %v14480_v6  ;;  %7603 = vmatpush.msrb.mxu3 %v7602_v58  ;;  %v7619_v29 = vsub.f32 %v14985_v19, %v18848_v52  ;;  %v18849_v6 = vld [vmem:[#allocation188_spill] sm:$0xff]  ;;  %v5165_v54 = vadd.f32 %v18851_v62, %v18850_v40  ;;  %v18852_v3 = vld [vmem:[#allocation201_spill] sm:$0xff]  ;;  %v18854_v53 = vld [vmem:[#allocation123_spill] sm:$0xff]  ;;  %v7614_v8 = vand.u32 4294901760, %v7613_v18 }
 0x721   :  { %7426 = vmatpush.msrb.mxu0 %v18847_v37  ;;  %v5250_v22 = vadd.f32 %v18849_v6, %v5161_v59  ;;  %v5270_v10 = vadd.f32 %v18852_v3, %v5177_v7  ;;  %7518 = vmatpush.msrb.mxu2 %v14894_v9  ;;  %v18855_v58 = vld [vmem:[#allocation202_spill] sm:$0xff]  ;;  %v18856_v43 = vld [vmem:[#allocation213_spill] sm:$0xff]  ;;  %v18857_v37 = vld [vmem:[#allocation32_spill] sm:$0xff]  ;;  %v18859_v59 = vand.u32 4294901760, %v15004_v57 }
 0x722   :  { %7475 = vmatpush.msrb.mxu1 %v18853_v63  ;;  %v5169_v48 = vadd.f32 %v18855_v58, %v18854_v53  ;;  %v5265_v31 = vadd.f32 %v18856_v43, %v5173_v61  ;;  %v18858_v52 = vand.u32 4294901760, %v18857_v37  ;;  %7609 = vmatpush.msrb.mxu3 %v7608_v42  ;;  %v18860_v6 = vld [vmem:[#allocation235_spill] sm:$0xff]  ;;  %v18862_v40 = vld [vmem:[#allocation196_spill] sm:$0xff]  ;;  %v18863_v19 = vld [vmem:[#allocation177_spill] sm:$0xff]  ;;  %v15080_v61 = vand.u32 4294901760, %v15049_v50  ;;  %v15089_v37 = vpop.f32.mrf.mxu0 }
 0x723   :  { %v7625_v62 = vsub.f32 %v15004_v57, %v18859_v59  ;;  %v3460_v3 = vadd.f32 %v18860_v6, %v3215_v13  ;;  %v18861_v7 = vld [vmem:[#allocation159_spill] sm:$0xff]  ;;  %v5181_v9 = vadd.f32 %v18863_v19, %v18862_v40  ;;  %7520 = vmatpush.msrb.mxu2 %v14912_v4  ;;  %v18866_v42 = vld [vmem:[#allocation58_spill] sm:$0xff]  ;;  %v18867_v53 = vld [vmem:[#allocation176_spill] sm:$0xff]  ;;  %v18868_v43 = vand.u32 4294901760, %v14562_v0  ;;  %v15096_v0 = vpop.f32.mrf.mxu3 }
 0x724   :  { %7430 = vmatpush.msrb.mxu0 %v18858_v52  ;;  %v5320_v63 = vadd.f32 %v18861_v7, %v5240_v39  ;;  %v18864_v20 = vld [vmem:[#allocation27_spill] sm:$0xff]  ;;  %18865 = vst [vmem:[#allocation48_spill] sm:$0xff] %v15080_v61  ;;  %v3227_v18 = vadd.f32 %v18866_v42, %v2901_v60  ;;  %v5245_v58 = vadd.f32 %v18867_v53, %v5157_v16  ;;  %v7620_v13 = vand.u32 4294901760, %v7619_v29  ;;  %v18871_v59 = vld [vmem:[#allocation206_spill] sm:$0xff]  ;;  %v18872_v7 = vld [vmem:[#allocation5_spill] sm:$0xff] }
 0x725   :  { %7477 = vmatpush.msrb.mxu1 %v18864_v20  ;;  %7615 = vmatpush.msrb.mxu3 %v7614_v8  ;;  %v18869_v39 = vand.u32 4294901760, %v15023_v2  ;;  %v18870_v20 = vld [vmem:[#allocation190_spill] sm:$0xff]  ;;  %v5356_v6 = vadd.f32 %v18871_v59, %v5270_v10  ;;  %v18875_v8 = vld [vmem:[#allocation204_spill] sm:$0xff]  ;;  %v18878_v10 = vld [vmem:[#allocation73_spill] sm:$0xff] }
 0x726   :  { %7434 = vmatpush.msrb.mxu0 %v18868_v43  ;;  %v5332_v52 = vadd.f32 %v18870_v20, %v5250_v22  ;;  %v5435_v40 = vadd.f32 %v18872_v7, %v5320_v63  ;;  %v18873_v60 = vld [vmem:[#allocation34_spill] sm:$0xff]  ;;  %7522 = vmatpush.msrb.mxu2 %v14942_v24  ;;  %v5260_v42 = vadd.f32 %v18875_v8, %v5169_v48  ;;  %v7626_v22 = vand.u32 4294901760, %v7625_v62  ;;  %v18879_v63 = vld [vmem:[#allocation224_spill] sm:$0xff]  ;;  %v18880_v7 = vld [vmem:[#allocation225_spill] sm:$0xff] }
 0x727   :  { %v7631_v19 = vsub.f32 %v15023_v2, %v18869_v39  ;;  %7479 = vmatpush.msrb.mxu1 %v18873_v60  ;;  %v18874_v16 = vld [vmem:[#allocation198_spill] sm:$0xff]  ;;  %v18877_v39 = vand.u32 4294901760, %v14487_v27  ;;  %7621 = vmatpush.msrb.mxu3 %v7620_v13  ;;  %v5275_v20 = vadd.f32 %v18878_v10, %v5181_v9  ;;  %v5459_v59 = vadd.f32 %v18879_v63, %v5356_v6  ;;  %v15109_v60 = vpop.f32.mrf.mxu2  ;;  %v18885_v8 = vld [vmem:[#allocation36_spill] sm:$0xff] }
 0x728   :  { %v5255_v29 = vadd.f32 %v18874_v16, %v5165_v54  ;;  %v18876_v53 = vld [vmem:[#allocation214_spill] sm:$0xff]  ;;  %7524 = vmatpush.msrb.mxu2 %v14959_v36  ;;  %v7532_v54 = vsub.f32 %v15049_v50, %v15080_v61  ;;  %v18886_v9 = vand.u32 4294901760, %v18885_v8  ;;  %v18888_v63 = vld [vmem:[#allocation128_spill] sm:$0xff] }
 0x729   :  { %v5350_v43 = vadd.f32 %v18876_v53, %v5265_v31  ;;  %7438 = vmatpush.msrb.mxu0 %v18877_v39  ;;  %7481 = vmatpush.msrb.mxu1 %v18880_v7  ;;  %v18881_v48 = vld [vmem:[#allocation46_spill] sm:$0xff]  ;;  %v7632_v6 = vand.u32 4294901760, %v7631_v19  ;;  %v15118_v53 = vpop.f32.mrf.mxu1  ;;  %v18887_v39 = vld [vmem:[#allocation59_spill] sm:$0xff]  ;;  %v5504_v7 = vadd.f32 %v18888_v63, %v5435_v40  ;;  %v18889_v61 = vld [vmem:[#allocation16_spill] sm:$0xff] }
 0x72a   :  { %v15112_v31 = vadd.f32 %v18881_v48, %v3460_v3  ;;  %v18883_v27 = vld [vmem:[#allocation118_spill] sm:$0xff]  ;;  %7627 = vmatpush.msrb.mxu3 %v7626_v22  ;;  %v3468_v10 = vadd.f32 %v18887_v39, %v3227_v18  ;;  %7526 = vmatpush.msrb.mxu2 %v14972_v32  ;;  %v18891_v3 = vld [vmem:[#allocation200_spill] sm:$0xff]  ;;  %v18896_v18 = vld [vmem:[#allocation207_spill] sm:$0xff] }
 0x72b   :  { %v5326_v16 = vadd.f32 %v18883_v27, %v5245_v58  ;;  %v18884_v13 = vld [vmem:[#allocation10_spill] sm:$0xff]  ;;  %7442 = vmatpush.msrb.mxu0 %v18886_v9  ;;  %v5455_v50 = vadd.f32 %v18889_v61, %v5350_v43  ;;  %v5338_v58 = vadd.f32 %v18891_v3, %v5255_v29  ;;  %v18893_v27 = vld [vmem:[#allocation31_spill] sm:$0xff]  ;;  %v18895_v19 = vld [vmem:[#allocation20_spill] sm:$0xff]  ;;  %v5344_v8 = vadd.f32 %v18896_v18, %v5260_v42  ;;  %v5773_v42 = vpop.f32.mrf.mxu0 }
 0x72c   :  { %18882 = vst [vmem:[#allocation236_spill] sm:$0xff] %v15112_v31  ;;  %v5443_v62 = vadd.f32 %v18884_v13, %v5332_v52  ;;  %v18890_v2 = vld [vmem:[#allocation22_spill] sm:$0xff]  ;;  %v18892_v52 = vld [vmem:[#allocation221_spill] sm:$0xff]  ;;  %v18894_v13 = vand.u32 4294901760, %v18893_v27  ;;  %7633 = vmatpush.msrb.mxu3 %v7632_v6  ;;  %v6443_v22 = vmul.f32 %v18895_v19, %v13485_v55  ;;  %v18897_v40 = vld [vmem:[#allocation220_spill] sm:$0xff]  ;;  %7528 = vmatpush.msrb.mxu2 %v14987_v49  ;;  %v15136_v29 = vand.u32 4294901760, %v7532_v54 }
 0x72d   :  { %7483 = vmatpush.msrb.mxu1 %v18890_v2  ;;  %v5439_v48 = vadd.f32 %v18892_v52, %v5326_v16  ;;  %v5362_v9 = vadd.f32 %v18897_v40, %v5275_v20  ;;  %v18898_v61 = vld [vmem:[#allocation23_spill] sm:$0xff]  ;;  %v18899_v2 = vld [vmem:[#allocation37_spill] sm:$0xff]  ;;  %v18901_v16 = vld [vmem:[#allocation138_spill] sm:$0xff]  ;;  %v18903_v6 = vand.u32 4294901760, %v14622_v35  ;;  %v18911_v35 = vand.u32 4294901760, %v14693_v1  ;;  %7635 = vmatmul.f32.vlgmr.msrb.gmra.mxu3 %v15014_v28 }
 0x72e   :  { %7446 = vmatpush.msrb.mxu0 %v18894_v13  ;;  %v5528_v43 = vadd.f32 %v18898_v61, %v5459_v59  ;;  %18900 = vst [vmem:[#allocation237_spill] sm:$0xff] %v15136_v29  ;;  %v5512_v39 = vadd.f32 %v18901_v16, %v5443_v62  ;;  %v18902_v63 = vld [vmem:[#allocation70_spill] sm:$0xff]  ;;  %7802 = vmatpush.msra.mxu3 %v14688_v15  ;;  %v18905_v59 = vld [vmem:[#allocation7_spill] sm:$0xff]  ;;  %v18906_v13 = vld [vmem:[#allocation140_spill] sm:$0xff] }
 0x72f   :  { %7485 = vmatpush.msrb.mxu1 %v18899_v2  ;;  %v5447_v3 = vadd.f32 %v18902_v63, %v5338_v58  ;;  %v18904_v20 = vld [vmem:[#allocation18_spill] sm:$0xff]  ;;  %v5571_v27 = vadd.f32 %v18905_v59, %v5504_v7  ;;  %v5451_v18 = vadd.f32 %v18906_v13, %v5344_v8  ;;  %v18907_v40 = vld [vmem:[#allocation12_spill] sm:$0xff]  ;;  %v18908_v61 = vld [vmem:[#allocation41_spill] sm:$0xff]  ;;  %v6441_v7 = vmul.f32 %v18895_v19, %v13508_v38 }
 0x730   :  { %7450 = vmatpush.msrb.mxu0 %v18903_v6  ;;  %v6451_v52 = vmul.f32 %v18904_v20, %v13497_v14  ;;  %v5524_v54 = vadd.f32 %v18907_v40, %v5455_v50  ;;  %v18909_v2 = vand.u32 4294901760, %v18908_v61  ;;  %v18910_v62 = vld [vmem:[#allocation9_spill] sm:$0xff]  ;;  %7804 = vmatpush.msra.mxu3 %v14662_v51  ;;  %v18912_v63 = vld [vmem:[#allocation238_spill] sm:$0xff]  ;;  %v18915_v59 = vld [vmem:[#allocation24_spill] sm:$0xff] }
 0x731   :  { %7487 = vmatpush.msrb.mxu1 %v14632_v11  ;;  %v5508_v58 = vadd.f32 %v18910_v62, %v5439_v48  ;;  %v15158_v8 = vadd.f32 %v18912_v63, %v3468_v10  ;;  %v18914_v50 = vld [vmem:[#allocation21_spill] sm:$0xff]  ;;  %v5463_v13 = vadd.f32 %v18915_v59, %v5362_v9  ;;  %7534 = vmatmul.f32.vlgmr.msrb.gmra.mxu2 %v15136_v29  ;;  %v15164_v11 = vpop.f32.mrf.mxu3  ;;  %v18916_v48 = vld [vmem:[#allocation11_spill] sm:$0xff]  ;;  %v15171_v10 = vpop.f32.mrf.mxu1 }
 0x732   :  { %7735 = vmatpush.msra.mxu2 %v18909_v2  ;;  %7454 = vmatpush.msrb.mxu0 %v18911_v35  ;;  %v6459_v16 = vadd.f32 %v6451_v52, %v6443_v22  ;;  %v5619_v6 = vadd.f32 %v18914_v50, %v5528_v43  ;;  %v5587_v1 = vadd.f32 %v18916_v48, %v5512_v39  ;;  %v18917_v40 = vld [vmem:[#allocation75_spill] sm:$0xff]  ;;  %v18918_v52 = vld [vmem:[#allocation38_spill] sm:$0xff]  ;;  %v18920_v43 = vld [vmem:[#allocation8_spill] sm:$0xff]  ;;  %v15180_v39 = vpop.f32.mrf.mxu2 }
 0x733   :  { %18913 = vst [vmem:[#allocation57_spill] sm:$0xff] %v15158_v8  ;;  %7456 = vmatmul.f32.vlgmr.msrb.gmra.mxu0 %v14707_v34  ;;  %v5516_v22 = vadd.f32 %v18917_v40, %v5447_v3  ;;  %v18919_v2 = vand.u32 4294901760, %v18918_v52  ;;  %7489 = vmatpush.msrb.mxu1 %v14591_v46  ;;  %v6449_v9 = vmul.f32 %v18904_v20, %v13515_v12  ;;  %v18921_v35 = vld [vmem:[#allocation14_spill] sm:$0xff]  ;;  %v18922_v50 = vld [vmem:[#allocation17_spill] sm:$0xff]  ;;  %v18924_v46 = vld [vmem:[#allocation39_spill] sm:$0xff] }
 0x734   :  { %v5682_v62 = vadd.f32 %v18920_v43, %v5571_v27  ;;  %v5520_v63 = vadd.f32 %v18921_v35, %v5451_v18  ;;  %v5611_v59 = vadd.f32 %v18922_v50, %v5524_v54  ;;  %7641 = vmatpush.msra.mxu0 %v18908_v61  ;;  %7806 = vmatpush.msra.mxu3 %v14730_v41  ;;  %v18923_v3 = vld [vmem:[#allocation133_spill] sm:$0xff]  ;;  %v18925_v40 = vand.u32 4294901760, %v18924_v46  ;;  %v18930_v29 = vld [vmem:[#allocation67_spill] sm:$0xff] }
 0x735   :  { %7739 = vmatpush.msra.mxu2 %v18919_v2  ;;  %v5579_v48 = vadd.f32 %v18923_v3, %v5508_v58  ;;  %v15188_v27 = vmul.f32 %v18904_v20, %v13518_v47  ;;  %v15190_v18 = vand.u32 4294901760, %v6459_v16  ;;  %v6457_v54 = vadd.f32 %v6449_v9, %v6441_v7  ;;  %v18926_v2 = vld [vmem:[#allocation25_spill] sm:$0xff]  ;;  %7491 = vmatpush.msrb.mxu1 %v14660_v21  ;;  %v18929_v3 = vld [vmem:[#allocation222_spill] sm:$0xff]  ;;  %v5778_v7 = vpop.f32.mrf.mxu0  ;;  %v18931_v9 = vld [vmem:[#allocation136_spill] sm:$0xff] }
 0x736   :  { %v5706_v61 = vadd.f32 %v18926_v2, %v5619_v6  ;;  %v18927_v43 = vld [vmem:[#allocation29_spill] sm:$0xff]  ;;  %7644 = vmatpush.msra.mxu0 %v18918_v52  ;;  %v5595_v28 = vadd.f32 %v18930_v29, %v5516_v22  ;;  %7808 = vmatpush.msra.mxu3 %v14778_v56  ;;  %v6453_v6 = vmul.f32 %v18904_v20, %v18931_v9  ;;  %v18933_v21 = vld [vmem:[#allocation15_spill] sm:$0xff]  ;;  %v18934_v52 = vld [vmem:[#allocation114_spill] sm:$0xff] }
 0x737   :  { %7743 = vmatpush.msra.mxu2 %v18925_v40  ;;  %v5532_v35 = vadd.f32 %v18927_v43, %v5463_v13  ;;  %v18928_v58 = vld [vmem:[#allocation137_spill] sm:$0xff]  ;;  %v5690_v40 = vadd.f32 %v18929_v3, %v5587_v1  ;;  %7493 = vmatmul.f32.vlgmr.msrb.gmra.mxu1 %v14707_v34  ;;  %v5702_v43 = vadd.f32 %v18933_v21, %v5611_v59  ;;  %v18935_v49 = vand.u32 4294901760, %v18934_v52  ;;  %v18936_v3 = vld [vmem:[#allocation78_spill] sm:$0xff] }
 0x738   :  { %v6445_v50 = vmul.f32 %v18895_v19, %v18928_v58  ;;  %v18932_v13 = vld [vmem:[#allocation13_spill] sm:$0xff]  ;;  %7694 = vmatpush.msra.mxu1 %v14688_v15  ;;  %v5779_v1 = vadd.f32 %v5778_v7, %v5706_v61  ;;  %v5686_v29 = vadd.f32 %v18936_v3, %v5579_v48  ;;  %7647 = vmatpush.msra.mxu0 %v18924_v46  ;;  %v18937_v59 = vld [vmem:[#allocation226_spill] sm:$0xff]  ;;  %v18938_v15 = vand.u32 4294901760, %v14829_v30 }
 0x739   :  { %v5603_v2 = vadd.f32 %v18932_v13, %v5520_v63  ;;  %7747 = vmatpush.msra.mxu2 %v18935_v49  ;;  %v5759_v22 = vadd.f32 %v14926_v44, %v5690_v40  ;;  %7810 = vmatpush.msra.mxu3 %v14797_v45  ;;  %v15214_v20 = vsub.f32 %v6459_v16, %v15190_v18  ;;  %v15216_v63 = vand.u32 4294901760, %v6457_v54  ;;  %v18939_v44 = vld [vmem:[#allocation85_spill] sm:$0xff]  ;;  %v5854_v16 = vpop.f32.mrf.mxu1  ;;  %v5986_v7 = vpop.f32.mrf.mxu3 }
 0x73a   :  { %v5627_v13 = vadd.f32 %v18937_v59, %v5532_v35  ;;  %7696 = vmatpush.msra.mxu1 %v14662_v51  ;;  %v5774_v49 = vadd.f32 %v5773_v42, %v5702_v43  ;;  %v15222_v48 = vadd.f32 %v6453_v6, %v6445_v50  ;;  %v5694_v61 = vadd.f32 %v18939_v44, %v5595_v28  ;;  %v18940_v46 = vld [vmem:[#allocation125_spill] sm:$0xff]  ;;  %v18941_v35 = vld [vmem:[#allocation158_spill] sm:$0xff]  ;;  %v18942_v51 = vld [vmem:[#allocation124_spill] sm:$0xff]  ;;  %v5927_v50 = vpop.f32.mrf.mxu2 }
 0x73b   :  { %7751 = vmatpush.msra.mxu2 %v18938_v15  ;;  %v5754_v40 = vadd.f32 %v18940_v46, %v5686_v29  ;;  %7650 = vmatpush.msra.mxu0 %v18934_v52  ;;  %v15230_v21 = vmul.f32 %v18941_v35, %v13518_v47  ;;  %v5698_v3 = vadd.f32 %v18942_v51, %v5603_v2  ;;  %v18943_v42 = vand.u32 4294901760, %v14853_v23  ;;  %v18944_v47 = vld [vmem:[#allocation141_spill] sm:$0xff]  ;;  %v18948_v59 = vld [vmem:[#allocation116_spill] sm:$0xff] }
 0x73c   :  { %7812 = vmatpush.msra.mxu3 %v14812_v17  ;;  %7698 = vmatpush.msra.mxu1 %v14730_v41  ;;  %v5855_v28 = vadd.f32 %v5854_v16, %v5779_v1  ;;  %v15238_v6 = vmul.f32 %v18941_v35, %v18931_v9  ;;  %v5831_v43 = vadd.f32 %v14957_v33, %v5759_v22  ;;  %v18945_v52 = vld [vmem:[#allocation33_spill] sm:$0xff]  ;;  %v18946_v9 = vand.u32 4294901760, %v14859_v25 }
 0x73d   :  { %7755 = vmatpush.msra.mxu2 %v18943_v42  ;;  %7653 = vmatpush.msra.mxu0 %v14829_v30  ;;  %v6447_v2 = vmul.f32 %v18895_v19, %v18944_v47  ;;  %v15246_v41 = vsub.f32 %v6457_v54, %v15216_v63  ;;  %v5710_v29 = vadd.f32 %v18945_v52, %v5627_v13  ;;  %v18947_v30 = vld [vmem:[#allocation232_spill] sm:$0xff]  ;;  %v18949_v19 = vld [vmem:[#allocation135_spill] sm:$0xff]  ;;  %v5783_v54 = vpop.f32.mrf.mxu0 }
 0x73e   :  { %7814 = vmatpush.msra.mxu3 %v14822_v26  ;;  %v5769_v1 = vadd.f32 %v15089_v37, %v5698_v3  ;;  %7700 = vmatpush.msra.mxu1 %v14778_v56  ;;  %v5849_v33 = vadd.f32 %v15171_v10, %v5774_v49  ;;  %v5749_v22 = vadd.f32 %v18947_v30, %v5682_v62  ;;  %v18950_v13 = vld [vmem:[#allocation147_spill] sm:$0xff]  ;;  %v18951_v37 = vld [vmem:[#allocation217_spill] sm:$0xff]  ;;  %v18954_v62 = vld [vmem:[#allocation88_spill] sm:$0xff] }
 0x73f   :  { %7759 = vmatpush.msra.mxu2 %v18946_v9  ;;  %v5825_v15 = vadd.f32 %v18948_v59, %v5754_v40  ;;  %7656 = vmatpush.msra.mxu0 %v14853_v23  ;;  %v6417_v44 = vmul.f32 %v18950_v13, %v13508_v38  ;;  %v5764_v46 = vadd.f32 %v18951_v37, %v5694_v61  ;;  %v18952_v56 = vld [vmem:[#allocation65_spill] sm:$0xff]  ;;  %v18955_v40 = vld [vmem:[#allocation194_spill] sm:$0xff]  ;;  %v18961_v52 = vld [vmem:[#allocation227_spill] sm:$0xff] }
 0x740   :  { %7816 = vmatpush.msra.mxu3 %v18949_v19  ;;  %7702 = vmatpush.msra.mxu1 %v14797_v45  ;;  %v18953_v16 = vand.u32 4294901760, %v18952_v56  ;;  %v5928_v10 = vadd.f32 %v5927_v50, %v5855_v28  ;;  %v5784_v49 = vadd.f32 %v5783_v54, %v5710_v29  ;;  %v5912_v51 = vadd.f32 %v18954_v62, %v5831_v43  ;;  %v18958_v50 = vld [vmem:[#allocation126_spill] sm:$0xff]  ;;  %v18963_v9 = vld [vmem:[#allocation100_spill] sm:$0xff]  ;;  %v18964_v30 = vld [vmem:[#allocation229_spill] sm:$0xff] }
 0x741   :  { %7659 = vmatpush.msra.mxu0 %v14859_v25  ;;  %v6463_v23 = vadd.f32 %v15188_v27, %v6447_v2  ;;  %v6425_v38 = vmul.f32 %v18941_v35, %v13515_v12  ;;  %v5843_v61 = vadd.f32 %v15118_v53, %v5769_v1  ;;  %v5924_v45 = vadd.f32 %v15180_v39, %v5849_v33  ;;  %v18957_v25 = vld [vmem:[#allocation130_spill] sm:$0xff]  ;;  %v18959_v27 = vld [vmem:[#allocation77_spill] sm:$0xff]  ;;  %v5860_v12 = vpop.f32.mrf.mxu1  ;;  %v5990_v59 = vpop.f32.mrf.mxu3  ;;  %v18966_v37 = vld [vmem:[#allocation184_spill] sm:$0xff] }
 0x742   :  { %7763 = vmatpush.msra.mxu2 %v18953_v16  ;;  %7818 = vmatpush.msra.mxu3 %v14872_v5  ;;  %v18956_v3 = vand.u32 4294901760, %v18955_v40  ;;  %v6427_v42 = vmul.f32 %v18941_v35, %v13497_v14  ;;  %v5819_v28 = vadd.f32 %v18957_v25, %v5749_v22  ;;  %v5908_v43 = vadd.f32 %v18958_v50, %v5825_v15  ;;  %v5931_v1 = vpop.f32.mrf.mxu2  ;;  %v18968_v16 = vld [vmem:[#allocation49_spill] sm:$0xff] }
 0x743   :  { %7704 = vmatpush.msra.mxu1 %v14812_v17  ;;  %7662 = vmatpush.msra.mxu0 %v18952_v56  ;;  %v6433_v53 = vadd.f32 %v6425_v38, %v6417_v44  ;;  %v15282_v39 = vperm.slane %v15112_v31, 0  ;;  %v18960_v17 = vld [vmem:[#allocation42_spill] sm:$0xff]  ;;  %v18962_v29 = vand.u32 4294901760, %v18961_v52  ;;  %v15288_v14 = vadd.f32 %v5986_v7, %v5928_v10 }
 0x744   :  { %7767 = vmatpush.msra.mxu2 %v18956_v3  ;;  %7820 = vmatpush.msra.mxu3 %v18959_v27  ;;  %v5837_v2 = vadd.f32 %v18960_v17, %v5764_v46  ;;  %v5861_v35 = vadd.f32 %v5860_v12, %v5784_v49  ;;  %v15291_v33 = vadd.f32 %v18963_v9, %v5912_v51  ;;  %v15295_v22 = vand.u32 4294901760, %v6463_v23  ;;  %v18972_v51 = vld [vmem:[#allocation152_spill] sm:$0xff]  ;;  %v18978_v12 = vld [vmem:[#allocation231_spill] sm:$0xff]  ;;  %v18980_v17 = vld [vmem:[#allocation218_spill] sm:$0xff] }
 0x745   :  { %7706 = vmatpush.msra.mxu1 %v14822_v26  ;;  %7665 = vmatpush.msra.mxu0 %v18955_v40  ;;  %v6421_v26 = vmul.f32 %v18950_v13, %v18928_v58  ;;  %v6419_v15 = vmul.f32 %v18950_v13, %v13485_v55  ;;  %v15302_v7 = vperm.slane %v15158_v8, 3  ;;  %v5920_v54 = vadd.f32 %v15109_v60, %v5843_v61  ;;  %v18969_v58 = vld [vmem:[#allocation55_spill] sm:$0xff] }
 0x746   :  { %7771 = vmatpush.msra.mxu2 %v18962_v29  ;;  %7822 = vmatpush.msra.mxu3 %v18964_v30  ;;  %v15306_v44 = vadd.f32 %v15164_v11, %v5924_v45  ;;  %v18967_v46 = vand.u32 4294901760, %v18966_v37  ;;  %v5932_v56 = vadd.f32 %v5931_v1, %v5861_v35  ;;  %v5904_v10 = vadd.f32 %v18968_v16, %v5819_v28  ;;  %v18976_v28 = vld [vmem:[#allocation101_spill] sm:$0xff] }
 0x747   :  { %18965 = vst [vmem:[#allocation63_spill] sm:$0xff] %v15302_v7  ;;  %7708 = vmatpush.msra.mxu1 %v18949_v19  ;;  %v15313_v49 = vadd.f32 %v18969_v58, %v5908_v43  ;;  %7668 = vmatpush.msra.mxu0 %v18961_v52  ;;  %v6423_v55 = vmul.f32 %v18950_v13, %v18944_v47  ;;  %v15319_v60 = vand.u32 4294901760, %v6433_v53  ;;  %v15322_v11 = vperm.slane %v15112_v31, 3  ;;  %v18971_v19 = vld [vmem:[#allocation129_spill] sm:$0xff]  ;;  %v18981_v52 = vld [vmem:[#allocation111_spill] sm:$0xff]  ;;  %v18987_v58 = vld [vmem:[#allocation212_spill] sm:$0xff] }
 0x748   :  { %7775 = vmatpush.msra.mxu2 %v18967_v46  ;;  %7824 = vmatpush.msra.mxu3 %v14912_v4  ;;  %v5916_v62 = vadd.f32 %v18971_v19, %v5837_v2  ;;  %v18973_v38 = vand.u32 4294901760, %v18972_v51  ;;  %v15328_v61 = vadd.f32 %v5990_v59, %v5932_v56  ;;  %v6100_v45 = vmul.f32 %v15302_v7, %v15288_v14  ;;  %v18986_v46 = vld [vmem:[#allocation233_spill] sm:$0xff] }
 0x749   :  { %18970 = vst [vmem:[#allocation71_spill] sm:$0xff] %v15322_v11  ;;  %7710 = vmatpush.msra.mxu1 %v14872_v5  ;;  %7671 = vmatpush.msra.mxu0 %v18966_v37  ;;  %v15335_v47 = vsub.f32 %v6463_v23, %v15295_v22  ;;  %v15338_v13 = vand.u32 4294901760, %v15222_v48  ;;  %v6437_v5 = vadd.f32 %v15238_v6, %v6421_v26  ;;  %v15342_v3 = vperm.slane %v15112_v31, 1 }
 0x74a   :  { %7779 = vmatpush.msra.mxu2 %v18973_v38  ;;  %18974 = vst [vmem:[#allocation170_spill] sm:$0xff] %v15328_v61  ;;  %7826 = vmatpush.msra.mxu3 %v14942_v24  ;;  %v6435_v40 = vadd.f32 %v6427_v42, %v6419_v15  ;;  %v15345_v25 = vadd.f32 %v15096_v0, %v5920_v54  ;;  %v18977_v50 = vand.u32 4294901760, %v18976_v28  ;;  %v17515_v42 = vand.u32 4294901760, %v15246_v41 }
 0x74b   :  { %7712 = vmatpush.msra.mxu1 %v18959_v27  ;;  %v6090_v23 = vmul.f32 %v15322_v11, %v15291_v33  ;;  %v6098_v43 = vmul.f32 %v15302_v7, %v15306_v44  ;;  %v15355_v6 = vadd.f32 %v18978_v12, %v5904_v10  ;;  %7674 = vmatpush.msra.mxu0 %v18972_v51  ;;  %v18982_v29 = vand.u32 4294901760, %v18981_v52  ;;  %v18990_v12 = vld [vmem:[#allocation40_spill] sm:$0xff] }
 0x74c   :  { %18975 = vst [vmem:[#allocation155_spill] sm:$0xff] %v15345_v25  ;;  %7783 = vmatpush.msra.mxu2 %v18977_v50  ;;  %7828 = vmatpush.msra.mxu3 %v14959_v36  ;;  %v6439_v0 = vadd.f32 %v15230_v21, %v6423_v55  ;;  %v15362_v27 = vsub.f32 %v6433_v53, %v15319_v60  ;;  %v6469_v21 = vld [vmem:[%s17002_s3 + $0x20] sm:$0xff]  ;;  %v15381_v9 = vand.u32 4294901760, %v6437_v5  ;;  %v15384_v59 = vand.u32 4294901760, %v6435_v40 }
 0x74d   :  { %18979 = vst [vmem:[#allocation76_spill] sm:$0xff] %v15355_v6  ;;  %v15365_v2 = vadd.f32 %v18980_v17, %v5916_v62  ;;  %7714 = vmatpush.msra.mxu1 %v18964_v30  ;;  %v6108_v35 = vsub.f32 %v6090_v23, %v6100_v45  ;;  %v6088_v1 = vmul.f32 %v15322_v11, %v15313_v49  ;;  %v17516_v30 = vand.u32 4294901760, %v15214_v20 }
 0x74e   :  { %7787 = vmatpush.msra.mxu2 %v18982_v29  ;;  %7677 = vmatpush.msra.mxu0 %v18976_v28  ;;  %v15379_v53 = vsub.f32 %v15222_v48, %v15338_v13  ;;  %v15387_v26 = vperm.slane %v15112_v31, 2  ;;  %v15390_v15 = vperm.slane %v15158_v8, 2  ;;  %v18985_v54 = vand.u32 4294901760, %v15004_v57 }
 0x74f   :  { %7830 = vmatpush.msra.mxu3 %v14972_v32  ;;  %7716 = vmatpush.msra.mxu1 %v14912_v4  ;;  %v6106_v37 = vsub.f32 %v6088_v1, %v6098_v43  ;;  %v6096_v48 = vmul.f32 %v15302_v7, %v15345_v25  ;;  %v15399_v56 = vand.u32 4294901760, %v6439_v0  ;;  %v15404_v16 = vsub.f32 %v15246_v41, %v17515_v42  ;;  %v18992_v1 = vld [vmem:[#allocation121_spill] sm:$0xff] }
 0x750   :  { %18983 = vst [vmem:[#allocation156_spill] sm:$0xff] %v15387_v26  ;;  %7791 = vmatpush.msra.mxu2 %v18985_v54  ;;  %7680 = vmatpush.msra.mxu0 %v18981_v52  ;;  %v6472_v4 = vsel %vm6470_vm3, %v6469_v21, 0  ;;  %v17514_v10 = vand.u32 4294901760, %v15362_v27  ;;  %v18988_v55 = vand.u32 4294901760, %v18987_v58  ;;  %v17518_v19 = vand.u32 4294901760, %v15335_v47  ;;  %v18993_v21 = vld [vmem:[#allocation43_spill] sm:$0xff] }
 0x751   :  { %18984 = vst [vmem:[#allocation113_spill] sm:$0xff] %v15390_v15  ;;  %7832 = vmatpush.msra.mxu3 %v18986_v46  ;;  %7718 = vmatpush.msra.mxu1 %v14942_v24  ;;  %v15412_v62 = vand.u32 4294901760, %v6108_v35  ;;  %v6086_v51 = vmul.f32 %v15322_v11, %v15355_v6  ;;  %v6094_v38 = vmul.f32 %v15302_v7, %v15365_v2  ;;  %v17517_v45 = vand.u32 4294901760, %v15379_v53 }
 0x752   :  { %7795 = vmatpush.msra.mxu2 %v18988_v55  ;;  %7683 = vmatpush.msra.mxu0 %v15004_v57  ;;  %v15424_v24 = vsub.f32 %v15214_v20, %v17516_v30  ;;  %v15427_v28 = vsub.f32 %v6437_v5, %v15381_v9  ;;  %v15430_v50 = vsub.f32 %v6435_v40, %v15384_v59  ;;  %v15434_v23 = vand.u32 4294901760, %v6106_v37 }
 0x753   :  { %7979 = vmatpush.msrb.mxu3 %v15295_v22  ;;  %7720 = vmatpush.msra.mxu1 %v14959_v36  ;;  %v15436_v57 = vand.u32 4294901760, %v6472_v4  ;;  %v6104_v43 = vsub.f32 %v6086_v51, %v6096_v48  ;;  %v6084_v17 = vmul.f32 %v15322_v11, %v18990_v12  ;;  %v15441_v52 = vperm.slane %v15158_v8, 0 }
 0x754   :  { %7942 = vmatpush.msrb.mxu2 %v15335_v47  ;;  %7686 = vmatpush.msra.mxu0 %v18987_v58  ;;  %v15446_v5 = vsub.f32 %v6439_v0, %v15399_v56  ;;  %v15451_v36 = vsub.f32 %v15362_v27, %v17514_v10  ;;  %v6072_v40 = vmul.f32 %v15390_v15, %v15288_v14  ;;  %v15456_v29 = vperm.slane %v15158_v8, 1 }
 0x755   :  { %18989 = vst [vmem:[#allocation81_spill] sm:$0xff] %v15436_v57  ;;  %7981 = vmatpush.msrb.mxu3 %v15338_v13  ;;  %7797 = vmatmul.f32.vlgmr.msra.gmra.mxu2 %v18992_v1  ;;  %v7882_v0 = vsub.f32 %v15335_v47, %v17518_v19  ;;  %v15464_v54 = vsub.f32 %v6108_v35, %v15412_v62  ;;  %v19003_v34 = vand.u32 4294901760, %v15430_v50  ;;  %v19004_v31 = vand.u32 4294901760, %v15404_v16 }
 0x756   :  { %18991 = vst [vmem:[#allocation82_spill] sm:$0xff] %v15456_v29  ;;  %7689 = vmatmul.f32.vlgmr.msra.gmra.mxu0 %v18993_v21  ;;  %v6102_v48 = vsub.f32 %v6084_v17, %v6094_v38  ;;  %7945 = vmatpush.msrb.mxu2 %v15379_v53  ;;  %v7888_v58 = vsub.f32 %v15379_v53, %v17517_v45  ;;  %v15485_v17 = vand.u32 4294901760, %v6104_v43 }
 0x757   :  { %7722 = vmatpush.msra.mxu1 %v14972_v32  ;;  %v6062_v51 = vmul.f32 %v15387_v26, %v15291_v33  ;;  %v6070_v10 = vmul.f32 %v15390_v15, %v15306_v44  ;;  %7847 = vmatpush.msrb.mxu0 %v15295_v22  ;;  %v15480_v32 = vsub.f32 %v6106_v37, %v15434_v23  ;;  %v7883_v37 = vand.u32 4294901760, %v7882_v0 }
 0x758   :  { %7983 = vmatpush.msrb.mxu3 %v15190_v18  ;;  %v15483_v38 = vsub.f32 %v6472_v4, %v15436_v57  ;;  %7948 = vmatpush.msrb.mxu2 %v15214_v20  ;;  %v6060_v45 = vmul.f32 %v15387_v26, %v15313_v49  ;;  %v6068_v19 = vmul.f32 %v15390_v15, %v15345_v25  ;;  %v15498_v35 = vand.u32 4294901760, %v6102_v48 }
 0x759   :  { %18994 = vst [vmem:[#allocation163_spill] sm:$0xff] %v15480_v32  ;;  %7834 = vmatmul.f32.vlgmr.msra.gmra.mxu3 %v18992_v1  ;;  %v6080_v30 = vsub.f32 %v6062_v51, %v6072_v40  ;;  %7724 = vmatpush.msra.mxu1 %v18986_v46  ;;  %v18996_v40 = vld [vmem:[#allocation48_spill] sm:$0xff]  ;;  %v7889_v51 = vand.u32 4294901760, %v7888_v58  ;;  %v6058_v61 = vmul.f32 %v15387_v26, %v15355_v6  ;;  %v18997_v0 = vand.u32 4294901760, %v15427_v28 }
 0x75a   :  { %18995 = vst [vmem:[#allocation172_spill] sm:$0xff] %v15483_v38  ;;  %7849 = vmatpush.msrb.mxu0 %v15338_v13  ;;  %7985 = vmatpush.msrb.mxu3 %v15216_v63  ;;  %v6078_v42 = vsub.f32 %v6060_v45, %v6070_v10  ;;  %v6066_v46 = vmul.f32 %v15390_v15, %v15365_v2  ;;  %v15512_v21 = vand.u32 4294901760, %v15483_v38  ;;  %v7895_v4 = vand.u32 4294901760, %v15424_v24 }
 0x75b   :  { %7728 = vmatmul.f32.vlgmr.msra.gmra.mxu1 %v18996_v40  ;;  %7951 = vmatpush.msrb.mxu2 %v15246_v41  ;;  %v7912_v55 = vsub.f32 %v15427_v28, %v18997_v0  ;;  %v15515_v10 = vsub.f32 %v6104_v43, %v15485_v17  ;;  %v15519_v45 = vand.u32 4294901760, %v6080_v30  ;;  %v6076_v58 = vsub.f32 %v6058_v61, %v6068_v19 }
 0x75c   :  { %7884 = vmatpush.msrb.mxu1 %v7883_v37  ;;  %18998 = vst [vmem:[#allocation167_spill] sm:$0xff] %v15512_v21  ;;  %7851 = vmatpush.msrb.mxu0 %v15190_v18  ;;  %v6056_v37 = vmul.f32 %v15387_v26, %v18990_v12  ;;  %v6044_v0 = vmul.f32 %v15456_v29, %v15288_v14  ;;  %v19000_v43 = vand.u32 4294901760, %v15446_v5  ;;  %v19001_v1 = vand.u32 4294901760, %v15464_v54 }
 0x75d   :  { %18999 = vst [vmem:[#allocation86_spill] sm:$0xff] %v15515_v10  ;;  %7987 = vmatpush.msrb.mxu3 %v15399_v56  ;;  %7954 = vmatpush.msrb.mxu2 %v15446_v5  ;;  %v15534_v61 = vsub.f32 %v6102_v48, %v15498_v35  ;;  %v15538_v19 = vand.u32 4294901760, %v6078_v42  ;;  %v6034_v24 = vmul.f32 %v15342_v3, %v15291_v33  ;;  %v15559_v15 = vand.u32 4294901760, %v6076_v58 }
 0x75e   :  { %7890 = vmatpush.msrb.mxu1 %v7889_v51  ;;  %v7906_v40 = vsub.f32 %v15446_v5, %v19000_v43  ;;  %v8119_v7 = vsub.f32 %v15464_v54, %v19001_v1  ;;  %7853 = vmatpush.msrb.mxu0 %v15216_v63  ;;  %v6074_v51 = vsub.f32 %v6056_v37, %v6066_v46  ;;  %v19002_v1 = vand.u32 4294901760, %v15480_v32 }
 0x75f   :  { %7989 = vmatpush.msrb.mxu3 %v15381_v9  ;;  %v6042_v43 = vmul.f32 %v15456_v29, %v15306_v44  ;;  %7957 = vmatpush.msrb.mxu2 %v15427_v28  ;;  %v7865_v11 = vsub.f32 %v15483_v38, %v15512_v21  ;;  %v7918_v46 = vsub.f32 %v15430_v50, %v19003_v34  ;;  %v7913_v8 = vand.u32 4294901760, %v7912_v55 }
 0x760   :  { %7896 = vmatpush.msrb.mxu1 %v7895_v4  ;;  %v8125_v48 = vsub.f32 %v15480_v32, %v19002_v1  ;;  %7855 = vmatpush.msrb.mxu0 %v15399_v56  ;;  %v15557_v4 = vsub.f32 %v6080_v30, %v15519_v45  ;;  %v6052_v26 = vsub.f32 %v6034_v24, %v6044_v0  ;;  %v7907_v34 = vand.u32 4294901760, %v7906_v40 }
 0x761   :  { %7991 = vmatpush.msrb.mxu3 %v15384_v59  ;;  %v6032_v1 = vmul.f32 %v15342_v3, %v15313_v49  ;;  %7960 = vmatpush.msrb.mxu2 %v15430_v50  ;;  %v8120_v37 = vand.u32 4294901760, %v8119_v7  ;;  %v6040_v32 = vmul.f32 %v15456_v29, %v15345_v25  ;;  %v15572_v0 = vsub.f32 %v6078_v42, %v15538_v19 }
 0x762   :  { %7902 = vmatpush.msrb.mxu1 %v19004_v31  ;;  %7857 = vmatpush.msrb.mxu0 %v15381_v9  ;;  %v15574_v24 = vand.u32 4294901760, %v6074_v51  ;;  %v15577_v7 = vand.u32 4294901760, %v7865_v11  ;;  %v19006_v16 = vand.u32 4294901760, %v15515_v10  ;;  %v6030_v40 = vmul.f32 %v15342_v3, %v15355_v6 }
 0x763   :  { %7993 = vmatpush.msrb.mxu3 %v15319_v60  ;;  %v6050_v31 = vsub.f32 %v6032_v1, %v6042_v43  ;;  %7963 = vmatpush.msrb.mxu2 %v15362_v27  ;;  %v6038_v30 = vmul.f32 %v15456_v29, %v15365_v2  ;;  %v8126_v42 = vand.u32 4294901760, %v8125_v48  ;;  %v15589_v1 = vsub.f32 %v6076_v58, %v15559_v15 }
 0x764   :  { %7908 = vmatpush.msrb.mxu1 %v7907_v34  ;;  %19005 = vst [vmem:[#allocation168_spill] sm:$0xff] %v15577_v7  ;;  %v8131_v55 = vsub.f32 %v15515_v10, %v19006_v16  ;;  %7859 = vmatpush.msrb.mxu0 %v15384_v59  ;;  %v15591_v11 = vand.u32 4294901760, %v6052_v26  ;;  %v7919_v34 = vand.u32 4294901760, %v7918_v46  ;;  %v6048_v16 = vsub.f32 %v6030_v40, %v6040_v32 }
 0x765   :  { %8121 = vmatpush.msra.mxu3 %v8120_v37  ;;  %8076 = vmatpush.msra.mxu2 %v15412_v62  ;;  %v6028_v10 = vmul.f32 %v15342_v3, %v18990_v12  ;;  %v6016_v37 = vmul.f32 %v15441_v52, %v15288_v14  ;;  %v19007_v48 = vand.u32 4294901760, %v15534_v61  ;;  %v15604_v29 = vsub.f32 %v6074_v51, %v15574_v24 }
 0x766   :  { %7914 = vmatpush.msrb.mxu1 %v7913_v8  ;;  %7861 = vmatpush.msrb.mxu0 %v15319_v60  ;;  %v15606_v8 = vand.u32 4294901760, %v6050_v31  ;;  %v8132_v32 = vand.u32 4294901760, %v8131_v55  ;;  %v6006_v40 = vmul.f32 %v15282_v39, %v15291_v33  ;;  %v7925_v51 = vand.u32 4294901760, %v15451_v36 }
 0x767   :  { %8127 = vmatpush.msra.mxu3 %v8126_v42  ;;  %v8137_v58 = vsub.f32 %v15534_v61, %v19007_v48  ;;  %7966 = vmatmul.f32.vlgmr.msrb.gmra.mxu2 %v15483_v38  ;;  %v6046_v46 = vsub.f32 %v6028_v10, %v6038_v30  ;;  %v6014_v42 = vmul.f32 %v15441_v52, %v15306_v44  ;;  %v19008_v48 = vand.u32 4294901760, %v15557_v4 }
 0x768   :  { %7867 = vmatmul.f32.vlgmr.msrb.gmra.mxu0 %v15577_v7  ;;  %8078 = vmatpush.msra.mxu2 %v15434_v23  ;;  %v15621_v55 = vsub.f32 %v6052_v26, %v15591_v11  ;;  %v19009_v10 = vand.u32 4294901760, %v15335_v47  ;;  %v15625_v30 = vand.u32 4294901760, %v6048_v16  ;;  %v6024_v7 = vsub.f32 %v6006_v40, %v6016_v37 }
 0x769   :  { %7920 = vmatpush.msrb.mxu1 %v7919_v34  ;;  %v8143_v43 = vsub.f32 %v15557_v4, %v19008_v48  ;;  %8133 = vmatpush.msra.mxu3 %v8132_v32  ;;  %v6004_v34 = vmul.f32 %v15282_v39, %v15313_v49  ;;  %v6012_v36 = vmul.f32 %v15441_v52, %v15345_v25  ;;  %v8138_v48 = vand.u32 4294901760, %v8137_v58 }
 0x76a   :  { %8012 = vmatpush.msra.mxu0 %v19009_v10  ;;  %7997 = vmatmul.f32.vlgmr.msrb.gmra.mxu3 %v15512_v21  ;;  %v19010_v26 = vand.u32 4294901760, %v15572_v0  ;;  %v17543_v32 = vand.u32 4294901760, %v15604_v29  ;;  %v15638_v10 = vsub.f32 %v6050_v31, %v15606_v8  ;;  %v19011_v37 = vand.u32 4294901760, %v15379_v53 }
 0x76b   :  { %8080 = vmatpush.msra.mxu2 %v15485_v17  ;;  %7926 = vmatpush.msrb.mxu1 %v7925_v51  ;;  %v15642_v40 = vand.u32 4294901760, %v6046_v46  ;;  %v6022_v38 = vsub.f32 %v6004_v34, %v6014_v42  ;;  %v6002_v21 = vmul.f32 %v15282_v39, %v15355_v6  ;;  %v6010_v58 = vmul.f32 %v15441_v52, %v15365_v2 }
 0x76c   :  { %v8149_v47 = vsub.f32 %v15572_v0, %v19010_v26  ;;  %8016 = vmatpush.msra.mxu0 %v19011_v37  ;;  %8139 = vmatpush.msra.mxu3 %v8138_v48  ;;  %v8144_v26 = vand.u32 4294901760, %v8143_v43  ;;  %v19012_v31 = vand.u32 4294901760, %v15589_v1  ;;  %v15656_v42 = vsub.f32 %v6048_v16, %v15625_v30 }
 0x76d   :  { %7928 = vmatmul.f32.vlgmr.msrb.gmra.mxu1 %v15436_v57  ;;  %8082 = vmatpush.msra.mxu2 %v15498_v35  ;;  %v15658_v34 = vand.u32 4294901760, %v6024_v7  ;;  %v6020_v37 = vsub.f32 %v6002_v21, %v6012_v36  ;;  %v6000_v48 = vmul.f32 %v15282_v39, %v18990_v12  ;;  %v19013_v43 = vand.u32 4294901760, %v15214_v20 }
 0x76e   :  { %v8155_v51 = vsub.f32 %v15589_v1, %v19012_v31  ;;  %8055 = vmatpush.msra.mxu1 %v15295_v22  ;;  %8145 = vmatpush.msra.mxu3 %v8144_v26  ;;  %v8150_v31 = vand.u32 4294901760, %v8149_v47  ;;  %v8161_v22 = vsub.f32 %v15604_v29, %v17543_v32  ;;  %v17550_v53 = vand.u32 4294901760, %v15638_v10 }
 0x76f   :  { %8020 = vmatpush.msra.mxu0 %v19013_v43  ;;  %8084 = vmatpush.msra.mxu2 %v15519_v45  ;;  %v15671_v21 = vsub.f32 %v6046_v46, %v15642_v40  ;;  %v15673_v16 = vand.u32 4294901760, %v6022_v38  ;;  %v6018_v36 = vsub.f32 %v6000_v48, %v6010_v58  ;;  %v19014_v20 = vand.u32 4294901760, %v15246_v41 }
 0x770   :  { %8057 = vmatpush.msra.mxu1 %v15338_v13  ;;  %8151 = vmatpush.msra.mxu3 %v8150_v31  ;;  %v8156_v47 = vand.u32 4294901760, %v8155_v51  ;;  %v19015_v26 = vand.u32 4294901760, %v15621_v55  ;;  %v17549_v13 = vand.u32 4294901760, %v15656_v42  ;;  %v15684_v46 = vsub.f32 %v6024_v7, %v15658_v34 }
 0x771   :  { %8024 = vmatpush.msra.mxu0 %v19014_v20  ;;  %8086 = vmatpush.msra.mxu2 %v15538_v19  ;;  %v15686_v32 = vand.u32 4294901760, %v6020_v37  ;;  %v19016_v41 = vand.u32 4294901760, %v15446_v5  ;;  %v8162_v58 = vand.u32 4294901760, %v8161_v22  ;;  %v8173_v51 = vsub.f32 %v15638_v10, %v17550_v53 }
 0x772   :  { %v8167_v43 = vsub.f32 %v15621_v55, %v19015_v26  ;;  %8059 = vmatpush.msra.mxu1 %v15190_v18  ;;  %8157 = vmatpush.msra.mxu3 %v8156_v47  ;;  %v17548_v18 = vand.u32 4294901760, %v15671_v21  ;;  %v15697_v7 = vsub.f32 %v6022_v38, %v15673_v16  ;;  %v15699_v48 = vand.u32 4294901760, %v6018_v36 }
 0x773   :  { %8028 = vmatpush.msra.mxu0 %v19016_v41  ;;  %8088 = vmatpush.msra.mxu2 %v15559_v15  ;;  %v19017_v5 = vand.u32 4294901760, %v15427_v28  ;;  %v17547_v22 = vand.u32 4294901760, %v15684_v46  ;;  %v15710_v38 = vsub.f32 %v6020_v37, %v15686_v32  ;;  %v19018_v20 = vand.u32 4294901760, %v15430_v50  ;;  %v19020_v41 = vld [vmem:[#allocation163_spill] sm:$0xff] }
 0x774   :  { %8061 = vmatpush.msra.mxu1 %v15216_v63  ;;  %8163 = vmatpush.msra.mxu3 %v8162_v58  ;;  %v8168_v31 = vand.u32 4294901760, %v8167_v43  ;;  %v8179_v63 = vsub.f32 %v15656_v42, %v17549_v13  ;;  %v8174_v28 = vand.u32 4294901760, %v8173_v51  ;;  %v17546_v47 = vand.u32 4294901760, %v15697_v7 }
 0x775   :  { %8032 = vmatpush.msra.mxu0 %v19017_v5  ;;  %8090 = vmatpush.msra.mxu2 %v15574_v24  ;;  %v15721_v26 = vsub.f32 %v6018_v36, %v15699_v48  ;;  %v19019_v37 = vand.u32 4294901760, %v15362_v27  ;;  %v8191_v50 = vsub.f32 %v15684_v46, %v17547_v22  ;;  %v17545_v43 = vand.u32 4294901760, %v15710_v38 }
 0x776   :  { %8063 = vmatpush.msra.mxu1 %v15399_v56  ;;  %8169 = vmatpush.msra.mxu3 %v8168_v31  ;;  %v8185_v56 = vsub.f32 %v15671_v21, %v17548_v18  ;;  %v8197_v36 = vsub.f32 %v15697_v7, %v17546_v47  ;;  %v6667_v47 = vpop.f32.mrf.mxu2  ;;  %v19033_v22 = vand.u32 4294901760, %v15572_v0 }
 0x777   :  { %8036 = vmatpush.msra.mxu0 %v19018_v20  ;;  %8092 = vmatpush.msra.mxu2 %v15591_v11  ;;  %v8192_v58 = vand.u32 4294901760, %v8191_v50  ;;  %v8203_v51 = vsub.f32 %v15710_v38, %v17545_v43  ;;  %v19031_v43 = vand.u32 4294901760, %v15534_v61 }
 0x778   :  { %8065 = vmatpush.msra.mxu1 %v15381_v9  ;;  %8175 = vmatpush.msra.mxu3 %v8174_v28  ;;  %v8180_v9 = vand.u32 4294901760, %v8179_v63  ;;  %v8186_v27 = vand.u32 4294901760, %v8185_v56  ;;  %v8198_v5 = vand.u32 4294901760, %v8197_v36  ;;  %v19022_v63 = vld [vmem:[#allocation57_spill] sm:$0xff]  ;;  %v19024_v56 = vld [vmem:[#allocation236_spill] sm:$0xff] }
 0x779   :  { %8040 = vmatpush.msra.mxu0 %v19019_v37  ;;  %8094 = vmatpush.msra.mxu2 %v15606_v8  ;;  %v15753_v20 = vperm.slane %v19022_v63, 7  ;;  %v8204_v28 = vand.u32 4294901760, %v8203_v51  ;;  %v15759_v37 = vperm.slane %v19024_v56, 7 }
 0x77a   :  { %8042 = vmatmul.f32.vlgmr.msra.gmra.mxu0 %v15436_v57  ;;  %8067 = vmatpush.msra.mxu1 %v15384_v59  ;;  %v17544_v59 = vand.u32 4294901760, %v15721_v26 }
 0x77b   :  { %8219 = vmatpush.msrb.mxu0 %v15464_v54  ;;  %8181 = vmatpush.msra.mxu3 %v8180_v9  ;;  %19023 = vst [vmem:[#allocation173_spill] sm:$0xff] %v15753_v20  ;;  %v6212_v50 = vmul.f32 %v15753_v20, %v15288_v14  ;;  %v6210_v36 = vmul.f32 %v15753_v20, %v15306_v44 }
 0x77c   :  { %8069 = vmatpush.msra.mxu1 %v15319_v60  ;;  %8096 = vmatpush.msra.mxu2 %v15625_v30  ;;  %v19021_v60 = vld [vmem:[#allocation86_spill] sm:$0xff]  ;;  %v8209_v31 = vsub.f32 %v15721_v26, %v17544_v59  ;;  %19025 = vst [vmem:[#allocation91_spill] sm:$0xff] %v15759_v37  ;;  %v6200_v51 = vmul.f32 %v15759_v37, %v15313_v49 }
 0x77d   :  { %8222 = vmatpush.msrb.mxu0 %v19020_v41  ;;  %8071 = vmatmul.f32.vlgmr.msra.gmra.mxu1 %v15436_v57  ;;  %v19030_v59 = vand.u32 4294901760, %v19021_v60  ;;  %v15916_v57 = vperm.slane %v19022_v63, 4 }
 0x77e   :  { %8187 = vmatpush.msra.mxu3 %v8186_v27  ;;  %8272 = vmatpush.msrb.mxu1 %v15412_v62  ;;  %v8210_v9 = vand.u32 4294901760, %v8209_v31  ;;  %v6202_v27 = vmul.f32 %v15759_v37, %v15291_v33  ;;  %v19026_v31 = vand.u32 4294901760, %v15464_v54 }
 0x77f   :  { %8098 = vmatpush.msra.mxu2 %v15642_v40  ;;  %8225 = vmatpush.msrb.mxu0 %v19021_v60  ;;  %19043 = vst [vmem:[#allocation107_spill] sm:$0xff] %v15916_v57 }
 0x780   :  { %8193 = vmatpush.msra.mxu3 %v8192_v58  ;;  %8274 = vmatpush.msrb.mxu1 %v15434_v23  ;;  %v6220_v58 = vsub.f32 %v6202_v27, %v6212_v50  ;;  %v15789_v50 = vperm.slane %v19022_v63, 6  ;;  %v19028_v27 = vand.u32 4294901760, %v19020_v41 }
 0x781   :  { %8100 = vmatpush.msra.mxu2 %v15658_v34  ;;  %8228 = vmatpush.msrb.mxu0 %v15534_v61  ;;  %v19032_v61 = vand.u32 4294901760, %v15557_v4 }
 0x782   :  { %8199 = vmatpush.msra.mxu3 %v8198_v5  ;;  %8276 = vmatpush.msrb.mxu1 %v15485_v17  ;;  %v6208_v5 = vmul.f32 %v15753_v20, %v15345_v25  ;;  %19027 = vst [vmem:[#allocation92_spill] sm:$0xff] %v15789_v50  ;;  %v6184_v41 = vmul.f32 %v15789_v50, %v15288_v14 }
 0x783   :  { %8102 = vmatpush.msra.mxu2 %v15673_v16  ;;  %8231 = vmatpush.msrb.mxu0 %v15557_v4 }
 0x784   :  { %8205 = vmatpush.msra.mxu3 %v8204_v28  ;;  %8278 = vmatpush.msrb.mxu1 %v15498_v35  ;;  %v6218_v28 = vsub.f32 %v6200_v51, %v6210_v36  ;;  %v6196_v36 = vmul.f32 %v15759_v37, %v18990_v12  ;;  %v15801_v51 = vperm.slane %v19024_v56, 6 }
 0x785   :  { %8104 = vmatpush.msra.mxu2 %v15686_v32  ;;  %8234 = vmatpush.msrb.mxu0 %v15572_v0  ;;  %v15857_v0 = vperm.slane %v19024_v56, 5 }
 0x786   :  { %8211 = vmatpush.msra.mxu3 %v8210_v9  ;;  %8280 = vmatpush.msrb.mxu1 %v15519_v45  ;;  %v6206_v9 = vmul.f32 %v15753_v20, %v15365_v2  ;;  %19029 = vst [vmem:[#allocation178_spill] sm:$0xff] %v15801_v51  ;;  %v6170_v4 = vmul.f32 %v15801_v51, %v15355_v6 }
 0x787   :  { %8106 = vmatpush.msra.mxu2 %v15699_v48  ;;  %8237 = vmatpush.msrb.mxu0 %v15589_v1  ;;  %19035 = vst [vmem:[#allocation97_spill] sm:$0xff] %v15857_v0  ;;  %v6146_v53 = vmul.f32 %v15857_v0, %v15291_v33 }
 0x788   :  { %8380 = vmatpush.msrb.mxu3 %v15412_v62  ;;  %8282 = vmatpush.msrb.mxu1 %v15538_v19  ;;  %v6198_v62 = vmul.f32 %v15759_v37, %v15355_v6 }
 0x789   :  { %8313 = vmatpush.msrb.mxu2 %v19026_v31  ;;  %8240 = vmatpush.msrb.mxu0 %v15604_v29  ;;  %v6613_v31 = vpop.f32.mrf.mxu1 }
 0x78a   :  { %8382 = vmatpush.msrb.mxu3 %v15434_v23  ;;  %8284 = vmatpush.msrb.mxu1 %v15559_v15  ;;  %v15796_v23 = vand.u32 4294901760, %v6220_v58  ;;  %v6216_v54 = vsub.f32 %v6198_v62, %v6208_v5  ;;  %v6214_v5 = vsub.f32 %v6196_v36, %v6206_v9  ;;  %v6182_v62 = vmul.f32 %v15789_v50, %v15306_v44 }
 0x78b   :  { %8317 = vmatpush.msrb.mxu2 %v19028_v27  ;;  %8243 = vmatpush.msrb.mxu0 %v15621_v55  ;;  %v6512_v27 = vpop.f32.mrf.mxu0  ;;  %v6172_v36 = vmul.f32 %v15801_v51, %v15313_v49 }
 0x78c   :  { %8384 = vmatpush.msrb.mxu3 %v15485_v17  ;;  %8286 = vmatpush.msrb.mxu1 %v15574_v24  ;;  %v15810_v17 = vand.u32 4294901760, %v6218_v28  ;;  %v6614_v60 = vadd.f32 %v6613_v31, %v6512_v27  ;;  %v15824_v9 = vand.u32 4294901760, %v6216_v54  ;;  %v6180_v31 = vmul.f32 %v15789_v50, %v15345_v25 }
 0x78d   :  { %8321 = vmatpush.msrb.mxu2 %v19030_v59  ;;  %8246 = vmatpush.msrb.mxu0 %v15638_v10  ;;  %v6174_v59 = vmul.f32 %v15801_v51, %v15291_v33  ;;  %v6190_v27 = vsub.f32 %v6172_v36, %v6182_v62  ;;  %v19036_v36 = vand.u32 4294901760, %v15589_v1 }
 0x78e   :  { %8386 = vmatpush.msrb.mxu3 %v15498_v35  ;;  %8288 = vmatpush.msrb.mxu1 %v15591_v11  ;;  %v15822_v35 = vsub.f32 %v6220_v58, %v15796_v23  ;;  %v15838_v58 = vand.u32 4294901760, %v6214_v5  ;;  %v15854_v62 = vsub.f32 %v6216_v54, %v15824_v9 }
 0x78f   :  { %8325 = vmatpush.msrb.mxu2 %v19031_v43  ;;  %8249 = vmatpush.msrb.mxu0 %v15656_v42  ;;  %v6192_v43 = vsub.f32 %v6174_v59, %v6184_v41  ;;  %v6178_v41 = vmul.f32 %v15789_v50, %v15365_v2  ;;  %v15848_v59 = vperm.slane %v19022_v63, 5  ;;  %v15872_v18 = vand.u32 4294901760, %v6190_v27 }
 0x790   :  { %8388 = vmatpush.msrb.mxu3 %v15519_v45  ;;  %8290 = vmatpush.msrb.mxu1 %v15606_v8  ;;  %v15836_v45 = vsub.f32 %v6218_v28, %v15810_v17  ;;  %v17551_v28 = vand.u32 4294901760, %v15822_v35 }
 0x791   :  { %8329 = vmatpush.msrb.mxu2 %v19032_v61  ;;  %8252 = vmatpush.msrb.mxu0 %v15671_v21  ;;  %19034 = vst [vmem:[#allocation180_spill] sm:$0xff] %v15848_v59  ;;  %v15862_v61 = vand.u32 4294901760, %v6192_v43  ;;  %v6156_v1 = vmul.f32 %v15848_v59, %v15288_v14 }
 0x792   :  { %8390 = vmatpush.msrb.mxu3 %v15538_v19  ;;  %8292 = vmatpush.msrb.mxu1 %v15625_v30  ;;  %v6668_v19 = vadd.f32 %v6667_v47, %v6614_v60  ;;  %v6188_v47 = vsub.f32 %v6170_v4, %v6180_v31  ;;  %v17554_v54 = vand.u32 4294901760, %v15836_v45  ;;  %v15870_v60 = vsub.f32 %v6214_v5, %v15838_v58 }
 0x793   :  { %8333 = vmatpush.msrb.mxu2 %v19033_v22  ;;  %8255 = vmatpush.msrb.mxu0 %v15684_v46  ;;  %v6706_v22 = vpop.f32.mrf.mxu3  ;;  %19037 = vst [vmem:[#allocation186_spill] sm:$0xff] %v15862_v61  ;;  %v19039_v31 = vand.u32 4294901760, %v15604_v29  ;;  %v8460_v5 = vsub.f32 %v15822_v35, %v17551_v28  ;;  %v6775_v29 = vpop.f32.mrf.mxu0 }
 0x794   :  { %8392 = vmatpush.msrb.mxu3 %v15559_v15  ;;  %8294 = vmatpush.msrb.mxu1 %v15642_v40  ;;  %v6168_v15 = vmul.f32 %v15801_v51, %v18990_v12  ;;  %19038 = vst [vmem:[#allocation102_spill] sm:$0xff] %v15872_v18 }
 0x795   :  { %8337 = vmatpush.msrb.mxu2 %v19036_v36  ;;  %8258 = vmatpush.msrb.mxu0 %v15697_v7  ;;  %v6154_v36 = vmul.f32 %v15848_v59, %v15306_v44 }
 0x796   :  { %8394 = vmatpush.msrb.mxu3 %v15574_v24  ;;  %8296 = vmatpush.msrb.mxu1 %v15658_v34  ;;  %v6186_v4 = vsub.f32 %v6168_v15, %v6178_v41  ;;  %v6707_v24 = vadd.f32 %v6706_v22, %v6668_v19  ;;  %v19040_v41 = vand.u32 4294901760, %v15621_v55  ;;  %v15893_v19 = vsub.f32 %v6192_v43, %v15862_v61 }
 0x797   :  { %8341 = vmatpush.msrb.mxu2 %v19039_v31  ;;  %8261 = vmatpush.msrb.mxu0 %v15710_v38  ;;  %v15895_v22 = vand.u32 4294901760, %v6188_v47  ;;  %v8466_v15 = vsub.f32 %v15836_v45, %v17554_v54  ;;  %v17555_v31 = vand.u32 4294901760, %v15870_v60  ;;  %v15906_v55 = vsub.f32 %v6190_v27, %v15872_v18 }
 0x798   :  { %8396 = vmatpush.msrb.mxu3 %v15591_v11  ;;  %8298 = vmatpush.msrb.mxu1 %v15673_v16  ;;  %v6144_v11 = vmul.f32 %v15857_v0, %v15313_v49  ;;  %v6164_v43 = vsub.f32 %v6146_v53, %v6156_v1  ;;  %v15911_v28 = vand.u32 4294901760, %v6186_v4  ;;  %v6776_v54 = vadd.f32 %v6775_v29, %v6707_v24  ;;  %v6812_v1 = vpop.f32.mrf.mxu1 }
 0x799   :  { %8345 = vmatpush.msrb.mxu2 %v19040_v41  ;;  %8264 = vmatpush.msrb.mxu0 %v15721_v26  ;;  %v19041_v41 = vand.u32 4294901760, %v15638_v10  ;;  %v8461_v53 = vand.u32 4294901760, %v8460_v5  ;;  %v19044_v27 = vand.u32 4294901760, %v15854_v62  ;;  %v15928_v63 = vsub.f32 %v6188_v47, %v15895_v22 }
 0x79a   :  { %8398 = vmatpush.msrb.mxu3 %v15606_v8  ;;  %8300 = vmatpush.msrb.mxu1 %v15686_v32  ;;  %19042 = vst [vmem:[#allocation110_spill] sm:$0xff] %v15911_v28  ;;  %v6162_v13 = vsub.f32 %v6144_v11, %v6154_v36  ;;  %v6152_v8 = vmul.f32 %v15848_v59, %v15345_v25  ;;  %v19045_v36 = vand.u32 4294901760, %v15656_v42  ;;  %v8467_v5 = vand.u32 4294901760, %v8466_v15 }
 0x79b   :  { %8349 = vmatpush.msrb.mxu2 %v19041_v41  ;;  %8417 = vmatpush.msra.mxu0 %v15796_v23  ;;  %v8472_v10 = vsub.f32 %v15854_v62, %v19044_v27  ;;  %v6142_v24 = vmul.f32 %v15857_v0, %v15355_v6  ;;  %v8478_v42 = vsub.f32 %v15870_v60, %v17555_v31  ;;  %v17556_v29 = vand.u32 4294901760, %v15906_v55 }
 0x79c   :  { %8400 = vmatpush.msrb.mxu3 %v15625_v30  ;;  %8302 = vmatpush.msrb.mxu1 %v15699_v48  ;;  %v6150_v30 = vmul.f32 %v15848_v59, %v15365_v2  ;;  %v15940_v41 = vand.u32 4294901760, %v6164_v43  ;;  %v19047_v47 = vand.u32 4294901760, %v15671_v21  ;;  %v15945_v27 = vsub.f32 %v6186_v4, %v15911_v28 }
 0x79d   :  { %8353 = vmatpush.msrb.mxu2 %v19045_v36  ;;  %8419 = vmatpush.msra.mxu0 %v15810_v17  ;;  %v15947_v36 = vand.u32 4294901760, %v6162_v13  ;;  %v6160_v11 = vsub.f32 %v6142_v24, %v6152_v8  ;;  %v15952_v15 = vperm.slane %v19024_v56, 4  ;;  %v6813_v31 = vadd.f32 %v6812_v1, %v6776_v54  ;;  %v6853_v54 = vpop.f32.mrf.mxu2 }
 0x79e   :  { %8402 = vmatpush.msrb.mxu3 %v15642_v40  ;;  %19046 = vst [vmem:[#allocation112_spill] sm:$0xff] %v15940_v41  ;;  %8462 = vmatpush.msra.mxu1 %v8461_v53  ;;  %v6140_v40 = vmul.f32 %v15857_v0, %v18990_v12  ;;  %v6128_v21 = vmul.f32 %v15916_v57, %v15288_v14  ;;  %v19050_v4 = vand.u32 4294901760, %v15684_v46  ;;  %v8473_v53 = vand.u32 4294901760, %v8472_v10 }
 0x79f   :  { %8357 = vmatpush.msrb.mxu2 %v19047_v47  ;;  %19048 = vst [vmem:[#allocation120_spill] sm:$0xff] %v15947_v36  ;;  %8421 = vmatpush.msra.mxu0 %v15824_v9  ;;  %v19051_v8 = vand.u32 4294901760, %v15893_v19  ;;  %v17557_v56 = vand.u32 4294901760, %v15928_v63  ;;  %v15967_v1 = vsub.f32 %v6164_v43, %v15940_v41  ;;  %v6118_v46 = vmul.f32 %v15952_v15, %v15291_v33 }
 0x7a0   :  { %19049 = vst [vmem:[#allocation117_spill] sm:$0xff] %v15952_v15  ;;  %8404 = vmatpush.msrb.mxu3 %v15658_v34  ;;  %8468 = vmatpush.msra.mxu1 %v8467_v5  ;;  %v6158_v47 = vsub.f32 %v6140_v40, %v6150_v30  ;;  %v8479_v34 = vand.u32 4294901760, %v8478_v42  ;;  %v6126_v10 = vmul.f32 %v15916_v57, %v15306_v44  ;;  %v19052_v5 = vand.u32 4294901760, %v15697_v7 }
 0x7a1   :  { %8361 = vmatpush.msrb.mxu2 %v19050_v4  ;;  %v8484_v24 = vsub.f32 %v15893_v19, %v19051_v8  ;;  %8423 = vmatpush.msra.mxu0 %v15838_v58  ;;  %v8490_v30 = vsub.f32 %v15906_v55, %v17556_v29  ;;  %v15979_v42 = vand.u32 4294901760, %v6160_v11  ;;  %v15982_v43 = vsub.f32 %v6162_v13, %v15947_v36 }
 0x7a2   :  { %8406 = vmatpush.msrb.mxu3 %v15673_v16  ;;  %8474 = vmatpush.msra.mxu1 %v8473_v53  ;;  %v17558_v16 = vand.u32 4294901760, %v15945_v27  ;;  %v6136_v40 = vsub.f32 %v6118_v46, %v6128_v21  ;;  %v6116_v7 = vmul.f32 %v15952_v15, %v15313_v49  ;;  %v6124_v4 = vmul.f32 %v15916_v57, %v15345_v25 }
 0x7a3   :  { %8365 = vmatpush.msrb.mxu2 %v19052_v5  ;;  %8425 = vmatpush.msra.mxu0 %v15862_v61  ;;  %v6854_v53 = vadd.f32 %v6853_v54, %v6813_v31  ;;  %v19053_v8 = vand.u32 4294901760, %v15710_v38  ;;  %v8485_v5 = vand.u32 4294901760, %v8484_v24  ;;  %v8496_v13 = vsub.f32 %v15928_v63, %v17557_v56  ;;  %v19054_v24 = vld [vmem:[#allocation182_spill] sm:$0xff] }
 0x7a4   :  { %8408 = vmatpush.msrb.mxu3 %v15686_v32  ;;  %8480 = vmatpush.msra.mxu1 %v8479_v34  ;;  %v15995_v29 = vand.u32 4294901760, %v6158_v47  ;;  %v6954_v32 = vpop.f32.mrf.mxu3  ;;  %v6134_v46 = vsub.f32 %v6116_v7, %v6126_v10  ;;  %v6114_v31 = vmul.f32 %v15952_v15, %v15355_v6  ;;  %v6122_v38 = vmul.f32 %v15916_v57, %v15365_v2 }
 0x7a5   :  { %8369 = vmatpush.msrb.mxu2 %v19053_v8  ;;  %8427 = vmatpush.msra.mxu0 %v15872_v18  ;;  %v8491_v54 = vand.u32 4294901760, %v8490_v30  ;;  %v8502_v34 = vsub.f32 %v15945_v27, %v17558_v16  ;;  %v16009_v8 = vsub.f32 %v6160_v11, %v15979_v42  ;;  %v19055_v10 = vand.u32 4294901760, %v15721_v26  ;;  %v19056_v16 = vld [vmem:[#allocation62_spill] sm:$0xff] }
 0x7a6   :  { %8410 = vmatpush.msrb.mxu3 %v15699_v48  ;;  %8486 = vmatpush.msra.mxu1 %v8485_v5  ;;  %v7008_v48 = vpop.f32.mrf.mxu0  ;;  %v16015_v56 = vand.u32 4294901760, %v6136_v40  ;;  %v6132_v5 = vsub.f32 %v6114_v31, %v6124_v4  ;;  %v6112_v30 = vmul.f32 %v15952_v15, %v18990_v12  ;;  %v6955_v21 = vadd.f32 %v6954_v32, %v6854_v53  ;;  %v19064_v15 = vld [vmem:[#allocation113_spill] sm:$0xff] }
 0x7a7   :  { %8213 = vmatmul.f32.vlgmr.msra.gmra.mxu3 %v19054_v24  ;;  %8373 = vmatpush.msrb.mxu2 %v19055_v10  ;;  %v16022_v11 = vsub.f32 %v6158_v47, %v15995_v29  ;;  %v8497_v26 = vand.u32 4294901760, %v8496_v13  ;;  %v19057_v10 = vand.u32 4294901760, %v15967_v1  ;;  %v16028_v4 = vand.u32 4294901760, %v6134_v46  ;;  %v7047_v47 = vpop.f32.mrf.mxu1 }
 0x7a8   :  { %8429 = vmatpush.msra.mxu0 %v15895_v22  ;;  %8613 = vmatpush.msra.mxu3 %v15796_v23  ;;  %v6130_v31 = vsub.f32 %v6112_v30, %v6122_v38  ;;  %v7009_v20 = vadd.f32 %v7008_v48, %v6955_v21  ;;  %v8503_v53 = vand.u32 4294901760, %v8502_v34  ;;  %v19058_v13 = vand.u32 4294901760, %v15982_v43 }
 0x7a9   :  { %8112 = vmatmul.f32.vlgmr.msra.gmra.mxu2 %v19056_v16  ;;  %8492 = vmatpush.msra.mxu1 %v8491_v54  ;;  %v8508_v7 = vsub.f32 %v15967_v1, %v19057_v10  ;;  %v17561_v16 = vand.u32 4294901760, %v16009_v8  ;;  %v16038_v54 = vsub.f32 %v6136_v40, %v16015_v56  ;;  %v16040_v38 = vand.u32 4294901760, %v6132_v5  ;;  %v7116_v10 = vpop.f32.mrf.mxu2 }
 0x7aa   :  { %8560 = vmatpush.msra.mxu2 %v15822_v35  ;;  %8431 = vmatpush.msra.mxu0 %v15911_v28  ;;  %v8514_v32 = vsub.f32 %v15982_v43, %v19058_v13  ;;  %v17564_v21 = vand.u32 4294901760, %v16022_v11  ;;  %v16047_v34 = vsub.f32 %v6134_v46, %v16028_v4  ;;  %v16049_v30 = vand.u32 4294901760, %v6130_v31 }
 0x7ab   :  { %8615 = vmatpush.msra.mxu3 %v15810_v17  ;;  %8498 = vmatpush.msra.mxu1 %v8497_v26  ;;  %v8509_v48 = vand.u32 4294901760, %v8508_v7  ;;  %v7048_v26 = vadd.f32 %v7047_v47, %v7009_v20  ;;  %v8520_v40 = vsub.f32 %v16009_v8, %v17561_v16  ;;  %v16059_v46 = vsub.f32 %v6132_v5, %v16040_v38  ;;  %v19061_v16 = vld [vmem:[#allocation197_spill] sm:$0xff] }
 0x7ac   :  { %8563 = vmatpush.msra.mxu2 %v15836_v45  ;;  %8433 = vmatpush.msra.mxu0 %v15940_v41  ;;  %v8526_v20 = vsub.f32 %v16022_v11, %v17564_v21  ;;  %v16069_v13 = vsub.f32 %v6130_v31, %v16049_v30  ;;  %v19063_v47 = vand.u32 4294901760, %v16038_v54  ;;  %v6312_v59 = vmul.f32 %v19064_v15, %v15291_v33  ;;  %v7153_v50 = vpop.f32.mrf.mxu3 }
 0x7ad   :  { %8617 = vmatpush.msra.mxu3 %v15824_v9  ;;  %8504 = vmatpush.msra.mxu1 %v8503_v53  ;;  %v8515_v53 = vand.u32 4294901760, %v8514_v32  ;;  %v19059_v32 = vld [vmem:[#allocation156_spill] sm:$0xff]  ;;  %v7117_v37 = vadd.f32 %v7116_v10, %v7048_v26  ;;  %v8521_v21 = vand.u32 4294901760, %v8520_v40  ;;  %v19065_v26 = vld [vmem:[#allocation210_spill] sm:$0xff]  ;;  %v19066_v10 = vld [vmem:[#allocation157_spill] sm:$0xff] }
 0x7ae   :  { %8566 = vmatpush.msra.mxu2 %v15854_v62  ;;  %8435 = vmatpush.msra.mxu0 %v15947_v36  ;;  %v6304_v5 = vmul.f32 %v19059_v32, %v15288_v14  ;;  %v8532_v31 = vsub.f32 %v16038_v54, %v19063_v47  ;;  %v19067_v40 = vld [vmem:[#allocation50_spill] sm:$0xff]  ;;  %v19068_v47 = vand.u32 4294901760, %v16047_v34 }
 0x7af   :  { %8619 = vmatpush.msra.mxu3 %v15838_v58  ;;  %8510 = vmatpush.msra.mxu1 %v8509_v48  ;;  %v19060_v48 = vld [vmem:[#allocation148_spill] sm:$0xff] }
 0x7b0   :  { %8569 = vmatpush.msra.mxu2 %v15870_v60  ;;  %8437 = vmatpush.msra.mxu0 %v15979_v42  ;;  %v2621_v7 = vadd.f32 %v19061_v16, %v19060_v48  ;;  %v6302_v16 = vmul.f32 %v19059_v32, %v15306_v44  ;;  %v2629_v48 = vadd.f32 %v19066_v10, %v19065_v26 }
 0x7b1   :  { %8621 = vmatpush.msra.mxu3 %v15862_v61  ;;  %8375 = vmatmul.f32.vlgmr.msrb.gmra.mxu2 %v19054_v24  ;;  %v8538_v57 = vsub.f32 %v16047_v34, %v19068_v47  ;;  %v6310_v26 = vmul.f32 %v19064_v15, %v15313_v49  ;;  %v8533_v47 = vand.u32 4294901760, %v8532_v31  ;;  %v19072_v61 = vld [vmem:[#allocation52_spill] sm:$0xff] }
 0x7b2   :  { %8516 = vmatpush.msra.mxu1 %v8515_v53  ;;  %8572 = vmatpush.msra.mxu2 %v15893_v19  ;;  %v19062_v53 = vld [vmem:[#allocation174_spill] sm:$0xff]  ;;  %v2896_v0 = vadd.f32 %v19067_v40, %v2621_v7  ;;  %v19069_v7 = vld [vmem:[#allocation61_spill] sm:$0xff]  ;;  %v7194_v40 = vpop.f32.mrf.mxu0 }
 0x7b3   :  { %8439 = vmatpush.msra.mxu0 %v15995_v29  ;;  %8623 = vmatpush.msra.mxu3 %v15872_v18  ;;  %v6320_v18 = vadd.f32 %v6312_v59, %v6304_v5  ;;  %v2906_v10 = vadd.f32 %v19069_v7, %v2629_v48  ;;  %v19071_v59 = vand.u32 4294901760, %v16059_v46  ;;  %v6318_v51 = vadd.f32 %v6310_v26, %v6302_v16 }
 0x7b4   :  { %8267 = vmatmul.f32.vlgmr.msrb.gmra.mxu0 %v19062_v53  ;;  %8412 = vmatmul.f32.vlgmr.msrb.gmra.mxu3 %v19054_v24  ;;  %v8527_v53 = vand.u32 4294901760, %v8526_v20  ;;  %v19070_v24 = vld [vmem:[#allocation187_spill] sm:$0xff]  ;;  %v7154_v20 = vadd.f32 %v7153_v50, %v7117_v37  ;;  %v3221_v48 = vadd.f32 %v19072_v61, %v2896_v0  ;;  %v6308_v7 = vmul.f32 %v19064_v15, %v15355_v6  ;;  %v7295_v61 = vpop.f32.mrf.mxu1 }
 0x7b5   :  { %8522 = vmatpush.msra.mxu1 %v8521_v21  ;;  %8575 = vmatpush.msra.mxu2 %v15906_v55  ;;  %v6300_v21 = vmul.f32 %v19059_v32, %v15345_v25  ;;  %v8544_v5 = vsub.f32 %v16059_v46, %v19071_v59  ;;  %v6298_v37 = vmul.f32 %v19059_v32, %v15365_v2  ;;  %v8539_v31 = vand.u32 4294901760, %v8538_v57 }
 0x7b6   :  { %8441 = vmatpush.msra.mxu0 %v16015_v56  ;;  %8625 = vmatpush.msra.mxu3 %v15895_v22  ;;  %v7195_v50 = vadd.f32 %v7194_v40, %v7154_v20  ;;  %v16119_v0 = vand.u32 4294901760, %v6320_v18  ;;  %v6306_v32 = vmul.f32 %v19064_v15, %v18990_v12  ;;  %v6280_v40 = vmul.f32 %v15342_v3, %v15288_v14 }
 0x7b7   :  { %8306 = vmatmul.f32.vlgmr.msrb.gmra.mxu1 %v19070_v24  ;;  %8578 = vmatpush.msra.mxu2 %v15928_v63  ;;  %v6316_v26 = vadd.f32 %v6308_v7, %v6300_v21  ;;  %v19074_v24 = vld [vmem:[#allocation80_spill] sm:$0xff]  ;;  %v8545_v20 = vand.u32 4294901760, %v8544_v5  ;;  %v19075_v21 = vld [vmem:[#allocation82_spill] sm:$0xff]  ;;  %v6278_v15 = vmul.f32 %v15342_v3, %v15306_v44 }
 0x7b8   :  { %8528 = vmatpush.msra.mxu1 %v8527_v53  ;;  %8443 = vmatpush.msra.mxu0 %v16028_v4  ;;  %v19073_v53 = vand.u32 4294901760, %v16069_v13  ;;  %v3233_v57 = vadd.f32 %v19074_v24, %v2906_v10  ;;  %v6314_v59 = vadd.f32 %v6306_v32, %v6298_v37  ;;  %v6288_v7 = vmul.f32 %v19075_v21, %v15291_v33 }
 0x7b9   :  { %8627 = vmatpush.msra.mxu3 %v15911_v28  ;;  %8581 = vmatpush.msra.mxu2 %v15945_v27  ;;  %v7296_v10 = vadd.f32 %v7295_v61, %v7195_v50  ;;  %v16140_v24 = vsub.f32 %v6320_v18, %v16119_v0  ;;  %v7349_v28 = vpop.f32.mrf.mxu2  ;;  %v19078_v37 = vand.u32 4294901760, %v15822_v35  ;;  %v16145_v32 = vand.u32 4294901760, %v6316_v26  ;;  %v19079_v61 = vld [vmem:[#allocation69_spill] sm:$0xff] }
 0x7ba   :  { %8534 = vmatpush.msra.mxu1 %v8533_v47  ;;  %v8550_v16 = vsub.f32 %v16069_v13, %v19073_v53  ;;  %8445 = vmatpush.msra.mxu0 %v16040_v38  ;;  %v16129_v47 = vand.u32 4294901760, %v6318_v51  ;;  %v19076_v53 = vld [vmem:[#allocation53_spill] sm:$0xff]  ;;  %v6276_v50 = vmul.f32 %v15342_v3, %v15345_v25  ;;  %v19080_v35 = vand.u32 4294901760, %v15836_v45 }
 0x7bb   :  { %8629 = vmatpush.msra.mxu3 %v15940_v41  ;;  %8584 = vmatpush.msra.mxu2 %v15967_v1  ;;  %v3464_v41 = vadd.f32 %v19076_v53, %v3221_v48  ;;  %v6286_v48 = vmul.f32 %v19075_v21, %v15313_v49  ;;  %v19081_v53 = vld [vmem:[#allocation51_spill] sm:$0xff]  ;;  %v6282_v45 = vmul.f32 %v19075_v21, %v18990_v12 }
 0x7bc   :  { %8540 = vmatpush.msra.mxu1 %v8539_v31  ;;  %8447 = vmatpush.msra.mxu0 %v16049_v30  ;;  %v19077_v31 = vld [vmem:[#allocation132_spill] sm:$0xff]  ;;  %v8551_v5 = vand.u32 4294901760, %v8550_v16  ;;  %v3472_v16 = vadd.f32 %v19079_v61, %v3233_v57  ;;  %v16154_v18 = vsub.f32 %v6318_v51, %v16129_v47  ;;  %v6274_v57 = vmul.f32 %v15342_v3, %v15365_v2  ;;  %v7388_v61 = vpop.f32.mrf.mxu3 }
 0x7bd   :  { %8631 = vmatpush.msra.mxu3 %v15947_v36  ;;  %8453 = vmatmul.f32.vlgmr.msra.gmra.mxu0 %v19077_v31  ;;  %v6296_v36 = vadd.f32 %v6288_v7, %v6280_v40  ;;  %v16159_v40 = vand.u32 4294901760, %v6314_v59  ;;  %v6284_v7 = vmul.f32 %v19075_v21, %v15355_v6  ;;  %v3691_v31 = vadd.f32 %v19081_v53, %v3464_v41 }
 0x7be   :  { %8546 = vmatpush.msra.mxu1 %v8545_v20  ;;  %8587 = vmatpush.msra.mxu2 %v15982_v43  ;;  %v6294_v20 = vadd.f32 %v6286_v48, %v6278_v15  ;;  %v17583_v51 = vand.u32 4294901760, %v16140_v24  ;;  %v16174_v15 = vsub.f32 %v6316_v26, %v16145_v32  ;;  %v6256_v41 = vmul.f32 %v15282_v39, %v15288_v14 }
 0x7bf   :  { %8654 = vmatpush.msrb.mxu0 %v19078_v37  ;;  %8633 = vmatpush.msra.mxu3 %v15979_v42  ;;  %v19082_v37 = vld [vmem:[#allocation179_spill] sm:$0xff]  ;;  %v16176_v3 = vand.u32 4294901760, %v6296_v36  ;;  %v6264_v21 = vmul.f32 %v15441_v52, %v15291_v33  ;;  %v16190_v26 = vsub.f32 %v6314_v59, %v16159_v40  ;;  %v6262_v59 = vmul.f32 %v15441_v52, %v15313_v49 }
 0x7c0   :  { %8552 = vmatpush.msra.mxu1 %v8551_v5  ;;  %8590 = vmatpush.msra.mxu2 %v16009_v8  ;;  %v7350_v5 = vadd.f32 %v7349_v28, %v7296_v10  ;;  %19083 = vst [vmem:[#allocation122_spill] sm:$0xff] %v16174_v15  ;;  %v6292_v28 = vadd.f32 %v6284_v7, %v6276_v50  ;;  %v19084_v10 = vld [vmem:[#allocation66_spill] sm:$0xff]  ;;  %v16192_v50 = vand.u32 4294901760, %v6294_v20  ;;  %v16196_v7 = vperm.slane %v3691_v31, 0 }
 0x7c1   :  { %8658 = vmatpush.msrb.mxu0 %v19080_v35  ;;  %8554 = vmatmul.f32.vlgmr.msra.gmra.mxu1 %v19082_v37  ;;  %v3699_v48 = vadd.f32 %v19084_v10, %v3472_v16  ;;  %v19085_v35 = vand.u32 4294901760, %v15854_v62  ;;  %v6290_v16 = vadd.f32 %v6282_v45, %v6274_v57  ;;  %v6254_v62 = vmul.f32 %v15282_v39, %v15306_v44 }
 0x7c2   :  { %8635 = vmatpush.msra.mxu3 %v15995_v29  ;;  %8721 = vmatpush.msrb.mxu1 %v15796_v23  ;;  %v17582_v23 = vand.u32 4294901760, %v16154_v18  ;;  %v7389_v53 = vadd.f32 %v7388_v61, %v7350_v5  ;;  %v19086_v10 = vand.u32 4294901760, %v15870_v60  ;;  %v17586_v57 = vand.u32 4294901760, %v16174_v15 }
 0x7c3   :  { %8593 = vmatpush.msra.mxu2 %v16022_v11  ;;  %8662 = vmatpush.msrb.mxu0 %v19085_v35  ;;  %v16210_v31 = vsub.f32 %v6296_v36, %v16176_v3  ;;  %v16212_v60 = vand.u32 4294901760, %v6292_v28  ;;  %v6272_v5 = vadd.f32 %v6264_v21, %v6256_v41  ;;  %v16214_v45 = vperm.slane %v3699_v48, 0  ;;  %v19089_v41 = vld [vmem:[#allocation186_spill] sm:$0xff] }
 0x7c4   :  { %8637 = vmatpush.msra.mxu3 %v16015_v56  ;;  %8723 = vmatpush.msrb.mxu1 %v15810_v17  ;;  %v8801_v17 = vsub.f32 %v16140_v24, %v17583_v51  ;;  %v19087_v61 = vand.u32 4294901760, %v15893_v19  ;;  %v6252_v35 = vmul.f32 %v15282_v39, %v15345_v25  ;;  %v6260_v36 = vmul.f32 %v15441_v52, %v15355_v6 }
 0x7c5   :  { %8596 = vmatpush.msra.mxu2 %v16038_v54  ;;  %8666 = vmatpush.msrb.mxu0 %v19086_v10  ;;  %v16230_v19 = vsub.f32 %v6294_v20, %v16192_v50  ;;  %v16232_v48 = vand.u32 4294901760, %v6290_v16  ;;  %v6270_v21 = vadd.f32 %v6262_v59, %v6254_v62  ;;  %v19088_v10 = vand.u32 4294901760, %v15906_v55  ;;  %v7457_v20 = vpop.f32.mrf.mxu0  ;;  %v19092_v62 = vld [vmem:[#allocation102_spill] sm:$0xff] }
 0x7c6   :  { %8639 = vmatpush.msra.mxu3 %v16028_v4  ;;  %8725 = vmatpush.msrb.mxu1 %v15824_v9  ;;  %v8807_v9 = vsub.f32 %v16154_v18, %v17582_v23  ;;  %v6250_v23 = vmul.f32 %v15282_v39, %v15365_v2  ;;  %v6226_v51 = vmul.f32 %v16196_v7, %v15355_v6  ;;  %v16252_v39 = vand.u32 4294901760, %v6272_v5 }
 0x7c7   :  { %8599 = vmatpush.msra.mxu2 %v16047_v34  ;;  %8670 = vmatpush.msrb.mxu0 %v19087_v61  ;;  %v8802_v61 = vand.u32 4294901760, %v8801_v17  ;;  %v8813_v55 = vsub.f32 %v16174_v15, %v17586_v57  ;;  %v16250_v17 = vsub.f32 %v6292_v28, %v16212_v60  ;;  %v6240_v6 = vmul.f32 %v16214_v45, %v15288_v14  ;;  %v19091_v57 = vld [vmem:[#allocation83_spill] sm:$0xff] }
 0x7c8   :  { %8641 = vmatpush.msra.mxu3 %v16040_v38  ;;  %8727 = vmatpush.msrb.mxu1 %v15838_v58  ;;  %v6258_v58 = vmul.f32 %v15441_v52, %v18990_v12  ;;  %v19090_v52 = vand.u32 4294901760, %v15928_v63  ;;  %v8808_v59 = vand.u32 4294901760, %v8807_v9  ;;  %v19093_v28 = vand.u32 4294901760, %v16190_v26 }
 0x7c9   :  { %8602 = vmatpush.msra.mxu2 %v16059_v46  ;;  %8674 = vmatpush.msrb.mxu0 %v19088_v10  ;;  %v6268_v10 = vadd.f32 %v6260_v36, %v6252_v35  ;;  %v16269_v9 = vand.u32 4294901760, %v6270_v21  ;;  %v7458_v35 = vadd.f32 %v7457_v20, %v7389_v53  ;;  %v19094_v36 = vand.u32 4294901760, %v15945_v27  ;;  %v19096_v27 = vld [vmem:[#allocation56_spill] sm:$0xff] }
 0x7ca   :  { %8643 = vmatpush.msra.mxu3 %v16049_v30  ;;  %8729 = vmatpush.msrb.mxu1 %v19089_v41  ;;  %v6230_v41 = vmul.f32 %v16196_v7, %v15291_v33  ;;  %v8819_v15 = vsub.f32 %v16190_v26, %v19093_v28  ;;  %v8814_v28 = vand.u32 4294901760, %v8813_v55  ;;  %v16282_v20 = vsub.f32 %v6272_v5, %v16252_v39 }
 0x7cb   :  { %8605 = vmatpush.msra.mxu2 %v16069_v13  ;;  %8678 = vmatpush.msrb.mxu0 %v19090_v52  ;;  %v7494_v52 = vpop.f32.mrf.mxu1  ;;  %v6236_v55 = vmul.f32 %v16214_v45, %v15345_v25  ;;  %v19098_v5 = vand.u32 4294901760, %v16230_v19  ;;  %v16299_v53 = vsub.f32 %v6270_v21, %v16269_v9  ;;  %v19101_v21 = vand.u32 4294901760, %v16250_v17 }
 0x7cc   :  { %8803 = vmatpush.msrb.mxu3 %v8802_v61  ;;  %8608 = vmatmul.f32.vlgmr.msra.gmra.mxu2 %v19091_v57  ;;  %v16267_v61 = vsub.f32 %v6290_v16, %v16232_v48  ;;  %v6266_v57 = vadd.f32 %v6258_v58, %v6250_v23  ;;  %v19095_v16 = vand.u32 4294901760, %v16210_v31  ;;  %v16286_v23 = vand.u32 4294901760, %v6268_v10 }
 0x7cd   :  { %8731 = vmatpush.msrb.mxu1 %v19092_v62  ;;  %8758 = vmatpush.msrb.mxu2 %v16119_v0  ;;  %v6238_v62 = vmul.f32 %v16214_v45, %v15306_v44  ;;  %v6248_v58 = vsub.f32 %v6230_v41, %v6240_v6  ;;  %v7495_v6 = vadd.f32 %v7494_v52, %v7458_v35  ;;  %v19099_v41 = vld [vmem:[#allocation110_spill] sm:$0xff] }
 0x7ce   :  { %8682 = vmatpush.msrb.mxu0 %v19094_v36  ;;  %8809 = vmatpush.msrb.mxu3 %v8808_v59  ;;  %v8825_v63 = vsub.f32 %v16210_v31, %v19095_v16  ;;  %v19097_v59 = vand.u32 4294901760, %v15967_v1  ;;  %v8820_v36 = vand.u32 4294901760, %v8819_v15  ;;  %v8831_v16 = vsub.f32 %v16230_v19, %v19098_v5 }
 0x7cf   :  { %8733 = vmatpush.msrb.mxu1 %v15895_v22  ;;  %8647 = vmatmul.f32.vlgmr.msra.gmra.mxu3 %v19096_v27  ;;  %v6228_v22 = vmul.f32 %v16196_v7, %v15313_v49  ;;  %v16303_v25 = vand.u32 4294901760, %v6266_v57  ;;  %v6234_v15 = vmul.f32 %v16214_v45, %v15365_v2  ;;  %v8837_v35 = vsub.f32 %v16250_v17, %v19101_v21 }
 0x7d0   :  { %8760 = vmatpush.msrb.mxu2 %v16129_v47  ;;  %8686 = vmatpush.msrb.mxu0 %v19097_v59  ;;  %v19100_v59 = vand.u32 4294901760, %v15982_v43  ;;  %v8826_v5 = vand.u32 4294901760, %v8825_v63  ;;  %v6244_v27 = vsub.f32 %v6226_v51, %v6236_v55  ;;  %v6224_v43 = vmul.f32 %v16196_v7, %v18990_v12 }
 0x7d1   :  { %8815 = vmatpush.msrb.mxu3 %v8814_v28  ;;  %8735 = vmatpush.msrb.mxu1 %v19099_v41  ;;  %v6246_v1 = vsub.f32 %v6228_v22, %v6238_v62  ;;  %v7535_v28 = vpop.f32.mrf.mxu2  ;;  %v19102_v41 = vld [vmem:[#allocation112_spill] sm:$0xff]  ;;  %v16316_v62 = vsub.f32 %v6268_v10, %v16286_v23  ;;  %v16318_v22 = vand.u32 4294901760, %v6248_v58  ;;  %v19103_v63 = vand.u32 4294901760, %v16009_v8 }
 0x7d2   :  { %8762 = vmatpush.msrb.mxu2 %v16145_v32  ;;  %8690 = vmatpush.msrb.mxu0 %v19100_v59  ;;  %v19104_v59 = vand.u32 4294901760, %v16267_v61  ;;  %v7536_v52 = vadd.f32 %v7535_v28, %v7495_v6  ;;  %v19105_v10 = vld [vmem:[#allocation120_spill] sm:$0xff]  ;;  %v16331_v51 = vsub.f32 %v6266_v57, %v16303_v25  ;;  %v6242_v8 = vsub.f32 %v6224_v43, %v6234_v15 }
 0x7d3   :  { %8821 = vmatpush.msrb.mxu3 %v8820_v36  ;;  %8737 = vmatpush.msrb.mxu1 %v19102_v41  ;;  %v8832_v36 = vand.u32 4294901760, %v8831_v16  ;;  %v8854_v41 = vand.u32 4294901760, %v16299_v53  ;;  %v16333_v55 = vand.u32 4294901760, %v6246_v1  ;;  %v19106_v16 = vand.u32 4294901760, %v16022_v11 }
 0x7d4   :  { %8764 = vmatpush.msrb.mxu2 %v16159_v40  ;;  %8694 = vmatpush.msrb.mxu0 %v19103_v63  ;;  %v8843_v21 = vsub.f32 %v16267_v61, %v19104_v59  ;;  %v7636_v63 = vpop.f32.mrf.mxu3  ;;  %v19107_v59 = vand.u32 4294901760, %v16282_v20  ;;  %v8860_v57 = vand.u32 4294901760, %v16316_v62  ;;  %v16344_v28 = vsub.f32 %v6248_v58, %v16318_v22 }
 0x7d5   :  { %8827 = vmatpush.msrb.mxu3 %v8826_v5  ;;  %8739 = vmatpush.msrb.mxu1 %v19105_v10  ;;  %v8838_v5 = vand.u32 4294901760, %v8837_v35  ;;  %v16346_v15 = vand.u32 4294901760, %v6244_v27  ;;  %v19108_v11 = vand.u32 4294901760, %v16038_v54  ;;  %v8855_v43 = vsub.f32 %v16299_v53, %v8854_v41 }
 0x7d6   :  { %8766 = vmatpush.msrb.mxu2 %v16176_v3  ;;  %8698 = vmatpush.msrb.mxu0 %v19106_v16  ;;  %v8849_v6 = vsub.f32 %v16282_v20, %v19107_v59  ;;  %v8844_v35 = vand.u32 4294901760, %v8843_v21  ;;  %v8866_v58 = vand.u32 4294901760, %v16331_v51  ;;  %v16357_v10 = vsub.f32 %v6246_v1, %v16333_v55 }
 0x7d7   :  { %8833 = vmatpush.msrb.mxu3 %v8832_v36  ;;  %8741 = vmatpush.msrb.mxu1 %v15979_v42  ;;  %v7690_v36 = vpop.f32.mrf.mxu0  ;;  %v7637_v42 = vadd.f32 %v7636_v63, %v7536_v52  ;;  %v16359_v16 = vand.u32 4294901760, %v6242_v8  ;;  %v19109_v54 = vand.u32 4294901760, %v16047_v34  ;;  %v8872_v63 = vand.u32 4294901760, %v16344_v28 }
 0x7d8   :  { %8768 = vmatpush.msrb.mxu2 %v16192_v50  ;;  %8702 = vmatpush.msrb.mxu0 %v19108_v11  ;;  %v8850_v21 = vand.u32 4294901760, %v8849_v6  ;;  %v16370_v1 = vsub.f32 %v6244_v27, %v16346_v15  ;;  %v8856_v34 = vand.u32 4294901760, %v8855_v43  ;;  %v7729_v59 = vpop.f32.mrf.mxu1  ;;  %v8878_v6 = vand.u32 4294901760, %v16357_v10 }
 0x7d9   :  { %8839 = vmatpush.msrb.mxu3 %v8838_v5  ;;  %8743 = vmatpush.msrb.mxu1 %v15995_v29  ;;  %v8861_v29 = vsub.f32 %v16316_v62, %v8860_v57  ;;  %v7691_v52 = vadd.f32 %v7690_v36, %v7637_v42  ;;  %v19110_v5 = vand.u32 4294901760, %v16059_v46  ;;  %v16381_v11 = vsub.f32 %v6242_v8, %v16359_v16  ;;  %v7798_v8 = vpop.f32.mrf.mxu2 }
 0x7da   :  { %8770 = vmatpush.msrb.mxu2 %v16212_v60  ;;  %8706 = vmatpush.msrb.mxu0 %v19109_v54  ;;  %v19111_v27 = vand.u32 4294901760, %v16069_v13  ;;  %v8884_v43 = vand.u32 4294901760, %v16370_v1 }
 0x7db   :  { %8845 = vmatpush.msrb.mxu3 %v8844_v35  ;;  %8745 = vmatpush.msrb.mxu1 %v16015_v56  ;;  %v8867_v56 = vsub.f32 %v16331_v51, %v8866_v58  ;;  %v7730_v46 = vadd.f32 %v7729_v59, %v7691_v52  ;;  %v8873_v35 = vsub.f32 %v16344_v28, %v8872_v63  ;;  %v8890_v36 = vand.u32 4294901760, %v16381_v11 }
 0x7dc   :  { %8772 = vmatpush.msrb.mxu2 %v16232_v48  ;;  %8710 = vmatpush.msrb.mxu0 %v19110_v5 }
 0x7dd   :  { %8851 = vmatpush.msrb.mxu3 %v8850_v21  ;;  %8747 = vmatpush.msrb.mxu1 %v16028_v4  ;;  %v8862_v4 = vand.u32 4294901760, %v8861_v29  ;;  %v8868_v13 = vand.u32 4294901760, %v8867_v56  ;;  %v8874_v42 = vand.u32 4294901760, %v8873_v35  ;;  %v7799_v54 = vadd.f32 %v7798_v8, %v7730_v46  ;;  %v7835_v21 = vpop.f32.mrf.mxu3  ;;  %v19112_v29 = vld [vmem:[#allocation122_spill] sm:$0xff] }
 0x7de   :  { %8774 = vmatpush.msrb.mxu2 %v16252_v39  ;;  %8714 = vmatpush.msrb.mxu0 %v19111_v27  ;;  %v19113_v46 = vld [vmem:[#allocation178_spill] sm:$0xff] }
 0x7df   :  { %8857 = vmatpush.msrb.mxu3 %v8856_v34  ;;  %8716 = vmatmul.f32.vlgmr.msrb.gmra.mxu0 %v19082_v37  ;;  %v7836_v34 = vadd.f32 %v7835_v21, %v7799_v54  ;;  %v6400_v35 = vmul.f32 %v19113_v46, %v15288_v14  ;;  %v19115_v54 = vld [vmem:[#allocation92_spill] sm:$0xff]  ;;  %v19116_v21 = vand.u32 4294901760, %v16140_v24 }
 0x7e0   :  { %8749 = vmatpush.msrb.mxu1 %v16040_v38  ;;  %8776 = vmatpush.msrb.mxu2 %v16269_v9  ;;  %v8879_v38 = vsub.f32 %v16357_v10, %v8878_v6 }
 0x7e1   :  { %8901 = vmatpush.msra.mxu0 %v16140_v24  ;;  %8863 = vmatpush.msrb.mxu3 %v8862_v4 }
 0x7e2   :  { %8751 = vmatpush.msrb.mxu1 %v16049_v30  ;;  %8778 = vmatpush.msrb.mxu2 %v16286_v23  ;;  %v8885_v30 = vsub.f32 %v16370_v1, %v8884_v43  ;;  %v8880_v52 = vand.u32 4294901760, %v8879_v38  ;;  %v19114_v38 = vld [vmem:[#allocation119_spill] sm:$0xff] }
 0x7e3   :  { %8904 = vmatpush.msra.mxu0 %v16154_v18  ;;  %8753 = vmatmul.f32.vlgmr.msrb.gmra.mxu1 %v19082_v37  ;;  %v8891_v37 = vsub.f32 %v16381_v11, %v8890_v36 }
 0x7e4   :  { %8869 = vmatpush.msrb.mxu3 %v8868_v13  ;;  %8954 = vmatpush.msra.mxu1 %v16119_v0  ;;  %v8886_v59 = vand.u32 4294901760, %v8885_v30  ;;  %v6398_v13 = vmul.f32 %v19113_v46, %v15306_v44  ;;  %v6408_v30 = vmul.f32 %v19115_v54, %v15291_v33 }
 0x7e5   :  { %8780 = vmatpush.msrb.mxu2 %v16303_v25  ;;  %8907 = vmatpush.msra.mxu0 %v19112_v29  ;;  %v7868_v5 = vpop.f32.mrf.mxu0  ;;  %v8892_v56 = vand.u32 4294901760, %v8891_v37 }
 0x7e6   :  { %8875 = vmatpush.msrb.mxu3 %v8874_v42  ;;  %8956 = vmatpush.msra.mxu1 %v16129_v47  ;;  %v7869_v27 = vadd.f32 %v7868_v5, %v7836_v34  ;;  %v6416_v5 = vadd.f32 %v6408_v30, %v6400_v35  ;;  %v19118_v34 = vld [vmem:[#allocation35_spill] sm:$0xff]  ;;  %v19121_v35 = vand.u32 4294901760, %v19112_v29  ;;  %v19123_v30 = vld [vmem:[#allocation234_spill] sm:$0xff]  ;;  %v19125_v29 = vand.u32 4294901760, %v16190_v26 }
 0x7e7   :  { %8782 = vmatpush.msrb.mxu2 %v16318_v22  ;;  %8910 = vmatpush.msra.mxu0 %v16190_v26  ;;  %v19127_v26 = vand.u32 4294901760, %v16210_v31 }
 0x7e8   :  { %8881 = vmatpush.msrb.mxu3 %v8880_v52  ;;  %8958 = vmatpush.msra.mxu1 %v16145_v32  ;;  %v19117_v52 = vld [vmem:[#allocation155_spill] sm:$0xff] }
 0x7e9   :  { %8784 = vmatpush.msrb.mxu2 %v16333_v55  ;;  %8913 = vmatpush.msra.mxu0 %v16210_v31  ;;  %v6396_v37 = vmul.f32 %v19113_v46, %v19117_v52 }
 0x7ea   :  { %8887 = vmatpush.msrb.mxu3 %v8886_v59  ;;  %8960 = vmatpush.msra.mxu1 %v16159_v40  ;;  %v7929_v4 = vpop.f32.mrf.mxu1  ;;  %v7967_v42 = vpop.f32.mrf.mxu2  ;;  %v19119_v59 = vand.u32 4294901760, %v16154_v18 }
 0x7eb   :  { %8786 = vmatpush.msrb.mxu2 %v16346_v15  ;;  %8916 = vmatpush.msra.mxu0 %v16230_v19  ;;  %v7930_v8 = vadd.f32 %v7929_v4, %v7869_v27  ;;  %v19120_v27 = vld [vmem:[#allocation76_spill] sm:$0xff] }
 0x7ec   :  { %8893 = vmatpush.msrb.mxu3 %v8892_v56  ;;  %8962 = vmatpush.msra.mxu1 %v16176_v3  ;;  %v6404_v4 = vmul.f32 %v19115_v54, %v19120_v27 }
 0x7ed   :  { %8788 = vmatpush.msrb.mxu2 %v16359_v16  ;;  %8919 = vmatpush.msra.mxu0 %v16250_v17  ;;  %v7968_v24 = vadd.f32 %v7967_v42, %v7930_v8  ;;  %v16454_v8 = vand.u32 4294901760, %v6416_v5 }
 0x7ee   :  { %9062 = vmatpush.msra.mxu3 %v16119_v0  ;;  %8794 = vmatmul.f32.vlgmr.msrb.gmra.mxu2 %v19114_v38  ;;  %v6406_v0 = vmul.f32 %v19115_v54, %v15313_v49  ;;  %v7998_v38 = vpop.f32.mrf.mxu3  ;;  %v6412_v18 = vadd.f32 %v6404_v4, %v6396_v37 }
 0x7ef   :  { %8964 = vmatpush.msra.mxu1 %v16192_v50  ;;  %8995 = vmatpush.msra.mxu2 %v19116_v21 }
 0x7f0   :  { %8922 = vmatpush.msra.mxu0 %v16267_v61  ;;  %9064 = vmatpush.msra.mxu3 %v16129_v47  ;;  %v6414_v56 = vadd.f32 %v6406_v0, %v6398_v13  ;;  %v6394_v47 = vmul.f32 %v19113_v46, %v15365_v2  ;;  %v6402_v13 = vmul.f32 %v19115_v54, %v18990_v12  ;;  %v19124_v46 = vld [vmem:[#allocation219_spill] sm:$0xff] }
 0x7f1   :  { %8966 = vmatpush.msra.mxu1 %v16212_v60  ;;  %8895 = vmatmul.f32.vlgmr.msrb.gmra.mxu3 %v19118_v34  ;;  %v1748_v21 = vadd.f32 %v19124_v46, %v19123_v30  ;;  %v7999_v0 = vadd.f32 %v7998_v38, %v7968_v24  ;;  %v16476_v38 = vand.u32 4294901760, %v6412_v18  ;;  %v19128_v46 = vld [vmem:[#allocation6_spill] sm:$0xff] }
 0x7f2   :  { %8999 = vmatpush.msra.mxu2 %v19119_v59  ;;  %8925 = vmatpush.msra.mxu0 %v16282_v20  ;;  %v16465_v37 = vand.u32 4294901760, %v6414_v56  ;;  %v6410_v54 = vadd.f32 %v6402_v13, %v6394_v47  ;;  %v19126_v59 = vld [vmem:[#allocation180_spill] sm:$0xff] }
 0x7f3   :  { %9066 = vmatpush.msra.mxu3 %v16145_v32  ;;  %8968 = vmatpush.msra.mxu1 %v16232_v48  ;;  %v19122_v32 = vld [vmem:[#allocation97_spill] sm:$0xff]  ;;  %v6384_v4 = vmul.f32 %v19126_v59, %v15291_v33  ;;  %v6382_v30 = vmul.f32 %v19126_v59, %v15313_v49  ;;  %v1975_v31 = vadd.f32 %v19128_v46, %v1748_v21  ;;  %v19133_v46 = vld [vmem:[#allocation107_spill] sm:$0xff] }
 0x7f4   :  { %9003 = vmatpush.msra.mxu2 %v19121_v35  ;;  %8928 = vmatpush.msra.mxu0 %v16299_v53  ;;  %v6376_v42 = vmul.f32 %v19122_v32, %v15288_v14  ;;  %v6374_v35 = vmul.f32 %v19122_v32, %v15306_v44  ;;  %v6372_v13 = vmul.f32 %v19122_v32, %v19117_v52 }
 0x7f5   :  { %9068 = vmatpush.msra.mxu3 %v16159_v40  ;;  %8970 = vmatpush.msra.mxu1 %v16252_v39  ;;  %v6370_v21 = vmul.f32 %v19122_v32, %v15365_v2  ;;  %v6356_v53 = vmul.f32 %v19133_v46, %v19120_v27 }
 0x7f6   :  { %9007 = vmatpush.msra.mxu2 %v19125_v29  ;;  %8931 = vmatpush.msra.mxu0 %v16316_v62  ;;  %v6392_v47 = vadd.f32 %v6384_v4, %v6376_v42  ;;  %v19129_v29 = vand.u32 4294901760, %v16230_v19  ;;  %v6390_v42 = vadd.f32 %v6382_v30, %v6374_v35  ;;  %v19130_v19 = vand.u32 4294901760, %v16250_v17  ;;  %v19131_v30 = vld [vmem:[#allocation117_spill] sm:$0xff] }
 0x7f7   :  { %9070 = vmatpush.msra.mxu3 %v16176_v3  ;;  %v8043_v40 = vpop.f32.mrf.mxu0  ;;  %8972 = vmatpush.msra.mxu1 %v16269_v9  ;;  %v16483_v3 = vsub.f32 %v6416_v5, %v16454_v8  ;;  %v16496_v5 = vand.u32 4294901760, %v6410_v54  ;;  %v16506_v4 = vsub.f32 %v6412_v18, %v16476_v38  ;;  %v6352_v17 = vmul.f32 %v19131_v30, %v15288_v14 }
 0x7f8   :  { %9011 = vmatpush.msra.mxu2 %v19127_v26  ;;  %v8044_v24 = vadd.f32 %v8043_v40, %v7999_v0  ;;  %8934 = vmatpush.msra.mxu0 %v16331_v51  ;;  %v16492_v0 = vsub.f32 %v6414_v56, %v16465_v37  ;;  %v6380_v40 = vmul.f32 %v19126_v59, %v19120_v27  ;;  %v16513_v26 = vand.u32 4294901760, %v6392_v47 }
 0x7f9   :  { %9072 = vmatpush.msra.mxu3 %v16192_v50  ;;  %8974 = vmatpush.msra.mxu1 %v16286_v23  ;;  %v9141_v35 = vand.u32 4294901760, %v16483_v3  ;;  %v19132_v18 = vand.u32 4294901760, %v16267_v61  ;;  %v6350_v61 = vmul.f32 %v19131_v30, %v15306_v44  ;;  %v6354_v62 = vmul.f32 %v19133_v46, %v18990_v12 }
 0x7fa   :  { %9015 = vmatpush.msra.mxu2 %v19129_v29  ;;  %8937 = vmatpush.msra.mxu0 %v16344_v28  ;;  %v8072_v50 = vpop.f32.mrf.mxu1  ;;  %v6388_v32 = vadd.f32 %v6380_v40, %v6372_v13  ;;  %v6360_v29 = vmul.f32 %v19133_v46, %v15291_v33  ;;  %v16528_v13 = vand.u32 4294901760, %v6390_v42  ;;  %v19135_v40 = vld [vmem:[#allocation60_spill] sm:$0xff] }
 0x7fb   :  { %9074 = vmatpush.msra.mxu3 %v16212_v60  ;;  %8976 = vmatpush.msra.mxu1 %v16303_v25  ;;  %v8073_v56 = vadd.f32 %v8072_v50, %v8044_v24  ;;  %v6378_v60 = vmul.f32 %v19126_v59, %v18990_v12  ;;  %v9147_v59 = vand.u32 4294901760, %v16492_v0 }
 0x7fc   :  { %9019 = vmatpush.msra.mxu2 %v19130_v19  ;;  %8940 = vmatpush.msra.mxu0 %v16357_v10 }
 0x7fd   :  { %9076 = vmatpush.msra.mxu3 %v16232_v48  ;;  %8978 = vmatpush.msra.mxu1 %v16318_v22  ;;  %v9676_v24 = vmul.f32 %v8073_v56, %v1975_v31  ;;  %v16526_v48 = vsub.f32 %v6410_v54, %v16496_v5  ;;  %v6386_v50 = vadd.f32 %v6378_v60, %v6370_v21  ;;  %v19134_v31 = vand.u32 4294901760, %v16282_v20 }
 0x7fe   :  { %9023 = vmatpush.msra.mxu2 %v19132_v18  ;;  %8943 = vmatpush.msra.mxu0 %v16370_v1  ;;  %v17591_v56 = vand.u32 4294901760, %v16506_v4  ;;  %v9142_v54 = vsub.f32 %v16483_v3, %v9141_v35  ;;  %v16545_v21 = vsub.f32 %v6392_v47, %v16513_v26  ;;  %v16547_v20 = vand.u32 4294901760, %v6388_v32  ;;  %v19136_v18 = vld [vmem:[#allocation45_spill] sm:$0xff] }
 0x7ff   :  { %9078 = vmatpush.msra.mxu3 %v16252_v39  ;;  %8980 = vmatpush.msra.mxu1 %v16333_v55  ;;  %v9678_v19 = vadd.f32 %v9676_v24, %v19135_v40  ;;  %v6358_v39 = vmul.f32 %v19133_v46, %v15313_v49  ;;  %v6368_v60 = vadd.f32 %v6360_v29, %v6352_v17  ;;  %v9159_v47 = vand.u32 4294901760, %v16526_v48 }
 0x800   :  { %9027 = vmatpush.msra.mxu2 %v19134_v31  ;;  %8946 = vmatpush.msra.mxu0 %v16381_v11  ;;  %v6348_v24 = vmul.f32 %v19131_v30, %v19117_v52  ;;  %v16564_v17 = vsub.f32 %v6390_v42, %v16528_v13  ;;  %v16566_v29 = vand.u32 4294901760, %v6386_v50  ;;  %v9154_v40 = vsub.f32 %v16506_v4, %v17591_v56 }
 0x801   :  { %9080 = vmatpush.msra.mxu3 %v16269_v9  ;;  %8949 = vmatmul.f32.vlgmr.msra.gmra.mxu0 %v19136_v18  ;;  %9680 = vst [vmem:[%s17003_s4] sm:$0xff] %v9678_v19  ;;  %v9148_v9 = vsub.f32 %v16492_v0, %v9147_v59  ;;  %v6366_v31 = vadd.f32 %v6358_v39, %v6350_v61  ;;  %v9143_v42 = vand.u32 4294901760, %v9142_v54  ;;  %v16584_v19 = vand.u32 4294901760, %v6368_v60  ;;  %v19137_v39 = vld [vmem:[#allocation127_spill] sm:$0xff] }
 0x802   :  { %8982 = vmatpush.msra.mxu1 %v16346_v15  ;;  %9031 = vmatpush.msra.mxu2 %v8854_v41  ;;  %v6346_v41 = vmul.f32 %v19131_v30, %v15365_v2  ;;  %v16582_v61 = vsub.f32 %v6388_v32, %v16547_v20  ;;  %v6364_v56 = vadd.f32 %v6356_v53, %v6348_v24  ;;  %v9171_v54 = vand.u32 4294901760, %v16564_v17  ;;  %v19139_v24 = vld [vmem:[#allocation63_spill] sm:$0xff] }
 0x803   :  { %9099 = vmatpush.msrb.mxu0 %v16454_v8  ;;  %9082 = vmatpush.msra.mxu3 %v16286_v23  ;;  %v9165_v23 = vand.u32 4294901760, %v16545_v21  ;;  %v9149_v18 = vand.u32 4294901760, %v9148_v9  ;;  %v9160_v32 = vsub.f32 %v16526_v48, %v9159_v47  ;;  %v16601_v9 = vand.u32 4294901760, %v6366_v31 }
 0x804   :  { %8984 = vmatpush.msra.mxu1 %v16359_v16  ;;  %9035 = vmatpush.msra.mxu2 %v8860_v57  ;;  %v19138_v57 = vld [vmem:[#allocation71_spill] sm:$0xff]  ;;  %v6362_v46 = vadd.f32 %v6354_v62, %v6346_v41  ;;  %v6336_v51 = vmul.f32 %v19139_v24, %v15291_v33  ;;  %v9155_v53 = vand.u32 4294901760, %v9154_v40  ;;  %v16620_v41 = vand.u32 4294901760, %v6364_v56 }
 0x805   :  { %9101 = vmatpush.msrb.mxu0 %v16465_v37  ;;  %8988 = vmatmul.f32.vlgmr.msra.gmra.mxu1 %v19137_v39  ;;  %v6328_v30 = vmul.f32 %v19138_v57, %v15288_v14  ;;  %v6334_v28 = vmul.f32 %v19139_v24, %v15313_v49  ;;  %v9161_v40 = vand.u32 4294901760, %v9160_v32  ;;  %v6332_v10 = vmul.f32 %v19139_v24, %v19120_v27 }
 0x806   :  { %9084 = vmatpush.msra.mxu3 %v16303_v25  ;;  %9144 = vmatpush.msrb.mxu1 %v9143_v42  ;;  %v16599_v25 = vsub.f32 %v6386_v50, %v16566_v29  ;;  %v9166_v50 = vsub.f32 %v16545_v21, %v9165_v23  ;;  %v9177_v42 = vand.u32 4294901760, %v16582_v61  ;;  %v16637_v62 = vand.u32 4294901760, %v6362_v46 }
 0x807   :  { %9039 = vmatpush.msra.mxu2 %v8866_v58  ;;  %9103 = vmatpush.msrb.mxu0 %v16476_v38  ;;  %v6326_v58 = vmul.f32 %v19138_v57, %v15306_v44  ;;  %v6344_v39 = vadd.f32 %v6336_v51, %v6328_v30  ;;  %v16652_v51 = vsub.f32 %v6364_v56, %v16620_v41 }
 0x808   :  { %9086 = vmatpush.msra.mxu3 %v16318_v22  ;;  %9150 = vmatpush.msrb.mxu1 %v9149_v18  ;;  %v16616_v22 = vsub.f32 %v6368_v60, %v16584_v19  ;;  %v9172_v60 = vsub.f32 %v16564_v17, %v9171_v54  ;;  %v16633_v18 = vsub.f32 %v6366_v31, %v16601_v9  ;;  %v9167_v32 = vand.u32 4294901760, %v9166_v50 }
 0x809   :  { %9043 = vmatpush.msra.mxu2 %v8872_v63  ;;  %9105 = vmatpush.msrb.mxu0 %v16496_v5  ;;  %v6324_v63 = vmul.f32 %v19138_v57, %v19117_v52  ;;  %v6342_v30 = vadd.f32 %v6334_v28, %v6326_v58  ;;  %v9178_v31 = vsub.f32 %v16582_v61, %v9177_v42  ;;  %v16654_v58 = vand.u32 4294901760, %v6344_v39 }
 0x80a   :  { %9088 = vmatpush.msra.mxu3 %v16333_v55  ;;  %9156 = vmatpush.msrb.mxu1 %v9155_v53  ;;  %v17600_v55 = vand.u32 4294901760, %v16599_v25  ;;  %v6330_v1 = vmul.f32 %v19139_v24, %v18990_v12  ;;  %v17596_v53 = vand.u32 4294901760, %v16633_v18  ;;  %v16667_v56 = vsub.f32 %v6362_v46, %v16637_v62 }
 0x80b   :  { %9047 = vmatpush.msra.mxu2 %v8878_v6  ;;  %9107 = vmatpush.msrb.mxu0 %v16513_v26  ;;  %v6322_v6 = vmul.f32 %v19138_v57, %v15365_v2  ;;  %v6340_v57 = vadd.f32 %v6332_v10, %v6324_v63  ;;  %v16669_v50 = vand.u32 4294901760, %v6342_v30  ;;  %v9179_v11 = vand.u32 4294901760, %v9178_v31 }
 0x80c   :  { %9090 = vmatpush.msra.mxu3 %v16346_v15  ;;  %9162 = vmatpush.msrb.mxu1 %v9161_v40  ;;  %v17599_v15 = vand.u32 4294901760, %v16616_v22  ;;  %v17594_v28 = vand.u32 4294901760, %v16652_v51  ;;  %v16679_v46 = vsub.f32 %v6344_v39, %v16654_v58  ;;  %v9196_v40 = vsub.f32 %v16633_v18, %v17596_v53 }
 0x80d   :  { %9051 = vmatpush.msra.mxu2 %v8884_v43  ;;  %9109 = vmatpush.msrb.mxu0 %v16528_v13  ;;  %v9173_v43 = vand.u32 4294901760, %v9172_v60  ;;  %v6338_v24 = vadd.f32 %v6330_v1, %v6322_v6  ;;  %v16681_v63 = vand.u32 4294901760, %v6340_v57  ;;  %v17593_v10 = vand.u32 4294901760, %v16667_v56 }
 0x80e   :  { %9092 = vmatpush.msra.mxu3 %v16359_v16  ;;  %9168 = vmatpush.msrb.mxu1 %v9167_v32  ;;  %v9184_v16 = vsub.f32 %v16599_v25, %v17600_v55  ;;  %v16691_v6 = vsub.f32 %v6342_v30, %v16669_v50  ;;  %v17592_v31 = vand.u32 4294901760, %v16679_v46  ;;  %v9197_v30 = vand.u32 4294901760, %v9196_v40  ;;  %v19141_v55 = vld [vmem:[#allocation173_spill] sm:$0xff] }
 0x80f   :  { %9055 = vmatpush.msra.mxu2 %v8890_v36  ;;  %9111 = vmatpush.msrb.mxu0 %v16547_v20  ;;  %v9190_v36 = vsub.f32 %v16616_v22, %v17599_v15  ;;  %v16693_v39 = vand.u32 4294901760, %v6338_v24  ;;  %v16703_v1 = vsub.f32 %v6340_v57, %v16681_v63  ;;  %v6448_v57 = vmul.f32 %v16196_v7, %v15288_v14 }
 0x810   :  { %9295 = vmatpush.msrb.mxu3 %v16454_v8  ;;  %9057 = vmatmul.f32.vlgmr.msra.gmra.mxu2 %v19118_v34  ;;  %v9185_v60 = vand.u32 4294901760, %v9184_v16  ;;  %v17595_v16 = vand.u32 4294901760, %v16691_v6  ;;  %v9214_v40 = vsub.f32 %v16679_v46, %v17592_v31  ;;  %v6442_v53 = vmul.f32 %v16196_v7, %v15365_v2 }
 0x811   :  { %9174 = vmatpush.msrb.mxu1 %v9173_v43  ;;  %9242 = vmatpush.msrb.mxu2 %v16483_v3  ;;  %v9191_v32 = vand.u32 4294901760, %v9190_v36  ;;  %v9208_v43 = vsub.f32 %v16667_v56, %v17593_v10 }
 0x812   :  { %9113 = vmatpush.msrb.mxu0 %v16566_v29  ;;  %9297 = vmatpush.msrb.mxu3 %v16465_v37 }
 0x813   :  { %9180 = vmatpush.msrb.mxu1 %v9179_v11  ;;  %9094 = vmatmul.f32.vlgmr.msra.gmra.mxu3 %v19118_v34  ;;  %v9202_v34 = vsub.f32 %v16652_v51, %v17594_v28  ;;  %v16713_v11 = vsub.f32 %v6338_v24, %v16693_v39  ;;  %v6456_v24 = vmul.f32 %v16214_v45, %v15291_v33 }
 0x814   :  { %9245 = vmatpush.msrb.mxu2 %v16492_v0  ;;  %9115 = vmatpush.msrb.mxu0 %v16584_v19  ;;  %v6454_v28 = vmul.f32 %v16214_v45, %v15313_v49 }
 0x815   :  { %9299 = vmatpush.msrb.mxu3 %v16476_v38  ;;  %9186 = vmatpush.msrb.mxu1 %v9185_v60  ;;  %v9203_v36 = vand.u32 4294901760, %v9202_v34  ;;  %v17597_v60 = vand.u32 4294901760, %v16703_v1  ;;  %v9209_v34 = vand.u32 4294901760, %v9208_v43  ;;  %v17598_v31 = vand.u32 4294901760, %v16713_v11 }
 0x816   :  { %9248 = vmatpush.msrb.mxu2 %v16506_v4  ;;  %9117 = vmatpush.msrb.mxu0 %v16601_v9  ;;  %v6464_v10 = vadd.f32 %v6456_v24, %v6448_v57  ;;  %v9215_v43 = vand.u32 4294901760, %v9214_v40  ;;  %v6452_v24 = vmul.f32 %v16214_v45, %v19120_v27 }
 0x817   :  { %9301 = vmatpush.msrb.mxu3 %v16496_v5  ;;  %9192 = vmatpush.msrb.mxu1 %v9191_v32  ;;  %v6446_v32 = vmul.f32 %v16196_v7, %v15306_v44  ;;  %v9232_v40 = vsub.f32 %v16713_v11, %v17598_v31 }
 0x818   :  { %9251 = vmatpush.msrb.mxu2 %v16526_v48  ;;  %9119 = vmatpush.msrb.mxu0 %v16620_v41 }
 0x819   :  { %9303 = vmatpush.msrb.mxu3 %v16513_v26  ;;  %9198 = vmatpush.msrb.mxu1 %v9197_v30  ;;  %v9220_v30 = vsub.f32 %v16691_v6, %v17595_v16  ;;  %v9226_v16 = vsub.f32 %v16703_v1, %v17597_v60  ;;  %v6462_v57 = vadd.f32 %v6454_v28, %v6446_v32  ;;  %v16755_v60 = vand.u32 4294901760, %v6464_v10 }
 0x81a   :  { %9254 = vmatpush.msrb.mxu2 %v16545_v21  ;;  %9121 = vmatpush.msrb.mxu0 %v16637_v62  ;;  %v6450_v32 = vmul.f32 %v16214_v45, %v18990_v12 }
 0x81b   :  { %9305 = vmatpush.msrb.mxu3 %v16528_v13  ;;  %9204 = vmatpush.msrb.mxu1 %v9203_v36  ;;  %v6444_v36 = vmul.f32 %v16196_v7, %v19117_v52  ;;  %v19140_v7 = vld [vmem:[#allocation91_spill] sm:$0xff]  ;;  %v16766_v31 = vand.u32 4294901760, %v6462_v57 }
 0x81c   :  { %9257 = vmatpush.msrb.mxu2 %v16564_v17  ;;  %9123 = vmatpush.msrb.mxu0 %v16654_v58  ;;  %v6458_v15 = vadd.f32 %v6450_v32, %v6442_v53  ;;  %v6422_v45 = vmul.f32 %v19140_v7, %v15306_v44  ;;  %v6420_v44 = vmul.f32 %v19140_v7, %v19117_v52  ;;  %v19145_v17 = vld [vmem:[#allocation43_spill] sm:$0xff] }
 0x81d   :  { %9307 = vmatpush.msrb.mxu3 %v16547_v20  ;;  %9210 = vmatpush.msrb.mxu1 %v9209_v34  ;;  %v9221_v34 = vand.u32 4294901760, %v9220_v30  ;;  %v6460_v28 = vadd.f32 %v6452_v24, %v6444_v36  ;;  %v9227_v30 = vand.u32 4294901760, %v9226_v16  ;;  %v6432_v36 = vmul.f32 %v19141_v55, %v15291_v33  ;;  %v19142_v24 = vld [vmem:[#allocation237_spill] sm:$0xff] }
 0x81e   :  { %9260 = vmatpush.msrb.mxu2 %v16582_v61  ;;  %9125 = vmatpush.msrb.mxu0 %v16669_v50  ;;  %v6430_v33 = vmul.f32 %v19141_v55, %v15313_v49  ;;  %v16792_v3 = vsub.f32 %v6462_v57, %v16766_v31  ;;  %v6418_v52 = vmul.f32 %v19140_v7, %v15365_v2  ;;  %v19144_v2 = vand.u32 4294901760, %v16506_v4 }
 0x81f   :  { %9309 = vmatpush.msrb.mxu3 %v16566_v29  ;;  %9216 = vmatpush.msrb.mxu1 %v9215_v43  ;;  %v6424_v43 = vmul.f32 %v19140_v7, %v15288_v14  ;;  %v9233_v14 = vand.u32 4294901760, %v9232_v40  ;;  %v16779_v16 = vand.u32 4294901760, %v6460_v28  ;;  %v19143_v40 = vld [vmem:[#allocation121_spill] sm:$0xff]  ;;  %v6426_v32 = vmul.f32 %v19141_v55, %v18990_v12 }
 0x820   :  { %9263 = vmatpush.msrb.mxu2 %v16599_v25  ;;  %9127 = vmatpush.msrb.mxu0 %v16681_v63  ;;  %v6438_v49 = vadd.f32 %v6430_v33, %v6422_v45  ;;  %v19146_v61 = vand.u32 4294901760, %v16599_v25 }
 0x821   :  { %9311 = vmatpush.msrb.mxu3 %v16584_v19  ;;  %9222 = vmatpush.msrb.mxu1 %v9221_v34  ;;  %v16774_v34 = vsub.f32 %v6464_v10, %v16755_v60  ;;  %v6440_v53 = vadd.f32 %v6432_v36, %v6424_v43  ;;  %v6428_v10 = vmul.f32 %v19141_v55, %v19120_v27 }
 0x822   :  { %9266 = vmatpush.msrb.mxu2 %v16616_v22  ;;  %9129 = vmatpush.msrb.mxu0 %v16693_v39  ;;  %v16804_v0 = vsub.f32 %v6460_v28, %v16779_v16  ;;  %v16819_v7 = vand.u32 4294901760, %v6438_v49  ;;  %v6434_v43 = vadd.f32 %v6426_v32, %v6418_v52  ;;  %v19151_v52 = vand.u32 4294901760, %v16667_v56 }
 0x823   :  { %9313 = vmatpush.msrb.mxu3 %v16601_v9  ;;  %9135 = vmatmul.f32.vlgmr.msrb.gmra.mxu0 %v19142_v24  ;;  %v9482_v27 = vand.u32 4294901760, %v16774_v34  ;;  %v6436_v57 = vadd.f32 %v6428_v10, %v6420_v44  ;;  %v19149_v44 = vand.u32 4294901760, %v16633_v18 }
 0x824   :  { %9228 = vmatpush.msrb.mxu1 %v9227_v30  ;;  %9269 = vmatpush.msrb.mxu2 %v16633_v18 }
 0x825   :  { %9336 = vmatpush.msra.mxu0 %v9141_v35  ;;  %9315 = vmatpush.msrb.mxu3 %v16620_v41  ;;  %v16794_v35 = vand.u32 4294901760, %v6458_v15  ;;  %v9483_v12 = vsub.f32 %v16774_v34, %v9482_v27  ;;  %v16833_v55 = vand.u32 4294901760, %v6436_v57 }
 0x826   :  { %9234 = vmatpush.msrb.mxu1 %v9233_v14  ;;  %9272 = vmatpush.msrb.mxu2 %v16652_v51  ;;  %v19147_v14 = vld [vmem:[#allocation48_spill] sm:$0xff] }
 0x827   :  { %9340 = vmatpush.msra.mxu0 %v9147_v59  ;;  %9236 = vmatmul.f32.vlgmr.msrb.gmra.mxu1 %v19143_v40  ;;  %v16806_v59 = vand.u32 4294901760, %v6440_v53  ;;  %v16817_v28 = vsub.f32 %v6458_v15, %v16794_v35  ;;  %v16847_v15 = vand.u32 4294901760, %v6434_v43  ;;  %v9484_v21 = vand.u32 4294901760, %v9483_v12 }
 0x828   :  { %9317 = vmatpush.msrb.mxu3 %v16637_v62  ;;  %9403 = vmatpush.msra.mxu1 %v16454_v8  ;;  %v9488_v8 = vand.u32 4294901760, %v16792_v3  ;;  %v16859_v30 = vsub.f32 %v6436_v57, %v16833_v55 }
 0x829   :  { %9275 = vmatpush.msrb.mxu2 %v16667_v56  ;;  %9344 = vmatpush.msra.mxu0 %v19144_v2  ;;  %v16831_v4 = vsub.f32 %v6440_v53, %v16806_v59  ;;  %v9500_v48 = vand.u32 4294901760, %v16817_v28  ;;  %v16870_v45 = vsub.f32 %v6434_v43, %v16847_v15  ;;  %v19148_v53 = vand.u32 4294901760, %v16616_v22  ;;  %v19156_v56 = vld [vmem:[#allocation168_spill] sm:$0xff] }
 0x82a   :  { %9319 = vmatpush.msrb.mxu3 %v16654_v58  ;;  %9405 = vmatpush.msra.mxu1 %v16465_v37  ;;  %v9494_v37 = vand.u32 4294901760, %v16804_v0  ;;  %v9518_v24 = vand.u32 4294901760, %v16859_v30 }
 0x82b   :  { %9278 = vmatpush.msrb.mxu2 %v16679_v46  ;;  %9348 = vmatpush.msra.mxu0 %v9159_v47  ;;  %v16845_v47 = vsub.f32 %v6438_v49, %v16819_v7  ;;  %v9524_v33 = vand.u32 4294901760, %v16870_v45  ;;  %v19150_v49 = vand.u32 4294901760, %v16652_v51  ;;  %v19152_v51 = vand.u32 4294901760, %v16679_v46  ;;  %v19159_v46 = vld [vmem:[#allocation167_spill] sm:$0xff] }
 0x82c   :  { %9321 = vmatpush.msrb.mxu3 %v16669_v50  ;;  %9407 = vmatpush.msra.mxu1 %v16476_v38  ;;  %v9489_v38 = vsub.f32 %v16792_v3, %v9488_v8  ;;  %v9519_v22 = vsub.f32 %v16859_v30, %v9518_v24 }
 0x82d   :  { %9281 = vmatpush.msrb.mxu2 %v16691_v6  ;;  %9352 = vmatpush.msra.mxu0 %v9165_v23  ;;  %v9506_v23 = vand.u32 4294901760, %v16831_v4  ;;  %v9512_v36 = vand.u32 4294901760, %v16845_v47  ;;  %v9525_v18 = vsub.f32 %v16870_v45, %v9524_v33 }
 0x82e   :  { %9323 = vmatpush.msrb.mxu3 %v16681_v63  ;;  %9409 = vmatpush.msra.mxu1 %v16496_v5  ;;  %v9495_v5 = vsub.f32 %v16804_v0, %v9494_v37 }
 0x82f   :  { %9284 = vmatpush.msrb.mxu2 %v16703_v1  ;;  %9356 = vmatpush.msra.mxu0 %v9171_v54  ;;  %v9501_v54 = vsub.f32 %v16817_v28, %v9500_v48  ;;  %v9526_v57 = vand.u32 4294901760, %v9525_v18 }
 0x830   :  { %9325 = vmatpush.msrb.mxu3 %v16693_v39  ;;  %9411 = vmatpush.msra.mxu1 %v16513_v26  ;;  %v9490_v26 = vand.u32 4294901760, %v9489_v38 }
 0x831   :  { %9287 = vmatpush.msrb.mxu2 %v16713_v11  ;;  %9360 = vmatpush.msra.mxu0 %v9177_v42  ;;  %v9496_v42 = vand.u32 4294901760, %v9495_v5  ;;  %v9502_v25 = vand.u32 4294901760, %v9501_v54 }
 0x832   :  { %9485 = vmatpush.msra.mxu3 %v9484_v21  ;;  %9290 = vmatmul.f32.vlgmr.msrb.gmra.mxu2 %v19145_v17 }
 0x833   :  { %9413 = vmatpush.msra.mxu1 %v16528_v13  ;;  %9448 = vmatpush.msra.mxu2 %v16755_v60  ;;  %v9507_v13 = vsub.f32 %v16831_v4, %v9506_v23 }
 0x834   :  { %9364 = vmatpush.msra.mxu0 %v19146_v61  ;;  %9491 = vmatpush.msra.mxu3 %v9490_v26 }
 0x835   :  { %9415 = vmatpush.msra.mxu1 %v16547_v20  ;;  %9329 = vmatmul.f32.vlgmr.msrb.gmra.mxu3 %v19147_v14  ;;  %v9513_v20 = vsub.f32 %v16845_v47, %v9512_v36  ;;  %v9508_v10 = vand.u32 4294901760, %v9507_v13 }
 0x836   :  { %9450 = vmatpush.msra.mxu2 %v16766_v31  ;;  %9368 = vmatpush.msra.mxu0 %v19148_v53 }
 0x837   :  { %9497 = vmatpush.msra.mxu3 %v9496_v42  ;;  %9417 = vmatpush.msra.mxu1 %v16566_v29  ;;  %v9514_v29 = vand.u32 4294901760, %v9513_v20 }
 0x838   :  { %9452 = vmatpush.msra.mxu2 %v16779_v16  ;;  %9372 = vmatpush.msra.mxu0 %v19149_v44  ;;  %v19161_v44 = vld [vmem:[#allocation208_spill] sm:$0xff] }
 0x839   :  { %9503 = vmatpush.msra.mxu3 %v9502_v25  ;;  %9419 = vmatpush.msra.mxu1 %v16584_v19  ;;  %v9520_v19 = vand.u32 4294901760, %v9519_v22  ;;  %v19162_v22 = vld [vmem:[#allocation2_spill] sm:$0xff] }
 0x83a   :  { %9454 = vmatpush.msra.mxu2 %v16794_v35  ;;  %9376 = vmatpush.msra.mxu0 %v19150_v49  ;;  %v19163_v49 = vld [vmem:[#allocation215_spill] sm:$0xff] }
 0x83b   :  { %9509 = vmatpush.msra.mxu3 %v9508_v10  ;;  %9421 = vmatpush.msra.mxu1 %v16601_v9  ;;  %v19153_v9 = vand.u32 4294901760, %v16691_v6  ;;  %v8113_v6 = vpop.f32.mrf.mxu2 }
 0x83c   :  { %9456 = vmatpush.msra.mxu2 %v16806_v59  ;;  %9380 = vmatpush.msra.mxu0 %v19151_v52  ;;  %v19164_v52 = vld [vmem:[#allocation162_spill] sm:$0xff] }
 0x83d   :  { %9515 = vmatpush.msra.mxu3 %v9514_v29  ;;  %9423 = vmatpush.msra.mxu1 %v16620_v41  ;;  %v19154_v41 = vand.u32 4294901760, %v16703_v1  ;;  %v2641_v29 = vadd.f32 %v19163_v49, %v19162_v22 }
 0x83e   :  { %9458 = vmatpush.msra.mxu2 %v16819_v7  ;;  %9384 = vmatpush.msra.mxu0 %v19152_v51 }
 0x83f   :  { %9521 = vmatpush.msra.mxu3 %v9520_v19  ;;  %9425 = vmatpush.msra.mxu1 %v16637_v62  ;;  %v19155_v62 = vand.u32 4294901760, %v16713_v11  ;;  %v8307_v11 = vpop.f32.mrf.mxu1  ;;  %v19165_v19 = vld [vmem:[#allocation108_spill] sm:$0xff] }
 0x840   :  { %9460 = vmatpush.msra.mxu2 %v16833_v55  ;;  %9388 = vmatpush.msra.mxu0 %v19153_v9  ;;  %v2633_v51 = vadd.f32 %v19165_v19, %v19164_v52 }
 0x841   :  { %9527 = vmatpush.msra.mxu3 %v9526_v57  ;;  %9427 = vmatpush.msra.mxu1 %v16654_v58  ;;  %v19157_v58 = vld [vmem:[#allocation81_spill] sm:$0xff]  ;;  %v19166_v57 = vld [vmem:[#allocation84_spill] sm:$0xff] }
 0x842   :  { %9462 = vmatpush.msra.mxu2 %v16847_v15  ;;  %9392 = vmatpush.msra.mxu0 %v19154_v41  ;;  %v19167_v41 = vld [vmem:[#allocation94_spill] sm:$0xff] }
 0x843   :  { %9656 = vmatpush.msrb.mxu3 %v16755_v60  ;;  %9429 = vmatpush.msra.mxu1 %v16669_v50  ;;  %v19158_v50 = vld [vmem:[#allocation172_spill] sm:$0xff] }
 0x844   :  { %9613 = vmatpush.msrb.mxu2 %v9482_v27  ;;  %9396 = vmatpush.msra.mxu0 %v19155_v62  ;;  %v2921_v62 = vadd.f32 %v19167_v41, %v2641_v29 }
 0x845   :  { %9658 = vmatpush.msrb.mxu3 %v16766_v31  ;;  %9468 = vmatmul.f32.vlgmr.msra.gmra.mxu2 %v19156_v56 }
 0x846   :  { %9398 = vmatmul.f32.vlgmr.msra.gmra.mxu0 %v19143_v40  ;;  %9617 = vmatpush.msrb.mxu2 %v9488_v8 }
 0x847   :  { %9431 = vmatpush.msra.mxu1 %v16681_v63  ;;  %9543 = vmatpush.msrb.mxu0 %v16774_v34  ;;  %v8214_v63 = vpop.f32.mrf.mxu3  ;;  %v8376_v34 = vpop.f32.mrf.mxu2 }
 0x848   :  { %9660 = vmatpush.msrb.mxu3 %v16779_v16  ;;  %9621 = vmatpush.msrb.mxu2 %v9494_v37 }
 0x849   :  { %9529 = vmatmul.f32.vlgmr.msra.gmra.mxu3 %v19157_v58  ;;  %9433 = vmatpush.msra.mxu1 %v16693_v39  ;;  %v8215_v39 = vadd.f32 %v8214_v63, %v8113_v6  ;;  %v19170_v63 = vld [vmem:[#allocation72_spill] sm:$0xff] }
 0x84a   :  { %9546 = vmatpush.msrb.mxu0 %v16792_v3  ;;  %9662 = vmatpush.msrb.mxu3 %v16794_v35  ;;  %v2911_v6 = vadd.f32 %v19170_v63, %v2633_v51 }
 0x84b   :  { %9435 = vmatmul.f32.vlgmr.msra.gmra.mxu1 %v19143_v40  ;;  %9625 = vmatpush.msrb.mxu2 %v9500_v48 }
 0x84c   :  { %9580 = vmatpush.msrb.mxu1 %v16755_v60  ;;  %9549 = vmatpush.msrb.mxu0 %v16804_v0  ;;  %v8555_v0 = vpop.f32.mrf.mxu1 }
 0x84d   :  { %9664 = vmatpush.msrb.mxu3 %v16806_v59  ;;  %9629 = vmatpush.msrb.mxu2 %v9506_v23 }
 0x84e   :  { %9582 = vmatpush.msrb.mxu1 %v16766_v31  ;;  %9552 = vmatpush.msrb.mxu0 %v16817_v28  ;;  %v8268_v31 = vpop.f32.mrf.mxu0 }
 0x84f   :  { %9666 = vmatpush.msrb.mxu3 %v16819_v7  ;;  %9633 = vmatpush.msrb.mxu2 %v9512_v36  ;;  %v8269_v1 = vadd.f32 %v8268_v31, %v8215_v39  ;;  %v8413_v3 = vpop.f32.mrf.mxu3  ;;  %v19171_v31 = vld [vmem:[#allocation87_spill] sm:$0xff] }
 0x850   :  { %9584 = vmatpush.msrb.mxu1 %v16779_v16  ;;  %9555 = vmatpush.msrb.mxu0 %v16831_v4 }
 0x851   :  { %9668 = vmatpush.msrb.mxu3 %v16833_v55  ;;  %9637 = vmatpush.msrb.mxu2 %v9518_v24  ;;  %v8308_v60 = vadd.f32 %v8307_v11, %v8269_v1  ;;  %v19172_v11 = vld [vmem:[#allocation105_spill] sm:$0xff] }
 0x852   :  { %9586 = vmatpush.msrb.mxu1 %v16794_v35  ;;  %9558 = vmatpush.msrb.mxu0 %v16845_v47 }
 0x853   :  { %9670 = vmatpush.msrb.mxu3 %v16847_v15  ;;  %9641 = vmatpush.msrb.mxu2 %v9524_v33  ;;  %v8377_v16 = vadd.f32 %v8376_v34, %v8308_v60  ;;  %v19160_v33 = vld [vmem:[#allocation205_spill] sm:$0xff]  ;;  %v3251_v60 = vadd.f32 %v19172_v11, %v2921_v62  ;;  %v19173_v34 = vld [vmem:[#allocation104_spill] sm:$0xff] }
 0x854   :  { %9588 = vmatpush.msrb.mxu1 %v16806_v59  ;;  %9561 = vmatpush.msrb.mxu0 %v16859_v30  ;;  %v8609_v59 = vpop.f32.mrf.mxu2  ;;  %v2637_v10 = vadd.f32 %v19161_v44, %v19160_v33 }
 0x855   :  { %9643 = vmatmul.f32.vlgmr.msrb.gmra.mxu2 %v19157_v58  ;;  %9672 = vmatmul.f32.vlgmr.msrb.gmra.mxu3 %v19157_v58  ;;  %v8414_v35 = vadd.f32 %v8413_v3, %v8377_v16  ;;  %v19168_v58 = vld [vmem:[#allocation3_spill] sm:$0xff] }
 0x856   :  { %9590 = vmatpush.msrb.mxu1 %v16819_v7  ;;  %9564 = vmatpush.msrb.mxu0 %v16870_v45  ;;  %v8454_v40 = vpop.f32.mrf.mxu0  ;;  %v2916_v9 = vadd.f32 %v19166_v57, %v2637_v10 }
 0x857   :  { %9567 = vmatmul.f32.vlgmr.msrb.gmra.mxu0 %v19158_v50  ;;  %v8455_v27 = vadd.f32 %v8454_v40, %v8414_v35  ;;  %v8648_v8 = vpop.f32.mrf.mxu3  ;;  %v19169_v50 = vld [vmem:[#allocation4_spill] sm:$0xff]  ;;  %v19174_v35 = vld [vmem:[#allocation90_spill] sm:$0xff] }
 0x858   :  { %9592 = vmatpush.msrb.mxu1 %v16833_v55  ;;  %v3245_v1 = vadd.f32 %v19171_v31, %v2916_v9  ;;  %v3239_v40 = vadd.f32 %v19174_v35, %v2911_v6 }
 0x859   :  { %v8556_v32 = vadd.f32 %v8555_v0, %v8455_v27  ;;  %v19175_v0 = vld [vmem:[#allocation89_spill] sm:$0xff] }
 0x85a   :  { %9594 = vmatpush.msrb.mxu1 %v16847_v15 }
 0x85b   :  { %9598 = vmatmul.f32.vlgmr.msrb.gmra.mxu1 %v19159_v46  ;;  %v8610_v2 = vadd.f32 %v8609_v59, %v8556_v32  ;;  %v2645_v46 = vadd.f32 %v19169_v50, %v19168_v58  ;;  %v3480_v59 = vadd.f32 %v19175_v0, %v3245_v1  ;;  %v19176_v32 = vld [vmem:[#allocation99_spill] sm:$0xff] }
 0x85d   :  { %v8649_v7 = vadd.f32 %v8648_v8, %v8610_v2  ;;  %v2926_v16 = vadd.f32 %v19173_v34, %v2645_v46  ;;  %v3484_v2 = vadd.f32 %v19176_v32, %v3251_v60  ;;  %v19177_v8 = vld [vmem:[#allocation115_spill] sm:$0xff] }
 0x85e   :  { %v8717_v28 = vpop.f32.mrf.mxu0 }
 0x85f   :  { %v8718_v43 = vadd.f32 %v8717_v28, %v8649_v7  ;;  %v3257_v28 = vadd.f32 %v19177_v8, %v2926_v16 }
 0x860   :  { %v8754_v12 = vpop.f32.mrf.mxu1 }
 0x861   :  { %v8755_v4 = vadd.f32 %v8754_v12, %v8718_v43  ;;  %v19178_v12 = vld [vmem:[#allocation79_spill] sm:$0xff] }
 0x871   :  { %v8795_v37 = vpop.f32.mrf.mxu2 }
 0x872   :  { %v8796_v55 = vadd.f32 %v8795_v37, %v8755_v4  ;;  %v3476_v37 = vadd.f32 %v19178_v12, %v3239_v40 }
 0x874   :  { %v8896_v38 = vpop.f32.mrf.mxu3 }
 0x875   :  { %v8897_v47 = vadd.f32 %v8896_v38, %v8796_v55  ;;  %v19179_v38 = vld [vmem:[#allocation95_spill] sm:$0xff] }
 0x87e   :  { %v8950_v48 = vpop.f32.mrf.mxu0 }
 0x87f   :  { %v8951_v15 = vadd.f32 %v8950_v48, %v8897_v47  ;;  %v3707_v48 = vadd.f32 %v19179_v38, %v3480_v59  ;;  %v19180_v47 = vld [vmem:[#allocation96_spill] sm:$0xff] }
 0x882   :  { %v8989_v21 = vpop.f32.mrf.mxu1 }
 0x883   :  { %v8990_v23 = vadd.f32 %v8989_v21, %v8951_v15  ;;  %v3711_v15 = vadd.f32 %v19180_v47, %v3484_v2  ;;  %v19181_v21 = vld [vmem:[#allocation109_spill] sm:$0xff] }
 0x893   :  { %v9058_v5 = vpop.f32.mrf.mxu2 }
 0x894   :  { %v9059_v30 = vadd.f32 %v9058_v5, %v8990_v23  ;;  %v3488_v5 = vadd.f32 %v19181_v21, %v3257_v28 }
 0x896   :  { %v9095_v17 = vpop.f32.mrf.mxu3 }
 0x897   :  { %v9096_v54 = vadd.f32 %v9095_v17, %v9059_v30  ;;  %v19182_v17 = vld [vmem:[#allocation74_spill] sm:$0xff] }
 0x8a0   :  { %v9136_v26 = vpop.f32.mrf.mxu0 }
 0x8a1   :  { %v9137_v36 = vadd.f32 %v9136_v26, %v9096_v54  ;;  %v3703_v26 = vadd.f32 %v19182_v17, %v3476_v37  ;;  %v19183_v54 = vld [vmem:[#allocation170_spill] sm:$0xff] }
 0x8a4   :  { %v9237_v45 = vpop.f32.mrf.mxu1 }
 0x8a5   :  { %v9238_v42 = vadd.f32 %v9237_v45, %v9137_v36  ;;  %v5994_v36 = vmul.f32 %v19183_v54, %v3711_v15 }
 0x8b5   :  { %v9291_v61 = vpop.f32.mrf.mxu2 }
 0x8b6   :  { %v9292_v13 = vadd.f32 %v9291_v61, %v9238_v42  ;;  %v3718_v61 = vmul.f32 %v3707_v48, %v3703_v26  ;;  %v19184_v42 = vld [vmem:[#allocation106_spill] sm:$0xff] }
 0x8b8   :  { %v9330_v24 = vpop.f32.mrf.mxu3 }
 0x8b9   :  { %v9331_v53 = vadd.f32 %v9330_v24, %v9292_v13  ;;  %v3715_v13 = vadd.f32 %v19184_v42, %v3488_v5 }
 0x8c3   :  { %v9399_v14 = vpop.f32.mrf.mxu0 }
 0x8c4   :  { %v9400_v25 = vadd.f32 %v9399_v14, %v9331_v53  ;;  %v5996_v14 = vadd.f32 %v5994_v36, %v3718_v61 }
 0x8c8   :  { %v9436_v20 = vpop.f32.mrf.mxu1  ;;  %v9469_v56 = vpop.f32.mrf.mxu2 }
 0x8c9   :  { %v9437_v18 = vadd.f32 %v9436_v20, %v9400_v25 }
 0x8cb   :  { %v9470_v39 = vadd.f32 %v9469_v56, %v9437_v18 }
 0x8cc   :  { %v9530_v3 = vpop.f32.mrf.mxu3 }
 0x8cd   :  { %v9531_v27 = vadd.f32 %v9530_v3, %v9470_v39 }
 0x8d4   :  { %v9568_v7 = vpop.f32.mrf.mxu0 }
 0x8d5   :  { %v9569_v43 = vadd.f32 %v9568_v7, %v9531_v27 }
 0x8d8   :  { %v9599_v4 = vpop.f32.mrf.mxu1  ;;  %v9644_v55 = vpop.f32.mrf.mxu2 }
 0x8d9   :  { %v9600_v23 = vadd.f32 %v9599_v4, %v9569_v43  ;;  %v9673_v30 = vpop.f32.mrf.mxu3 }
 0x8db   :  { %v9645_v45 = vadd.f32 %v9644_v55, %v9600_v23 }
 0x8dd   :  { %v9674_v24 = vadd.f32 %v9673_v30, %v9645_v45 }
 0x8df   :  { %v9677_v53 = vmul.f32 %v9674_v24, %v3715_v13 }
 0x8e1   :  { %v9679_v25 = vadd.f32 %v9677_v53, %v5996_v14 }
 0x8e3   :  { %9681 = vst [vmem:[%s17003_s4 + $0x8] sm:$0xff] %v9679_v25 }

</bundles_post_ra>
